<compile_context>
chip_gen: v6e
topology: v6e:2x2x1
jax: 0.10.0
libtpu: 0.0.40
codegen_flags: <defaults>
</compile_context>

<pallas_src>
import functools

import jax
import jax.numpy as jnp
from jax.experimental import pallas as pl
from jax.experimental.pallas import tpu as pltpu

INPUT_DIM = 6
OUTPUT_DIM = 1
HIDDEN_SIZE = 400          # nn.Linear default in DQN.__init__

IN_PAD = 8                 # input features padded 6 -> 8 (aligned rows)
HID_PAD = 512              # hidden padded 400 -> 512 (4 full 128-lane tiles)


def dqn_kernel(x_ref, w1_ref, b1_ref, w2_ref, b2_ref, o_ref, *, use_mxu):
    """One batch tile, batch-on-lanes layout.

    x_ref  : (IN_PAD,  tb)      input features, batch along lanes
    w1_ref : (HID_PAD, IN_PAD)  fc1 weight (PyTorch layout, zero-padded)
    b1_ref : (HID_PAD, 1)       fc1 bias (zero-padded)
    w2_ref : (HID_PAD, 1)       fc2 weight (padded rows are exactly 0)
    b2_ref : (1, 1)             fc2 bias
    o_ref  : (1, tb)            lane-dense output row
    """
    x = x_ref[...]                                        # (IN_PAD, tb)

    if use_mxu:
        # Large tiles: fc1 on the (otherwise idle) MXU slot, K = IN_PAD = 8.
        acc = jnp.dot(w1_ref[...], x,
                      preferred_element_type=jnp.float32) + b1_ref[...]
    else:
        # Small tiles: 8 broadcast multiply-adds on the VPU (exact f32).
        w1 = w1_ref[...]
        acc = b1_ref[...] + w1[:, 0:1] * x[0:1, :]        # (HID_PAD, tb)
        for k in range(1, IN_PAD):                        # static unroll (8)
            acc = acc + w1[:, k:k + 1] * x[k:k + 1, :]

    # sigmoid(t) = 0.5 * tanh(t/2) + 0.5  -- tanh goes to the EUP slot.
    h = 0.5 * jnp.tanh(0.5 * acc) + 0.5                   # (HID_PAD, tb)

    # fc2 (out_dim == 1): elementwise scale + cross-sublane (XLU) reduction.
    # Result is already lane-dense (1, tb); padded hidden rows contribute 0.
    o = jnp.sum(h * w2_ref[...], axis=0, keepdims=True) + b2_ref[...]
    o_ref[...] = o.astype(o_ref.dtype)


def prepare_params(w1, b1, w2, b2):
    """One-time (load-time) repack from PyTorch nn.Linear layout
    (w1: (hidden, in), b1: (hidden,), w2: (out, hidden), b2: (out,)) into the
    kernel layout, zero-padding hidden -> HID_PAD and in -> IN_PAD.
    NOT part of the per-call hot path."""
    hid, ind = w1.shape
    w1_p = jnp.zeros((HID_PAD, IN_PAD), jnp.float32).at[:hid, :ind].set(w1)
    b1_p = jnp.zeros((HID_PAD, 1), jnp.float32).at[:hid, 0].set(b1)
    # Padded fc2 rows MUST be exactly 0 (sigmoid(0)=0.5 would otherwise leak).
    w2_p = jnp.zeros((HID_PAD, 1), jnp.float32).at[:hid, 0].set(w2[0])
    b2_p = b2.reshape(1, 1).astype(jnp.float32)
    return w1_p, b1_p, w2_p, b2_p


def dqn_forward(x, w1_p, b1_p, w2_p, b2_p, *, tile_b=512):
    """x: (B, input_dim) f32; params in kernel layout (see prepare_params).
    tile_b must be a multiple of 128; 512 is a good default (1024 amortizes
    per-step overhead better on v5e)."""
    B, in_dim = x.shape
    assert in_dim <= IN_PAD

    # Tiny per-call layout plumbing (fused by XLA): pad features to IN_PAD and
    # put the batch on the lane axis so the kernel output is lane-dense.
    xT = x.T                                              # (in_dim, B)
    if in_dim < IN_PAD:
        xT = jnp.pad(xT, ((0, IN_PAD - in_dim), (0, 0)))  # zeros: exact no-op

    tile_b = max(128, (tile_b // 128) * 128)              # keep lane-aligned
    tb = B if B <= tile_b else tile_b                     # full block if small
    grid_b = pl.cdiv(B, tb)                               # >=2 splits v7x TCs
    use_mxu = tb >= 256                                   # MXU fc1 at large tiles

    resident = lambda shape: pl.BlockSpec(shape, lambda i: (0,) * len(shape))

    out_row = pl.pallas_call(
        functools.partial(dqn_kernel, use_mxu=use_mxu),
        out_shape=jax.ShapeDtypeStruct((1, B), x.dtype),
        grid=(grid_b,),
        in_specs=[
            pl.BlockSpec((IN_PAD, tb), lambda i: (0, i)),  # x: batch-tiled (lanes)
            resident((HID_PAD, IN_PAD)),                   # w1 resident
            resident((HID_PAD, 1)),                        # b1 resident
            resident((HID_PAD, 1)),                        # w2 resident
            resident((1, 1)),                              # b2 resident
        ],
        out_specs=pl.BlockSpec((1, tb), lambda i: (0, i)), # lane-dense output
        compiler_params=pltpu.CompilerParams(
            # Independent batch axis -> shards across TCs on v7x (no-op v5e/v6e).
            dimension_semantics=("parallel",),
        ),
    )(xT, w1_p, b1_p, w2_p, b2_p)

    return out_row.reshape(B, OUTPUT_DIM)


def init_params(key):
    """Deterministic init mimicking PyTorch nn.Linear defaults
    (uniform +-1/sqrt(fan_in)), in PyTorch parameter layout."""
    k1, k2, k3, k4 = jax.random.split(key, 4)
    bound1 = 1.0 / jnp.sqrt(INPUT_DIM)
    bound2 = 1.0 / jnp.sqrt(HIDDEN_SIZE)
    w1 = jax.random.uniform(k1, (HIDDEN_SIZE, INPUT_DIM), jnp.float32, -bound1, bound1)
    b1 = jax.random.uniform(k2, (HIDDEN_SIZE,), jnp.float32, -bound1, bound1)
    w2 = jax.random.uniform(k3, (OUTPUT_DIM, HIDDEN_SIZE), jnp.float32, -bound2, bound2)
    b2 = jax.random.uniform(k4, (OUTPUT_DIM,), jnp.float32, -bound2, bound2)
    return w1, b1, w2, b2


if __name__ == "__main__":
    key = jax.random.PRNGKey(0)
    kx, kp, kx2 = jax.random.split(key, 3)

    # PyTorch-layout params -> one-time repack (load-time, not per-call).
    w1, b1, w2, b2 = init_params(kp)
    params = prepare_params(w1, b1, w2, b2)

    def reference(xb):  # same math as the PyTorch module, plain JAX f32
        h = jax.nn.sigmoid(xb @ w1.T + b1)
        return h @ w2.T + b2

    # Small batch (demo size): exact f32 VPU path, single full-array block.
    B = 8
    x = jax.random.normal(kx, (B, INPUT_DIM), jnp.float32)
    y = jax.block_until_ready(dqn_forward(x, *params))
    assert y.shape == (B, OUTPUT_DIM)
    assert jnp.allclose(y, reference(x), atol=1e-5, rtol=1e-4)

    # Larger batch: exercises batch tiling (grid of 2 with a partial last
    # tile), the lane-dense output writeback and the MXU fc1 path.  Tolerance
    # is loose only to cover a possible reduced-precision MXU pass; exact f32
    # semantics are pinned by the B=8 check above.
    B2 = 1000
    x2 = jax.random.normal(kx2, (B2, INPUT_DIM), jnp.float32)
    y2 = jax.block_until_ready(dqn_forward(x2, *params))
    assert y2.shape == (B2, OUTPUT_DIM)
    assert jnp.allclose(y2, reference(x2), atol=5e-3)

    print("KERNEL_OK")
</pallas_src>

<mosaic_0001>
module attributes {stable_mosaic.version = 11 : i64} {
  func.func @dqn_kernel(%arg0: i32, %arg1: memref<8x8xf32, #tpu.memory_space<vmem>>, %arg2: memref<512x8xf32, #tpu.memory_space<vmem>>, %arg3: memref<512x1xf32, #tpu.memory_space<vmem>>, %arg4: memref<512x1xf32, #tpu.memory_space<vmem>>, %arg5: memref<1x1xf32, #tpu.memory_space<vmem>>, %arg6: memref<1x8xf32, #tpu.memory_space<vmem>>) attributes {dimension_semantics = [#tpu.dimension_semantics<parallel>], iteration_bounds = array<i64: 1>, scalar_prefetch = 0 : i64, scratch_operands = 0 : i64, tpu.core_type = #tpu.core_type<tc>, window_params = [{transform_indices = @transform_0, window_bounds = array<i64: 8, 8>}, {pipeline_mode = #tpu.pipeline_mode<synchronous>, transform_indices = @transform_1, window_bounds = array<i64: 512, 8>}, {pipeline_mode = #tpu.pipeline_mode<synchronous>, transform_indices = @transform_2, window_bounds = array<i64: 512, 1>}, {pipeline_mode = #tpu.pipeline_mode<synchronous>, transform_indices = @transform_3, window_bounds = array<i64: 512, 1>}, {pipeline_mode = #tpu.pipeline_mode<synchronous>, transform_indices = @transform_4, window_bounds = array<i64: 1, 1>}, {transform_indices = @transform_5, window_bounds = array<i64: 1, 8>}]} {
    %c0 = arith.constant 0 : index
    %c0_0 = arith.constant 0 : index
    %0 = vector.load %arg1[%c0, %c0_0] : memref<8x8xf32, #tpu.memory_space<vmem>>, vector<8x8xf32>
    %c0_1 = arith.constant 0 : index
    %c0_2 = arith.constant 0 : index
    %1 = vector.load %arg2[%c0_1, %c0_2] : memref<512x8xf32, #tpu.memory_space<vmem>>, vector<512x8xf32>
    %c0_3 = arith.constant 0 : index
    %c0_4 = arith.constant 0 : index
    %2 = vector.load %arg3[%c0_3, %c0_4] : memref<512x1xf32, #tpu.memory_space<vmem>>, vector<512x1xf32>
    %3 = vector.extract_strided_slice %1 {offsets = [0, 0], sizes = [512, 1], strides = [1, 1]} : vector<512x8xf32> to vector<512x1xf32>
    %4 = vector.extract_strided_slice %0 {offsets = [0, 0], sizes = [1, 8], strides = [1, 1]} : vector<8x8xf32> to vector<1x8xf32>
    %5 = vector.broadcast %3 : vector<512x1xf32> to vector<512x8xf32>
    %6 = vector.broadcast %4 : vector<1x8xf32> to vector<512x8xf32>
    %7 = arith.mulf %5, %6 : vector<512x8xf32>
    %8 = vector.broadcast %2 : vector<512x1xf32> to vector<512x8xf32>
    %9 = arith.addf %8, %7 : vector<512x8xf32>
    %10 = vector.extract_strided_slice %1 {offsets = [0, 1], sizes = [512, 1], strides = [1, 1]} : vector<512x8xf32> to vector<512x1xf32>
    %11 = vector.extract_strided_slice %0 {offsets = [1, 0], sizes = [1, 8], strides = [1, 1]} : vector<8x8xf32> to vector<1x8xf32>
    %12 = vector.broadcast %10 : vector<512x1xf32> to vector<512x8xf32>
    %13 = vector.broadcast %11 : vector<1x8xf32> to vector<512x8xf32>
    %14 = arith.mulf %12, %13 : vector<512x8xf32>
    %15 = arith.addf %9, %14 : vector<512x8xf32>
    %16 = vector.extract_strided_slice %1 {offsets = [0, 2], sizes = [512, 1], strides = [1, 1]} : vector<512x8xf32> to vector<512x1xf32>
    %17 = vector.extract_strided_slice %0 {offsets = [2, 0], sizes = [1, 8], strides = [1, 1]} : vector<8x8xf32> to vector<1x8xf32>
    %18 = vector.broadcast %16 : vector<512x1xf32> to vector<512x8xf32>
    %19 = vector.broadcast %17 : vector<1x8xf32> to vector<512x8xf32>
    %20 = arith.mulf %18, %19 : vector<512x8xf32>
    %21 = arith.addf %15, %20 : vector<512x8xf32>
    %22 = vector.extract_strided_slice %1 {offsets = [0, 3], sizes = [512, 1], strides = [1, 1]} : vector<512x8xf32> to vector<512x1xf32>
    %23 = vector.extract_strided_slice %0 {offsets = [3, 0], sizes = [1, 8], strides = [1, 1]} : vector<8x8xf32> to vector<1x8xf32>
    %24 = vector.broadcast %22 : vector<512x1xf32> to vector<512x8xf32>
    %25 = vector.broadcast %23 : vector<1x8xf32> to vector<512x8xf32>
    %26 = arith.mulf %24, %25 : vector<512x8xf32>
    %27 = arith.addf %21, %26 : vector<512x8xf32>
    %28 = vector.extract_strided_slice %1 {offsets = [0, 4], sizes = [512, 1], strides = [1, 1]} : vector<512x8xf32> to vector<512x1xf32>
    %29 = vector.extract_strided_slice %0 {offsets = [4, 0], sizes = [1, 8], strides = [1, 1]} : vector<8x8xf32> to vector<1x8xf32>
    %30 = vector.broadcast %28 : vector<512x1xf32> to vector<512x8xf32>
    %31 = vector.broadcast %29 : vector<1x8xf32> to vector<512x8xf32>
    %32 = arith.mulf %30, %31 : vector<512x8xf32>
    %33 = arith.addf %27, %32 : vector<512x8xf32>
    %34 = vector.extract_strided_slice %1 {offsets = [0, 5], sizes = [512, 1], strides = [1, 1]} : vector<512x8xf32> to vector<512x1xf32>
    %35 = vector.extract_strided_slice %0 {offsets = [5, 0], sizes = [1, 8], strides = [1, 1]} : vector<8x8xf32> to vector<1x8xf32>
    %36 = vector.broadcast %34 : vector<512x1xf32> to vector<512x8xf32>
    %37 = vector.broadcast %35 : vector<1x8xf32> to vector<512x8xf32>
    %38 = arith.mulf %36, %37 : vector<512x8xf32>
    %39 = arith.addf %33, %38 : vector<512x8xf32>
    %40 = vector.extract_strided_slice %1 {offsets = [0, 6], sizes = [512, 1], strides = [1, 1]} : vector<512x8xf32> to vector<512x1xf32>
    %41 = vector.extract_strided_slice %0 {offsets = [6, 0], sizes = [1, 8], strides = [1, 1]} : vector<8x8xf32> to vector<1x8xf32>
    %42 = vector.broadcast %40 : vector<512x1xf32> to vector<512x8xf32>
    %43 = vector.broadcast %41 : vector<1x8xf32> to vector<512x8xf32>
    %44 = arith.mulf %42, %43 : vector<512x8xf32>
    %45 = arith.addf %39, %44 : vector<512x8xf32>
    %46 = vector.extract_strided_slice %1 {offsets = [0, 7], sizes = [512, 1], strides = [1, 1]} : vector<512x8xf32> to vector<512x1xf32>
    %47 = vector.extract_strided_slice %0 {offsets = [7, 0], sizes = [1, 8], strides = [1, 1]} : vector<8x8xf32> to vector<1x8xf32>
    %48 = vector.broadcast %46 : vector<512x1xf32> to vector<512x8xf32>
    %49 = vector.broadcast %47 : vector<1x8xf32> to vector<512x8xf32>
    %50 = arith.mulf %48, %49 : vector<512x8xf32>
    %51 = arith.addf %45, %50 : vector<512x8xf32>
    %cst = arith.constant 5.000000e-01 : f32
    %52 = vector.broadcast %cst : f32 to vector<512x8xf32>
    %53 = arith.mulf %52, %51 : vector<512x8xf32>
    %54 = math.tanh %53 : vector<512x8xf32>
    %cst_5 = arith.constant 5.000000e-01 : f32
    %55 = vector.broadcast %cst_5 : f32 to vector<512x8xf32>
    %56 = arith.mulf %55, %54 : vector<512x8xf32>
    %cst_6 = arith.constant 5.000000e-01 : f32
    %57 = vector.broadcast %cst_6 : f32 to vector<512x8xf32>
    %58 = arith.addf %56, %57 : vector<512x8xf32>
    %c0_7 = arith.constant 0 : index
    %c0_8 = arith.constant 0 : index
    %59 = vector.load %arg4[%c0_7, %c0_8] : memref<512x1xf32, #tpu.memory_space<vmem>>, vector<512x1xf32>
    %60 = vector.broadcast %59 : vector<512x1xf32> to vector<512x8xf32>
    %61 = arith.mulf %58, %60 : vector<512x8xf32>
    %cst_9 = arith.constant dense<0.000000e+00> : vector<8xf32>
    %62 = vector.multi_reduction <add>, %61, %cst_9 [0] : vector<512x8xf32> to vector<8xf32>
    %63 = vector.shape_cast %62 : vector<8xf32> to vector<1x8xf32>
    %c0_10 = arith.constant 0 : index
    %c0_11 = arith.constant 0 : index
    %64 = vector.load %arg5[%c0_10, %c0_11] : memref<1x1xf32, #tpu.memory_space<vmem>>, vector<1x1xf32>
    %65 = vector.broadcast %64 : vector<1x1xf32> to vector<1x8xf32>
    %66 = arith.addf %63, %65 : vector<1x8xf32>
    %c0_12 = arith.constant 0 : index
    %c0_13 = arith.constant 0 : index
    %67 = vector.load %arg6[%c0_12, %c0_13] : memref<1x8xf32, #tpu.memory_space<vmem>>, vector<1x8xf32>
    tpu.vector_store %arg6[%c0_12, %c0_13], %66 {strides = array<i32>} : memref<1x8xf32, #tpu.memory_space<vmem>>, vector<1x8xf32>,
    return
  }
  func.func @transform_0(%arg0: i32) -> (i32, i32) {
    %c0_i32 = arith.constant 0 : i32
    %c0_i32_0 = arith.constant 0 : i32
    return %c0_i32, %arg0 : i32, i32
  }
  func.func @transform_1(%arg0: i32) -> (i32, i32) {
    %c0_i32 = arith.constant 0 : i32
    %c0_i32_0 = arith.constant 0 : i32
    %c0_i32_1 = arith.constant 0 : i32
    return %c0_i32, %c0_i32_0 : i32, i32
  }
  func.func @transform_2(%arg0: i32) -> (i32, i32) {
    %c0_i32 = arith.constant 0 : i32
    %c0_i32_0 = arith.constant 0 : i32
    %c0_i32_1 = arith.constant 0 : i32
    return %c0_i32, %c0_i32_0 : i32, i32
  }
  func.func @transform_3(%arg0: i32) -> (i32, i32) {
    %c0_i32 = arith.constant 0 : i32
    %c0_i32_0 = arith.constant 0 : i32
    %c0_i32_1 = arith.constant 0 : i32
    return %c0_i32, %c0_i32_0 : i32, i32
  }
  func.func @transform_4(%arg0: i32) -> (i32, i32) {
    %c0_i32 = arith.constant 0 : i32
    %c0_i32_0 = arith.constant 0 : i32
    %c0_i32_1 = arith.constant 0 : i32
    return %c0_i32, %c0_i32_0 : i32, i32
  }
  func.func @transform_5(%arg0: i32) -> (i32, i32) {
    %c0_i32 = arith.constant 0 : i32
    %c0_i32_0 = arith.constant 0 : i32
    return %c0_i32, %arg0 : i32, i32
  }
}

</mosaic_0001>

<bundles_post_ra>
// kernel: tpu_custom_call.1
= control target key start
LH: loop header
LB: loop body
LE: loop exit
PB: predicated region body
PF: predicated region fallthrough
CT: control target
= control target key end

     0   :  { %s10256_s0 = inlined_call_operand.vmem [shape: f32[8,8], index: 0, kind: input, shape index: {}]   ;;  %s10257_s1 = inlined_call_operand.vmem [shape: f32[512,8], index: 1, kind: input, shape index: {}]   ;;  %s10258_s2 = inlined_call_operand.vmem [shape: f32[512,1], index: 2, kind: input, shape index: {}]   ;;  %s10259_s3 = inlined_call_operand.vmem [shape: f32[512,1], index: 3, kind: input, shape index: {}]   ;;  %s10260_s4 = inlined_call_operand.<no memory space> [shape: f32[1,1], index: 4, kind: input, shape index: {}]   ;;  %s10261_s5 = inlined_call_operand.hbm [shape: f32[1,8], index: 5, kind: output, shape index: {}]  }
   0x1   :  { %v10_v0 = vstv %s10260_s4 }
   0x2   :  { %11 = vst [vmem:[#allocation2] sm:$0x1] %v10_v0 }
   0x3   :  { %v4820_v1 = vld [vmem:[%s10257_s1 + $0x10] sm:$0xff]  ;;  %v4825_v2 = vld [vmem:[%s10257_s1] sm:$0xff]  ;;  %v10265_v3 = vmov 1   ;;  %v10262_v4 = vmov 0   ;;  %v4834_v5 = vld [vmem:[%s10257_s1 + $0x18] sm:$0xff] }
   0x4   :  { %4515 = vset.pattern.permute.xlu0 %v10265_v3  ;;  %4514 = vset.pattern.permute.xlu1 %v10262_v4  ;;  %v4841_v6 = vld [vmem:[%s10257_s1 + $0x28] sm:$0xff]  ;;  %v4848_v7 = vld [vmem:[%s10257_s1 + $0x38] sm:$0xff] }
   0x5   :  { %164 = vperm.xlu1 %4514, %v4820_v1   ;;  %925 = vperm.xlu0 %4515, %v4825_v2  }
   0x9   :  { %169 = vperm.xlu1 %4514, %v4834_v5   ;;  %937 = vperm.xlu0 %4515, %v4834_v5  }
   0xd   :  { %179 = vperm.xlu1 %4514, %v4841_v6   ;;  %945 = vperm.xlu0 %4515, %v4841_v6  }
   0xe   :  { %12 = vsyncpa [#allocation4], 0  ;;  %v4855_v8 = vld [vmem:[%s10257_s1 + $0x48] sm:$0xff]  ;;  %v4862_v9 = vld [vmem:[%s10257_s1 + $0x58] sm:$0xff]  ;;  %v10264_v42 = vmov 2   ;;  %vm4344_vm0 = vcmask 64512  }
   0xf   :  { %v4869_v10 = vld [vmem:[%s10257_s1 + $0x68] sm:$0xff]  ;;  %v4876_v11 = vld [vmem:[%s10257_s1 + $0x78] sm:$0xff]  ;;  %v5072_v44 = vld [vmem:[%s10257_s1 + $0x20] sm:$0xff]  ;;  %vm4489_vm1 = vcmask 57344  }
  0x10   :  { %v4883_v12 = vld [vmem:[%s10257_s1 + $0x88] sm:$0xff]  ;;  %v4890_v13 = vld [vmem:[%s10257_s1 + $0x98] sm:$0xff]  ;;  %v5085_v48 = vld [vmem:[%s10257_s1 + $0x30] sm:$0xff] }
  0x11   :  { %189 = vperm.xlu1 %4514, %v4848_v7   ;;  %953 = vperm.xlu0 %4515, %v4848_v7   ;;  %v4897_v14 = vld [vmem:[%s10257_s1 + $0xa8] sm:$0xff]  ;;  %v4904_v15 = vld [vmem:[%s10257_s1 + $0xb8] sm:$0xff]  ;;  %v5098_v52 = vld [vmem:[%s10257_s1 + $0x40] sm:$0xff] }
  0x12   :  { %v4911_v16 = vld [vmem:[%s10257_s1 + $0xc8] sm:$0xff]  ;;  %v4918_v17 = vld [vmem:[%s10257_s1 + $0xd8] sm:$0xff]  ;;  %v5111_v56 = vld [vmem:[%s10257_s1 + $0x50] sm:$0xff] }
  0x13   :  { %v4925_v18 = vld [vmem:[%s10257_s1 + $0xe8] sm:$0xff]  ;;  %v4932_v19 = vld [vmem:[%s10257_s1 + $0xf8] sm:$0xff]  ;;  %v5124_v60 = vld [vmem:[%s10257_s1 + $0x60] sm:$0xff] }
  0x14   :  { %v4939_v20 = vld [vmem:[%s10257_s1 + $0x108] sm:$0xff]  ;;  %v4946_v21 = vld [vmem:[%s10257_s1 + $0x118] sm:$0xff]  ;;  %v5137_v0 = vld [vmem:[%s10257_s1 + $0x70] sm:$0xff] }
  0x15   :  { %199 = vperm.xlu1 %4514, %v4855_v8   ;;  %961 = vperm.xlu0 %4515, %v4855_v8   ;;  %v4953_v22 = vld [vmem:[%s10257_s1 + $0x128] sm:$0xff]  ;;  %v4960_v23 = vld [vmem:[%s10257_s1 + $0x138] sm:$0xff]  ;;  %v5163_v4 = vld [vmem:[%s10257_s1 + $0x90] sm:$0xff] }
  0x16   :  { %v4967_v24 = vld [vmem:[%s10257_s1 + $0x148] sm:$0xff]  ;;  %v4974_v25 = vld [vmem:[%s10257_s1 + $0x158] sm:$0xff] }
  0x17   :  { %v4981_v26 = vld [vmem:[%s10257_s1 + $0x168] sm:$0xff]  ;;  %v4988_v27 = vld [vmem:[%s10257_s1 + $0x178] sm:$0xff] }
  0x18   :  { %v4995_v28 = vld [vmem:[%s10257_s1 + $0x188] sm:$0xff]  ;;  %v5002_v29 = vld [vmem:[%s10257_s1 + $0x198] sm:$0xff] }
  0x19   :  { %209 = vperm.xlu1 %4514, %v4862_v9   ;;  %969 = vperm.xlu0 %4515, %v4862_v9   ;;  %10323 = vst [vmem:[#allocation6_spill] sm:$0xff] %v5002_v29  ;;  %v5009_v30 = vld [vmem:[%s10257_s1 + $0x1a8] sm:$0xff]  ;;  %v5016_v31 = vld [vmem:[%s10257_s1 + $0x1b8] sm:$0xff] }
  0x1a   :  { %10324 = vst [vmem:[#allocation7_spill] sm:$0xff] %v5009_v30  ;;  %10325 = vst [vmem:[#allocation8_spill] sm:$0xff] %v5016_v31  ;;  %v5023_v32 = vld [vmem:[%s10257_s1 + $0x1c8] sm:$0xff]  ;;  %v5030_v33 = vld [vmem:[%s10257_s1 + $0x1d8] sm:$0xff] }
  0x1b   :  { %10326 = vst [vmem:[#allocation9_spill] sm:$0xff] %v5023_v32  ;;  %10327 = vst [vmem:[#allocation10_spill] sm:$0xff] %v5030_v33  ;;  %v5037_v34 = vld [vmem:[%s10257_s1 + $0x1e8] sm:$0xff]  ;;  %v5044_v35 = vld [vmem:[%s10257_s1 + $0x1f8] sm:$0xff] }
  0x1c   :  { %10328 = vst [vmem:[#allocation11_spill] sm:$0xff] %v5037_v34  ;;  %10329 = vst [vmem:[#allocation12_spill] sm:$0xff] %v5044_v35  ;;  %v89_v38 = vld [vmem:[%s10258_s2 + $0x8] sm:$0xff]  ;;  %v91_v43 = vld [vmem:[%s10258_s2 + $0x18] sm:$0xff] }
  0x1d   :  { %219 = vperm.xlu1 %4514, %v4869_v10   ;;  %977 = vperm.xlu0 %4515, %v4869_v10   ;;  %v5058_v39 = vld [vmem:[%s10257_s1 + $0x8] sm:$0xff]  ;;  %v95_v51 = vld [vmem:[%s10258_s2 + $0x38] sm:$0xff] }
  0x1e   :  { %v93_v47 = vld [vmem:[%s10258_s2 + $0x28] sm:$0xff]  ;;  %v99_v59 = vld [vmem:[%s10258_s2 + $0x58] sm:$0xff] }
  0x1f   :  { %v97_v55 = vld [vmem:[%s10258_s2 + $0x48] sm:$0xff] }
  0x20   :  { %v101_v63 = vld [vmem:[%s10258_s2 + $0x68] sm:$0xff] }
  0x21   :  { %229 = vperm.xlu1 %4514, %v4876_v11   ;;  %985 = vperm.xlu0 %4515, %v4876_v11  }
  0x25   :  { %239 = vperm.xlu1 %4514, %v4883_v12   ;;  %993 = vperm.xlu0 %4515, %v4883_v12  }
  0x29   :  { %249 = vperm.xlu1 %4514, %v4890_v13   ;;  %1001 = vperm.xlu0 %4515, %v4890_v13  }
  0x2d   :  { %259 = vperm.xlu1 %4514, %v4897_v14   ;;  %1009 = vperm.xlu0 %4515, %v4897_v14  }
  0x31   :  { %269 = vperm.xlu1 %4514, %v4904_v15   ;;  %1017 = vperm.xlu0 %4515, %v4904_v15  }
  0x35   :  { %279 = vperm.xlu1 %4514, %v4911_v16   ;;  %1025 = vperm.xlu0 %4515, %v4911_v16  }
  0x39   :  { %289 = vperm.xlu1 %4514, %v4918_v17   ;;  %1033 = vperm.xlu0 %4515, %v4918_v17  }
  0x3d   :  { %299 = vperm.xlu1 %4514, %v4925_v18   ;;  %1041 = vperm.xlu0 %4515, %v4925_v18  }
  0x41   :  { %309 = vperm.xlu1 %4514, %v4932_v19   ;;  %1049 = vperm.xlu0 %4515, %v4932_v19  }
  0x45   :  { %319 = vperm.xlu1 %4514, %v4939_v20   ;;  %1057 = vperm.xlu0 %4515, %v4939_v20  }
  0x49   :  { %329 = vperm.xlu1 %4514, %v4946_v21   ;;  %1065 = vperm.xlu0 %4515, %v4946_v21  }
  0x4d   :  { %339 = vperm.xlu1 %4514, %v4953_v22   ;;  %1073 = vperm.xlu0 %4515, %v4953_v22  }
  0x51   :  { %349 = vperm.xlu1 %4514, %v4960_v23   ;;  %1081 = vperm.xlu0 %4515, %v4960_v23  }
  0x55   :  { %359 = vperm.xlu1 %4514, %v4967_v24   ;;  %1089 = vperm.xlu0 %4515, %v4967_v24  }
  0x59   :  { %369 = vperm.xlu1 %4514, %v4974_v25   ;;  %1097 = vperm.xlu0 %4515, %v4974_v25  }
  0x5d   :  { %379 = vperm.xlu1 %4514, %v4981_v26   ;;  %1105 = vperm.xlu0 %4515, %v4981_v26  }
  0x61   :  { %389 = vperm.xlu1 %4514, %v4988_v27   ;;  %1113 = vperm.xlu0 %4515, %v4988_v27  }
  0x65   :  { %399 = vperm.xlu1 %4514, %v4995_v28   ;;  %1121 = vperm.xlu0 %4515, %v4995_v28  }
  0x69   :  { %409 = vperm.xlu1 %4514, %v5002_v29   ;;  %1129 = vperm.xlu0 %4515, %v5002_v29  }
  0x6d   :  { %419 = vperm.xlu1 %4514, %v5009_v30   ;;  %1137 = vperm.xlu0 %4515, %v5009_v30  }
  0x71   :  { %429 = vperm.xlu1 %4514, %v5016_v31   ;;  %1145 = vperm.xlu0 %4515, %v5016_v31  }
  0x75   :  { %439 = vperm.xlu1 %4514, %v5023_v32   ;;  %1153 = vperm.xlu0 %4515, %v5023_v32  }
  0x79   :  { %449 = vperm.xlu1 %4514, %v5030_v33   ;;  %1161 = vperm.xlu0 %4515, %v5030_v33  }
  0x7d   :  { %459 = vperm.xlu1 %4514, %v5037_v34   ;;  %1169 = vperm.xlu0 %4515, %v5037_v34  }
  0x80   :  { %v5046_v36 = vpop.permute.xlu1 %164  ;;  %v5048_v37 = vpop.permute.xlu0 %925 }
  0x81   :  { %10330 = vst [vmem:[#allocation13_spill] sm:$0xff] %v5046_v36  ;;  %10331 = vst [vmem:[#allocation14_spill] sm:$0xff] %v5048_v37  ;;  %469 = vperm.xlu1 %4514, %v5044_v35   ;;  %1177 = vperm.xlu0 %4515, %v5044_v35  }
  0x84   :  { %v5060_v40 = vpop.permute.xlu1 %169  ;;  %v5062_v41 = vpop.permute.xlu0 %937 }
  0x85   :  { %10332 = vst [vmem:[#allocation15_spill] sm:$0xff] %v5060_v40  ;;  %10333 = vst [vmem:[#allocation16_spill] sm:$0xff] %v5062_v41  ;;  %547 = vperm.xlu1 %4514, %v89_v38   ;;  %4518 = vset.pattern.permute.xlu0 %v10264_v42 }
  0x86   :  { %1317 = vperm.xlu0 %4518, %v5058_v39  }
  0x88   :  { %v5074_v45 = vpop.permute.xlu1 %179  ;;  %v5076_v46 = vpop.permute.xlu0 %945 }
  0x89   :  { %10334 = vst [vmem:[#allocation17_spill] sm:$0xff] %v5074_v45  ;;  %10335 = vst [vmem:[#allocation18_spill] sm:$0xff] %v5076_v46  ;;  %557 = vperm.xlu1 %4514, %v91_v43  }
  0x8a   :  { %1329 = vperm.xlu0 %4518, %v5072_v44  }
  0x8c   :  { %v5087_v49 = vpop.permute.xlu1 %189  ;;  %v5089_v50 = vpop.permute.xlu0 %953 }
  0x8d   :  { %10336 = vst [vmem:[#allocation19_spill] sm:$0xff] %v5087_v49  ;;  %10337 = vst [vmem:[#allocation20_spill] sm:$0xff] %v5089_v50  ;;  %567 = vperm.xlu1 %4514, %v93_v47   ;;  %v103_v47 = vld [vmem:[%s10258_s2 + $0x78] sm:$0xff] }
  0x8e   :  { %1337 = vperm.xlu0 %4518, %v5085_v48  }
  0x90   :  { %v5100_v53 = vpop.permute.xlu1 %199  ;;  %v5102_v54 = vpop.permute.xlu0 %961 }
  0x91   :  { %10338 = vst [vmem:[#allocation21_spill] sm:$0xff] %v5100_v53  ;;  %10339 = vst [vmem:[#allocation22_spill] sm:$0xff] %v5102_v54  ;;  %577 = vperm.xlu1 %4514, %v95_v51   ;;  %v5150_v51 = vld [vmem:[%s10257_s1 + $0x80] sm:$0xff] }
  0x92   :  { %1345 = vperm.xlu0 %4518, %v5098_v52  }
  0x94   :  { %v5113_v57 = vpop.permute.xlu1 %209  ;;  %v5115_v58 = vpop.permute.xlu0 %969 }
  0x95   :  { %10340 = vst [vmem:[#allocation23_spill] sm:$0xff] %v5113_v57  ;;  %10341 = vst [vmem:[#allocation24_spill] sm:$0xff] %v5115_v58  ;;  %587 = vperm.xlu1 %4514, %v97_v55  }
  0x96   :  { %1353 = vperm.xlu0 %4518, %v5111_v56  }
  0x98   :  { %v5126_v61 = vpop.permute.xlu1 %219  ;;  %v5128_v62 = vpop.permute.xlu0 %977 }
  0x99   :  { %10342 = vst [vmem:[#allocation25_spill] sm:$0xff] %v5126_v61  ;;  %10343 = vst [vmem:[#allocation26_spill] sm:$0xff] %v5128_v62  ;;  %597 = vperm.xlu1 %4514, %v99_v59  }
  0x9a   :  { %1361 = vperm.xlu0 %4518, %v5124_v60  }
  0x9c   :  { %v5139_v38 = vpop.permute.xlu1 %229  ;;  %v5141_v43 = vpop.permute.xlu0 %985 }
  0x9d   :  { %10344 = vst [vmem:[#allocation27_spill] sm:$0xff] %v5139_v38  ;;  %10345 = vst [vmem:[#allocation28_spill] sm:$0xff] %v5141_v43  ;;  %607 = vperm.xlu1 %4514, %v101_v63   ;;  %v105_v63 = vld [vmem:[%s10258_s2 + $0x88] sm:$0xff] }
  0x9e   :  { %1369 = vperm.xlu0 %4518, %v5137_v0  }
  0xa0   :  { %v5152_v55 = vpop.permute.xlu1 %239  ;;  %v5154_v59 = vpop.permute.xlu0 %993 }
  0xa1   :  { %10346 = vst [vmem:[#allocation29_spill] sm:$0xff] %v5152_v55  ;;  %10347 = vst [vmem:[#allocation30_spill] sm:$0xff] %v5154_v59  ;;  %617 = vperm.xlu1 %4514, %v103_v47   ;;  %v107_v47 = vld [vmem:[%s10258_s2 + $0x98] sm:$0xff]  ;;  %v5176_v59 = vld [vmem:[%s10257_s1 + $0xa0] sm:$0xff] }
  0xa2   :  { %1377 = vperm.xlu0 %4518, %v5150_v51  }
  0xa4   :  { %v5165_v42 = vpop.permute.xlu1 %249  ;;  %v5167_v3 = vpop.permute.xlu0 %1001 }
  0xa5   :  { %10348 = vst [vmem:[#allocation31_spill] sm:$0xff] %v5165_v42  ;;  %10349 = vst [vmem:[#allocation32_spill] sm:$0xff] %v5167_v3  ;;  %627 = vperm.xlu1 %4514, %v105_v63   ;;  %v109_v63 = vld [vmem:[%s10258_s2 + $0xa8] sm:$0xff]  ;;  %v5189_v3 = vld [vmem:[%s10257_s1 + $0xb0] sm:$0xff] }
  0xa6   :  { %1385 = vperm.xlu0 %4518, %v5163_v4  }
  0xa8   :  { %v5178_v55 = vpop.permute.xlu1 %259  ;;  %v5180_v43 = vpop.permute.xlu0 %1009 }
  0xa9   :  { %10350 = vst [vmem:[#allocation33_spill] sm:$0xff] %v5178_v55  ;;  %10351 = vst [vmem:[#allocation34_spill] sm:$0xff] %v5180_v43  ;;  %637 = vperm.xlu1 %4514, %v107_v47   ;;  %v111_v47 = vld [vmem:[%s10258_s2 + $0xb8] sm:$0xff]  ;;  %v5202_v43 = vld [vmem:[%s10257_s1 + $0xc0] sm:$0xff] }
  0xaa   :  { %1393 = vperm.xlu0 %4518, %v5176_v59  }
  0xac   :  { %v5191_v42 = vpop.permute.xlu1 %269  ;;  %v5193_v38 = vpop.permute.xlu0 %1017 }
  0xad   :  { %10352 = vst [vmem:[#allocation35_spill] sm:$0xff] %v5191_v42  ;;  %10353 = vst [vmem:[#allocation36_spill] sm:$0xff] %v5193_v38  ;;  %647 = vperm.xlu1 %4514, %v109_v63   ;;  %v113_v63 = vld [vmem:[%s10258_s2 + $0xc8] sm:$0xff]  ;;  %v5215_v38 = vld [vmem:[%s10257_s1 + $0xd0] sm:$0xff] }
  0xae   :  { %1401 = vperm.xlu0 %4518, %v5189_v3  }
  0xb0   :  { %v5204_v55 = vpop.permute.xlu1 %279  ;;  %v5206_v62 = vpop.permute.xlu0 %1025 }
  0xb1   :  { %10354 = vst [vmem:[#allocation37_spill] sm:$0xff] %v5204_v55  ;;  %10355 = vst [vmem:[#allocation38_spill] sm:$0xff] %v5206_v62  ;;  %657 = vperm.xlu1 %4514, %v111_v47   ;;  %v115_v47 = vld [vmem:[%s10258_s2 + $0xd8] sm:$0xff]  ;;  %v5228_v62 = vld [vmem:[%s10257_s1 + $0xe0] sm:$0xff] }
  0xb2   :  { %1409 = vperm.xlu0 %4518, %v5202_v43  }
  0xb4   :  { %v5217_v42 = vpop.permute.xlu1 %289  ;;  %v5219_v61 = vpop.permute.xlu0 %1033 }
  0xb5   :  { %10356 = vst [vmem:[#allocation39_spill] sm:$0xff] %v5217_v42  ;;  %10357 = vst [vmem:[#allocation40_spill] sm:$0xff] %v5219_v61  ;;  %667 = vperm.xlu1 %4514, %v113_v63   ;;  %v117_v63 = vld [vmem:[%s10258_s2 + $0xe8] sm:$0xff]  ;;  %v5241_v61 = vld [vmem:[%s10257_s1 + $0xf0] sm:$0xff] }
  0xb6   :  { %1417 = vperm.xlu0 %4518, %v5215_v38  }
  0xb8   :  { %v5230_v55 = vpop.permute.xlu1 %299  ;;  %v5232_v58 = vpop.permute.xlu0 %1041 }
  0xb9   :  { %10358 = vst [vmem:[#allocation41_spill] sm:$0xff] %v5230_v55  ;;  %10359 = vst [vmem:[#allocation42_spill] sm:$0xff] %v5232_v58  ;;  %677 = vperm.xlu1 %4514, %v115_v47   ;;  %v119_v47 = vld [vmem:[%s10258_s2 + $0xf8] sm:$0xff]  ;;  %v5254_v58 = vld [vmem:[%s10257_s1 + $0x100] sm:$0xff] }
  0xba   :  { %1425 = vperm.xlu0 %4518, %v5228_v62  }
  0xbc   :  { %v5243_v42 = vpop.permute.xlu1 %309  ;;  %v5245_v57 = vpop.permute.xlu0 %1049 }
  0xbd   :  { %10360 = vst [vmem:[#allocation43_spill] sm:$0xff] %v5243_v42  ;;  %10361 = vst [vmem:[#allocation44_spill] sm:$0xff] %v5245_v57  ;;  %687 = vperm.xlu1 %4514, %v117_v63   ;;  %v121_v63 = vld [vmem:[%s10258_s2 + $0x108] sm:$0xff]  ;;  %v5267_v57 = vld [vmem:[%s10257_s1 + $0x110] sm:$0xff] }
  0xbe   :  { %1433 = vperm.xlu0 %4518, %v5241_v61  }
  0xc0   :  { %v5256_v55 = vpop.permute.xlu1 %319  ;;  %v5258_v54 = vpop.permute.xlu0 %1057 }
  0xc1   :  { %10362 = vst [vmem:[#allocation45_spill] sm:$0xff] %v5256_v55  ;;  %10363 = vst [vmem:[#allocation46_spill] sm:$0xff] %v5258_v54  ;;  %697 = vperm.xlu1 %4514, %v119_v47   ;;  %v123_v47 = vld [vmem:[%s10258_s2 + $0x118] sm:$0xff]  ;;  %v5280_v54 = vld [vmem:[%s10257_s1 + $0x120] sm:$0xff] }
  0xc2   :  { %1441 = vperm.xlu0 %4518, %v5254_v58  }
  0xc4   :  { %v5269_v42 = vpop.permute.xlu1 %329  ;;  %v5271_v53 = vpop.permute.xlu0 %1065 }
  0xc5   :  { %10364 = vst [vmem:[#allocation47_spill] sm:$0xff] %v5269_v42  ;;  %10365 = vst [vmem:[#allocation48_spill] sm:$0xff] %v5271_v53  ;;  %707 = vperm.xlu1 %4514, %v121_v63   ;;  %v125_v63 = vld [vmem:[%s10258_s2 + $0x128] sm:$0xff]  ;;  %v5293_v53 = vld [vmem:[%s10257_s1 + $0x130] sm:$0xff] }
  0xc6   :  { %1449 = vperm.xlu0 %4518, %v5267_v57  }
  0xc8   :  { %v5282_v55 = vpop.permute.xlu1 %339  ;;  %v5284_v50 = vpop.permute.xlu0 %1073 }
  0xc9   :  { %10366 = vst [vmem:[#allocation49_spill] sm:$0xff] %v5282_v55  ;;  %10367 = vst [vmem:[#allocation50_spill] sm:$0xff] %v5284_v50  ;;  %717 = vperm.xlu1 %4514, %v123_v47   ;;  %v127_v47 = vld [vmem:[%s10258_s2 + $0x138] sm:$0xff]  ;;  %v5306_v50 = vld [vmem:[%s10257_s1 + $0x140] sm:$0xff] }
  0xca   :  { %1457 = vperm.xlu0 %4518, %v5280_v54  }
  0xcc   :  { %v5295_v42 = vpop.permute.xlu1 %349  ;;  %v5297_v49 = vpop.permute.xlu0 %1081 }
  0xcd   :  { %10368 = vst [vmem:[#allocation51_spill] sm:$0xff] %v5295_v42  ;;  %10369 = vst [vmem:[#allocation52_spill] sm:$0xff] %v5297_v49  ;;  %727 = vperm.xlu1 %4514, %v125_v63   ;;  %v129_v63 = vld [vmem:[%s10258_s2 + $0x148] sm:$0xff]  ;;  %v5319_v49 = vld [vmem:[%s10257_s1 + $0x150] sm:$0xff] }
  0xce   :  { %1465 = vperm.xlu0 %4518, %v5293_v53  }
  0xd0   :  { %v5308_v55 = vpop.permute.xlu1 %359  ;;  %v5310_v46 = vpop.permute.xlu0 %1089 }
  0xd1   :  { %10370 = vst [vmem:[#allocation53_spill] sm:$0xff] %v5308_v55  ;;  %10371 = vst [vmem:[#allocation54_spill] sm:$0xff] %v5310_v46  ;;  %737 = vperm.xlu1 %4514, %v127_v47   ;;  %v131_v47 = vld [vmem:[%s10258_s2 + $0x158] sm:$0xff]  ;;  %v5332_v46 = vld [vmem:[%s10257_s1 + $0x160] sm:$0xff] }
  0xd2   :  { %1473 = vperm.xlu0 %4518, %v5306_v50  }
  0xd4   :  { %v5321_v42 = vpop.permute.xlu1 %369  ;;  %v5323_v45 = vpop.permute.xlu0 %1097 }
  0xd5   :  { %10372 = vst [vmem:[#allocation55_spill] sm:$0xff] %v5321_v42  ;;  %10373 = vst [vmem:[#allocation56_spill] sm:$0xff] %v5323_v45  ;;  %747 = vperm.xlu1 %4514, %v129_v63   ;;  %v133_v63 = vld [vmem:[%s10258_s2 + $0x168] sm:$0xff]  ;;  %v5345_v45 = vld [vmem:[%s10257_s1 + $0x170] sm:$0xff] }
  0xd6   :  { %1481 = vperm.xlu0 %4518, %v5319_v49  }
  0xd8   :  { %v5334_v55 = vpop.permute.xlu1 %379  ;;  %v5336_v41 = vpop.permute.xlu0 %1105 }
  0xd9   :  { %10374 = vst [vmem:[#allocation57_spill] sm:$0xff] %v5334_v55  ;;  %10375 = vst [vmem:[#allocation58_spill] sm:$0xff] %v5336_v41  ;;  %757 = vperm.xlu1 %4514, %v131_v47   ;;  %v135_v47 = vld [vmem:[%s10258_s2 + $0x178] sm:$0xff]  ;;  %v5358_v41 = vld [vmem:[%s10257_s1 + $0x180] sm:$0xff] }
  0xda   :  { %1489 = vperm.xlu0 %4518, %v5332_v46  }
  0xdc   :  { %v5347_v42 = vpop.permute.xlu1 %389  ;;  %v5349_v40 = vpop.permute.xlu0 %1113 }
  0xdd   :  { %10376 = vst [vmem:[#allocation59_spill] sm:$0xff] %v5347_v42  ;;  %10377 = vst [vmem:[#allocation60_spill] sm:$0xff] %v5349_v40  ;;  %767 = vperm.xlu1 %4514, %v133_v63   ;;  %v137_v63 = vld [vmem:[%s10258_s2 + $0x188] sm:$0xff]  ;;  %v5371_v40 = vld [vmem:[%s10257_s1 + $0x190] sm:$0xff] }
  0xde   :  { %1497 = vperm.xlu0 %4518, %v5345_v45  }
  0xe0   :  { %v5360_v55 = vpop.permute.xlu1 %399  ;;  %v5362_v37 = vpop.permute.xlu0 %1121 }
  0xe1   :  { %10378 = vst [vmem:[#allocation61_spill] sm:$0xff] %v5360_v55  ;;  %10379 = vst [vmem:[#allocation62_spill] sm:$0xff] %v5362_v37  ;;  %777 = vperm.xlu1 %4514, %v135_v47   ;;  %v139_v47 = vld [vmem:[%s10258_s2 + $0x198] sm:$0xff]  ;;  %v5384_v37 = vld [vmem:[%s10257_s1 + $0x1a0] sm:$0xff] }
  0xe2   :  { %1505 = vperm.xlu0 %4518, %v5358_v41  }
  0xe4   :  { %v5373_v42 = vpop.permute.xlu1 %409  ;;  %v5375_v36 = vpop.permute.xlu0 %1129 }
  0xe5   :  { %10380 = vst [vmem:[#allocation63_spill] sm:$0xff] %v5373_v42  ;;  %10381 = vst [vmem:[#allocation64_spill] sm:$0xff] %v5375_v36  ;;  %787 = vperm.xlu1 %4514, %v137_v63   ;;  %v141_v63 = vld [vmem:[%s10258_s2 + $0x1a8] sm:$0xff]  ;;  %v5397_v36 = vld [vmem:[%s10257_s1 + $0x1b0] sm:$0xff] }
  0xe6   :  { %1513 = vperm.xlu0 %4518, %v5371_v40  }
  0xe8   :  { %v5386_v55 = vpop.permute.xlu1 %419  ;;  %v5388_v35 = vpop.permute.xlu0 %1137 }
  0xe9   :  { %10382 = vst [vmem:[#allocation65_spill] sm:$0xff] %v5386_v55  ;;  %10383 = vst [vmem:[#allocation66_spill] sm:$0xff] %v5388_v35  ;;  %797 = vperm.xlu1 %4514, %v139_v47   ;;  %v143_v47 = vld [vmem:[%s10258_s2 + $0x1b8] sm:$0xff]  ;;  %v5410_v35 = vld [vmem:[%s10257_s1 + $0x1c0] sm:$0xff] }
  0xea   :  { %1521 = vperm.xlu0 %4518, %v5384_v37   ;;  %10386 = vst [vmem:[#allocation69_spill] sm:$0xff] %v5410_v35 }
  0xec   :  { %v5399_v42 = vpop.permute.xlu1 %429  ;;  %v5401_v34 = vpop.permute.xlu0 %1145 }
  0xed   :  { %10384 = vst [vmem:[#allocation67_spill] sm:$0xff] %v5399_v42  ;;  %10385 = vst [vmem:[#allocation68_spill] sm:$0xff] %v5401_v34  ;;  %807 = vperm.xlu1 %4514, %v141_v63   ;;  %v145_v63 = vld [vmem:[%s10258_s2 + $0x1c8] sm:$0xff]  ;;  %v5423_v34 = vld [vmem:[%s10257_s1 + $0x1d0] sm:$0xff] }
  0xee   :  { %1529 = vperm.xlu0 %4518, %v5397_v36   ;;  %10389 = vst [vmem:[#allocation72_spill] sm:$0xff] %v5423_v34 }
  0xf0   :  { %v5412_v55 = vpop.permute.xlu1 %439  ;;  %v5414_v33 = vpop.permute.xlu0 %1153 }
  0xf1   :  { %10387 = vst [vmem:[#allocation70_spill] sm:$0xff] %v5412_v55  ;;  %10388 = vst [vmem:[#allocation71_spill] sm:$0xff] %v5414_v33  ;;  %817 = vperm.xlu1 %4514, %v143_v47   ;;  %v147_v47 = vld [vmem:[%s10258_s2 + $0x1d8] sm:$0xff]  ;;  %v5436_v33 = vld [vmem:[%s10257_s1 + $0x1e0] sm:$0xff] }
  0xf2   :  { %1537 = vperm.xlu0 %4518, %v5410_v35   ;;  %10392 = vst [vmem:[#allocation75_spill] sm:$0xff] %v5436_v33 }
  0xf4   :  { %v5425_v42 = vpop.permute.xlu1 %449  ;;  %v5427_v32 = vpop.permute.xlu0 %1161 }
  0xf5   :  { %10390 = vst [vmem:[#allocation73_spill] sm:$0xff] %v5425_v42  ;;  %10391 = vst [vmem:[#allocation74_spill] sm:$0xff] %v5427_v32  ;;  %827 = vperm.xlu1 %4514, %v145_v63   ;;  %v149_v63 = vld [vmem:[%s10258_s2 + $0x1e8] sm:$0xff]  ;;  %v5449_v32 = vld [vmem:[%s10257_s1 + $0x1f0] sm:$0xff] }
  0xf6   :  { %1545 = vperm.xlu0 %4518, %v5423_v34   ;;  %10395 = vst [vmem:[#allocation78_spill] sm:$0xff] %v5449_v32 }
  0xf8   :  { %v5438_v55 = vpop.permute.xlu1 %459  ;;  %v5440_v35 = vpop.permute.xlu0 %1169 }
  0xf9   :  { %10393 = vst [vmem:[#allocation76_spill] sm:$0xff] %v5438_v55  ;;  %10394 = vst [vmem:[#allocation77_spill] sm:$0xff] %v5440_v35  ;;  %837 = vperm.xlu1 %4514, %v147_v47   ;;  %v151_v47 = vld [vmem:[%s10258_s2 + $0x1f8] sm:$0xff] }
  0xfa   :  { %1553 = vperm.xlu0 %4518, %v5436_v33   ;;  %v10282_v33 = vmov 3  }
  0xfc   :  { %v5451_v42 = vpop.permute.xlu1 %469  ;;  %v5453_v34 = vpop.permute.xlu0 %1177 }
  0xfd   :  { %10396 = vst [vmem:[#allocation79_spill] sm:$0xff] %v5451_v42  ;;  %10397 = vst [vmem:[#allocation80_spill] sm:$0xff] %v5453_v34  ;;  %847 = vperm.xlu1 %4514, %v149_v63   ;;  %v10401_v34 = vmov 1  }
  0xfe   :  { %1561 = vperm.xlu0 %4518, %v5449_v32  }
 0x100   :  { %v5459_v35 = vpop.permute.xlu1 %547 }
 0x101   :  { %10398 = vst [vmem:[#allocation81_spill] sm:$0xff] %v5459_v35  ;;  %857 = vperm.xlu1 %4514, %v151_v47   ;;  %v5461_v55 = vpop.permute.xlu0 %1317 }
 0x102   :  { %10399 = vst [vmem:[#allocation82_spill] sm:$0xff] %v5461_v55  ;;  %4519 = vset.pattern.permute.xlu0 %v10282_v33 }
 0x103   :  { %1701 = vperm.xlu0 %4519, %v4825_v2  }
 0x104   :  { %v5465_v42 = vpop.permute.xlu1 %557 }
 0x105   :  { %10400 = vst [vmem:[#allocation83_spill] sm:$0xff] %v5465_v42  ;;  %4516 = vset.pattern.permute.xlu1 %v10401_v34  ;;  %v5468_v63 = vpop.permute.xlu0 %1329  ;;  %v10460_v42 = vld [vmem:[#allocation69_spill] sm:$0xff] }
 0x106   :  { %10402 = vst [vmem:[#allocation84_spill] sm:$0xff] %v5468_v63  ;;  %929 = vperm.xlu1 %4516, %v5058_v39  }
 0x107   :  { %1713 = vperm.xlu0 %4519, %v4834_v5  }
 0x108   :  { %v5472_v32 = vpop.permute.xlu1 %567 }
 0x109   :  { %10403 = vst [vmem:[#allocation85_spill] sm:$0xff] %v5472_v32  ;;  %v5474_v47 = vpop.permute.xlu0 %1337 }
 0x10a   :  { %10404 = vst [vmem:[#allocation86_spill] sm:$0xff] %v5474_v47  ;;  %933 = vperm.xlu1 %4516, %v4820_v1  }
 0x10b   :  { %1721 = vperm.xlu0 %4519, %v4841_v6  }
 0x10c   :  { %v5478_v33 = vpop.permute.xlu1 %577 }
 0x10d   :  { %10405 = vst [vmem:[#allocation87_spill] sm:$0xff] %v5478_v33  ;;  %v5480_v35 = vpop.permute.xlu0 %1345 }
 0x10e   :  { %10406 = vst [vmem:[#allocation88_spill] sm:$0xff] %v5480_v35  ;;  %941 = vperm.xlu1 %4516, %v5072_v44  }
 0x10f   :  { %1729 = vperm.xlu0 %4519, %v4848_v7  }
 0x110   :  { %v5484_v34 = vpop.permute.xlu1 %587 }
 0x111   :  { %10407 = vst [vmem:[#allocation89_spill] sm:$0xff] %v5484_v34  ;;  %v5486_v63 = vpop.permute.xlu0 %1353 }
 0x112   :  { %10408 = vst [vmem:[#allocation90_spill] sm:$0xff] %v5486_v63  ;;  %949 = vperm.xlu1 %4516, %v5085_v48  }
 0x113   :  { %1737 = vperm.xlu0 %4519, %v4855_v8  }
 0x114   :  { %v5490_v47 = vpop.permute.xlu1 %597 }
 0x115   :  { %10409 = vst [vmem:[#allocation91_spill] sm:$0xff] %v5490_v47  ;;  %v5492_v55 = vpop.permute.xlu0 %1361 }
 0x116   :  { %10410 = vst [vmem:[#allocation92_spill] sm:$0xff] %v5492_v55  ;;  %957 = vperm.xlu1 %4516, %v5098_v52  }
 0x117   :  { %1745 = vperm.xlu0 %4519, %v4862_v9  }
 0x118   :  { %v5496_v35 = vpop.permute.xlu1 %607 }
 0x119   :  { %10411 = vst [vmem:[#allocation93_spill] sm:$0xff] %v5496_v35  ;;  %v5498_v33 = vpop.permute.xlu0 %1369 }
 0x11a   :  { %10412 = vst [vmem:[#allocation94_spill] sm:$0xff] %v5498_v33  ;;  %965 = vperm.xlu1 %4516, %v5111_v56  }
 0x11b   :  { %1753 = vperm.xlu0 %4519, %v4869_v10  }
 0x11c   :  { %v5502_v63 = vpop.permute.xlu1 %617 }
 0x11d   :  { %10413 = vst [vmem:[#allocation95_spill] sm:$0xff] %v5502_v63  ;;  %v5504_v34 = vpop.permute.xlu0 %1377 }
 0x11e   :  { %10414 = vst [vmem:[#allocation96_spill] sm:$0xff] %v5504_v34  ;;  %973 = vperm.xlu1 %4516, %v5124_v60  }
 0x11f   :  { %1761 = vperm.xlu0 %4519, %v4876_v11  }
 0x120   :  { %v5508_v55 = vpop.permute.xlu1 %627 }
 0x121   :  { %10415 = vst [vmem:[#allocation97_spill] sm:$0xff] %v5508_v55  ;;  %v5510_v47 = vpop.permute.xlu0 %1385 }
 0x122   :  { %10416 = vst [vmem:[#allocation98_spill] sm:$0xff] %v5510_v47  ;;  %981 = vperm.xlu1 %4516, %v5137_v0  }
 0x123   :  { %1769 = vperm.xlu0 %4519, %v4883_v12  }
 0x124   :  { %v5514_v33 = vpop.permute.xlu1 %637 }
 0x125   :  { %10417 = vst [vmem:[#allocation99_spill] sm:$0xff] %v5514_v33  ;;  %v5516_v35 = vpop.permute.xlu0 %1393 }
 0x126   :  { %10418 = vst [vmem:[#allocation100_spill] sm:$0xff] %v5516_v35  ;;  %989 = vperm.xlu1 %4516, %v5150_v51  }
 0x127   :  { %1777 = vperm.xlu0 %4519, %v4890_v13  }
 0x128   :  { %v5520_v34 = vpop.permute.xlu1 %647 }
 0x129   :  { %10419 = vst [vmem:[#allocation101_spill] sm:$0xff] %v5520_v34  ;;  %v5522_v63 = vpop.permute.xlu0 %1401 }
 0x12a   :  { %10420 = vst [vmem:[#allocation102_spill] sm:$0xff] %v5522_v63  ;;  %997 = vperm.xlu1 %4516, %v5163_v4  }
 0x12b   :  { %1785 = vperm.xlu0 %4519, %v4897_v14  }
 0x12c   :  { %v5526_v47 = vpop.permute.xlu1 %657 }
 0x12d   :  { %10421 = vst [vmem:[#allocation103_spill] sm:$0xff] %v5526_v47  ;;  %v5528_v55 = vpop.permute.xlu0 %1409 }
 0x12e   :  { %10422 = vst [vmem:[#allocation104_spill] sm:$0xff] %v5528_v55  ;;  %1005 = vperm.xlu1 %4516, %v5176_v59  }
 0x12f   :  { %1793 = vperm.xlu0 %4519, %v4904_v15  }
 0x130   :  { %v5532_v35 = vpop.permute.xlu1 %667 }
 0x131   :  { %10423 = vst [vmem:[#allocation105_spill] sm:$0xff] %v5532_v35  ;;  %v5534_v33 = vpop.permute.xlu0 %1417 }
 0x132   :  { %10424 = vst [vmem:[#allocation106_spill] sm:$0xff] %v5534_v33  ;;  %1013 = vperm.xlu1 %4516, %v5189_v3  }
 0x133   :  { %1801 = vperm.xlu0 %4519, %v4911_v16  }
 0x134   :  { %v5538_v63 = vpop.permute.xlu1 %677 }
 0x135   :  { %10425 = vst [vmem:[#allocation107_spill] sm:$0xff] %v5538_v63  ;;  %v5540_v34 = vpop.permute.xlu0 %1425 }
 0x136   :  { %10426 = vst [vmem:[#allocation108_spill] sm:$0xff] %v5540_v34  ;;  %1021 = vperm.xlu1 %4516, %v5202_v43  }
 0x137   :  { %1809 = vperm.xlu0 %4519, %v4918_v17  }
 0x138   :  { %v5544_v55 = vpop.permute.xlu1 %687 }
 0x139   :  { %10427 = vst [vmem:[#allocation109_spill] sm:$0xff] %v5544_v55  ;;  %v5546_v47 = vpop.permute.xlu0 %1433 }
 0x13a   :  { %10428 = vst [vmem:[#allocation110_spill] sm:$0xff] %v5546_v47  ;;  %1029 = vperm.xlu1 %4516, %v5215_v38  }
 0x13b   :  { %1817 = vperm.xlu0 %4519, %v4925_v18  }
 0x13c   :  { %v5550_v33 = vpop.permute.xlu1 %697 }
 0x13d   :  { %10429 = vst [vmem:[#allocation111_spill] sm:$0xff] %v5550_v33  ;;  %v5552_v35 = vpop.permute.xlu0 %1441 }
 0x13e   :  { %10430 = vst [vmem:[#allocation112_spill] sm:$0xff] %v5552_v35  ;;  %1037 = vperm.xlu1 %4516, %v5228_v62  }
 0x13f   :  { %1825 = vperm.xlu0 %4519, %v4932_v19  }
 0x140   :  { %v5556_v34 = vpop.permute.xlu1 %707 }
 0x141   :  { %10431 = vst [vmem:[#allocation113_spill] sm:$0xff] %v5556_v34  ;;  %v5558_v63 = vpop.permute.xlu0 %1449 }
 0x142   :  { %10432 = vst [vmem:[#allocation114_spill] sm:$0xff] %v5558_v63  ;;  %1045 = vperm.xlu1 %4516, %v5241_v61  }
 0x143   :  { %1833 = vperm.xlu0 %4519, %v4939_v20  }
 0x144   :  { %v5562_v47 = vpop.permute.xlu1 %717 }
 0x145   :  { %10433 = vst [vmem:[#allocation115_spill] sm:$0xff] %v5562_v47  ;;  %v5564_v55 = vpop.permute.xlu0 %1457 }
 0x146   :  { %10434 = vst [vmem:[#allocation116_spill] sm:$0xff] %v5564_v55  ;;  %1053 = vperm.xlu1 %4516, %v5254_v58  }
 0x147   :  { %1841 = vperm.xlu0 %4519, %v4946_v21  }
 0x148   :  { %v5568_v35 = vpop.permute.xlu1 %727 }
 0x149   :  { %10435 = vst [vmem:[#allocation117_spill] sm:$0xff] %v5568_v35  ;;  %v5570_v33 = vpop.permute.xlu0 %1465 }
 0x14a   :  { %10436 = vst [vmem:[#allocation118_spill] sm:$0xff] %v5570_v33  ;;  %1061 = vperm.xlu1 %4516, %v5267_v57  }
 0x14b   :  { %1849 = vperm.xlu0 %4519, %v4953_v22  }
 0x14c   :  { %v5574_v63 = vpop.permute.xlu1 %737 }
 0x14d   :  { %10437 = vst [vmem:[#allocation119_spill] sm:$0xff] %v5574_v63  ;;  %v5576_v34 = vpop.permute.xlu0 %1473 }
 0x14e   :  { %10438 = vst [vmem:[#allocation120_spill] sm:$0xff] %v5576_v34  ;;  %1069 = vperm.xlu1 %4516, %v5280_v54  }
 0x14f   :  { %1857 = vperm.xlu0 %4519, %v4960_v23  }
 0x150   :  { %v5580_v55 = vpop.permute.xlu1 %747 }
 0x151   :  { %10439 = vst [vmem:[#allocation121_spill] sm:$0xff] %v5580_v55  ;;  %v5582_v47 = vpop.permute.xlu0 %1481 }
 0x152   :  { %10440 = vst [vmem:[#allocation122_spill] sm:$0xff] %v5582_v47  ;;  %1077 = vperm.xlu1 %4516, %v5293_v53  }
 0x153   :  { %1865 = vperm.xlu0 %4519, %v4967_v24  }
 0x154   :  { %v5586_v33 = vpop.permute.xlu1 %757 }
 0x155   :  { %10441 = vst [vmem:[#allocation123_spill] sm:$0xff] %v5586_v33  ;;  %v5588_v35 = vpop.permute.xlu0 %1489 }
 0x156   :  { %10442 = vst [vmem:[#allocation124_spill] sm:$0xff] %v5588_v35  ;;  %1085 = vperm.xlu1 %4516, %v5306_v50  }
 0x157   :  { %1873 = vperm.xlu0 %4519, %v4974_v25  }
 0x158   :  { %v5592_v34 = vpop.permute.xlu1 %767 }
 0x159   :  { %10443 = vst [vmem:[#allocation125_spill] sm:$0xff] %v5592_v34  ;;  %v5594_v63 = vpop.permute.xlu0 %1497 }
 0x15a   :  { %10444 = vst [vmem:[#allocation126_spill] sm:$0xff] %v5594_v63  ;;  %1093 = vperm.xlu1 %4516, %v5319_v49  }
 0x15b   :  { %1881 = vperm.xlu0 %4519, %v4981_v26  }
 0x15c   :  { %v5598_v47 = vpop.permute.xlu1 %777 }
 0x15d   :  { %10445 = vst [vmem:[#allocation127_spill] sm:$0xff] %v5598_v47  ;;  %v5600_v55 = vpop.permute.xlu0 %1505 }
 0x15e   :  { %10446 = vst [vmem:[#allocation128_spill] sm:$0xff] %v5600_v55  ;;  %1101 = vperm.xlu1 %4516, %v5332_v46  }
 0x15f   :  { %1889 = vperm.xlu0 %4519, %v4988_v27  }
 0x160   :  { %v5604_v35 = vpop.permute.xlu1 %787 }
 0x161   :  { %10447 = vst [vmem:[#allocation129_spill] sm:$0xff] %v5604_v35  ;;  %v5606_v33 = vpop.permute.xlu0 %1513 }
 0x162   :  { %10448 = vst [vmem:[#allocation130_spill] sm:$0xff] %v5606_v33  ;;  %1109 = vperm.xlu1 %4516, %v5345_v45  }
 0x163   :  { %1897 = vperm.xlu0 %4519, %v4995_v28  }
 0x164   :  { %v5610_v63 = vpop.permute.xlu1 %797 }
 0x165   :  { %10449 = vst [vmem:[#allocation131_spill] sm:$0xff] %v5610_v63  ;;  %v5612_v34 = vpop.permute.xlu0 %1521 }
 0x166   :  { %10450 = vst [vmem:[#allocation132_spill] sm:$0xff] %v5612_v34  ;;  %1117 = vperm.xlu1 %4516, %v5358_v41  }
 0x167   :  { %1905 = vperm.xlu0 %4519, %v5002_v29   ;;  %v10467_v29 = vld [vmem:[#allocation75_spill] sm:$0xff] }
 0x168   :  { %v5616_v55 = vpop.permute.xlu1 %807 }
 0x169   :  { %10451 = vst [vmem:[#allocation133_spill] sm:$0xff] %v5616_v55  ;;  %v5618_v47 = vpop.permute.xlu0 %1529  ;;  %v10457_v55 = vld [vmem:[#allocation9_spill] sm:$0xff] }
 0x16a   :  { %10452 = vst [vmem:[#allocation134_spill] sm:$0xff] %v5618_v47  ;;  %1125 = vperm.xlu1 %4516, %v5371_v40  }
 0x16b   :  { %1913 = vperm.xlu0 %4519, %v5009_v30  }
 0x16c   :  { %v5622_v33 = vpop.permute.xlu1 %817 }
 0x16d   :  { %10453 = vst [vmem:[#allocation135_spill] sm:$0xff] %v5622_v33  ;;  %v5624_v35 = vpop.permute.xlu0 %1537  ;;  %v10461_v33 = vld [vmem:[#allocation10_spill] sm:$0xff] }
 0x16e   :  { %10454 = vst [vmem:[#allocation136_spill] sm:$0xff] %v5624_v35  ;;  %1133 = vperm.xlu1 %4516, %v5384_v37  }
 0x16f   :  { %1921 = vperm.xlu0 %4519, %v5016_v31   ;;  %v10464_v31 = vld [vmem:[#allocation72_spill] sm:$0xff] }
 0x170   :  { %v5628_v34 = vpop.permute.xlu1 %827 }
 0x171   :  { %10455 = vst [vmem:[#allocation137_spill] sm:$0xff] %v5628_v34  ;;  %v5630_v63 = vpop.permute.xlu0 %1545  ;;  %v10465_v34 = vld [vmem:[#allocation11_spill] sm:$0xff] }
 0x172   :  { %10456 = vst [vmem:[#allocation138_spill] sm:$0xff] %v5630_v63  ;;  %1141 = vperm.xlu1 %4516, %v5397_v36  }
 0x173   :  { %1929 = vperm.xlu0 %4519, %v10457_v55  }
 0x174   :  { %v5634_v47 = vpop.permute.xlu1 %837 }
 0x175   :  { %10458 = vst [vmem:[#allocation139_spill] sm:$0xff] %v5634_v47  ;;  %v5636_v32 = vpop.permute.xlu0 %1553  ;;  %v10469_v47 = vld [vmem:[#allocation12_spill] sm:$0xff] }
 0x176   :  { %10459 = vst [vmem:[#allocation140_spill] sm:$0xff] %v5636_v32  ;;  %1149 = vperm.xlu1 %4516, %v10460_v42   ;;  %v10471_v42 = vld [vmem:[#allocation78_spill] sm:$0xff] }
 0x177   :  { %1937 = vperm.xlu0 %4519, %v10461_v33  }
 0x178   :  { %v5640_v35 = vpop.permute.xlu1 %847 }
 0x179   :  { %10462 = vst [vmem:[#allocation141_spill] sm:$0xff] %v5640_v35  ;;  %v5642_v30 = vpop.permute.xlu0 %1561  ;;  %v10286_v35 = vmov 4  }
 0x17a   :  { %10463 = vst [vmem:[#allocation142_spill] sm:$0xff] %v5642_v30  ;;  %1157 = vperm.xlu1 %4516, %v10464_v31  }
 0x17b   :  { %1945 = vperm.xlu0 %4519, %v10465_v34  }
 0x17c   :  { %v5646_v63 = vpop.permute.xlu1 %857 }
 0x17d   :  { %10466 = vst [vmem:[#allocation72_spill] sm:$0xff] %v5646_v63  ;;  %v10474_v63 = vmov 2  }
 0x17e   :  { %1165 = vperm.xlu1 %4516, %v10467_v29   ;;  %v5649_v55 = vpop.permute.xlu0 %1701 }
 0x17f   :  { %10468 = vst [vmem:[#allocation75_spill] sm:$0xff] %v5649_v55  ;;  %1953 = vperm.xlu0 %4519, %v10469_v47  }
 0x181   :  { %v5652_v32 = vpop.permute.xlu1 %929 }
 0x182   :  { %10470 = vst [vmem:[#allocation12_spill] sm:$0xff] %v5652_v32  ;;  %1173 = vperm.xlu1 %4516, %v10471_v42   ;;  %v5655_v33 = vpop.permute.xlu0 %1713 }
 0x183   :  { %10472 = vst [vmem:[#allocation78_spill] sm:$0xff] %v5655_v33  ;;  %4522 = vset.pattern.permute.xlu0 %v10286_v35 }
 0x184   :  { %2093 = vperm.xlu0 %4522, %v5058_v39  }
 0x185   :  { %v5659_v30 = vpop.permute.xlu1 %933 }
 0x186   :  { %10473 = vst [vmem:[#allocation143_spill] sm:$0xff] %v5659_v30  ;;  %4517 = vset.pattern.permute.xlu1 %v10474_v63  ;;  %v5662_v34 = vpop.permute.xlu0 %1721 }
 0x187   :  { %10475 = vst [vmem:[#allocation144_spill] sm:$0xff] %v5662_v34  ;;  %1313 = vperm.xlu1 %4517, %v4825_v2  }
 0x188   :  { %2105 = vperm.xlu0 %4522, %v5072_v44  }
 0x189   :  { %v5666_v32 = vpop.permute.xlu1 %941 }
 0x18a   :  { %10476 = vst [vmem:[#allocation145_spill] sm:$0xff] %v5666_v32  ;;  %v5668_v55 = vpop.permute.xlu0 %1729 }
 0x18b   :  { %10477 = vst [vmem:[#allocation146_spill] sm:$0xff] %v5668_v55  ;;  %1321 = vperm.xlu1 %4517, %v4820_v1  }
 0x18c   :  { %2113 = vperm.xlu0 %4522, %v5085_v48  }
 0x18d   :  { %v5672_v35 = vpop.permute.xlu1 %949 }
 0x18e   :  { %10478 = vst [vmem:[#allocation147_spill] sm:$0xff] %v5672_v35  ;;  %v5674_v33 = vpop.permute.xlu0 %1737 }
 0x18f   :  { %10479 = vst [vmem:[#allocation148_spill] sm:$0xff] %v5674_v33  ;;  %1325 = vperm.xlu1 %4517, %v4834_v5  }
 0x190   :  { %2121 = vperm.xlu0 %4522, %v5098_v52  }
 0x191   :  { %v5678_v63 = vpop.permute.xlu1 %957 }
 0x192   :  { %10480 = vst [vmem:[#allocation149_spill] sm:$0xff] %v5678_v63  ;;  %v5680_v2 = vpop.permute.xlu0 %1745 }
 0x193   :  { %10481 = vst [vmem:[#allocation150_spill] sm:$0xff] %v5680_v2  ;;  %1333 = vperm.xlu1 %4517, %v4841_v6  }
 0x194   :  { %2129 = vperm.xlu0 %4522, %v5111_v56  }
 0x195   :  { %v5684_v55 = vpop.permute.xlu1 %965 }
 0x196   :  { %10482 = vst [vmem:[#allocation151_spill] sm:$0xff] %v5684_v55  ;;  %v5686_v1 = vpop.permute.xlu0 %1753 }
 0x197   :  { %10483 = vst [vmem:[#allocation152_spill] sm:$0xff] %v5686_v1  ;;  %1341 = vperm.xlu1 %4517, %v4848_v7  }
 0x198   :  { %2137 = vperm.xlu0 %4522, %v5124_v60  }
 0x199   :  { %v5690_v33 = vpop.permute.xlu1 %973 }
 0x19a   :  { %10484 = vst [vmem:[#allocation153_spill] sm:$0xff] %v5690_v33  ;;  %v5692_v5 = vpop.permute.xlu0 %1761 }
 0x19b   :  { %10485 = vst [vmem:[#allocation154_spill] sm:$0xff] %v5692_v5  ;;  %1349 = vperm.xlu1 %4517, %v4855_v8  }
 0x19c   :  { %2145 = vperm.xlu0 %4522, %v5137_v0  }
 0x19d   :  { %v5696_v2 = vpop.permute.xlu1 %981 }
 0x19e   :  { %10486 = vst [vmem:[#allocation155_spill] sm:$0xff] %v5696_v2  ;;  %v5698_v6 = vpop.permute.xlu0 %1769 }
 0x19f   :  { %10487 = vst [vmem:[#allocation156_spill] sm:$0xff] %v5698_v6  ;;  %1357 = vperm.xlu1 %4517, %v4862_v9  }
 0x1a0   :  { %2153 = vperm.xlu0 %4522, %v5150_v51  }
 0x1a1   :  { %v5702_v1 = vpop.permute.xlu1 %989 }
 0x1a2   :  { %10488 = vst [vmem:[#allocation157_spill] sm:$0xff] %v5702_v1  ;;  %v5704_v7 = vpop.permute.xlu0 %1777 }
 0x1a3   :  { %10489 = vst [vmem:[#allocation158_spill] sm:$0xff] %v5704_v7  ;;  %1365 = vperm.xlu1 %4517, %v4869_v10  }
 0x1a4   :  { %2161 = vperm.xlu0 %4522, %v5163_v4  }
 0x1a5   :  { %v5708_v5 = vpop.permute.xlu1 %997 }
 0x1a6   :  { %10490 = vst [vmem:[#allocation159_spill] sm:$0xff] %v5708_v5  ;;  %v5710_v8 = vpop.permute.xlu0 %1785 }
 0x1a7   :  { %10491 = vst [vmem:[#allocation160_spill] sm:$0xff] %v5710_v8  ;;  %1373 = vperm.xlu1 %4517, %v4876_v11  }
 0x1a8   :  { %2169 = vperm.xlu0 %4522, %v5176_v59  }
 0x1a9   :  { %v5714_v6 = vpop.permute.xlu1 %1005 }
 0x1aa   :  { %10492 = vst [vmem:[#allocation161_spill] sm:$0xff] %v5714_v6  ;;  %v5716_v9 = vpop.permute.xlu0 %1793 }
 0x1ab   :  { %10493 = vst [vmem:[#allocation162_spill] sm:$0xff] %v5716_v9  ;;  %1381 = vperm.xlu1 %4517, %v4883_v12  }
 0x1ac   :  { %2177 = vperm.xlu0 %4522, %v5189_v3  }
 0x1ad   :  { %v5720_v7 = vpop.permute.xlu1 %1013 }
 0x1ae   :  { %10494 = vst [vmem:[#allocation163_spill] sm:$0xff] %v5720_v7  ;;  %v5722_v10 = vpop.permute.xlu0 %1801 }
 0x1af   :  { %10495 = vst [vmem:[#allocation164_spill] sm:$0xff] %v5722_v10  ;;  %1389 = vperm.xlu1 %4517, %v4890_v13  }
 0x1b0   :  { %2185 = vperm.xlu0 %4522, %v5202_v43  }
 0x1b1   :  { %v5726_v8 = vpop.permute.xlu1 %1021 }
 0x1b2   :  { %10496 = vst [vmem:[#allocation165_spill] sm:$0xff] %v5726_v8  ;;  %v5728_v11 = vpop.permute.xlu0 %1809 }
 0x1b3   :  { %10497 = vst [vmem:[#allocation166_spill] sm:$0xff] %v5728_v11  ;;  %1397 = vperm.xlu1 %4517, %v4897_v14  }
 0x1b4   :  { %2193 = vperm.xlu0 %4522, %v5215_v38  }
 0x1b5   :  { %v5732_v9 = vpop.permute.xlu1 %1029 }
 0x1b6   :  { %10498 = vst [vmem:[#allocation167_spill] sm:$0xff] %v5732_v9  ;;  %v5734_v12 = vpop.permute.xlu0 %1817 }
 0x1b7   :  { %10499 = vst [vmem:[#allocation168_spill] sm:$0xff] %v5734_v12  ;;  %1405 = vperm.xlu1 %4517, %v4904_v15  }
 0x1b8   :  { %2201 = vperm.xlu0 %4522, %v5228_v62  }
 0x1b9   :  { %v5738_v10 = vpop.permute.xlu1 %1037 }
 0x1ba   :  { %10500 = vst [vmem:[#allocation169_spill] sm:$0xff] %v5738_v10  ;;  %v5740_v13 = vpop.permute.xlu0 %1825 }
 0x1bb   :  { %10501 = vst [vmem:[#allocation170_spill] sm:$0xff] %v5740_v13  ;;  %1413 = vperm.xlu1 %4517, %v4911_v16  }
 0x1bc   :  { %2209 = vperm.xlu0 %4522, %v5241_v61  }
 0x1bd   :  { %v5744_v11 = vpop.permute.xlu1 %1045 }
 0x1be   :  { %10502 = vst [vmem:[#allocation171_spill] sm:$0xff] %v5744_v11  ;;  %v5746_v14 = vpop.permute.xlu0 %1833 }
 0x1bf   :  { %10503 = vst [vmem:[#allocation172_spill] sm:$0xff] %v5746_v14  ;;  %1421 = vperm.xlu1 %4517, %v4918_v17  }
 0x1c0   :  { %2217 = vperm.xlu0 %4522, %v5254_v58  }
 0x1c1   :  { %v5750_v12 = vpop.permute.xlu1 %1053 }
 0x1c2   :  { %10504 = vst [vmem:[#allocation173_spill] sm:$0xff] %v5750_v12  ;;  %v5752_v15 = vpop.permute.xlu0 %1841 }
 0x1c3   :  { %10505 = vst [vmem:[#allocation174_spill] sm:$0xff] %v5752_v15  ;;  %1429 = vperm.xlu1 %4517, %v4925_v18  }
 0x1c4   :  { %2225 = vperm.xlu0 %4522, %v5267_v57  }
 0x1c5   :  { %v5756_v13 = vpop.permute.xlu1 %1061 }
 0x1c6   :  { %10506 = vst [vmem:[#allocation175_spill] sm:$0xff] %v5756_v13  ;;  %v5758_v16 = vpop.permute.xlu0 %1849 }
 0x1c7   :  { %10507 = vst [vmem:[#allocation176_spill] sm:$0xff] %v5758_v16  ;;  %1437 = vperm.xlu1 %4517, %v4932_v19  }
 0x1c8   :  { %2233 = vperm.xlu0 %4522, %v5280_v54  }
 0x1c9   :  { %v5762_v14 = vpop.permute.xlu1 %1069 }
 0x1ca   :  { %10508 = vst [vmem:[#allocation177_spill] sm:$0xff] %v5762_v14  ;;  %v5764_v17 = vpop.permute.xlu0 %1857 }
 0x1cb   :  { %10509 = vst [vmem:[#allocation178_spill] sm:$0xff] %v5764_v17  ;;  %1445 = vperm.xlu1 %4517, %v4939_v20  }
 0x1cc   :  { %2241 = vperm.xlu0 %4522, %v5293_v53  }
 0x1cd   :  { %v5768_v15 = vpop.permute.xlu1 %1077 }
 0x1ce   :  { %10510 = vst [vmem:[#allocation179_spill] sm:$0xff] %v5768_v15  ;;  %v5770_v18 = vpop.permute.xlu0 %1865 }
 0x1cf   :  { %10511 = vst [vmem:[#allocation180_spill] sm:$0xff] %v5770_v18  ;;  %1453 = vperm.xlu1 %4517, %v4946_v21  }
 0x1d0   :  { %2249 = vperm.xlu0 %4522, %v5306_v50  }
 0x1d1   :  { %v5774_v16 = vpop.permute.xlu1 %1085 }
 0x1d2   :  { %10512 = vst [vmem:[#allocation181_spill] sm:$0xff] %v5774_v16  ;;  %v5776_v19 = vpop.permute.xlu0 %1873 }
 0x1d3   :  { %10513 = vst [vmem:[#allocation182_spill] sm:$0xff] %v5776_v19  ;;  %1461 = vperm.xlu1 %4517, %v4953_v22  }
 0x1d4   :  { %2257 = vperm.xlu0 %4522, %v5319_v49  }
 0x1d5   :  { %v5780_v17 = vpop.permute.xlu1 %1093 }
 0x1d6   :  { %10514 = vst [vmem:[#allocation183_spill] sm:$0xff] %v5780_v17  ;;  %v5782_v20 = vpop.permute.xlu0 %1881 }
 0x1d7   :  { %10515 = vst [vmem:[#allocation184_spill] sm:$0xff] %v5782_v20  ;;  %1469 = vperm.xlu1 %4517, %v4960_v23  }
 0x1d8   :  { %2265 = vperm.xlu0 %4522, %v5332_v46  }
 0x1d9   :  { %v5786_v18 = vpop.permute.xlu1 %1101 }
 0x1da   :  { %10516 = vst [vmem:[#allocation185_spill] sm:$0xff] %v5786_v18  ;;  %v5788_v21 = vpop.permute.xlu0 %1889  ;;  %v10288_v18 = vmov 6  }
 0x1db   :  { %10517 = vst [vmem:[#allocation186_spill] sm:$0xff] %v5788_v21  ;;  %1477 = vperm.xlu1 %4517, %v4967_v24  }
 0x1dc   :  { %2273 = vperm.xlu0 %4522, %v5345_v45  }
 0x1dd   :  { %v5792_v19 = vpop.permute.xlu1 %1109 }
 0x1de   :  { %10518 = vst [vmem:[#allocation187_spill] sm:$0xff] %v5792_v19  ;;  %v5794_v22 = vpop.permute.xlu0 %1897  ;;  %v10532_v19 = vld [vmem:[#allocation7_spill] sm:$0xff] }
 0x1df   :  { %10519 = vst [vmem:[#allocation188_spill] sm:$0xff] %v5794_v22  ;;  %1485 = vperm.xlu1 %4517, %v4974_v25  }
 0x1e0   :  { %2281 = vperm.xlu0 %4522, %v5358_v41  }
 0x1e1   :  { %v5798_v20 = vpop.permute.xlu1 %1117 }
 0x1e2   :  { %10520 = vst [vmem:[#allocation189_spill] sm:$0xff] %v5798_v20  ;;  %v5800_v23 = vpop.permute.xlu0 %1905  ;;  %v10528_v20 = vld [vmem:[#allocation6_spill] sm:$0xff] }
 0x1e3   :  { %10521 = vst [vmem:[#allocation190_spill] sm:$0xff] %v5800_v23  ;;  %1493 = vperm.xlu1 %4517, %v4981_v26  }
 0x1e4   :  { %2289 = vperm.xlu0 %4522, %v5371_v40  }
 0x1e5   :  { %v5804_v21 = vpop.permute.xlu1 %1125 }
 0x1e6   :  { %10522 = vst [vmem:[#allocation191_spill] sm:$0xff] %v5804_v21  ;;  %v5806_v24 = vpop.permute.xlu0 %1913  ;;  %v10529_v21 = vld [vmem:[#allocation69_spill] sm:$0xff] }
 0x1e7   :  { %10523 = vst [vmem:[#allocation192_spill] sm:$0xff] %v5806_v24  ;;  %1501 = vperm.xlu1 %4517, %v4988_v27  }
 0x1e8   :  { %2297 = vperm.xlu0 %4522, %v5384_v37  }
 0x1e9   :  { %v5810_v22 = vpop.permute.xlu1 %1133 }
 0x1ea   :  { %10524 = vst [vmem:[#allocation193_spill] sm:$0xff] %v5810_v22  ;;  %v5812_v25 = vpop.permute.xlu0 %1921  ;;  %v10535_v22 = vld [vmem:[#allocation8_spill] sm:$0xff] }
 0x1eb   :  { %10525 = vst [vmem:[#allocation194_spill] sm:$0xff] %v5812_v25  ;;  %1509 = vperm.xlu1 %4517, %v4995_v28  }
 0x1ec   :  { %2305 = vperm.xlu0 %4522, %v5397_v36  }
 0x1ed   :  { %v5816_v23 = vpop.permute.xlu1 %1141 }
 0x1ee   :  { %10526 = vst [vmem:[#allocation195_spill] sm:$0xff] %v5816_v23  ;;  %v5818_v26 = vpop.permute.xlu0 %1929  ;;  %v10538_v23 = vld [vmem:[#allocation9_spill] sm:$0xff] }
 0x1ef   :  { %10527 = vst [vmem:[#allocation196_spill] sm:$0xff] %v5818_v26  ;;  %1517 = vperm.xlu1 %4517, %v10528_v20  }
 0x1f0   :  { %2313 = vperm.xlu0 %4522, %v10529_v21  }
 0x1f1   :  { %v5822_v24 = vpop.permute.xlu1 %1149 }
 0x1f2   :  { %10530 = vst [vmem:[#allocation6_spill] sm:$0xff] %v5822_v24  ;;  %v5824_v27 = vpop.permute.xlu0 %1937 }
 0x1f3   :  { %10531 = vst [vmem:[#allocation69_spill] sm:$0xff] %v5824_v27  ;;  %1525 = vperm.xlu1 %4517, %v10532_v19   ;;  %v10540_v19 = vld [vmem:[#allocation10_spill] sm:$0xff] }
 0x1f4   :  { %2321 = vperm.xlu0 %4522, %v10464_v31  }
 0x1f5   :  { %v5828_v25 = vpop.permute.xlu1 %1157 }
 0x1f6   :  { %10533 = vst [vmem:[#allocation7_spill] sm:$0xff] %v5828_v25  ;;  %v5830_v28 = vpop.permute.xlu0 %1945  ;;  %v10287_v25 = vmov 5  }
 0x1f7   :  { %10534 = vst [vmem:[#allocation197_spill] sm:$0xff] %v5830_v28  ;;  %1533 = vperm.xlu1 %4517, %v10535_v22   ;;  %v5849_v22 = vld [vmem:[%s10257_s1] sm:$0xff]  ;;  %v5893_v28 = vld [vmem:[%s10257_s1 + $0x10] sm:$0xff] }
 0x1f8   :  { %2329 = vperm.xlu0 %4522, %v10467_v29  }
 0x1f9   :  { %v5834_v26 = vpop.permute.xlu1 %1165 }
 0x1fa   :  { %10536 = vst [vmem:[#allocation8_spill] sm:$0xff] %v5834_v26  ;;  %v5836_v20 = vpop.permute.xlu0 %1953 }
 0x1fb   :  { %10537 = vst [vmem:[#allocation198_spill] sm:$0xff] %v5836_v20  ;;  %1541 = vperm.xlu1 %4517, %v10538_v23   ;;  %v10543_v23 = vld [vmem:[#allocation11_spill] sm:$0xff] }
 0x1fc   :  { %2337 = vperm.xlu0 %4522, %v10471_v42  }
 0x1fd   :  { %v5840_v27 = vpop.permute.xlu1 %1173 }
 0x1fe   :  { %10539 = vst [vmem:[#allocation9_spill] sm:$0xff] %v5840_v27 }
 0x1ff   :  { %1549 = vperm.xlu1 %4517, %v10540_v19   ;;  %v5843_v24 = vpop.permute.xlu0 %2093  ;;  %v5860_v19 = vld [vmem:[%s10257_s1 + $0x18] sm:$0xff] }
 0x200   :  { %10541 = vst [vmem:[#allocation10_spill] sm:$0xff] %v5843_v24  ;;  %4523 = vset.pattern.permute.xlu0 %v10287_v25 }
 0x201   :  { %2477 = vperm.xlu0 %4523, %v5849_v22  }
 0x202   :  { %v5852_v20 = vpop.permute.xlu1 %1313 }
 0x203   :  { %10542 = vst [vmem:[#allocation199_spill] sm:$0xff] %v5852_v20  ;;  %1557 = vperm.xlu1 %4517, %v10543_v23   ;;  %v5855_v26 = vpop.permute.xlu0 %2105  ;;  %v5871_v20 = vld [vmem:[%s10257_s1 + $0x28] sm:$0xff] }
 0x204   :  { %10544 = vst [vmem:[#allocation11_spill] sm:$0xff] %v5855_v26  ;;  %10547 = vst [vmem:[#allocation202_spill] sm:$0xff] %v5871_v20  ;;  %v10549_v26 = vmov 3  }
 0x205   :  { %2489 = vperm.xlu0 %4523, %v5860_v19  }
 0x206   :  { %v5863_v25 = vpop.permute.xlu1 %1321 }
 0x207   :  { %10545 = vst [vmem:[#allocation200_spill] sm:$0xff] %v5863_v25  ;;  %1565 = vperm.xlu1 %4517, %v10469_v47   ;;  %v5866_v24 = vpop.permute.xlu0 %2113  ;;  %v5883_v47 = vld [vmem:[%s10257_s1 + $0x38] sm:$0xff] }
 0x208   :  { %10546 = vst [vmem:[#allocation201_spill] sm:$0xff] %v5866_v24 }
 0x209   :  { %2497 = vperm.xlu0 %4523, %v5871_v20  }
 0x20a   :  { %v5874_v23 = vpop.permute.xlu1 %1325 }
 0x20b   :  { %10548 = vst [vmem:[#allocation203_spill] sm:$0xff] %v5874_v23  ;;  %4520 = vset.pattern.permute.xlu1 %v10549_v26  ;;  %v5877_v27 = vpop.permute.xlu0 %2121 }
 0x20c   :  { %10550 = vst [vmem:[#allocation204_spill] sm:$0xff] %v5877_v27  ;;  %1705 = vperm.xlu1 %4520, %v5058_v39   ;;  %v5899_v39 = vld [vmem:[%s10257_s1 + $0x48] sm:$0xff] }
 0x20d   :  { %2505 = vperm.xlu0 %4523, %v5883_v47  }
 0x20e   :  { %v5886_v24 = vpop.permute.xlu1 %1333 }
 0x20f   :  { %10551 = vst [vmem:[#allocation205_spill] sm:$0xff] %v5886_v24  ;;  %v5888_v25 = vpop.permute.xlu0 %2129 }
 0x210   :  { %10552 = vst [vmem:[#allocation206_spill] sm:$0xff] %v5888_v25  ;;  %1709 = vperm.xlu1 %4520, %v5893_v28   ;;  %v5910_v25 = vld [vmem:[%s10257_s1 + $0x58] sm:$0xff] }
 0x211   :  { %2513 = vperm.xlu0 %4523, %v5899_v39  }
 0x212   :  { %v5902_v26 = vpop.permute.xlu1 %1341 }
 0x213   :  { %10553 = vst [vmem:[#allocation207_spill] sm:$0xff] %v5902_v26  ;;  %v5904_v27 = vpop.permute.xlu0 %2137  ;;  %v5921_v26 = vld [vmem:[%s10257_s1 + $0x68] sm:$0xff] }
 0x214   :  { %10554 = vst [vmem:[#allocation208_spill] sm:$0xff] %v5904_v27  ;;  %1717 = vperm.xlu1 %4520, %v5072_v44  }
 0x215   :  { %2521 = vperm.xlu0 %4523, %v5910_v25  }
 0x216   :  { %v5913_v24 = vpop.permute.xlu1 %1349 }
 0x217   :  { %10555 = vst [vmem:[#allocation209_spill] sm:$0xff] %v5913_v24  ;;  %v5915_v23 = vpop.permute.xlu0 %2145  ;;  %v5932_v24 = vld [vmem:[%s10257_s1 + $0x78] sm:$0xff] }
 0x218   :  { %10556 = vst [vmem:[#allocation210_spill] sm:$0xff] %v5915_v23  ;;  %1725 = vperm.xlu1 %4520, %v5085_v48  }
 0x219   :  { %2529 = vperm.xlu0 %4523, %v5921_v26  }
 0x21a   :  { %v5924_v44 = vpop.permute.xlu1 %1357 }
 0x21b   :  { %10557 = vst [vmem:[#allocation211_spill] sm:$0xff] %v5924_v44  ;;  %v5926_v27 = vpop.permute.xlu0 %2153  ;;  %v5943_v44 = vld [vmem:[%s10257_s1 + $0x88] sm:$0xff] }
 0x21c   :  { %10558 = vst [vmem:[#allocation212_spill] sm:$0xff] %v5926_v27  ;;  %1733 = vperm.xlu1 %4520, %v5098_v52  }
 0x21d   :  { %2537 = vperm.xlu0 %4523, %v5932_v24  }
 0x21e   :  { %v5935_v48 = vpop.permute.xlu1 %1365 }
 0x21f   :  { %10559 = vst [vmem:[#allocation213_spill] sm:$0xff] %v5935_v48  ;;  %v5937_v23 = vpop.permute.xlu0 %2161  ;;  %v5954_v48 = vld [vmem:[%s10257_s1 + $0x98] sm:$0xff] }
 0x220   :  { %10560 = vst [vmem:[#allocation214_spill] sm:$0xff] %v5937_v23  ;;  %1741 = vperm.xlu1 %4520, %v5111_v56  }
 0x221   :  { %2545 = vperm.xlu0 %4523, %v5943_v44  }
 0x222   :  { %v5946_v52 = vpop.permute.xlu1 %1373 }
 0x223   :  { %10561 = vst [vmem:[#allocation215_spill] sm:$0xff] %v5946_v52  ;;  %v5948_v27 = vpop.permute.xlu0 %2169  ;;  %v5965_v52 = vld [vmem:[%s10257_s1 + $0xa8] sm:$0xff] }
 0x224   :  { %10562 = vst [vmem:[#allocation216_spill] sm:$0xff] %v5948_v27  ;;  %1749 = vperm.xlu1 %4520, %v5124_v60  }
 0x225   :  { %2553 = vperm.xlu0 %4523, %v5954_v48  }
 0x226   :  { %v5957_v56 = vpop.permute.xlu1 %1381 }
 0x227   :  { %10563 = vst [vmem:[#allocation217_spill] sm:$0xff] %v5957_v56  ;;  %v5959_v23 = vpop.permute.xlu0 %2177  ;;  %v5976_v56 = vld [vmem:[%s10257_s1 + $0xb8] sm:$0xff] }
 0x228   :  { %10564 = vst [vmem:[#allocation218_spill] sm:$0xff] %v5959_v23  ;;  %1757 = vperm.xlu1 %4520, %v5137_v0  }
 0x229   :  { %2561 = vperm.xlu0 %4523, %v5965_v52  }
 0x22a   :  { %v5968_v60 = vpop.permute.xlu1 %1389 }
 0x22b   :  { %10565 = vst [vmem:[#allocation219_spill] sm:$0xff] %v5968_v60  ;;  %v5970_v27 = vpop.permute.xlu0 %2185  ;;  %v5987_v60 = vld [vmem:[%s10257_s1 + $0xc8] sm:$0xff] }
 0x22c   :  { %10566 = vst [vmem:[#allocation220_spill] sm:$0xff] %v5970_v27  ;;  %1765 = vperm.xlu1 %4520, %v5150_v51  }
 0x22d   :  { %2569 = vperm.xlu0 %4523, %v5976_v56  }
 0x22e   :  { %v5979_v0 = vpop.permute.xlu1 %1397 }
 0x22f   :  { %10567 = vst [vmem:[#allocation221_spill] sm:$0xff] %v5979_v0  ;;  %v5981_v23 = vpop.permute.xlu0 %2193  ;;  %v5998_v0 = vld [vmem:[%s10257_s1 + $0xd8] sm:$0xff] }
 0x230   :  { %10568 = vst [vmem:[#allocation222_spill] sm:$0xff] %v5981_v23  ;;  %1773 = vperm.xlu1 %4520, %v5163_v4  }
 0x231   :  { %2577 = vperm.xlu0 %4523, %v5987_v60  }
 0x232   :  { %v5990_v51 = vpop.permute.xlu1 %1405 }
 0x233   :  { %10569 = vst [vmem:[#allocation223_spill] sm:$0xff] %v5990_v51  ;;  %v5992_v27 = vpop.permute.xlu0 %2201  ;;  %v6009_v51 = vld [vmem:[%s10257_s1 + $0xe8] sm:$0xff] }
 0x234   :  { %10570 = vst [vmem:[#allocation224_spill] sm:$0xff] %v5992_v27  ;;  %1781 = vperm.xlu1 %4520, %v5176_v59  }
 0x235   :  { %2585 = vperm.xlu0 %4523, %v5998_v0  }
 0x236   :  { %v6001_v4 = vpop.permute.xlu1 %1413 }
 0x237   :  { %10571 = vst [vmem:[#allocation225_spill] sm:$0xff] %v6001_v4  ;;  %v6003_v23 = vpop.permute.xlu0 %2209  ;;  %v6020_v4 = vld [vmem:[%s10257_s1 + $0xf8] sm:$0xff] }
 0x238   :  { %10572 = vst [vmem:[#allocation226_spill] sm:$0xff] %v6003_v23  ;;  %1789 = vperm.xlu1 %4520, %v5189_v3  }
 0x239   :  { %2593 = vperm.xlu0 %4523, %v6009_v51  }
 0x23a   :  { %v6012_v59 = vpop.permute.xlu1 %1421 }
 0x23b   :  { %10573 = vst [vmem:[#allocation227_spill] sm:$0xff] %v6012_v59  ;;  %v6014_v27 = vpop.permute.xlu0 %2217  ;;  %v6031_v59 = vld [vmem:[%s10257_s1 + $0x108] sm:$0xff] }
 0x23c   :  { %10574 = vst [vmem:[#allocation228_spill] sm:$0xff] %v6014_v27  ;;  %1797 = vperm.xlu1 %4520, %v5202_v43  }
 0x23d   :  { %2601 = vperm.xlu0 %4523, %v6020_v4  }
 0x23e   :  { %v6023_v3 = vpop.permute.xlu1 %1429 }
 0x23f   :  { %10575 = vst [vmem:[#allocation229_spill] sm:$0xff] %v6023_v3  ;;  %v6025_v23 = vpop.permute.xlu0 %2225  ;;  %v6042_v3 = vld [vmem:[%s10257_s1 + $0x118] sm:$0xff] }
 0x240   :  { %10576 = vst [vmem:[#allocation230_spill] sm:$0xff] %v6025_v23  ;;  %1805 = vperm.xlu1 %4520, %v5215_v38  }
 0x241   :  { %2609 = vperm.xlu0 %4523, %v6031_v59  }
 0x242   :  { %v6034_v43 = vpop.permute.xlu1 %1437 }
 0x243   :  { %10577 = vst [vmem:[#allocation231_spill] sm:$0xff] %v6034_v43  ;;  %v6036_v27 = vpop.permute.xlu0 %2233  ;;  %v6053_v43 = vld [vmem:[%s10257_s1 + $0x128] sm:$0xff] }
 0x244   :  { %10578 = vst [vmem:[#allocation232_spill] sm:$0xff] %v6036_v27  ;;  %1813 = vperm.xlu1 %4520, %v5228_v62  }
 0x245   :  { %2617 = vperm.xlu0 %4523, %v6042_v3  }
 0x246   :  { %v6045_v38 = vpop.permute.xlu1 %1445 }
 0x247   :  { %10579 = vst [vmem:[#allocation233_spill] sm:$0xff] %v6045_v38  ;;  %v6047_v23 = vpop.permute.xlu0 %2241  ;;  %v6064_v38 = vld [vmem:[%s10257_s1 + $0x138] sm:$0xff] }
 0x248   :  { %10580 = vst [vmem:[#allocation234_spill] sm:$0xff] %v6047_v23  ;;  %1821 = vperm.xlu1 %4520, %v5241_v61  }
 0x249   :  { %2625 = vperm.xlu0 %4523, %v6053_v43  }
 0x24a   :  { %v6056_v62 = vpop.permute.xlu1 %1453 }
 0x24b   :  { %10581 = vst [vmem:[#allocation235_spill] sm:$0xff] %v6056_v62  ;;  %v6058_v27 = vpop.permute.xlu0 %2249  ;;  %v6075_v62 = vld [vmem:[%s10257_s1 + $0x148] sm:$0xff] }
 0x24c   :  { %10582 = vst [vmem:[#allocation236_spill] sm:$0xff] %v6058_v27  ;;  %1829 = vperm.xlu1 %4520, %v5254_v58  }
 0x24d   :  { %2633 = vperm.xlu0 %4523, %v6064_v38  }
 0x24e   :  { %v6067_v61 = vpop.permute.xlu1 %1461 }
 0x24f   :  { %10583 = vst [vmem:[#allocation237_spill] sm:$0xff] %v6067_v61  ;;  %v6069_v23 = vpop.permute.xlu0 %2257  ;;  %v6086_v61 = vld [vmem:[%s10257_s1 + $0x158] sm:$0xff] }
 0x250   :  { %10584 = vst [vmem:[#allocation238_spill] sm:$0xff] %v6069_v23  ;;  %1837 = vperm.xlu1 %4520, %v5267_v57  }
 0x251   :  { %2641 = vperm.xlu0 %4523, %v6075_v62  }
 0x252   :  { %v6078_v58 = vpop.permute.xlu1 %1469 }
 0x253   :  { %10585 = vst [vmem:[#allocation239_spill] sm:$0xff] %v6078_v58  ;;  %v6080_v27 = vpop.permute.xlu0 %2265  ;;  %v6097_v58 = vld [vmem:[%s10257_s1 + $0x168] sm:$0xff] }
 0x254   :  { %10586 = vst [vmem:[#allocation240_spill] sm:$0xff] %v6080_v27  ;;  %1845 = vperm.xlu1 %4520, %v5280_v54  }
 0x255   :  { %2649 = vperm.xlu0 %4523, %v6086_v61  }
 0x256   :  { %v6089_v57 = vpop.permute.xlu1 %1477 }
 0x257   :  { %10587 = vst [vmem:[#allocation241_spill] sm:$0xff] %v6089_v57  ;;  %v6091_v23 = vpop.permute.xlu0 %2273  ;;  %v6108_v57 = vld [vmem:[%s10257_s1 + $0x178] sm:$0xff] }
 0x258   :  { %10588 = vst [vmem:[#allocation242_spill] sm:$0xff] %v6091_v23  ;;  %1853 = vperm.xlu1 %4520, %v5293_v53  }
 0x259   :  { %2657 = vperm.xlu0 %4523, %v6097_v58  }
 0x25a   :  { %v6100_v54 = vpop.permute.xlu1 %1485 }
 0x25b   :  { %10589 = vst [vmem:[#allocation243_spill] sm:$0xff] %v6100_v54  ;;  %v6102_v27 = vpop.permute.xlu0 %2281  ;;  %v6119_v54 = vld [vmem:[%s10257_s1 + $0x188] sm:$0xff] }
 0x25c   :  { %10590 = vst [vmem:[#allocation244_spill] sm:$0xff] %v6102_v27  ;;  %1861 = vperm.xlu1 %4520, %v5306_v50  }
 0x25d   :  { %2665 = vperm.xlu0 %4523, %v6108_v57  }
 0x25e   :  { %v6111_v53 = vpop.permute.xlu1 %1493 }
 0x25f   :  { %10591 = vst [vmem:[#allocation245_spill] sm:$0xff] %v6111_v53  ;;  %v6113_v23 = vpop.permute.xlu0 %2289  ;;  %v6130_v53 = vld [vmem:[%s10257_s1 + $0x198] sm:$0xff] }
 0x260   :  { %10592 = vst [vmem:[#allocation246_spill] sm:$0xff] %v6113_v23  ;;  %1869 = vperm.xlu1 %4520, %v5319_v49  }
 0x261   :  { %2673 = vperm.xlu0 %4523, %v6119_v54  }
 0x262   :  { %v6122_v50 = vpop.permute.xlu1 %1501 }
 0x263   :  { %10593 = vst [vmem:[#allocation247_spill] sm:$0xff] %v6122_v50  ;;  %v6124_v27 = vpop.permute.xlu0 %2297  ;;  %v6141_v50 = vld [vmem:[%s10257_s1 + $0x1a8] sm:$0xff] }
 0x264   :  { %10594 = vst [vmem:[#allocation248_spill] sm:$0xff] %v6124_v27  ;;  %1877 = vperm.xlu1 %4520, %v5332_v46  }
 0x265   :  { %2681 = vperm.xlu0 %4523, %v6130_v53  }
 0x266   :  { %v6133_v49 = vpop.permute.xlu1 %1509 }
 0x267   :  { %10595 = vst [vmem:[#allocation249_spill] sm:$0xff] %v6133_v49  ;;  %v6135_v23 = vpop.permute.xlu0 %2305  ;;  %v6152_v49 = vld [vmem:[%s10257_s1 + $0x1b8] sm:$0xff] }
 0x268   :  { %10596 = vst [vmem:[#allocation250_spill] sm:$0xff] %v6135_v23  ;;  %1885 = vperm.xlu1 %4520, %v5345_v45   ;;  %10599 = vst [vmem:[#allocation253_spill] sm:$0xff] %v6152_v49 }
 0x269   :  { %2689 = vperm.xlu0 %4523, %v6141_v50  }
 0x26a   :  { %v6144_v46 = vpop.permute.xlu1 %1517 }
 0x26b   :  { %10597 = vst [vmem:[#allocation251_spill] sm:$0xff] %v6144_v46  ;;  %v6146_v27 = vpop.permute.xlu0 %2313  ;;  %v6163_v46 = vld [vmem:[%s10257_s1 + $0x1c8] sm:$0xff] }
 0x26c   :  { %10598 = vst [vmem:[#allocation252_spill] sm:$0xff] %v6146_v27  ;;  %1893 = vperm.xlu1 %4520, %v5358_v41   ;;  %10602 = vst [vmem:[#allocation256_spill] sm:$0xff] %v6163_v46 }
 0x26d   :  { %2697 = vperm.xlu0 %4523, %v6152_v49  }
 0x26e   :  { %v6155_v45 = vpop.permute.xlu1 %1525 }
 0x26f   :  { %10600 = vst [vmem:[#allocation254_spill] sm:$0xff] %v6155_v45  ;;  %v6157_v23 = vpop.permute.xlu0 %2321  ;;  %v6174_v45 = vld [vmem:[%s10257_s1 + $0x1d8] sm:$0xff] }
 0x270   :  { %10601 = vst [vmem:[#allocation255_spill] sm:$0xff] %v6157_v23  ;;  %1901 = vperm.xlu1 %4520, %v5371_v40   ;;  %10605 = vst [vmem:[#allocation259_spill] sm:$0xff] %v6174_v45 }
 0x271   :  { %2705 = vperm.xlu0 %4523, %v6163_v46  }
 0x272   :  { %v6166_v41 = vpop.permute.xlu1 %1533 }
 0x273   :  { %10603 = vst [vmem:[#allocation257_spill] sm:$0xff] %v6166_v41  ;;  %v6168_v27 = vpop.permute.xlu0 %2329  ;;  %v6185_v41 = vld [vmem:[%s10257_s1 + $0x1e8] sm:$0xff] }
 0x274   :  { %10604 = vst [vmem:[#allocation258_spill] sm:$0xff] %v6168_v27  ;;  %1909 = vperm.xlu1 %4520, %v5384_v37   ;;  %10608 = vst [vmem:[#allocation262_spill] sm:$0xff] %v6185_v41 }
 0x275   :  { %2713 = vperm.xlu0 %4523, %v6174_v45  }
 0x276   :  { %v6177_v40 = vpop.permute.xlu1 %1541 }
 0x277   :  { %10606 = vst [vmem:[#allocation260_spill] sm:$0xff] %v6177_v40  ;;  %v6179_v23 = vpop.permute.xlu0 %2337  ;;  %v6196_v40 = vld [vmem:[%s10257_s1 + $0x1f8] sm:$0xff] }
 0x278   :  { %10607 = vst [vmem:[#allocation261_spill] sm:$0xff] %v6179_v23  ;;  %1917 = vperm.xlu1 %4520, %v5397_v36   ;;  %10611 = vst [vmem:[#allocation265_spill] sm:$0xff] %v6196_v40 }
 0x279   :  { %2721 = vperm.xlu0 %4523, %v6185_v41  }
 0x27a   :  { %v6188_v37 = vpop.permute.xlu1 %1549 }
 0x27b   :  { %10609 = vst [vmem:[#allocation263_spill] sm:$0xff] %v6188_v37 }
 0x27c   :  { %1925 = vperm.xlu1 %4520, %v10529_v21   ;;  %v6191_v27 = vpop.permute.xlu0 %2477  ;;  %v6210_v21 = vld [vmem:[%s10257_s1 + $0x8] sm:$0xff] }
 0x27d   :  { %10610 = vst [vmem:[#allocation264_spill] sm:$0xff] %v6191_v27  ;;  %2729 = vperm.xlu0 %4523, %v6196_v40  }
 0x27e   :  { %v6199_v36 = vpop.permute.xlu1 %1557 }
 0x27f   :  { %10612 = vst [vmem:[#allocation266_spill] sm:$0xff] %v6199_v36 }
 0x280   :  { %1933 = vperm.xlu1 %4520, %v10464_v31   ;;  %v6202_v23 = vpop.permute.xlu0 %2489  ;;  %v6219_v31 = vld [vmem:[%s10257_s1 + $0x20] sm:$0xff] }
 0x281   :  { %10613 = vst [vmem:[#allocation267_spill] sm:$0xff] %v6202_v23  ;;  %4526 = vset.pattern.permute.xlu0 %v10288_v18 }
 0x282   :  { %v6205_v37 = vpop.permute.xlu1 %1565  ;;  %2869 = vperm.xlu0 %4526, %v6210_v21  }
 0x283   :  { %10614 = vst [vmem:[#allocation268_spill] sm:$0xff] %v6205_v37  ;;  %v6230_v37 = vld [vmem:[%s10257_s1 + $0x30] sm:$0xff] }
 0x284   :  { %1941 = vperm.xlu1 %4520, %v10467_v29   ;;  %v6214_v27 = vpop.permute.xlu0 %2497  ;;  %10618 = vst [vmem:[#allocation272_spill] sm:$0xff] %v6230_v37 }
 0x285   :  { %10615 = vst [vmem:[#allocation269_spill] sm:$0xff] %v6214_v27  ;;  %v10620_v27 = vmov 4  }
 0x286   :  { %2881 = vperm.xlu0 %4526, %v6219_v31  }
 0x287   :  { %v6222_v18 = vpop.permute.xlu1 %1705 }
 0x288   :  { %10616 = vst [vmem:[#allocation270_spill] sm:$0xff] %v6222_v18  ;;  %1949 = vperm.xlu1 %4520, %v10471_v42   ;;  %v6225_v23 = vpop.permute.xlu0 %2505  ;;  %v6242_v42 = vld [vmem:[%s10257_s1 + $0x40] sm:$0xff] }
 0x289   :  { %10617 = vst [vmem:[#allocation271_spill] sm:$0xff] %v6225_v23 }
 0x28a   :  { %2889 = vperm.xlu0 %4526, %v6230_v37  }
 0x28b   :  { %v6233_v29 = vpop.permute.xlu1 %1709 }
 0x28c   :  { %10619 = vst [vmem:[#allocation273_spill] sm:$0xff] %v6233_v29  ;;  %4521 = vset.pattern.permute.xlu1 %v10620_v27  ;;  %v6236_v36 = vpop.permute.xlu0 %2513  ;;  %v6253_v27 = vld [vmem:[%s10257_s1 + $0x50] sm:$0xff] }
 0x28d   :  { %10621 = vst [vmem:[#allocation274_spill] sm:$0xff] %v6236_v36  ;;  %2089 = vperm.xlu1 %4521, %v5849_v22  }
 0x28e   :  { %2897 = vperm.xlu0 %4526, %v6242_v42  }
 0x28f   :  { %v6245_v23 = vpop.permute.xlu1 %1717 }
 0x290   :  { %10622 = vst [vmem:[#allocation275_spill] sm:$0xff] %v6245_v23  ;;  %v6247_v18 = vpop.permute.xlu0 %2521  ;;  %v6264_v23 = vld [vmem:[%s10257_s1 + $0x60] sm:$0xff] }
 0x291   :  { %10623 = vst [vmem:[#allocation276_spill] sm:$0xff] %v6247_v18  ;;  %2097 = vperm.xlu1 %4521, %v5893_v28  }
 0x292   :  { %2905 = vperm.xlu0 %4526, %v6253_v27  }
 0x293   :  { %v6256_v36 = vpop.permute.xlu1 %1725 }
 0x294   :  { %10624 = vst [vmem:[#allocation277_spill] sm:$0xff] %v6256_v36  ;;  %v6258_v29 = vpop.permute.xlu0 %2529  ;;  %v6275_v36 = vld [vmem:[%s10257_s1 + $0x70] sm:$0xff] }
 0x295   :  { %10625 = vst [vmem:[#allocation278_spill] sm:$0xff] %v6258_v29  ;;  %2101 = vperm.xlu1 %4521, %v5860_v19  }
 0x296   :  { %2913 = vperm.xlu0 %4526, %v6264_v23  }
 0x297   :  { %v6267_v18 = vpop.permute.xlu1 %1733 }
 0x298   :  { %10626 = vst [vmem:[#allocation279_spill] sm:$0xff] %v6267_v18  ;;  %v6269_v17 = vpop.permute.xlu0 %2537  ;;  %v6286_v18 = vld [vmem:[%s10257_s1 + $0x80] sm:$0xff] }
 0x299   :  { %10627 = vst [vmem:[#allocation280_spill] sm:$0xff] %v6269_v17  ;;  %2109 = vperm.xlu1 %4521, %v5871_v20  }
 0x29a   :  { %2921 = vperm.xlu0 %4526, %v6275_v36  }
 0x29b   :  { %v6278_v29 = vpop.permute.xlu1 %1741 }
 0x29c   :  { %10628 = vst [vmem:[#allocation281_spill] sm:$0xff] %v6278_v29  ;;  %v6280_v16 = vpop.permute.xlu0 %2545  ;;  %v6297_v29 = vld [vmem:[%s10257_s1 + $0x90] sm:$0xff] }
 0x29d   :  { %10629 = vst [vmem:[#allocation282_spill] sm:$0xff] %v6280_v16  ;;  %2117 = vperm.xlu1 %4521, %v5883_v47  }
 0x29e   :  { %2929 = vperm.xlu0 %4526, %v6286_v18  }
 0x29f   :  { %v6289_v17 = vpop.permute.xlu1 %1749 }
 0x2a0   :  { %10630 = vst [vmem:[#allocation283_spill] sm:$0xff] %v6289_v17  ;;  %v6291_v15 = vpop.permute.xlu0 %2553  ;;  %v6308_v17 = vld [vmem:[%s10257_s1 + $0xa0] sm:$0xff] }
 0x2a1   :  { %10631 = vst [vmem:[#allocation284_spill] sm:$0xff] %v6291_v15  ;;  %2125 = vperm.xlu1 %4521, %v5899_v39  }
 0x2a2   :  { %2937 = vperm.xlu0 %4526, %v6297_v29  }
 0x2a3   :  { %v6300_v16 = vpop.permute.xlu1 %1757 }
 0x2a4   :  { %10632 = vst [vmem:[#allocation285_spill] sm:$0xff] %v6300_v16  ;;  %v6302_v14 = vpop.permute.xlu0 %2561  ;;  %v6319_v16 = vld [vmem:[%s10257_s1 + $0xb0] sm:$0xff] }
 0x2a5   :  { %10633 = vst [vmem:[#allocation286_spill] sm:$0xff] %v6302_v14  ;;  %2133 = vperm.xlu1 %4521, %v5910_v25  }
 0x2a6   :  { %2945 = vperm.xlu0 %4526, %v6308_v17  }
 0x2a7   :  { %v6311_v15 = vpop.permute.xlu1 %1765 }
 0x2a8   :  { %10634 = vst [vmem:[#allocation287_spill] sm:$0xff] %v6311_v15  ;;  %v6313_v13 = vpop.permute.xlu0 %2569  ;;  %v6330_v15 = vld [vmem:[%s10257_s1 + $0xc0] sm:$0xff] }
 0x2a9   :  { %10635 = vst [vmem:[#allocation288_spill] sm:$0xff] %v6313_v13  ;;  %2141 = vperm.xlu1 %4521, %v5921_v26  }
 0x2aa   :  { %2953 = vperm.xlu0 %4526, %v6319_v16  }
 0x2ab   :  { %v6322_v14 = vpop.permute.xlu1 %1773 }
 0x2ac   :  { %10636 = vst [vmem:[#allocation289_spill] sm:$0xff] %v6322_v14  ;;  %v6324_v12 = vpop.permute.xlu0 %2577  ;;  %v6341_v14 = vld [vmem:[%s10257_s1 + $0xd0] sm:$0xff] }
 0x2ad   :  { %10637 = vst [vmem:[#allocation290_spill] sm:$0xff] %v6324_v12  ;;  %2149 = vperm.xlu1 %4521, %v5932_v24  }
 0x2ae   :  { %2961 = vperm.xlu0 %4526, %v6330_v15  }
 0x2af   :  { %v6333_v13 = vpop.permute.xlu1 %1781 }
 0x2b0   :  { %10638 = vst [vmem:[#allocation291_spill] sm:$0xff] %v6333_v13  ;;  %v6335_v11 = vpop.permute.xlu0 %2585  ;;  %v6352_v13 = vld [vmem:[%s10257_s1 + $0xe0] sm:$0xff] }
 0x2b1   :  { %10639 = vst [vmem:[#allocation292_spill] sm:$0xff] %v6335_v11  ;;  %2157 = vperm.xlu1 %4521, %v5943_v44  }
 0x2b2   :  { %2969 = vperm.xlu0 %4526, %v6341_v14  }
 0x2b3   :  { %v6344_v12 = vpop.permute.xlu1 %1789 }
 0x2b4   :  { %10640 = vst [vmem:[#allocation293_spill] sm:$0xff] %v6344_v12  ;;  %v6346_v10 = vpop.permute.xlu0 %2593  ;;  %v6363_v12 = vld [vmem:[%s10257_s1 + $0xf0] sm:$0xff] }
 0x2b5   :  { %10641 = vst [vmem:[#allocation294_spill] sm:$0xff] %v6346_v10  ;;  %2165 = vperm.xlu1 %4521, %v5954_v48  }
 0x2b6   :  { %2977 = vperm.xlu0 %4526, %v6352_v13  }
 0x2b7   :  { %v6355_v11 = vpop.permute.xlu1 %1797 }
 0x2b8   :  { %10642 = vst [vmem:[#allocation295_spill] sm:$0xff] %v6355_v11  ;;  %v6357_v9 = vpop.permute.xlu0 %2601  ;;  %v6374_v11 = vld [vmem:[%s10257_s1 + $0x100] sm:$0xff] }
 0x2b9   :  { %10643 = vst [vmem:[#allocation296_spill] sm:$0xff] %v6357_v9  ;;  %2173 = vperm.xlu1 %4521, %v5965_v52  }
 0x2ba   :  { %2985 = vperm.xlu0 %4526, %v6363_v12  }
 0x2bb   :  { %v6366_v10 = vpop.permute.xlu1 %1805 }
 0x2bc   :  { %10644 = vst [vmem:[#allocation297_spill] sm:$0xff] %v6366_v10  ;;  %v6368_v8 = vpop.permute.xlu0 %2609  ;;  %v6385_v10 = vld [vmem:[%s10257_s1 + $0x110] sm:$0xff] }
 0x2bd   :  { %10645 = vst [vmem:[#allocation298_spill] sm:$0xff] %v6368_v8  ;;  %2181 = vperm.xlu1 %4521, %v5976_v56  }
 0x2be   :  { %2993 = vperm.xlu0 %4526, %v6374_v11  }
 0x2bf   :  { %v6377_v9 = vpop.permute.xlu1 %1813 }
 0x2c0   :  { %10646 = vst [vmem:[#allocation299_spill] sm:$0xff] %v6377_v9  ;;  %v6379_v7 = vpop.permute.xlu0 %2617  ;;  %v6396_v9 = vld [vmem:[%s10257_s1 + $0x120] sm:$0xff] }
 0x2c1   :  { %10647 = vst [vmem:[#allocation300_spill] sm:$0xff] %v6379_v7  ;;  %2189 = vperm.xlu1 %4521, %v5987_v60  }
 0x2c2   :  { %3001 = vperm.xlu0 %4526, %v6385_v10  }
 0x2c3   :  { %v6388_v8 = vpop.permute.xlu1 %1821 }
 0x2c4   :  { %10648 = vst [vmem:[#allocation301_spill] sm:$0xff] %v6388_v8  ;;  %v6390_v6 = vpop.permute.xlu0 %2625  ;;  %v6407_v8 = vld [vmem:[%s10257_s1 + $0x130] sm:$0xff] }
 0x2c5   :  { %10649 = vst [vmem:[#allocation302_spill] sm:$0xff] %v6390_v6  ;;  %2197 = vperm.xlu1 %4521, %v5998_v0  }
 0x2c6   :  { %3009 = vperm.xlu0 %4526, %v6396_v9  }
 0x2c7   :  { %v6399_v7 = vpop.permute.xlu1 %1829 }
 0x2c8   :  { %10650 = vst [vmem:[#allocation303_spill] sm:$0xff] %v6399_v7  ;;  %v6401_v5 = vpop.permute.xlu0 %2633  ;;  %v6418_v7 = vld [vmem:[%s10257_s1 + $0x140] sm:$0xff] }
 0x2c9   :  { %10651 = vst [vmem:[#allocation304_spill] sm:$0xff] %v6401_v5  ;;  %2205 = vperm.xlu1 %4521, %v6009_v51  }
 0x2ca   :  { %3017 = vperm.xlu0 %4526, %v6407_v8  }
 0x2cb   :  { %v6410_v6 = vpop.permute.xlu1 %1837 }
 0x2cc   :  { %10652 = vst [vmem:[#allocation305_spill] sm:$0xff] %v6410_v6  ;;  %v6412_v1 = vpop.permute.xlu0 %2641  ;;  %v6429_v6 = vld [vmem:[%s10257_s1 + $0x150] sm:$0xff] }
 0x2cd   :  { %10653 = vst [vmem:[#allocation306_spill] sm:$0xff] %v6412_v1  ;;  %2213 = vperm.xlu1 %4521, %v6020_v4  }
 0x2ce   :  { %3025 = vperm.xlu0 %4526, %v6418_v7  }
 0x2cf   :  { %v6421_v5 = vpop.permute.xlu1 %1845 }
 0x2d0   :  { %10654 = vst [vmem:[#allocation307_spill] sm:$0xff] %v6421_v5  ;;  %v6423_v2 = vpop.permute.xlu0 %2649  ;;  %v6440_v5 = vld [vmem:[%s10257_s1 + $0x160] sm:$0xff] }
 0x2d1   :  { %10655 = vst [vmem:[#allocation308_spill] sm:$0xff] %v6423_v2  ;;  %2221 = vperm.xlu1 %4521, %v6031_v59  }
 0x2d2   :  { %3033 = vperm.xlu0 %4526, %v6429_v6  }
 0x2d3   :  { %v6432_v1 = vpop.permute.xlu1 %1853 }
 0x2d4   :  { %10656 = vst [vmem:[#allocation309_spill] sm:$0xff] %v6432_v1  ;;  %v6434_v33 = vpop.permute.xlu0 %2657  ;;  %v6451_v1 = vld [vmem:[%s10257_s1 + $0x170] sm:$0xff] }
 0x2d5   :  { %10657 = vst [vmem:[#allocation310_spill] sm:$0xff] %v6434_v33  ;;  %2229 = vperm.xlu1 %4521, %v6042_v3  }
 0x2d6   :  { %3041 = vperm.xlu0 %4526, %v6440_v5  }
 0x2d7   :  { %v6443_v2 = vpop.permute.xlu1 %1861 }
 0x2d8   :  { %10658 = vst [vmem:[#allocation311_spill] sm:$0xff] %v6443_v2  ;;  %v6445_v55 = vpop.permute.xlu0 %2665  ;;  %v6462_v2 = vld [vmem:[%s10257_s1 + $0x180] sm:$0xff] }
 0x2d9   :  { %10659 = vst [vmem:[#allocation312_spill] sm:$0xff] %v6445_v55  ;;  %2237 = vperm.xlu1 %4521, %v6053_v43  }
 0x2da   :  { %3049 = vperm.xlu0 %4526, %v6451_v1  }
 0x2db   :  { %v6454_v33 = vpop.permute.xlu1 %1869 }
 0x2dc   :  { %10660 = vst [vmem:[#allocation313_spill] sm:$0xff] %v6454_v33  ;;  %v6456_v63 = vpop.permute.xlu0 %2673  ;;  %v6473_v33 = vld [vmem:[%s10257_s1 + $0x190] sm:$0xff] }
 0x2dd   :  { %10661 = vst [vmem:[#allocation314_spill] sm:$0xff] %v6456_v63  ;;  %2245 = vperm.xlu1 %4521, %v6064_v38   ;;  %10664 = vst [vmem:[#allocation317_spill] sm:$0xff] %v6473_v33 }
 0x2de   :  { %3057 = vperm.xlu0 %4526, %v6462_v2  }
 0x2df   :  { %v6465_v55 = vpop.permute.xlu1 %1877 }
 0x2e0   :  { %10662 = vst [vmem:[#allocation315_spill] sm:$0xff] %v6465_v55  ;;  %v6467_v35 = vpop.permute.xlu0 %2681  ;;  %v6484_v55 = vld [vmem:[%s10257_s1 + $0x1a0] sm:$0xff] }
 0x2e1   :  { %10663 = vst [vmem:[#allocation316_spill] sm:$0xff] %v6467_v35  ;;  %2253 = vperm.xlu1 %4521, %v6075_v62   ;;  %10667 = vst [vmem:[#allocation320_spill] sm:$0xff] %v6484_v55 }
 0x2e2   :  { %3065 = vperm.xlu0 %4526, %v6473_v33  }
 0x2e3   :  { %v6476_v63 = vpop.permute.xlu1 %1885 }
 0x2e4   :  { %10665 = vst [vmem:[#allocation318_spill] sm:$0xff] %v6476_v63  ;;  %v6478_v32 = vpop.permute.xlu0 %2689  ;;  %v6495_v63 = vld [vmem:[%s10257_s1 + $0x1b0] sm:$0xff] }
 0x2e5   :  { %10666 = vst [vmem:[#allocation319_spill] sm:$0xff] %v6478_v32  ;;  %2261 = vperm.xlu1 %4521, %v6086_v61   ;;  %10670 = vst [vmem:[#allocation323_spill] sm:$0xff] %v6495_v63 }
 0x2e6   :  { %3073 = vperm.xlu0 %4526, %v6484_v55  }
 0x2e7   :  { %v6487_v35 = vpop.permute.xlu1 %1893 }
 0x2e8   :  { %10668 = vst [vmem:[#allocation321_spill] sm:$0xff] %v6487_v35  ;;  %v6489_v34 = vpop.permute.xlu0 %2697  ;;  %v6506_v35 = vld [vmem:[%s10257_s1 + $0x1c0] sm:$0xff] }
 0x2e9   :  { %10669 = vst [vmem:[#allocation322_spill] sm:$0xff] %v6489_v34  ;;  %2269 = vperm.xlu1 %4521, %v6097_v58   ;;  %10673 = vst [vmem:[#allocation326_spill] sm:$0xff] %v6506_v35 }
 0x2ea   :  { %3081 = vperm.xlu0 %4526, %v6495_v63  }
 0x2eb   :  { %v6498_v32 = vpop.permute.xlu1 %1901 }
 0x2ec   :  { %10671 = vst [vmem:[#allocation324_spill] sm:$0xff] %v6498_v32  ;;  %v6500_v30 = vpop.permute.xlu0 %2705  ;;  %v6517_v32 = vld [vmem:[%s10257_s1 + $0x1d0] sm:$0xff] }
 0x2ed   :  { %10672 = vst [vmem:[#allocation325_spill] sm:$0xff] %v6500_v30  ;;  %2277 = vperm.xlu1 %4521, %v6108_v57   ;;  %10676 = vst [vmem:[#allocation329_spill] sm:$0xff] %v6517_v32 }
 0x2ee   :  { %3089 = vperm.xlu0 %4526, %v6506_v35  }
 0x2ef   :  { %v6509_v34 = vpop.permute.xlu1 %1909 }
 0x2f0   :  { %10674 = vst [vmem:[#allocation327_spill] sm:$0xff] %v6509_v34  ;;  %v6511_v55 = vpop.permute.xlu0 %2713  ;;  %v6528_v34 = vld [vmem:[%s10257_s1 + $0x1e0] sm:$0xff] }
 0x2f1   :  { %10675 = vst [vmem:[#allocation328_spill] sm:$0xff] %v6511_v55  ;;  %2285 = vperm.xlu1 %4521, %v6119_v54   ;;  %10679 = vst [vmem:[#allocation332_spill] sm:$0xff] %v6528_v34 }
 0x2f2   :  { %3097 = vperm.xlu0 %4526, %v6517_v32  }
 0x2f3   :  { %v6520_v30 = vpop.permute.xlu1 %1917 }
 0x2f4   :  { %10677 = vst [vmem:[#allocation330_spill] sm:$0xff] %v6520_v30  ;;  %v6522_v63 = vpop.permute.xlu0 %2721  ;;  %v6539_v30 = vld [vmem:[%s10257_s1 + $0x1f0] sm:$0xff] }
 0x2f5   :  { %10678 = vst [vmem:[#allocation331_spill] sm:$0xff] %v6522_v63  ;;  %2293 = vperm.xlu1 %4521, %v6130_v53  }
 0x2f6   :  { %3105 = vperm.xlu0 %4526, %v6528_v34   ;;  %v10301_v34 = vmov 7  }
 0x2f7   :  { %v6531_v55 = vpop.permute.xlu1 %1925 }
 0x2f8   :  { %10680 = vst [vmem:[#allocation333_spill] sm:$0xff] %v6531_v55  ;;  %v6533_v35 = vpop.permute.xlu0 %2729 }
 0x2f9   :  { %10681 = vst [vmem:[#allocation334_spill] sm:$0xff] %v6533_v35  ;;  %2301 = vperm.xlu1 %4521, %v6141_v50  }
 0x2fa   :  { %3113 = vperm.xlu0 %4526, %v6539_v30  }
 0x2fb   :  { %v6542_v63 = vpop.permute.xlu1 %1933 }
 0x2fc   :  { %10682 = vst [vmem:[#allocation335_spill] sm:$0xff] %v6542_v63 }
 0x2fd   :  { %2309 = vperm.xlu1 %4521, %v6152_v49   ;;  %v6545_v32 = vpop.permute.xlu0 %2869 }
 0x2fe   :  { %10683 = vst [vmem:[#allocation336_spill] sm:$0xff] %v6545_v32  ;;  %4527 = vset.pattern.permute.xlu0 %v10301_v34 }
 0x2ff   :  { %v6548_v55 = vpop.permute.xlu1 %1941  ;;  %3253 = vperm.xlu0 %4527, %v5849_v22  }
 0x300   :  { %10684 = vst [vmem:[#allocation337_spill] sm:$0xff] %v6548_v55 }
 0x301   :  { %2317 = vperm.xlu1 %4521, %v6163_v46   ;;  %v6552_v35 = vpop.permute.xlu0 %2881 }
 0x302   :  { %10685 = vst [vmem:[#allocation338_spill] sm:$0xff] %v6552_v35 }
 0x303   :  { %v6554_v33 = vpop.permute.xlu1 %1949  ;;  %3265 = vperm.xlu0 %4527, %v5860_v19  }
 0x304   :  { %10686 = vst [vmem:[#allocation339_spill] sm:$0xff] %v6554_v33 }
 0x305   :  { %2325 = vperm.xlu1 %4521, %v6174_v45   ;;  %v6558_v63 = vpop.permute.xlu0 %2889 }
 0x306   :  { %10687 = vst [vmem:[#allocation340_spill] sm:$0xff] %v6558_v63  ;;  %v10693_v63 = vmov 5  }
 0x307   :  { %3273 = vperm.xlu0 %4527, %v5871_v20  }
 0x308   :  { %v6561_v32 = vpop.permute.xlu1 %2089 }
 0x309   :  { %10688 = vst [vmem:[#allocation341_spill] sm:$0xff] %v6561_v32  ;;  %2333 = vperm.xlu1 %4521, %v6185_v41   ;;  %v6564_v34 = vpop.permute.xlu0 %2897 }
 0x30a   :  { %10689 = vst [vmem:[#allocation342_spill] sm:$0xff] %v6564_v34 }
 0x30b   :  { %3281 = vperm.xlu0 %4527, %v5883_v47  }
 0x30c   :  { %v6567_v55 = vpop.permute.xlu1 %2097 }
 0x30d   :  { %10690 = vst [vmem:[#allocation343_spill] sm:$0xff] %v6567_v55  ;;  %2341 = vperm.xlu1 %4521, %v6196_v40   ;;  %v6570_v33 = vpop.permute.xlu0 %2905 }
 0x30e   :  { %10691 = vst [vmem:[#allocation344_spill] sm:$0xff] %v6570_v33 }
 0x30f   :  { %3289 = vperm.xlu0 %4527, %v5899_v39  }
 0x310   :  { %v6573_v35 = vpop.permute.xlu1 %2101 }
 0x311   :  { %10692 = vst [vmem:[#allocation345_spill] sm:$0xff] %v6573_v35  ;;  %4524 = vset.pattern.permute.xlu1 %v10693_v63  ;;  %v6576_v20 = vpop.permute.xlu0 %2913  ;;  %v10745_v35 = vld [vmem:[#allocation317_spill] sm:$0xff] }
 0x312   :  { %10694 = vst [vmem:[#allocation346_spill] sm:$0xff] %v6576_v20  ;;  %2481 = vperm.xlu1 %4524, %v6210_v21  }
 0x313   :  { %3297 = vperm.xlu0 %4527, %v5910_v25  }
 0x314   :  { %v6580_v34 = vpop.permute.xlu1 %2109 }
 0x315   :  { %10695 = vst [vmem:[#allocation347_spill] sm:$0xff] %v6580_v34  ;;  %v6582_v32 = vpop.permute.xlu0 %2921 }
 0x316   :  { %10696 = vst [vmem:[#allocation348_spill] sm:$0xff] %v6582_v32  ;;  %2485 = vperm.xlu1 %4524, %v5893_v28  }
 0x317   :  { %3305 = vperm.xlu0 %4527, %v5921_v26  }
 0x318   :  { %v6586_v33 = vpop.permute.xlu1 %2117 }
 0x319   :  { %10697 = vst [vmem:[#allocation349_spill] sm:$0xff] %v6586_v33  ;;  %v6588_v55 = vpop.permute.xlu0 %2929 }
 0x31a   :  { %10698 = vst [vmem:[#allocation350_spill] sm:$0xff] %v6588_v55  ;;  %2493 = vperm.xlu1 %4524, %v6219_v31  }
 0x31b   :  { %3313 = vperm.xlu0 %4527, %v5932_v24  }
 0x31c   :  { %v6592_v63 = vpop.permute.xlu1 %2125 }
 0x31d   :  { %10699 = vst [vmem:[#allocation351_spill] sm:$0xff] %v6592_v63  ;;  %v6594_v20 = vpop.permute.xlu0 %2937 }
 0x31e   :  { %10700 = vst [vmem:[#allocation352_spill] sm:$0xff] %v6594_v20  ;;  %2501 = vperm.xlu1 %4524, %v6230_v37  }
 0x31f   :  { %3321 = vperm.xlu0 %4527, %v5943_v44  }
 0x320   :  { %v6598_v32 = vpop.permute.xlu1 %2133 }
 0x321   :  { %10701 = vst [vmem:[#allocation353_spill] sm:$0xff] %v6598_v32  ;;  %v6600_v34 = vpop.permute.xlu0 %2945 }
 0x322   :  { %10702 = vst [vmem:[#allocation354_spill] sm:$0xff] %v6600_v34  ;;  %2509 = vperm.xlu1 %4524, %v6242_v42  }
 0x323   :  { %3329 = vperm.xlu0 %4527, %v5954_v48  }
 0x324   :  { %v6604_v55 = vpop.permute.xlu1 %2141 }
 0x325   :  { %10703 = vst [vmem:[#allocation355_spill] sm:$0xff] %v6604_v55  ;;  %v6606_v33 = vpop.permute.xlu0 %2953 }
 0x326   :  { %10704 = vst [vmem:[#allocation356_spill] sm:$0xff] %v6606_v33  ;;  %2517 = vperm.xlu1 %4524, %v6253_v27  }
 0x327   :  { %3337 = vperm.xlu0 %4527, %v5965_v52  }
 0x328   :  { %v6610_v20 = vpop.permute.xlu1 %2149 }
 0x329   :  { %10705 = vst [vmem:[#allocation357_spill] sm:$0xff] %v6610_v20  ;;  %v6612_v63 = vpop.permute.xlu0 %2961 }
 0x32a   :  { %10706 = vst [vmem:[#allocation358_spill] sm:$0xff] %v6612_v63  ;;  %2525 = vperm.xlu1 %4524, %v6264_v23  }
 0x32b   :  { %3345 = vperm.xlu0 %4527, %v5976_v56  }
 0x32c   :  { %v6616_v34 = vpop.permute.xlu1 %2157 }
 0x32d   :  { %10707 = vst [vmem:[#allocation359_spill] sm:$0xff] %v6616_v34  ;;  %v6618_v32 = vpop.permute.xlu0 %2969 }
 0x32e   :  { %10708 = vst [vmem:[#allocation360_spill] sm:$0xff] %v6618_v32  ;;  %2533 = vperm.xlu1 %4524, %v6275_v36  }
 0x32f   :  { %3353 = vperm.xlu0 %4527, %v5987_v60  }
 0x330   :  { %v6622_v33 = vpop.permute.xlu1 %2165 }
 0x331   :  { %10709 = vst [vmem:[#allocation361_spill] sm:$0xff] %v6622_v33  ;;  %v6624_v55 = vpop.permute.xlu0 %2977 }
 0x332   :  { %10710 = vst [vmem:[#allocation362_spill] sm:$0xff] %v6624_v55  ;;  %2541 = vperm.xlu1 %4524, %v6286_v18  }
 0x333   :  { %3361 = vperm.xlu0 %4527, %v5998_v0  }
 0x334   :  { %v6628_v63 = vpop.permute.xlu1 %2173 }
 0x335   :  { %10711 = vst [vmem:[#allocation363_spill] sm:$0xff] %v6628_v63  ;;  %v6630_v20 = vpop.permute.xlu0 %2985 }
 0x336   :  { %10712 = vst [vmem:[#allocation364_spill] sm:$0xff] %v6630_v20  ;;  %2549 = vperm.xlu1 %4524, %v6297_v29  }
 0x337   :  { %3369 = vperm.xlu0 %4527, %v6009_v51  }
 0x338   :  { %v6634_v32 = vpop.permute.xlu1 %2181 }
 0x339   :  { %10713 = vst [vmem:[#allocation365_spill] sm:$0xff] %v6634_v32  ;;  %v6636_v34 = vpop.permute.xlu0 %2993 }
 0x33a   :  { %10714 = vst [vmem:[#allocation366_spill] sm:$0xff] %v6636_v34  ;;  %2557 = vperm.xlu1 %4524, %v6308_v17  }
 0x33b   :  { %3377 = vperm.xlu0 %4527, %v6020_v4  }
 0x33c   :  { %v6640_v55 = vpop.permute.xlu1 %2189 }
 0x33d   :  { %10715 = vst [vmem:[#allocation367_spill] sm:$0xff] %v6640_v55  ;;  %v6642_v33 = vpop.permute.xlu0 %3001 }
 0x33e   :  { %10716 = vst [vmem:[#allocation368_spill] sm:$0xff] %v6642_v33  ;;  %2565 = vperm.xlu1 %4524, %v6319_v16  }
 0x33f   :  { %3385 = vperm.xlu0 %4527, %v6031_v59  }
 0x340   :  { %v6646_v20 = vpop.permute.xlu1 %2197 }
 0x341   :  { %10717 = vst [vmem:[#allocation369_spill] sm:$0xff] %v6646_v20  ;;  %v6648_v63 = vpop.permute.xlu0 %3009 }
 0x342   :  { %10718 = vst [vmem:[#allocation370_spill] sm:$0xff] %v6648_v63  ;;  %2573 = vperm.xlu1 %4524, %v6330_v15  }
 0x343   :  { %3393 = vperm.xlu0 %4527, %v6042_v3  }
 0x344   :  { %v6652_v34 = vpop.permute.xlu1 %2205 }
 0x345   :  { %10719 = vst [vmem:[#allocation371_spill] sm:$0xff] %v6652_v34  ;;  %v6654_v32 = vpop.permute.xlu0 %3017 }
 0x346   :  { %10720 = vst [vmem:[#allocation372_spill] sm:$0xff] %v6654_v32  ;;  %2581 = vperm.xlu1 %4524, %v6341_v14  }
 0x347   :  { %3401 = vperm.xlu0 %4527, %v6053_v43  }
 0x348   :  { %v6658_v33 = vpop.permute.xlu1 %2213 }
 0x349   :  { %10721 = vst [vmem:[#allocation373_spill] sm:$0xff] %v6658_v33  ;;  %v6660_v55 = vpop.permute.xlu0 %3025 }
 0x34a   :  { %10722 = vst [vmem:[#allocation374_spill] sm:$0xff] %v6660_v55  ;;  %2589 = vperm.xlu1 %4524, %v6352_v13  }
 0x34b   :  { %3409 = vperm.xlu0 %4527, %v6064_v38  }
 0x34c   :  { %v6664_v63 = vpop.permute.xlu1 %2221 }
 0x34d   :  { %10723 = vst [vmem:[#allocation375_spill] sm:$0xff] %v6664_v63  ;;  %v6666_v20 = vpop.permute.xlu0 %3033 }
 0x34e   :  { %10724 = vst [vmem:[#allocation376_spill] sm:$0xff] %v6666_v20  ;;  %2597 = vperm.xlu1 %4524, %v6363_v12  }
 0x34f   :  { %3417 = vperm.xlu0 %4527, %v6075_v62  }
 0x350   :  { %v6670_v32 = vpop.permute.xlu1 %2229 }
 0x351   :  { %10725 = vst [vmem:[#allocation377_spill] sm:$0xff] %v6670_v32  ;;  %v6672_v34 = vpop.permute.xlu0 %3041 }
 0x352   :  { %10726 = vst [vmem:[#allocation378_spill] sm:$0xff] %v6672_v34  ;;  %2605 = vperm.xlu1 %4524, %v6374_v11  }
 0x353   :  { %3425 = vperm.xlu0 %4527, %v6086_v61  }
 0x354   :  { %v6676_v55 = vpop.permute.xlu1 %2237 }
 0x355   :  { %10727 = vst [vmem:[#allocation379_spill] sm:$0xff] %v6676_v55  ;;  %v6678_v33 = vpop.permute.xlu0 %3049 }
 0x356   :  { %10728 = vst [vmem:[#allocation380_spill] sm:$0xff] %v6678_v33  ;;  %2613 = vperm.xlu1 %4524, %v6385_v10  }
 0x357   :  { %3433 = vperm.xlu0 %4527, %v6097_v58  }
 0x358   :  { %v6682_v20 = vpop.permute.xlu1 %2245 }
 0x359   :  { %10729 = vst [vmem:[#allocation381_spill] sm:$0xff] %v6682_v20  ;;  %v6684_v63 = vpop.permute.xlu0 %3057 }
 0x35a   :  { %10730 = vst [vmem:[#allocation382_spill] sm:$0xff] %v6684_v63  ;;  %2621 = vperm.xlu1 %4524, %v6396_v9  }
 0x35b   :  { %3441 = vperm.xlu0 %4527, %v6108_v57  }
 0x35c   :  { %v6688_v34 = vpop.permute.xlu1 %2253 }
 0x35d   :  { %10731 = vst [vmem:[#allocation383_spill] sm:$0xff] %v6688_v34  ;;  %v6690_v32 = vpop.permute.xlu0 %3065 }
 0x35e   :  { %10732 = vst [vmem:[#allocation384_spill] sm:$0xff] %v6690_v32  ;;  %2629 = vperm.xlu1 %4524, %v6407_v8  }
 0x35f   :  { %3449 = vperm.xlu0 %4527, %v6119_v54  }
 0x360   :  { %v6694_v33 = vpop.permute.xlu1 %2261 }
 0x361   :  { %10733 = vst [vmem:[#allocation385_spill] sm:$0xff] %v6694_v33  ;;  %v6696_v55 = vpop.permute.xlu0 %3073 }
 0x362   :  { %10734 = vst [vmem:[#allocation386_spill] sm:$0xff] %v6696_v55  ;;  %2637 = vperm.xlu1 %4524, %v6418_v7  }
 0x363   :  { %3457 = vperm.xlu0 %4527, %v6130_v53  }
 0x364   :  { %v6700_v63 = vpop.permute.xlu1 %2269 }
 0x365   :  { %10735 = vst [vmem:[#allocation387_spill] sm:$0xff] %v6700_v63  ;;  %v6702_v20 = vpop.permute.xlu0 %3081 }
 0x366   :  { %10736 = vst [vmem:[#allocation388_spill] sm:$0xff] %v6702_v20  ;;  %2645 = vperm.xlu1 %4524, %v6429_v6  }
 0x367   :  { %3465 = vperm.xlu0 %4527, %v6141_v50  }
 0x368   :  { %v6706_v32 = vpop.permute.xlu1 %2277 }
 0x369   :  { %10737 = vst [vmem:[#allocation389_spill] sm:$0xff] %v6706_v32  ;;  %v6708_v34 = vpop.permute.xlu0 %3089 }
 0x36a   :  { %10738 = vst [vmem:[#allocation390_spill] sm:$0xff] %v6708_v34  ;;  %2653 = vperm.xlu1 %4524, %v6440_v5  }
 0x36b   :  { %3473 = vperm.xlu0 %4527, %v6152_v49  }
 0x36c   :  { %v6712_v55 = vpop.permute.xlu1 %2285 }
 0x36d   :  { %10739 = vst [vmem:[#allocation391_spill] sm:$0xff] %v6712_v55  ;;  %v6714_v33 = vpop.permute.xlu0 %3097  ;;  %v10747_v55 = vld [vmem:[#allocation320_spill] sm:$0xff] }
 0x36e   :  { %10740 = vst [vmem:[#allocation392_spill] sm:$0xff] %v6714_v33  ;;  %2661 = vperm.xlu1 %4524, %v6451_v1  }
 0x36f   :  { %3481 = vperm.xlu0 %4527, %v6163_v46  }
 0x370   :  { %v6718_v20 = vpop.permute.xlu1 %2293 }
 0x371   :  { %10741 = vst [vmem:[#allocation393_spill] sm:$0xff] %v6718_v20  ;;  %v6720_v63 = vpop.permute.xlu0 %3105  ;;  %v10750_v20 = vld [vmem:[#allocation323_spill] sm:$0xff] }
 0x372   :  { %10742 = vst [vmem:[#allocation394_spill] sm:$0xff] %v6720_v63  ;;  %2669 = vperm.xlu1 %4524, %v6462_v2  }
 0x373   :  { %3489 = vperm.xlu0 %4527, %v6174_v45  }
 0x374   :  { %v6724_v34 = vpop.permute.xlu1 %2301 }
 0x375   :  { %10743 = vst [vmem:[#allocation395_spill] sm:$0xff] %v6724_v34  ;;  %v6726_v32 = vpop.permute.xlu0 %3113  ;;  %v10752_v34 = vmov 0  }
 0x376   :  { %10744 = vst [vmem:[#allocation396_spill] sm:$0xff] %v6726_v32  ;;  %2677 = vperm.xlu1 %4524, %v10745_v35  }
 0x377   :  { %3497 = vperm.xlu0 %4527, %v6185_v41   ;;  %v10754_v41 = vld [vmem:[#allocation326_spill] sm:$0xff] }
 0x378   :  { %v6730_v33 = vpop.permute.xlu1 %2309 }
 0x379   :  { %10746 = vst [vmem:[#allocation317_spill] sm:$0xff] %v6730_v33 }
 0x37a   :  { %2685 = vperm.xlu1 %4524, %v10747_v55   ;;  %v6733_v46 = vpop.permute.xlu0 %3253 }
 0x37b   :  { %10748 = vst [vmem:[#allocation320_spill] sm:$0xff] %v6733_v46  ;;  %3505 = vperm.xlu0 %4527, %v6196_v40   ;;  %v10757_v46 = vld [vmem:[#allocation329_spill] sm:$0xff] }
 0x37c   :  { %v6736_v63 = vpop.permute.xlu1 %2317 }
 0x37d   :  { %10749 = vst [vmem:[#allocation397_spill] sm:$0xff] %v6736_v63 }
 0x37e   :  { %2693 = vperm.xlu1 %4524, %v10750_v20   ;;  %v6739_v45 = vpop.permute.xlu0 %3265 }
 0x37f   :  { %10751 = vst [vmem:[#allocation323_spill] sm:$0xff] %v6739_v45  ;;  %4529 = vset.pattern.permute.xlu0 %v10752_v34  ;;  %v10760_v45 = vld [vmem:[#allocation332_spill] sm:$0xff] }
 0x380   :  { %v6742_v32 = vpop.permute.xlu1 %2325  ;;  %154 = vperm.xlu0 %4529, %v5849_v22  }
 0x381   :  { %10753 = vst [vmem:[#allocation398_spill] sm:$0xff] %v6742_v32 }
 0x382   :  { %2701 = vperm.xlu1 %4524, %v10754_v41   ;;  %v6746_v33 = vpop.permute.xlu0 %3273 }
 0x383   :  { %10755 = vst [vmem:[#allocation326_spill] sm:$0xff] %v6746_v33 }
 0x384   :  { %v6748_v49 = vpop.permute.xlu1 %2333  ;;  %159 = vperm.xlu0 %4529, %v6210_v21  }
 0x385   :  { %10756 = vst [vmem:[#allocation399_spill] sm:$0xff] %v6748_v49 }
 0x386   :  { %2709 = vperm.xlu1 %4524, %v10757_v46   ;;  %v6752_v63 = vpop.permute.xlu0 %3281 }
 0x387   :  { %10758 = vst [vmem:[#allocation329_spill] sm:$0xff] %v6752_v63  ;;  %v10765_v63 = vmov 6  }
 0x388   :  { %v6754_v40 = vpop.permute.xlu1 %2341  ;;  %174 = vperm.xlu0 %4529, %v6219_v31  }
 0x389   :  { %10759 = vst [vmem:[#allocation400_spill] sm:$0xff] %v6754_v40 }
 0x38a   :  { %2717 = vperm.xlu1 %4524, %v10760_v45   ;;  %v6758_v32 = vpop.permute.xlu0 %3289 }
 0x38b   :  { %10761 = vst [vmem:[#allocation332_spill] sm:$0xff] %v6758_v32 }
 0x38c   :  { %184 = vperm.xlu0 %4529, %v6230_v37  }
 0x38d   :  { %v6761_v34 = vpop.permute.xlu1 %2481 }
 0x38e   :  { %10762 = vst [vmem:[#allocation401_spill] sm:$0xff] %v6761_v34  ;;  %2725 = vperm.xlu1 %4524, %v6539_v30   ;;  %v6764_v33 = vpop.permute.xlu0 %3297  ;;  %v10908_v34 = vld [vmem:[#allocation67_spill] sm:$0xff] }
 0x38f   :  { %10763 = vst [vmem:[#allocation402_spill] sm:$0xff] %v6764_v33 }
 0x390   :  { %194 = vperm.xlu0 %4529, %v6242_v42  }
 0x391   :  { %v6767_v49 = vpop.permute.xlu1 %2485 }
 0x392   :  { %10764 = vst [vmem:[#allocation403_spill] sm:$0xff] %v6767_v49  ;;  %4525 = vset.pattern.permute.xlu1 %v10765_v63  ;;  %v6770_v40 = vpop.permute.xlu0 %3305 }
 0x393   :  { %10766 = vst [vmem:[#allocation404_spill] sm:$0xff] %v6770_v40  ;;  %2865 = vperm.xlu1 %4525, %v5849_v22  }
 0x394   :  { %204 = vperm.xlu0 %4529, %v6253_v27   ;;  %v10773_v27 = vld [vmem:[#allocation202_spill] sm:$0xff] }
 0x395   :  { %v6774_v32 = vpop.permute.xlu1 %2493 }
 0x396   :  { %10767 = vst [vmem:[#allocation405_spill] sm:$0xff] %v6774_v32  ;;  %v6776_v37 = vpop.permute.xlu0 %3313 }
 0x397   :  { %10768 = vst [vmem:[#allocation406_spill] sm:$0xff] %v6776_v37  ;;  %2873 = vperm.xlu1 %4525, %v5893_v28  }
 0x398   :  { %214 = vperm.xlu0 %4529, %v6264_v23  }
 0x399   :  { %v6780_v33 = vpop.permute.xlu1 %2501 }
 0x39a   :  { %10769 = vst [vmem:[#allocation407_spill] sm:$0xff] %v6780_v33  ;;  %v6782_v42 = vpop.permute.xlu0 %3321 }
 0x39b   :  { %10770 = vst [vmem:[#allocation408_spill] sm:$0xff] %v6782_v42  ;;  %2877 = vperm.xlu1 %4525, %v5860_v19   ;;  %v10892_v42 = vld [vmem:[#allocation58_spill] sm:$0xff] }
 0x39c   :  { %224 = vperm.xlu0 %4529, %v6275_v36  }
 0x39d   :  { %v6786_v63 = vpop.permute.xlu1 %2509 }
 0x39e   :  { %10771 = vst [vmem:[#allocation409_spill] sm:$0xff] %v6786_v63  ;;  %v6788_v22 = vpop.permute.xlu0 %3329 }
 0x39f   :  { %10772 = vst [vmem:[#allocation410_spill] sm:$0xff] %v6788_v22  ;;  %2885 = vperm.xlu1 %4525, %v10773_v27  }
 0x3a0   :  { %234 = vperm.xlu0 %4529, %v6286_v18  }
 0x3a1   :  { %v6792_v37 = vpop.permute.xlu1 %2517 }
 0x3a2   :  { %10774 = vst [vmem:[#allocation202_spill] sm:$0xff] %v6792_v37  ;;  %v6794_v28 = vpop.permute.xlu0 %3337 }
 0x3a3   :  { %10775 = vst [vmem:[#allocation411_spill] sm:$0xff] %v6794_v28  ;;  %2893 = vperm.xlu1 %4525, %v5883_v47  }
 0x3a4   :  { %244 = vperm.xlu0 %4529, %v6297_v29  }
 0x3a5   :  { %v6798_v23 = vpop.permute.xlu1 %2525 }
 0x3a6   :  { %10776 = vst [vmem:[#allocation412_spill] sm:$0xff] %v6798_v23  ;;  %v6800_v19 = vpop.permute.xlu0 %3345  ;;  %v10887_v23 = vld [vmem:[#allocation54_spill] sm:$0xff] }
 0x3a7   :  { %10777 = vst [vmem:[#allocation413_spill] sm:$0xff] %v6800_v19  ;;  %2901 = vperm.xlu1 %4525, %v5899_v39  }
 0x3a8   :  { %254 = vperm.xlu0 %4529, %v6308_v17  }
 0x3a9   :  { %v6804_v36 = vpop.permute.xlu1 %2533 }
 0x3aa   :  { %10778 = vst [vmem:[#allocation414_spill] sm:$0xff] %v6804_v36  ;;  %v6806_v27 = vpop.permute.xlu0 %3353  ;;  %v10885_v36 = vld [vmem:[#allocation53_spill] sm:$0xff] }
 0x3ab   :  { %10779 = vst [vmem:[#allocation415_spill] sm:$0xff] %v6806_v27  ;;  %2909 = vperm.xlu1 %4525, %v5910_v25   ;;  %v10884_v27 = vld [vmem:[#allocation52_spill] sm:$0xff] }
 0x3ac   :  { %264 = vperm.xlu0 %4529, %v6319_v16  }
 0x3ad   :  { %v6810_v18 = vpop.permute.xlu1 %2541 }
 0x3ae   :  { %10780 = vst [vmem:[#allocation416_spill] sm:$0xff] %v6810_v18  ;;  %v6812_v47 = vpop.permute.xlu0 %3361 }
 0x3af   :  { %10781 = vst [vmem:[#allocation417_spill] sm:$0xff] %v6812_v47  ;;  %2917 = vperm.xlu1 %4525, %v5921_v26  }
 0x3b0   :  { %274 = vperm.xlu0 %4529, %v6330_v15  }
 0x3b1   :  { %v6816_v29 = vpop.permute.xlu1 %2549 }
 0x3b2   :  { %10782 = vst [vmem:[#allocation418_spill] sm:$0xff] %v6816_v29  ;;  %v6818_v39 = vpop.permute.xlu0 %3369 }
 0x3b3   :  { %10783 = vst [vmem:[#allocation419_spill] sm:$0xff] %v6818_v39  ;;  %2925 = vperm.xlu1 %4525, %v5932_v24   ;;  %v10877_v39 = vld [vmem:[#allocation45_spill] sm:$0xff] }
 0x3b4   :  { %284 = vperm.xlu0 %4529, %v6341_v14  }
 0x3b5   :  { %v6822_v17 = vpop.permute.xlu1 %2557 }
 0x3b6   :  { %10784 = vst [vmem:[#allocation420_spill] sm:$0xff] %v6822_v17  ;;  %v6824_v25 = vpop.permute.xlu0 %3377  ;;  %v10876_v17 = vld [vmem:[#allocation44_spill] sm:$0xff] }
 0x3b7   :  { %10785 = vst [vmem:[#allocation421_spill] sm:$0xff] %v6824_v25  ;;  %2933 = vperm.xlu1 %4525, %v5943_v44   ;;  %v10875_v25 = vld [vmem:[#allocation43_spill] sm:$0xff] }
 0x3b8   :  { %294 = vperm.xlu0 %4529, %v6352_v13  }
 0x3b9   :  { %v6828_v16 = vpop.permute.xlu1 %2565 }
 0x3ba   :  { %10786 = vst [vmem:[#allocation422_spill] sm:$0xff] %v6828_v16  ;;  %v6830_v26 = vpop.permute.xlu0 %3385 }
 0x3bb   :  { %10787 = vst [vmem:[#allocation423_spill] sm:$0xff] %v6830_v26  ;;  %2941 = vperm.xlu1 %4525, %v5954_v48  }
 0x3bc   :  { %304 = vperm.xlu0 %4529, %v6363_v12  }
 0x3bd   :  { %v6834_v15 = vpop.permute.xlu1 %2573 }
 0x3be   :  { %10788 = vst [vmem:[#allocation424_spill] sm:$0xff] %v6834_v15  ;;  %v6836_v24 = vpop.permute.xlu0 %3393 }
 0x3bf   :  { %10789 = vst [vmem:[#allocation425_spill] sm:$0xff] %v6836_v24  ;;  %2949 = vperm.xlu1 %4525, %v5965_v52  }
 0x3c0   :  { %314 = vperm.xlu0 %4529, %v6374_v11  }
 0x3c1   :  { %v6840_v14 = vpop.permute.xlu1 %2581 }
 0x3c2   :  { %10790 = vst [vmem:[#allocation426_spill] sm:$0xff] %v6840_v14  ;;  %v6842_v44 = vpop.permute.xlu0 %3401 }
 0x3c3   :  { %10791 = vst [vmem:[#allocation427_spill] sm:$0xff] %v6842_v44  ;;  %2957 = vperm.xlu1 %4525, %v5976_v56   ;;  %v10869_v44 = vld [vmem:[#allocation39_spill] sm:$0xff] }
 0x3c4   :  { %324 = vperm.xlu0 %4529, %v6385_v10  }
 0x3c5   :  { %v6846_v13 = vpop.permute.xlu1 %2589 }
 0x3c6   :  { %10792 = vst [vmem:[#allocation428_spill] sm:$0xff] %v6846_v13  ;;  %v6848_v48 = vpop.permute.xlu0 %3409 }
 0x3c7   :  { %10793 = vst [vmem:[#allocation429_spill] sm:$0xff] %v6848_v48  ;;  %2965 = vperm.xlu1 %4525, %v5987_v60   ;;  %v10867_v48 = vld [vmem:[#allocation38_spill] sm:$0xff] }
 0x3c8   :  { %334 = vperm.xlu0 %4529, %v6396_v9  }
 0x3c9   :  { %v6852_v12 = vpop.permute.xlu1 %2597 }
 0x3ca   :  { %10794 = vst [vmem:[#allocation430_spill] sm:$0xff] %v6852_v12  ;;  %v6854_v52 = vpop.permute.xlu0 %3417  ;;  %v10866_v12 = vld [vmem:[#allocation37_spill] sm:$0xff] }
 0x3cb   :  { %10795 = vst [vmem:[#allocation431_spill] sm:$0xff] %v6854_v52  ;;  %2973 = vperm.xlu1 %4525, %v5998_v0   ;;  %v10865_v52 = vld [vmem:[#allocation36_spill] sm:$0xff] }
 0x3cc   :  { %344 = vperm.xlu0 %4529, %v6407_v8  }
 0x3cd   :  { %v6858_v11 = vpop.permute.xlu1 %2605 }
 0x3ce   :  { %10796 = vst [vmem:[#allocation432_spill] sm:$0xff] %v6858_v11  ;;  %v6860_v56 = vpop.permute.xlu0 %3425  ;;  %v10863_v11 = vld [vmem:[#allocation34_spill] sm:$0xff] }
 0x3cf   :  { %10797 = vst [vmem:[#allocation433_spill] sm:$0xff] %v6860_v56  ;;  %2981 = vperm.xlu1 %4525, %v6009_v51   ;;  %v10862_v56 = vld [vmem:[#allocation33_spill] sm:$0xff] }
 0x3d0   :  { %354 = vperm.xlu0 %4529, %v6418_v7  }
 0x3d1   :  { %v6864_v10 = vpop.permute.xlu1 %2613 }
 0x3d2   :  { %10798 = vst [vmem:[#allocation434_spill] sm:$0xff] %v6864_v10  ;;  %v6866_v60 = vpop.permute.xlu0 %3433  ;;  %v10861_v10 = vld [vmem:[#allocation32_spill] sm:$0xff] }
 0x3d3   :  { %10799 = vst [vmem:[#allocation435_spill] sm:$0xff] %v6866_v60  ;;  %2989 = vperm.xlu1 %4525, %v6020_v4   ;;  %v10859_v60 = vld [vmem:[#allocation30_spill] sm:$0xff] }
 0x3d4   :  { %364 = vperm.xlu0 %4529, %v6429_v6  }
 0x3d5   :  { %v6870_v9 = vpop.permute.xlu1 %2621 }
 0x3d6   :  { %10800 = vst [vmem:[#allocation436_spill] sm:$0xff] %v6870_v9  ;;  %v6872_v0 = vpop.permute.xlu0 %3441  ;;  %v10858_v9 = vld [vmem:[#allocation29_spill] sm:$0xff] }
 0x3d7   :  { %10801 = vst [vmem:[#allocation437_spill] sm:$0xff] %v6872_v0  ;;  %2997 = vperm.xlu1 %4525, %v6031_v59   ;;  %v10857_v0 = vld [vmem:[#allocation28_spill] sm:$0xff] }
 0x3d8   :  { %374 = vperm.xlu0 %4529, %v6440_v5  }
 0x3d9   :  { %v6876_v8 = vpop.permute.xlu1 %2629 }
 0x3da   :  { %10802 = vst [vmem:[#allocation438_spill] sm:$0xff] %v6876_v8  ;;  %v6878_v51 = vpop.permute.xlu0 %3449 }
 0x3db   :  { %10803 = vst [vmem:[#allocation439_spill] sm:$0xff] %v6878_v51  ;;  %3005 = vperm.xlu1 %4525, %v6042_v3  }
 0x3dc   :  { %384 = vperm.xlu0 %4529, %v6451_v1  }
 0x3dd   :  { %v6882_v7 = vpop.permute.xlu1 %2637 }
 0x3de   :  { %10804 = vst [vmem:[#allocation440_spill] sm:$0xff] %v6882_v7  ;;  %v6884_v4 = vpop.permute.xlu0 %3457 }
 0x3df   :  { %10805 = vst [vmem:[#allocation441_spill] sm:$0xff] %v6884_v4  ;;  %3013 = vperm.xlu1 %4525, %v6053_v43  }
 0x3e0   :  { %394 = vperm.xlu0 %4529, %v6462_v2  }
 0x3e1   :  { %v6888_v6 = vpop.permute.xlu1 %2645 }
 0x3e2   :  { %10806 = vst [vmem:[#allocation442_spill] sm:$0xff] %v6888_v6  ;;  %v6890_v59 = vpop.permute.xlu0 %3465 }
 0x3e3   :  { %10807 = vst [vmem:[#allocation443_spill] sm:$0xff] %v6890_v59  ;;  %3021 = vperm.xlu1 %4525, %v6064_v38   ;;  %v10850_v59 = vld [vmem:[#allocation23_spill] sm:$0xff] }
 0x3e4   :  { %404 = vperm.xlu0 %4529, %v10745_v35  }
 0x3e5   :  { %v6894_v5 = vpop.permute.xlu1 %2653 }
 0x3e6   :  { %10808 = vst [vmem:[#allocation444_spill] sm:$0xff] %v6894_v5  ;;  %v6896_v3 = vpop.permute.xlu0 %3473 }
 0x3e7   :  { %10809 = vst [vmem:[#allocation445_spill] sm:$0xff] %v6896_v3  ;;  %3029 = vperm.xlu1 %4525, %v6075_v62   ;;  %v10848_v3 = vld [vmem:[#allocation22_spill] sm:$0xff] }
 0x3e8   :  { %414 = vperm.xlu0 %4529, %v10747_v55  }
 0x3e9   :  { %v6900_v1 = vpop.permute.xlu1 %2661 }
 0x3ea   :  { %10810 = vst [vmem:[#allocation446_spill] sm:$0xff] %v6900_v1  ;;  %v6902_v43 = vpop.permute.xlu0 %3481  ;;  %v10847_v1 = vld [vmem:[#allocation21_spill] sm:$0xff] }
 0x3eb   :  { %10811 = vst [vmem:[#allocation447_spill] sm:$0xff] %v6902_v43  ;;  %3037 = vperm.xlu1 %4525, %v6086_v61  }
 0x3ec   :  { %424 = vperm.xlu0 %4529, %v10750_v20  }
 0x3ed   :  { %v6906_v2 = vpop.permute.xlu1 %2669 }
 0x3ee   :  { %10812 = vst [vmem:[#allocation448_spill] sm:$0xff] %v6906_v2  ;;  %v6908_v38 = vpop.permute.xlu0 %3489  ;;  %v10841_v2 = vld [vmem:[#allocation15_spill] sm:$0xff] }
 0x3ef   :  { %10813 = vst [vmem:[#allocation449_spill] sm:$0xff] %v6908_v38  ;;  %3045 = vperm.xlu1 %4525, %v6097_v58   ;;  %v10839_v38 = vld [vmem:[#allocation14_spill] sm:$0xff] }
 0x3f0   :  { %434 = vperm.xlu0 %4529, %v10754_v41  }
 0x3f1   :  { %v6912_v35 = vpop.permute.xlu1 %2677 }
 0x3f2   :  { %10814 = vst [vmem:[#allocation450_spill] sm:$0xff] %v6912_v35  ;;  %v6914_v62 = vpop.permute.xlu0 %3497  ;;  %v10837_v35 = vld [vmem:[#allocation13_spill] sm:$0xff] }
 0x3f3   :  { %10815 = vst [vmem:[#allocation451_spill] sm:$0xff] %v6914_v62  ;;  %3053 = vperm.xlu1 %4525, %v6108_v57   ;;  %v88_v57 = vld [vmem:[%s10258_s2] sm:$0xff] }
 0x3f4   :  { %444 = vperm.xlu0 %4529, %v10757_v46  }
 0x3f5   :  { %v6918_v55 = vpop.permute.xlu1 %2685 }
 0x3f6   :  { %10816 = vst [vmem:[#allocation452_spill] sm:$0xff] %v6918_v55  ;;  %v6920_v61 = vpop.permute.xlu0 %3505 }
 0x3f7   :  { %10817 = vst [vmem:[#allocation453_spill] sm:$0xff] %v6920_v61  ;;  %3061 = vperm.xlu1 %4525, %v6119_v54   ;;  %v472_v54 = vlaneseq  ;;  %v10823_v61 = vld [vmem:[#allocation253_spill] sm:$0xff] }
 0x3f8   :  { %454 = vperm.xlu0 %4529, %v10760_v45  }
 0x3f9   :  { %v6924_v20 = vpop.permute.xlu1 %2693 }
 0x3fa   :  { %10818 = vst [vmem:[#allocation454_spill] sm:$0xff] %v6924_v20 }
 0x3fb   :  { %3069 = vperm.xlu1 %4525, %v6130_v53   ;;  %v6927_v58 = vpop.permute.xlu0 %154  ;;  %v90_v53 = vld [vmem:[%s10258_s2 + $0x10] sm:$0xff] }
 0x3fc   :  { %10819 = vst [vmem:[#allocation455_spill] sm:$0xff] %v6927_v58  ;;  %464 = vperm.xlu0 %4529, %v6539_v30  }
 0x3fd   :  { %v6930_v41 = vpop.permute.xlu1 %2701 }
 0x3fe   :  { %10820 = vst [vmem:[#allocation456_spill] sm:$0xff] %v6930_v41  ;;  %v6946_v41 = vshrl.u32 %v472_v54, 7 }
 0x3ff   :  { %3077 = vperm.xlu1 %4525, %v6141_v50   ;;  %v6936_v46 = vpop.permute.xlu0 %159  ;;  %v92_v50 = vld [vmem:[%s10258_s2 + $0x20] sm:$0xff] }
 0x400   :  { %10821 = vst [vmem:[#allocation457_spill] sm:$0xff] %v6936_v46  ;;  %542 = vperm.xlu0 %4529, %v88_v57   ;;  %10825 = vst [vmem:[#allocation459_spill] sm:$0xff] %v6946_v41  ;;  %v10827_v57 = vld [vmem:[#allocation256_spill] sm:$0xff]  ;;  %v10309_v20 = vsub.s32 0, %v6946_v41  ;;  %v1182_v55 = vsub.s32 1, %v6946_v41 }
 0x401   :  { %v6938_v45 = vpop.permute.xlu1 %2709 }
 0x402   :  { %10822 = vst [vmem:[#allocation458_spill] sm:$0xff] %v6938_v45 }
 0x403   :  { %3085 = vperm.xlu1 %4525, %v10823_v61   ;;  %v6944_v30 = vpop.permute.xlu0 %174  ;;  %v6961_v61 = vld [vmem:[%s10256_s0] sm:$0xff] }
 0x404   :  { %10824 = vst [vmem:[#allocation253_spill] sm:$0xff] %v6944_v30  ;;  %552 = vperm.xlu0 %4529, %v90_v53   ;;  %v94_v53 = vld [vmem:[%s10258_s2 + $0x30] sm:$0xff]  ;;  %v1570_v30 = vsub.s32 2, %v6946_v41 }
 0x405   :  { %v6948_v58 = vpop.permute.xlu1 %2717 }
 0x406   :  { %10826 = vst [vmem:[#allocation460_spill] sm:$0xff] %v6948_v58  ;;  %v10830_v58 = vld [vmem:[#allocation259_spill] sm:$0xff] }
 0x407   :  { %3093 = vperm.xlu1 %4525, %v10827_v57   ;;  %v6954_v45 = vpop.permute.xlu0 %184 }
 0x408   :  { %10828 = vst [vmem:[#allocation256_spill] sm:$0xff] %v6954_v45  ;;  %562 = vperm.xlu0 %4529, %v92_v50   ;;  %v6974_v45 = vrot.slane %v6961_v61, %v10309_v20  ;;  %v6977_v50 = vrot.slane %v6961_v61, %v1182_v55 }
 0x409   :  { %v6963_v54 = vpop.permute.xlu1 %2725 }
 0x40a   :  { %10829 = vst [vmem:[#allocation461_spill] sm:$0xff] %v6963_v54  ;;  %10832 = vst [vmem:[#allocation462_spill] sm:$0xff] %v6974_v45  ;;  %v96_v54 = vld [vmem:[%s10258_s2 + $0x40] sm:$0xff]  ;;  %v6990_v20 = vmul.f32 %v6974_v45, %v10837_v35  ;;  %v6994_v55 = vmul.f32 %v6977_v50, %v10839_v38  ;;  %v7001_v43 = vmul.f32 %v6974_v45, %v10841_v2 }
 0x40b   :  { %3101 = vperm.xlu1 %4525, %v10830_v58   ;;  %v6969_v57 = vpop.permute.xlu0 %194  ;;  %10833 = vst [vmem:[#allocation463_spill] sm:$0xff] %v6977_v50  ;;  %v10835_v58 = vld [vmem:[#allocation262_spill] sm:$0xff]  ;;  %v7038_v6 = vmul.f32 %v6974_v45, %v10850_v59  ;;  %v7110_v14 = vmul.f32 %v6974_v45, %v10869_v44  ;;  %v7129_v44 = vmul.f32 %v6974_v45, %v10875_v25  ;;  %v10880_v25 = vld [vmem:[#allocation48_spill] sm:$0xff] }
 0x40c   :  { %10831 = vst [vmem:[#allocation259_spill] sm:$0xff] %v6969_v57  ;;  %572 = vperm.xlu0 %4529, %v94_v53   ;;  %10838 = vst [vmem:[#allocation13_spill] sm:$0xff] %v6990_v20  ;;  %v6997_v53 = vrot.slane %v6961_v61, %v1570_v30  ;;  %v10844_v20 = vld [vmem:[#allocation18_spill] sm:$0xff]  ;;  %v98_v30 = vld [vmem:[%s10258_s2 + $0x50] sm:$0xff]  ;;  %v7150_v47 = vmul.f32 %v6977_v50, %v10880_v25  ;;  %v7169_v25 = vmul.f32 %v6977_v50, %v10884_v27 }
 0x40d   :  { %10840 = vst [vmem:[#allocation14_spill] sm:$0xff] %v6994_v55  ;;  %v7013_v38 = vmul.f32 %v6977_v50, %v10844_v20  ;;  %v10846_v55 = vld [vmem:[#allocation20_spill] sm:$0xff]  ;;  %v7032_v20 = vmul.f32 %v6977_v50, %v10848_v3  ;;  %v10854_v3 = vld [vmem:[#allocation265_spill] sm:$0xff]  ;;  %v7179_v28 = vmul.f32 %v6977_v50, %v10887_v23  ;;  %v7197_v33 = vmul.f32 %v6977_v50, %v10892_v42  ;;  %v10894_v23 = vld [vmem:[#allocation59_spill] sm:$0xff] }
 0x40e   :  { %v6983_v62 = vpop.permute.xlu1 %2865  ;;  %v10890_v27 = vld [vmem:[#allocation57_spill] sm:$0xff]  ;;  %v7201_v32 = vmul.f32 %v6974_v45, %v10894_v23  ;;  %v10898_v42 = vld [vmem:[#allocation62_spill] sm:$0xff]  ;;  %v10900_v23 = vld [vmem:[#allocation63_spill] sm:$0xff] }
 0x40f   :  { %10834 = vst [vmem:[#allocation464_spill] sm:$0xff] %v6983_v62  ;;  %3109 = vperm.xlu1 %4525, %v10835_v58   ;;  %v6986_v57 = vpop.permute.xlu0 %204  ;;  %v10842_v62 = vld [vmem:[#allocation16_spill] sm:$0xff]  ;;  %v7191_v63 = vmul.f32 %v6974_v45, %v10890_v27  ;;  %10893 = vst [vmem:[#allocation21_spill] sm:$0xff] %v7197_v33  ;;  %v10897_v27 = vld [vmem:[#allocation61_spill] sm:$0xff]  ;;  %v7220_v46 = vmul.f32 %v6974_v45, %v10900_v23  ;;  %v7239_v23 = vmul.f32 %v6974_v45, %v10908_v34 }
 0x410   :  { %10836 = vst [vmem:[#allocation262_spill] sm:$0xff] %v6986_v57  ;;  %582 = vperm.xlu0 %4529, %v96_v54   ;;  %v7005_v58 = vmul.f32 %v6977_v50, %v10842_v62  ;;  %v10843_v57 = vld [vmem:[#allocation17_spill] sm:$0xff]  ;;  %v10845_v54 = vld [vmem:[#allocation19_spill] sm:$0xff]  ;;  %v7024_v62 = vmul.f32 %v6977_v50, %v10846_v55  ;;  %v10913_v33 = vld [vmem:[#allocation70_spill] sm:$0xff] }
 0x411   :  { %v7009_v35 = vmul.f32 %v6974_v45, %v10843_v57  ;;  %v7020_v2 = vmul.f32 %v6974_v45, %v10845_v54  ;;  %v7028_v57 = vmul.f32 %v6974_v45, %v10847_v1  ;;  %v10851_v54 = vld [vmem:[#allocation24_spill] sm:$0xff]  ;;  %v10852_v55 = vld [vmem:[#allocation25_spill] sm:$0xff]  ;;  %v10853_v1 = vld [vmem:[#allocation26_spill] sm:$0xff] }
 0x412   :  { %v7034_v5 = vpop.permute.xlu1 %2873  ;;  %v7042_v4 = vmul.f32 %v6977_v50, %v10851_v54  ;;  %v7046_v7 = vmul.f32 %v6974_v45, %v10852_v55  ;;  %v7050_v51 = vmul.f32 %v6977_v50, %v10853_v1  ;;  %v7061_v54 = vmul.f32 %v6977_v50, %v10857_v0  ;;  %10901 = vst [vmem:[#allocation24_spill] sm:$0xff] %v7220_v46  ;;  %v10919_v46 = vld [vmem:[#allocation74_spill] sm:$0xff] }
 0x413   :  { %10849 = vst [vmem:[#allocation15_spill] sm:$0xff] %v7034_v5  ;;  %3117 = vperm.xlu1 %4525, %v10854_v3   ;;  %v7053_v8 = vpop.permute.xlu0 %214  ;;  %v10856_v5 = vld [vmem:[#allocation27_spill] sm:$0xff]  ;;  %v7065_v55 = vmul.f32 %v6974_v45, %v10858_v9  ;;  %v7069_v1 = vmul.f32 %v6977_v50, %v10859_v60  ;;  %v7081_v0 = vmul.f32 %v6974_v45, %v10862_v56  ;;  %v100_v60 = vld [vmem:[%s10258_s2 + $0x60] sm:$0xff] }
 0x414   :  { %10855 = vst [vmem:[#allocation16_spill] sm:$0xff] %v7053_v8  ;;  %v7057_v59 = vmul.f32 %v6974_v45, %v10856_v5  ;;  %592 = vperm.xlu0 %4529, %v98_v30   ;;  %v10860_v3 = vld [vmem:[#allocation31_spill] sm:$0xff]  ;;  %v7077_v5 = vmul.f32 %v6977_v50, %v10861_v10  ;;  %v7085_v9 = vmul.f32 %v6977_v50, %v10863_v11  ;;  %10909 = vst [vmem:[#allocation27_spill] sm:$0xff] %v7239_v23 }
 0x415   :  { %v7073_v8 = vmul.f32 %v6974_v45, %v10860_v3  ;;  %v10864_v30 = vld [vmem:[#allocation35_spill] sm:$0xff]  ;;  %v7096_v10 = vmul.f32 %v6977_v50, %v10865_v52  ;;  %v7100_v56 = vmul.f32 %v6974_v45, %v10866_v12  ;;  %v7104_v11 = vmul.f32 %v6977_v50, %v10867_v48  ;;  %v10871_v52 = vld [vmem:[#allocation41_spill] sm:$0xff]  ;;  %v10872_v12 = vld [vmem:[#allocation42_spill] sm:$0xff] }
 0x416   :  { %v7092_v3 = vmul.f32 %v6974_v45, %v10864_v30  ;;  %v7106_v13 = vpop.permute.xlu1 %2877  ;;  %v10870_v30 = vld [vmem:[#allocation40_spill] sm:$0xff]  ;;  %v7118_v15 = vmul.f32 %v6974_v45, %v10871_v52  ;;  %v7122_v26 = vmul.f32 %v6977_v50, %v10872_v12  ;;  %v10873_v48 = vmov 7   ;;  %v10878_v12 = vld [vmem:[#allocation46_spill] sm:$0xff] }
 0x417   :  { %10868 = vst [vmem:[#allocation17_spill] sm:$0xff] %v7106_v13  ;;  %v7114_v24 = vmul.f32 %v6977_v50, %v10870_v30  ;;  %4528 = vset.pattern.permute.xlu1 %v10873_v48  ;;  %v7125_v16 = vpop.permute.xlu0 %224  ;;  %v7133_v30 = vmul.f32 %v6977_v50, %v10876_v17  ;;  %v7137_v52 = vmul.f32 %v6974_v45, %v10877_v39  ;;  %v10881_v17 = vld [vmem:[#allocation49_spill] sm:$0xff]  ;;  %v10882_v39 = vld [vmem:[#allocation50_spill] sm:$0xff] }
 0x418   :  { %10874 = vst [vmem:[#allocation18_spill] sm:$0xff] %v7125_v16  ;;  %3257 = vperm.xlu1 %4528, %v6210_v21   ;;  %602 = vperm.xlu0 %4529, %v100_v60   ;;  %v7142_v48 = vmul.f32 %v6977_v50, %v10878_v12  ;;  %v10879_v16 = vld [vmem:[#allocation47_spill] sm:$0xff]  ;;  %v7154_v18 = vmul.f32 %v6974_v45, %v10881_v17  ;;  %v10906_v13 = vld [vmem:[#allocation66_spill] sm:$0xff] }
 0x419   :  { %v7146_v29 = vmul.f32 %v6974_v45, %v10879_v16  ;;  %v102_v21 = vld [vmem:[%s10258_s2 + $0x70] sm:$0xff]  ;;  %v7161_v60 = vmul.f32 %v6977_v50, %v10882_v39  ;;  %v7173_v17 = vmul.f32 %v6974_v45, %v10885_v36 }
 0x41a   :  { %v10883_v12 = vld [vmem:[#allocation51_spill] sm:$0xff]  ;;  %v7175_v19 = vpop.permute.xlu1 %2885 }
 0x41b   :  { %v7165_v16 = vmul.f32 %v6974_v45, %v10883_v12  ;;  %10886 = vst [vmem:[#allocation19_spill] sm:$0xff] %v7175_v19  ;;  %v10888_v39 = vld [vmem:[#allocation55_spill] sm:$0xff]  ;;  %v10889_v12 = vld [vmem:[#allocation56_spill] sm:$0xff]  ;;  %v7193_v36 = vpop.permute.xlu0 %234  ;;  %v7216_v19 = vmul.f32 %v6977_v50, %v10898_v42  ;;  %v7235_v42 = vmul.f32 %v6977_v50, %v10906_v13 }
 0x41c   :  { %v7183_v37 = vmul.f32 %v6974_v45, %v10888_v39  ;;  %v7187_v22 = vmul.f32 %v6977_v50, %v10889_v12  ;;  %10891 = vst [vmem:[#allocation20_spill] sm:$0xff] %v7193_v36  ;;  %v10895_v39 = vld [vmem:[#allocation60_spill] sm:$0xff]  ;;  %612 = vperm.xlu0 %4529, %v102_v21   ;;  %v7212_v36 = vmul.f32 %v6974_v45, %v10897_v27  ;;  %v104_v21 = vld [vmem:[%s10258_s2 + $0x80] sm:$0xff] }
 0x41d   :  { %v7205_v40 = vmul.f32 %v6977_v50, %v10895_v39  ;;  %v4723_v12 = vld [vmem:[%s10257_s1 + $0x10] sm:$0xff]  ;;  %10899 = vst [vmem:[#allocation23_spill] sm:$0xff] %v7216_v19  ;;  %10907 = vst [vmem:[#allocation265_spill] sm:$0xff] %v7235_v42  ;;  %v1958_v19 = vsub.s32 3, %v6946_v41  ;;  %v10918_v41 = vld [vmem:[#allocation73_spill] sm:$0xff] }
 0x41e   :  { %3261 = vperm.xlu1 %4528, %v4723_v12   ;;  %v10902_v39 = vld [vmem:[#allocation64_spill] sm:$0xff]  ;;  %v10904_v12 = vld [vmem:[#allocation65_spill] sm:$0xff]  ;;  %v10916_v42 = vld [vmem:[#allocation83_spill] sm:$0xff] }
 0x41f   :  { %10896 = vst [vmem:[#allocation22_spill] sm:$0xff] %v7205_v40  ;;  %v7224_v49 = vmul.f32 %v6977_v50, %v10902_v39  ;;  %v7231_v27 = vmul.f32 %v6974_v45, %v10904_v12  ;;  %v7242_v39 = vpop.permute.xlu1 %2893  ;;  %v7250_v12 = vmul.f32 %v6974_v45, %v10913_v33  ;;  %v863_v34 = vadd.f32 %v10916_v42, %v7001_v43  ;;  %v7258_v23 = vpop.permute.xlu0 %244  ;;  %v10921_v33 = vld [vmem:[#allocation85_spill] sm:$0xff] }
 0x420   :  { %10910 = vst [vmem:[#allocation28_spill] sm:$0xff] %v7242_v39  ;;  %10917 = vst [vmem:[#allocation31_spill] sm:$0xff] %v7258_v23  ;;  %v7262_v39 = vmul.f32 %v6974_v45, %v10918_v41  ;;  %622 = vperm.xlu0 %4529, %v104_v21   ;;  %v10923_v43 = vld [vmem:[#allocation77_spill] sm:$0xff]  ;;  %v10925_v41 = vld [vmem:[#allocation79_spill] sm:$0xff] }
 0x421   :  { %10903 = vst [vmem:[#allocation25_spill] sm:$0xff] %v7224_v49  ;;  %10905 = vst [vmem:[#allocation26_spill] sm:$0xff] %v7231_v27  ;;  %v10911_v49 = vld [vmem:[#allocation68_spill] sm:$0xff]  ;;  %v10914_v27 = vld [vmem:[#allocation71_spill] sm:$0xff]  ;;  %v7277_v42 = vmul.f32 %v6977_v50, %v10923_v43  ;;  %v7281_v23 = vmul.f32 %v6974_v45, %v10925_v41  ;;  %v7299_v41 = vrot.slane %v6961_v61, %v1958_v19 }
 0x422   :  { %v7246_v40 = vmul.f32 %v6977_v50, %v10911_v49  ;;  %v7254_v13 = vmul.f32 %v6977_v50, %v10914_v27  ;;  %v7266_v49 = vmul.f32 %v6977_v50, %v10919_v46  ;;  %3269 = vperm.xlu1 %4528, %v6219_v31   ;;  %v10922_v27 = vld [vmem:[#allocation76_spill] sm:$0xff]  ;;  %v10927_v46 = vld [vmem:[#allocation87_spill] sm:$0xff]  ;;  %v10932_v43 = vld [vmem:[#allocation89_spill] sm:$0xff] }
 0x423   :  { %10924 = vst [vmem:[#allocation33_spill] sm:$0xff] %v7277_v42  ;;  %10926 = vst [vmem:[#allocation34_spill] sm:$0xff] %v7281_v23  ;;  %v106_v31 = vld [vmem:[%s10258_s2 + $0x90] sm:$0xff]  ;;  %v869_v42 = vadd.f32 %v10932_v43, %v7028_v57  ;;  %v10940_v57 = vld [vmem:[#allocation86_spill] sm:$0xff] }
 0x424   :  { %10912 = vst [vmem:[#allocation29_spill] sm:$0xff] %v7246_v40  ;;  %10915 = vst [vmem:[#allocation30_spill] sm:$0xff] %v7254_v13  ;;  %v865_v40 = vadd.f32 %v10921_v33, %v7009_v35  ;;  %v7273_v13 = vmul.f32 %v6974_v45, %v10922_v27  ;;  %v10928_v35 = vld [vmem:[#allocation80_spill] sm:$0xff]  ;;  %v10930_v33 = vld [vmem:[#allocation82_spill] sm:$0xff]  ;;  %v7301_v45 = vpop.permute.xlu1 %2901  ;;  %v7321_v43 = vmul.f32 %v6997_v53, %v10940_v57  ;;  %632 = vperm.xlu0 %4529, %v106_v31  }
 0x425   :  { %10920 = vst [vmem:[#allocation32_spill] sm:$0xff] %v7266_v49  ;;  %v867_v49 = vadd.f32 %v10927_v46, %v7020_v2  ;;  %v7290_v21 = vmul.f32 %v6977_v50, %v10928_v35  ;;  %v7294_v27 = vmul.f32 %v6997_v53, %v10930_v33  ;;  %10933 = vst [vmem:[#allocation37_spill] sm:$0xff] %v7299_v41  ;;  %v10935_v46 = vld [vmem:[#allocation84_spill] sm:$0xff]  ;;  %v10937_v35 = vld [vmem:[#allocation91_spill] sm:$0xff] }
 0x426   :  { %10934 = vst [vmem:[#allocation38_spill] sm:$0xff] %v7301_v45  ;;  %v7304_v2 = vadd.f32 %v7005_v58, %v863_v34  ;;  %v7308_v23 = vmul.f32 %v6997_v53, %v10935_v46  ;;  %v871_v50 = vadd.f32 %v10937_v35, %v7038_v6  ;;  %v10938_v33 = vld [vmem:[#allocation93_spill] sm:$0xff]  ;;  %v7317_v19 = vadd.f32 %v7013_v38, %v865_v40  ;;  %v10942_v58 = vld [vmem:[#allocation95_spill] sm:$0xff]  ;;  %v10943_v46 = vld [vmem:[#allocation272_spill] sm:$0xff] }
 0x427   :  { %10929 = vst [vmem:[#allocation35_spill] sm:$0xff] %v7290_v21  ;;  %10931 = vst [vmem:[#allocation36_spill] sm:$0xff] %v7294_v27  ;;  %v873_v27 = vadd.f32 %v10938_v33, %v7046_v7  ;;  %v7314_v21 = vpop.permute.xlu0 %254  ;;  %v875_v34 = vadd.f32 %v10942_v58, %v7057_v59  ;;  %3277 = vperm.xlu1 %4528, %v10943_v46   ;;  %v7327_v6 = vadd.f32 %v7024_v62, %v867_v49  ;;  %v10944_v35 = vld [vmem:[#allocation88_spill] sm:$0xff]  ;;  %v10946_v33 = vld [vmem:[#allocation90_spill] sm:$0xff] }
 0x428   :  { %10936 = vst [vmem:[#allocation39_spill] sm:$0xff] %v7308_v23  ;;  %10939 = vst [vmem:[#allocation40_spill] sm:$0xff] %v7314_v21  ;;  %v7331_v7 = vmul.f32 %v6997_v53, %v10944_v35  ;;  %v7335_v40 = vmul.f32 %v6997_v53, %v10946_v33  ;;  %v10948_v38 = vld [vmem:[#allocation97_spill] sm:$0xff]  ;;  %v7343_v31 = vadd.f32 %v7032_v20, %v869_v42  ;;  %v10949_v62 = vld [vmem:[#allocation92_spill] sm:$0xff] }
 0x429   :  { %10941 = vst [vmem:[#allocation41_spill] sm:$0xff] %v7321_v43  ;;  %v877_v57 = vadd.f32 %v10948_v38, %v7065_v55  ;;  %v108_v59 = vld [vmem:[%s10258_s2 + $0xa0] sm:$0xff]  ;;  %v7347_v49 = vmul.f32 %v6997_v53, %v10949_v62  ;;  %v10951_v58 = vld [vmem:[#allocation99_spill] sm:$0xff]  ;;  %v7356_v55 = vadd.f32 %v7042_v4, %v871_v50  ;;  %v7359_v38 = vadd.f32 %v7050_v51, %v873_v27 }
 0x42a   :  { %10945 = vst [vmem:[#allocation42_spill] sm:$0xff] %v7331_v7  ;;  %10947 = vst [vmem:[#allocation43_spill] sm:$0xff] %v7335_v40  ;;  %v879_v46 = vadd.f32 %v10951_v58, %v7073_v8  ;;  %v10952_v35 = vld [vmem:[#allocation101_spill] sm:$0xff]  ;;  %v7353_v40 = vpop.permute.xlu1 %2909  ;;  %v10954_v20 = vld [vmem:[#allocation94_spill] sm:$0xff]  ;;  %v7370_v8 = vadd.f32 %v7061_v54, %v875_v34  ;;  %642 = vperm.xlu0 %4529, %v108_v59  }
 0x42b   :  { %10950 = vst [vmem:[#allocation44_spill] sm:$0xff] %v7347_v49  ;;  %v881_v33 = vadd.f32 %v10952_v35, %v7081_v0  ;;  %10953 = vst [vmem:[#allocation45_spill] sm:$0xff] %v7353_v40  ;;  %v7363_v42 = vmul.f32 %v6997_v53, %v10954_v20  ;;  %v10956_v62 = vld [vmem:[#allocation103_spill] sm:$0xff]  ;;  %v7367_v7 = vpop.permute.xlu0 %264  ;;  %v10958_v0 = vld [vmem:[#allocation96_spill] sm:$0xff] }
 0x42c   :  { %v883_v49 = vadd.f32 %v10956_v62, %v7092_v3  ;;  %10957 = vst [vmem:[#allocation47_spill] sm:$0xff] %v7367_v7  ;;  %v7374_v58 = vmul.f32 %v6997_v53, %v10958_v0  ;;  %v10960_v4 = vld [vmem:[#allocation105_spill] sm:$0xff]  ;;  %v7382_v3 = vadd.f32 %v7069_v1, %v877_v57  ;;  %v10961_v27 = vld [vmem:[#allocation98_spill] sm:$0xff]  ;;  %v10963_v34 = vld [vmem:[#allocation100_spill] sm:$0xff]  ;;  %v7398_v59 = vadd.f32 %v7077_v5, %v879_v46 }
 0x42d   :  { %10955 = vst [vmem:[#allocation46_spill] sm:$0xff] %v7363_v42  ;;  %v885_v51 = vadd.f32 %v10960_v4, %v7100_v56  ;;  %v4724_v50 = vld [vmem:[%s10257_s1 + $0x40] sm:$0xff]  ;;  %v7386_v54 = vmul.f32 %v6997_v53, %v10961_v27  ;;  %v7390_v35 = vmul.f32 %v6997_v53, %v10963_v34  ;;  %v10965_v20 = vld [vmem:[#allocation107_spill] sm:$0xff]  ;;  %v7401_v1 = vadd.f32 %v7085_v9, %v881_v33  ;;  %v10970_v34 = vld [vmem:[#allocation104_spill] sm:$0xff] }
 0x42e   :  { %10959 = vst [vmem:[#allocation48_spill] sm:$0xff] %v7374_v58  ;;  %3285 = vperm.xlu1 %4528, %v4724_v50   ;;  %v887_v56 = vadd.f32 %v10965_v20, %v7110_v14  ;;  %v110_v62 = vld [vmem:[%s10258_s2 + $0xb0] sm:$0xff]  ;;  %v10966_v57 = vld [vmem:[#allocation102_spill] sm:$0xff]  ;;  %v10968_v4 = vld [vmem:[#allocation109_spill] sm:$0xff]  ;;  %v7409_v27 = vpop.permute.xlu1 %2917  ;;  %v7412_v14 = vadd.f32 %v7096_v10, %v883_v49  ;;  %v7416_v20 = vmul.f32 %v6997_v53, %v10970_v34 }
 0x42f   :  { %10962 = vst [vmem:[#allocation49_spill] sm:$0xff] %v7386_v54  ;;  %10964 = vst [vmem:[#allocation50_spill] sm:$0xff] %v7390_v35  ;;  %v7405_v0 = vmul.f32 %v6997_v53, %v10966_v57  ;;  %v889_v50 = vadd.f32 %v10968_v4, %v7118_v15  ;;  %v10972_v5 = vld [vmem:[#allocation111_spill] sm:$0xff]  ;;  %v10973_v46 = vld [vmem:[#allocation113_spill] sm:$0xff]  ;;  %v7422_v57 = vpop.permute.xlu0 %274  ;;  %652 = vperm.xlu0 %4529, %v110_v62  }
 0x430   :  { %10969 = vst [vmem:[#allocation52_spill] sm:$0xff] %v7409_v27  ;;  %10971 = vst [vmem:[#allocation53_spill] sm:$0xff] %v7416_v20  ;;  %v891_v9 = vadd.f32 %v10972_v5, %v7129_v44  ;;  %v893_v33 = vadd.f32 %v10973_v46, %v7137_v52  ;;  %v10975_v15 = vld [vmem:[#allocation106_spill] sm:$0xff]  ;;  %v10977_v10 = vld [vmem:[#allocation115_spill] sm:$0xff]  ;;  %v7437_v44 = vadd.f32 %v7114_v24, %v887_v56 }
 0x431   :  { %10967 = vst [vmem:[#allocation51_spill] sm:$0xff] %v7405_v0  ;;  %10974 = vst [vmem:[#allocation54_spill] sm:$0xff] %v7422_v57  ;;  %v7425_v0 = vadd.f32 %v7104_v11, %v885_v51  ;;  %v7429_v4 = vmul.f32 %v6997_v53, %v10975_v15  ;;  %v895_v49 = vadd.f32 %v10977_v10, %v7146_v29  ;;  %v4725_v34 = vld [vmem:[%s10257_s1 + $0x50] sm:$0xff]  ;;  %v10980_v51 = vld [vmem:[#allocation110_spill] sm:$0xff] }
 0x432   :  { %3293 = vperm.xlu1 %4528, %v4725_v34   ;;  %v10978_v52 = vld [vmem:[#allocation108_spill] sm:$0xff]  ;;  %v7445_v5 = vmul.f32 %v6997_v53, %v10980_v51  ;;  %v10982_v46 = vld [vmem:[#allocation117_spill] sm:$0xff]  ;;  %v7453_v62 = vadd.f32 %v7122_v26, %v889_v50  ;;  %v10985_v10 = vld [vmem:[#allocation119_spill] sm:$0xff] }
 0x433   :  { %10976 = vst [vmem:[#allocation55_spill] sm:$0xff] %v7429_v4  ;;  %v7441_v11 = vmul.f32 %v6997_v53, %v10978_v52  ;;  %v897_v29 = vadd.f32 %v10982_v46, %v7154_v18  ;;  %v112_v15 = vld [vmem:[%s10258_s2 + $0xc0] sm:$0xff]  ;;  %v10983_v24 = vld [vmem:[#allocation112_spill] sm:$0xff]  ;;  %v899_v34 = vadd.f32 %v10985_v10, %v7165_v16  ;;  %v7466_v18 = vadd.f32 %v7133_v30, %v891_v9  ;;  %v7477_v4 = vpop.permute.xlu0 %284  ;;  %v11015_v58 = vld [vmem:[#allocation135_spill] sm:$0xff] }
 0x434   :  { %10981 = vst [vmem:[#allocation57_spill] sm:$0xff] %v7445_v5  ;;  %v7457_v56 = vmul.f32 %v6997_v53, %v10983_v24  ;;  %v10986_v52 = vld [vmem:[#allocation121_spill] sm:$0xff]  ;;  %v7463_v5 = vpop.permute.xlu1 %2925  ;;  %v7469_v46 = vadd.f32 %v7142_v48, %v893_v33  ;;  %v10988_v26 = vld [vmem:[#allocation114_spill] sm:$0xff]  ;;  %v10990_v24 = vld [vmem:[#allocation123_spill] sm:$0xff]  ;;  %v7480_v16 = vadd.f32 %v7150_v47, %v895_v49  ;;  %662 = vperm.xlu0 %4529, %v112_v15  }
 0x435   :  { %10979 = vst [vmem:[#allocation56_spill] sm:$0xff] %v7441_v11  ;;  %v901_v51 = vadd.f32 %v10986_v52, %v7173_v17  ;;  %10987 = vst [vmem:[#allocation59_spill] sm:$0xff] %v7463_v5  ;;  %v7473_v50 = vmul.f32 %v6997_v53, %v10988_v26  ;;  %v903_v11 = vadd.f32 %v10990_v24, %v7183_v37  ;;  %v10992_v17 = vld [vmem:[#allocation116_spill] sm:$0xff]  ;;  %v10994_v30 = vld [vmem:[#allocation125_spill] sm:$0xff] }
 0x436   :  { %10984 = vst [vmem:[#allocation58_spill] sm:$0xff] %v7457_v56  ;;  %10991 = vst [vmem:[#allocation61_spill] sm:$0xff] %v7477_v4  ;;  %v7484_v10 = vmul.f32 %v6997_v53, %v10992_v17  ;;  %v905_v48 = vadd.f32 %v10994_v30, %v7191_v63  ;;  %v4726_v9 = vld [vmem:[%s10257_s1 + $0x60] sm:$0xff]  ;;  %v7492_v37 = vadd.f32 %v7161_v60, %v897_v29  ;;  %v10997_v49 = vld [vmem:[#allocation120_spill] sm:$0xff] }
 0x437   :  { %10989 = vst [vmem:[#allocation60_spill] sm:$0xff] %v7473_v50  ;;  %3301 = vperm.xlu1 %4528, %v4726_v9   ;;  %v10995_v33 = vld [vmem:[#allocation118_spill] sm:$0xff]  ;;  %v7500_v52 = vmul.f32 %v6997_v53, %v10997_v49  ;;  %v10999_v26 = vld [vmem:[#allocation127_spill] sm:$0xff]  ;;  %v7508_v15 = vadd.f32 %v7169_v25, %v899_v34  ;;  %v7511_v60 = vadd.f32 %v7179_v28, %v901_v51  ;;  %v11002_v30 = vld [vmem:[#allocation129_spill] sm:$0xff]  ;;  %v7534_v20 = vpop.permute.xlu0 %294 }
 0x438   :  { %10993 = vst [vmem:[#allocation62_spill] sm:$0xff] %v7484_v10  ;;  %v7496_v47 = vmul.f32 %v6997_v53, %v10995_v33  ;;  %v907_v63 = vadd.f32 %v10999_v26, %v7201_v32  ;;  %v114_v24 = vld [vmem:[%s10258_s2 + $0xd0] sm:$0xff]  ;;  %v11000_v29 = vld [vmem:[#allocation122_spill] sm:$0xff]  ;;  %v909_v9 = vadd.f32 %v11002_v30, %v7212_v36  ;;  %v7519_v33 = vpop.permute.xlu1 %2933  ;;  %v7522_v32 = vadd.f32 %v7187_v22, %v903_v11  ;;  %v11011_v35 = vld [vmem:[#allocation21_spill] sm:$0xff] }
 0x439   :  { %10998 = vst [vmem:[#allocation64_spill] sm:$0xff] %v7500_v52  ;;  %v7515_v17 = vmul.f32 %v6997_v53, %v11000_v29  ;;  %11003 = vst [vmem:[#allocation66_spill] sm:$0xff] %v7519_v33  ;;  %v11004_v49 = vld [vmem:[#allocation124_spill] sm:$0xff]  ;;  %v11006_v25 = vld [vmem:[#allocation126_spill] sm:$0xff]  ;;  %v7537_v36 = vadd.f32 %v11011_v35, %v905_v48  ;;  %672 = vperm.xlu0 %4529, %v114_v24  }
 0x43a   :  { %10996 = vst [vmem:[#allocation63_spill] sm:$0xff] %v7496_v47  ;;  %v7526_v26 = vmul.f32 %v6997_v53, %v11004_v49  ;;  %v7530_v28 = vmul.f32 %v6997_v53, %v11006_v25  ;;  %v11008_v34 = vld [vmem:[#allocation24_spill] sm:$0xff]  ;;  %v11009_v51 = vld [vmem:[#allocation131_spill] sm:$0xff]  ;;  %11010 = vst [vmem:[#allocation70_spill] sm:$0xff] %v7534_v20 }
 0x43b   :  { %11001 = vst [vmem:[#allocation65_spill] sm:$0xff] %v7515_v17  ;;  %v911_v29 = vadd.f32 %v11009_v51, %v11008_v34  ;;  %v11012_v30 = vld [vmem:[#allocation26_spill] sm:$0xff]  ;;  %v11013_v54 = vld [vmem:[#allocation133_spill] sm:$0xff]  ;;  %v11014_v11 = vld [vmem:[#allocation27_spill] sm:$0xff]  ;;  %v7585_v17 = vpop.permute.xlu0 %304 }
 0x43c   :  { %11005 = vst [vmem:[#allocation67_spill] sm:$0xff] %v7526_v26  ;;  %11007 = vst [vmem:[#allocation68_spill] sm:$0xff] %v7530_v28  ;;  %v913_v22 = vadd.f32 %v11013_v54, %v11012_v30  ;;  %v915_v42 = vadd.f32 %v11015_v58, %v11014_v11  ;;  %v4727_v49 = vld [vmem:[%s10257_s1 + $0x70] sm:$0xff]  ;;  %v11016_v25 = vld [vmem:[#allocation22_spill] sm:$0xff] }
 0x43d   :  { %3309 = vperm.xlu1 %4528, %v4727_v49   ;;  %v7547_v43 = vadd.f32 %v11016_v25, %v907_v63  ;;  %v11017_v34 = vld [vmem:[#allocation128_spill] sm:$0xff]  ;;  %v11019_v35 = vld [vmem:[#allocation137_spill] sm:$0xff]  ;;  %v11020_v54 = vld [vmem:[#allocation139_spill] sm:$0xff]  ;;  %11036 = vst [vmem:[#allocation79_spill] sm:$0xff] %v7585_v17 }
 0x43e   :  { %v7551_v51 = vmul.f32 %v6997_v53, %v11017_v34  ;;  %v917_v48 = vadd.f32 %v11019_v35, %v7250_v12  ;;  %v919_v30 = vadd.f32 %v11020_v54, %v7262_v39  ;;  %v116_v58 = vld [vmem:[%s10258_s2 + $0xe0] sm:$0xff]  ;;  %v11021_v11 = vld [vmem:[#allocation23_spill] sm:$0xff]  ;;  %v7571_v35 = vpop.permute.xlu1 %2941  ;;  %v11031_v28 = vld [vmem:[#allocation132_spill] sm:$0xff] }
 0x43f   :  { %v7561_v49 = vadd.f32 %v11021_v11, %v909_v9  ;;  %v11023_v24 = vld [vmem:[#allocation130_spill] sm:$0xff]  ;;  %v11025_v25 = vld [vmem:[#allocation141_spill] sm:$0xff]  ;;  %11028 = vst [vmem:[#allocation74_spill] sm:$0xff] %v7571_v35  ;;  %v7578_v26 = vmul.f32 %v6997_v53, %v11031_v28  ;;  %682 = vperm.xlu0 %4529, %v116_v58   ;;  %v11061_v52 = vld [vmem:[#allocation463_spill] sm:$0xff] }
 0x440   :  { %11018 = vst [vmem:[#allocation71_spill] sm:$0xff] %v7551_v51  ;;  %v7565_v63 = vmul.f32 %v6997_v53, %v11023_v24  ;;  %v921_v34 = vadd.f32 %v11025_v25, %v7273_v13  ;;  %v11026_v23 = vld [vmem:[#allocation34_spill] sm:$0xff]  ;;  %v11027_v51 = vld [vmem:[#allocation72_spill] sm:$0xff]  ;;  %v11029_v39 = vld [vmem:[#allocation25_spill] sm:$0xff] }
 0x441   :  { %11022 = vst [vmem:[#allocation83_spill] sm:$0xff] %v7561_v49  ;;  %v923_v12 = vadd.f32 %v11027_v51, %v11026_v23  ;;  %v7574_v54 = vadd.f32 %v11029_v39, %v911_v29  ;;  %11032 = vst [vmem:[#allocation76_spill] sm:$0xff] %v7578_v26  ;;  %v11033_v9 = vld [vmem:[#allocation134_spill] sm:$0xff]  ;;  %v11035_v24 = vld [vmem:[#allocation459_spill] sm:$0xff] }
 0x442   :  { %11024 = vst [vmem:[#allocation73_spill] sm:$0xff] %v7565_v63  ;;  %v7582_v11 = vmul.f32 %v6997_v53, %v11033_v9  ;;  %v2346_v63 = vsub.s32 4, %v11035_v24  ;;  %v11037_v13 = vld [vmem:[#allocation265_spill] sm:$0xff]  ;;  %v11041_v29 = vld [vmem:[#allocation136_spill] sm:$0xff]  ;;  %v11043_v9 = vld [vmem:[#allocation30_spill] sm:$0xff] }
 0x443   :  { %11030 = vst [vmem:[#allocation85_spill] sm:$0xff] %v7574_v54  ;;  %v7588_v25 = vadd.f32 %v11037_v13, %v913_v22  ;;  %v11039_v23 = vld [vmem:[#allocation29_spill] sm:$0xff]  ;;  %v7595_v39 = vmul.f32 %v6997_v53, %v11041_v29  ;;  %v11045_v26 = vld [vmem:[#allocation138_spill] sm:$0xff]  ;;  %v11047_v13 = vld [vmem:[#allocation32_spill] sm:$0xff] }
 0x444   :  { %11034 = vst [vmem:[#allocation77_spill] sm:$0xff] %v7582_v11  ;;  %v7591_v51 = vadd.f32 %v11039_v23, %v915_v42  ;;  %v4728_v28 = vld [vmem:[%s10257_s1 + $0x80] sm:$0xff]  ;;  %v7601_v11 = vadd.f32 %v11043_v9, %v917_v48  ;;  %v7605_v22 = vmul.f32 %v6997_v53, %v11045_v26  ;;  %v7608_v42 = vadd.f32 %v11047_v13, %v919_v30  ;;  %v11049_v23 = vld [vmem:[#allocation140_spill] sm:$0xff]  ;;  %v11055_v26 = vld [vmem:[#allocation35_spill] sm:$0xff] }
 0x445   :  { %11038 = vst [vmem:[#allocation87_spill] sm:$0xff] %v7588_v25  ;;  %11042 = vst [vmem:[#allocation82_spill] sm:$0xff] %v7595_v39  ;;  %3317 = vperm.xlu1 %4528, %v4728_v28   ;;  %v7612_v29 = vmul.f32 %v6997_v53, %v11049_v23  ;;  %v118_v39 = vld [vmem:[%s10258_s2 + $0xf0] sm:$0xff]  ;;  %v11051_v28 = vld [vmem:[#allocation33_spill] sm:$0xff]  ;;  %v7631_v23 = vpop.permute.xlu1 %2949 }
 0x446   :  { %11040 = vst [vmem:[#allocation80_spill] sm:$0xff] %v7591_v51  ;;  %11044 = vst [vmem:[#allocation89_spill] sm:$0xff] %v7601_v11  ;;  %v7618_v58 = vadd.f32 %v11051_v28, %v921_v34  ;;  %v11053_v48 = vld [vmem:[#allocation142_spill] sm:$0xff]  ;;  %v11057_v30 = vld [vmem:[#allocation75_spill] sm:$0xff]  ;;  %692 = vperm.xlu0 %4529, %v118_v39  }
 0x447   :  { %11046 = vst [vmem:[#allocation84_spill] sm:$0xff] %v7605_v22  ;;  %11048 = vst [vmem:[#allocation91_spill] sm:$0xff] %v7608_v42  ;;  %v7622_v9 = vmul.f32 %v6997_v53, %v11053_v48  ;;  %v7625_v22 = vadd.f32 %v11055_v26, %v923_v12  ;;  %v7629_v13 = vmul.f32 %v7299_v41, %v11057_v30  ;;  %v11063_v10 = vld [vmem:[#allocation78_spill] sm:$0xff]  ;;  %v11064_v28 = vld [vmem:[#allocation143_spill] sm:$0xff]  ;;  %v7648_v26 = vpop.permute.xlu0 %314 }
 0x448   :  { %11050 = vst [vmem:[#allocation93_spill] sm:$0xff] %v7612_v29  ;;  %11052 = vst [vmem:[#allocation86_spill] sm:$0xff] %v7618_v58  ;;  %v11060_v29 = vld [vmem:[#allocation12_spill] sm:$0xff]  ;;  %v7639_v34 = vmul.f32 %v7299_v41, %v11063_v10  ;;  %v7643_v48 = vmul.f32 %v11061_v52, %v11064_v28  ;;  %v7646_v12 = vrot.slane %v6961_v61, %v2346_v63  ;;  %v11070_v17 = vld [vmem:[#allocation146_spill] sm:$0xff] }
 0x449   :  { %11054 = vst [vmem:[#allocation95_spill] sm:$0xff] %v7622_v9  ;;  %11056 = vst [vmem:[#allocation272_spill] sm:$0xff] %v7625_v22  ;;  %v7635_v47 = vmul.f32 %v11061_v52, %v11060_v29  ;;  %v11067_v30 = vld [vmem:[#allocation144_spill] sm:$0xff]  ;;  %v7660_v10 = vmul.f32 %v7299_v41, %v11070_v17  ;;  %v11071_v63 = vld [vmem:[#allocation147_spill] sm:$0xff]  ;;  %v7700_v57 = vpop.permute.xlu1 %2957 }
 0x44a   :  { %11058 = vst [vmem:[#allocation88_spill] sm:$0xff] %v7629_v13  ;;  %11059 = vst [vmem:[#allocation90_spill] sm:$0xff] %v7631_v23  ;;  %v7652_v9 = vmul.f32 %v7299_v41, %v11067_v30  ;;  %v11068_v13 = vld [vmem:[#allocation145_spill] sm:$0xff]  ;;  %v4729_v28 = vld [vmem:[%s10257_s1 + $0x90] sm:$0xff] }
 0x44b   :  { %11062 = vst [vmem:[#allocation97_spill] sm:$0xff] %v7635_v47  ;;  %11065 = vst [vmem:[#allocation92_spill] sm:$0xff] %v7643_v48  ;;  %v7656_v29 = vmul.f32 %v11061_v52, %v11068_v13  ;;  %3325 = vperm.xlu1 %4528, %v4729_v28   ;;  %v7667_v48 = vmul.f32 %v11061_v52, %v11071_v63  ;;  %v11073_v30 = vld [vmem:[#allocation148_spill] sm:$0xff]  ;;  %v11074_v13 = vld [vmem:[#allocation149_spill] sm:$0xff] }
 0x44c   :  { %11066 = vst [vmem:[#allocation99_spill] sm:$0xff] %v7648_v26  ;;  %v7671_v20 = vmul.f32 %v7299_v41, %v11073_v30  ;;  %v11076_v17 = vld [vmem:[#allocation150_spill] sm:$0xff]  ;;  %v11077_v28 = vld [vmem:[#allocation151_spill] sm:$0xff]  ;;  %v11080_v4 = vld [vmem:[#allocation153_spill] sm:$0xff] }
 0x44d   :  { %11069 = vst [vmem:[#allocation101_spill] sm:$0xff] %v7656_v29  ;;  %11072 = vst [vmem:[#allocation94_spill] sm:$0xff] %v7667_v48  ;;  %v7675_v29 = vmul.f32 %v11061_v52, %v11074_v13  ;;  %v7679_v50 = vmul.f32 %v7299_v41, %v11076_v17  ;;  %v120_v39 = vld [vmem:[%s10258_s2 + $0x100] sm:$0xff]  ;;  %v7686_v63 = vmul.f32 %v11061_v52, %v11077_v28  ;;  %v11079_v48 = vld [vmem:[#allocation152_spill] sm:$0xff] }
 0x44e   :  { %v7690_v30 = vmul.f32 %v7299_v41, %v11079_v48  ;;  %v7694_v13 = vmul.f32 %v11061_v52, %v11080_v4  ;;  %11083 = vst [vmem:[#allocation98_spill] sm:$0xff] %v7700_v57  ;;  %v11084_v7 = vld [vmem:[#allocation155_spill] sm:$0xff]  ;;  %v11086_v28 = vld [vmem:[#allocation156_spill] sm:$0xff]  ;;  %v11087_v48 = vld [vmem:[#allocation157_spill] sm:$0xff]  ;;  %702 = vperm.xlu0 %4529, %v120_v39  }
 0x44f   :  { %11075 = vst [vmem:[#allocation103_spill] sm:$0xff] %v7675_v29  ;;  %11078 = vst [vmem:[#allocation96_spill] sm:$0xff] %v7686_v63  ;;  %v11082_v29 = vld [vmem:[#allocation154_spill] sm:$0xff]  ;;  %v7704_v21 = vmul.f32 %v11061_v52, %v11084_v7  ;;  %v7708_v63 = vmul.f32 %v7299_v41, %v11086_v28  ;;  %v7712_v56 = vmul.f32 %v11061_v52, %v11087_v48  ;;  %v11091_v23 = vld [vmem:[#allocation159_spill] sm:$0xff] }
 0x450   :  { %11081 = vst [vmem:[#allocation105_spill] sm:$0xff] %v7694_v13  ;;  %v7698_v17 = vmul.f32 %v7299_v41, %v11082_v29  ;;  %v11089_v4 = vld [vmem:[#allocation158_spill] sm:$0xff]  ;;  %v7718_v29 = vpop.permute.xlu0 %324  ;;  %v7722_v57 = vmul.f32 %v11061_v52, %v11091_v23  ;;  %v11093_v7 = vld [vmem:[#allocation160_spill] sm:$0xff]  ;;  %v11094_v28 = vld [vmem:[#allocation161_spill] sm:$0xff] }
 0x451   :  { %11085 = vst [vmem:[#allocation100_spill] sm:$0xff] %v7704_v21  ;;  %11088 = vst [vmem:[#allocation107_spill] sm:$0xff] %v7712_v56  ;;  %v7716_v13 = vmul.f32 %v7299_v41, %v11089_v4  ;;  %v7726_v21 = vmul.f32 %v7299_v41, %v11093_v7  ;;  %v7730_v26 = vmul.f32 %v11061_v52, %v11094_v28  ;;  %v4730_v48 = vld [vmem:[%s10257_s1 + $0xa0] sm:$0xff]  ;;  %v11097_v23 = vld [vmem:[#allocation163_spill] sm:$0xff] }
 0x452   :  { %11090 = vst [vmem:[#allocation102_spill] sm:$0xff] %v7718_v29  ;;  %11092 = vst [vmem:[#allocation109_spill] sm:$0xff] %v7722_v57  ;;  %3333 = vperm.xlu1 %4528, %v4730_v48   ;;  %v11096_v4 = vld [vmem:[#allocation162_spill] sm:$0xff]  ;;  %v7741_v57 = vmul.f32 %v11061_v52, %v11097_v23  ;;  %v11099_v7 = vld [vmem:[#allocation164_spill] sm:$0xff] }
 0x453   :  { %11095 = vst [vmem:[#allocation104_spill] sm:$0xff] %v7730_v26  ;;  %v7737_v56 = vmul.f32 %v7299_v41, %v11096_v4  ;;  %v7745_v29 = vmul.f32 %v7299_v41, %v11099_v7  ;;  %v11100_v28 = vld [vmem:[#allocation165_spill] sm:$0xff]  ;;  %v122_v39 = vld [vmem:[%s10258_s2 + $0x110] sm:$0xff]  ;;  %v11102_v48 = vld [vmem:[#allocation166_spill] sm:$0xff] }
 0x454   :  { %11098 = vst [vmem:[#allocation111_spill] sm:$0xff] %v7741_v57  ;;  %v7749_v26 = vmul.f32 %v11061_v52, %v11100_v28  ;;  %v7756_v4 = vmul.f32 %v7299_v41, %v11102_v48  ;;  %v11103_v35 = vld [vmem:[#allocation167_spill] sm:$0xff]  ;;  %v11105_v57 = vld [vmem:[#allocation168_spill] sm:$0xff]  ;;  %v11106_v33 = vld [vmem:[#allocation169_spill] sm:$0xff]  ;;  %712 = vperm.xlu0 %4529, %v122_v39  }
 0x455   :  { %v7760_v23 = vmul.f32 %v11061_v52, %v11103_v35  ;;  %v7764_v7 = vmul.f32 %v7299_v41, %v11105_v57  ;;  %v7768_v28 = vmul.f32 %v11061_v52, %v11106_v33  ;;  %v11109_v5 = vld [vmem:[#allocation170_spill] sm:$0xff]  ;;  %v11110_v48 = vld [vmem:[#allocation171_spill] sm:$0xff]  ;;  %v11112_v35 = vld [vmem:[#allocation172_spill] sm:$0xff]  ;;  %v7788_v33 = vpop.permute.xlu0 %334 }
 0x456   :  { %11101 = vst [vmem:[#allocation113_spill] sm:$0xff] %v7749_v26  ;;  %v7770_v26 = vpop.permute.xlu1 %2965  ;;  %v7774_v27 = vmul.f32 %v7299_v41, %v11109_v5  ;;  %v7778_v47 = vmul.f32 %v11061_v52, %v11110_v48  ;;  %v11113_v57 = vld [vmem:[#allocation173_spill] sm:$0xff]  ;;  %11115 = vst [vmem:[#allocation112_spill] sm:$0xff] %v7788_v33  ;;  %v11117_v5 = vld [vmem:[#allocation175_spill] sm:$0xff] }
 0x457   :  { %11104 = vst [vmem:[#allocation106_spill] sm:$0xff] %v7760_v23  ;;  %11107 = vst [vmem:[#allocation115_spill] sm:$0xff] %v7768_v28  ;;  %v7782_v23 = vmul.f32 %v7299_v41, %v11112_v35  ;;  %v7786_v40 = vmul.f32 %v11061_v52, %v11113_v57  ;;  %v11116_v28 = vld [vmem:[#allocation174_spill] sm:$0xff]  ;;  %v7796_v45 = vmul.f32 %v11061_v52, %v11117_v5  ;;  %v11119_v48 = vld [vmem:[#allocation176_spill] sm:$0xff] }
 0x458   :  { %11108 = vst [vmem:[#allocation108_spill] sm:$0xff] %v7770_v26  ;;  %11111 = vst [vmem:[#allocation110_spill] sm:$0xff] %v7778_v47  ;;  %v7792_v26 = vmul.f32 %v7299_v41, %v11116_v28  ;;  %v7800_v47 = vmul.f32 %v7299_v41, %v11119_v48  ;;  %v4731_v35 = vld [vmem:[%s10257_s1 + $0xb0] sm:$0xff]  ;;  %v11120_v57 = vld [vmem:[#allocation177_spill] sm:$0xff] }
 0x459   :  { %11114 = vst [vmem:[#allocation117_spill] sm:$0xff] %v7786_v40  ;;  %11118 = vst [vmem:[#allocation119_spill] sm:$0xff] %v7796_v45  ;;  %3341 = vperm.xlu1 %4528, %v4731_v35   ;;  %v7807_v33 = vmul.f32 %v11061_v52, %v11120_v57  ;;  %v11122_v28 = vld [vmem:[#allocation178_spill] sm:$0xff]  ;;  %v11123_v5 = vld [vmem:[#allocation179_spill] sm:$0xff] }
 0x45a   :  { %v7811_v40 = vmul.f32 %v7299_v41, %v11122_v28  ;;  %v7815_v45 = vmul.f32 %v11061_v52, %v11123_v5  ;;  %v11125_v48 = vld [vmem:[#allocation180_spill] sm:$0xff]  ;;  %v124_v39 = vld [vmem:[%s10258_s2 + $0x120] sm:$0xff]  ;;  %v11130_v58 = vld [vmem:[#allocation183_spill] sm:$0xff]  ;;  %v7840_v42 = vpop.permute.xlu1 %2973 }
 0x45b   :  { %11121 = vst [vmem:[#allocation121_spill] sm:$0xff] %v7807_v33  ;;  %v7819_v22 = vmul.f32 %v7299_v41, %v11125_v48  ;;  %v11126_v35 = vld [vmem:[#allocation181_spill] sm:$0xff]  ;;  %v11128_v33 = vld [vmem:[#allocation182_spill] sm:$0xff]  ;;  %v7834_v5 = vmul.f32 %v11061_v52, %v11130_v58  ;;  %11134 = vst [vmem:[#allocation120_spill] sm:$0xff] %v7840_v42  ;;  %722 = vperm.xlu0 %4529, %v124_v39  }
 0x45c   :  { %11124 = vst [vmem:[#allocation114_spill] sm:$0xff] %v7815_v45  ;;  %v7826_v57 = vmul.f32 %v11061_v52, %v11126_v35  ;;  %v7830_v28 = vmul.f32 %v7299_v41, %v11128_v33  ;;  %v11132_v45 = vld [vmem:[#allocation184_spill] sm:$0xff]  ;;  %v11135_v11 = vld [vmem:[#allocation185_spill] sm:$0xff]  ;;  %v11137_v35 = vld [vmem:[#allocation186_spill] sm:$0xff] }
 0x45d   :  { %11131 = vst [vmem:[#allocation125_spill] sm:$0xff] %v7834_v5  ;;  %v7838_v48 = vmul.f32 %v7299_v41, %v11132_v45  ;;  %v7844_v51 = vmul.f32 %v11061_v52, %v11135_v11  ;;  %v11139_v33 = vld [vmem:[#allocation187_spill] sm:$0xff]  ;;  %v11141_v58 = vld [vmem:[#allocation188_spill] sm:$0xff]  ;;  %v7858_v45 = vpop.permute.xlu0 %344  ;;  %v11146_v11 = vld [vmem:[#allocation190_spill] sm:$0xff] }
 0x45e   :  { %11127 = vst [vmem:[#allocation123_spill] sm:$0xff] %v7826_v57  ;;  %11129 = vst [vmem:[#allocation116_spill] sm:$0xff] %v7830_v28  ;;  %v7848_v57 = vmul.f32 %v7299_v41, %v11137_v35  ;;  %v7852_v25 = vmul.f32 %v11061_v52, %v11139_v33  ;;  %v7856_v5 = vmul.f32 %v7299_v41, %v11141_v58  ;;  %v11148_v35 = vld [vmem:[#allocation191_spill] sm:$0xff]  ;;  %v4732_v33 = vld [vmem:[%s10257_s1 + $0xc0] sm:$0xff] }
 0x45f   :  { %11133 = vst [vmem:[#allocation118_spill] sm:$0xff] %v7838_v48  ;;  %11136 = vst [vmem:[#allocation127_spill] sm:$0xff] %v7844_v51  ;;  %v11144_v48 = vld [vmem:[#allocation189_spill] sm:$0xff]  ;;  %v7866_v51 = vmul.f32 %v7299_v41, %v11146_v11  ;;  %3349 = vperm.xlu1 %4528, %v4732_v33   ;;  %v11150_v58 = vld [vmem:[#allocation192_spill] sm:$0xff] }
 0x460   :  { %11138 = vst [vmem:[#allocation122_spill] sm:$0xff] %v7848_v57  ;;  %11140 = vst [vmem:[#allocation129_spill] sm:$0xff] %v7852_v25  ;;  %v7862_v42 = vmul.f32 %v11061_v52, %v11144_v48  ;;  %v7870_v57 = vmul.f32 %v11061_v52, %v11148_v35  ;;  %v7877_v25 = vmul.f32 %v7299_v41, %v11150_v58  ;;  %v11152_v48 = vld [vmem:[#allocation193_spill] sm:$0xff]  ;;  %v11154_v11 = vld [vmem:[#allocation194_spill] sm:$0xff] }
 0x461   :  { %11142 = vst [vmem:[#allocation124_spill] sm:$0xff] %v7856_v5  ;;  %11143 = vst [vmem:[#allocation126_spill] sm:$0xff] %v7858_v45  ;;  %v7885_v45 = vmul.f32 %v7299_v41, %v11154_v11  ;;  %v11156_v35 = vld [vmem:[#allocation203_spill] sm:$0xff]  ;;  %v11159_v58 = vld [vmem:[#allocation196_spill] sm:$0xff]  ;;  %v2734_v11 = vsub.s32 5, %v11035_v24 }
 0x462   :  { %11145 = vst [vmem:[#allocation24_spill] sm:$0xff] %v7862_v42  ;;  %11147 = vst [vmem:[#allocation131_spill] sm:$0xff] %v7866_v51  ;;  %v7881_v42 = vmul.f32 %v11061_v52, %v11152_v48  ;;  %v126_v33 = vld [vmem:[%s10258_s2 + $0x130] sm:$0xff]  ;;  %v11161_v48 = vld [vmem:[#allocation205_spill] sm:$0xff] }
 0x463   :  { %11149 = vst [vmem:[#allocation21_spill] sm:$0xff] %v7870_v57  ;;  %11151 = vst [vmem:[#allocation26_spill] sm:$0xff] %v7877_v25  ;;  %v1575_v57 = vmul.f32 %v6997_v53, %v11156_v35  ;;  %v11157_v39 = vld [vmem:[#allocation195_spill] sm:$0xff]  ;;  %v7898_v25 = vmul.f32 %v7299_v41, %v11159_v58  ;;  %v11163_v35 = vld [vmem:[#allocation6_spill] sm:$0xff]  ;;  %732 = vperm.xlu0 %4529, %v126_v33  }
 0x464   :  { %11153 = vst [vmem:[#allocation133_spill] sm:$0xff] %v7881_v42  ;;  %11155 = vst [vmem:[#allocation27_spill] sm:$0xff] %v7885_v45  ;;  %v7894_v51 = vmul.f32 %v11061_v52, %v11157_v39  ;;  %v1577_v42 = vmul.f32 %v6997_v53, %v11161_v48  ;;  %v7903_v45 = vpop.permute.xlu1 %2981  ;;  %v7907_v5 = vmul.f32 %v11061_v52, %v11163_v35  ;;  %v11165_v28 = vld [vmem:[#allocation69_spill] sm:$0xff]  ;;  %v11167_v39 = vld [vmem:[#allocation7_spill] sm:$0xff]  ;;  %v7919_v48 = vpop.permute.xlu0 %354 }
 0x465   :  { %11160 = vst [vmem:[#allocation22_spill] sm:$0xff] %v7898_v25  ;;  %11162 = vst [vmem:[#allocation128_spill] sm:$0xff] %v7903_v45  ;;  %v7911_v54 = vmul.f32 %v7299_v41, %v11165_v28  ;;  %v11169_v58 = vld [vmem:[#allocation207_spill] sm:$0xff]  ;;  %v11171_v24 = vld [vmem:[#allocation197_spill] sm:$0xff] }
 0x466   :  { %11158 = vst [vmem:[#allocation135_spill] sm:$0xff] %v7894_v51  ;;  %11164 = vst [vmem:[#allocation137_spill] sm:$0xff] %v7907_v5  ;;  %v7915_v51 = vmul.f32 %v11061_v52, %v11167_v39  ;;  %v1579_v25 = vmul.f32 %v6997_v53, %v11169_v58  ;;  %v7923_v45 = vmul.f32 %v7299_v41, %v11171_v24  ;;  %v11173_v49 = vld [vmem:[#allocation8_spill] sm:$0xff]  ;;  %v11175_v5 = vld [vmem:[#allocation209_spill] sm:$0xff] }
 0x467   :  { %11166 = vst [vmem:[#allocation139_spill] sm:$0xff] %v7911_v54  ;;  %11170 = vst [vmem:[#allocation130_spill] sm:$0xff] %v7919_v48  ;;  %v7927_v35 = vmul.f32 %v11061_v52, %v11173_v49  ;;  %v1581_v28 = vmul.f32 %v6997_v53, %v11175_v5  ;;  %v4733_v39 = vld [vmem:[%s10257_s1 + $0xd0] sm:$0xff]  ;;  %v11176_v58 = vld [vmem:[#allocation198_spill] sm:$0xff]  ;;  %v1639_v49 = vadd.f32 %v1575_v57, %v7304_v2 }
 0x468   :  { %11168 = vst [vmem:[#allocation23_spill] sm:$0xff] %v7915_v51  ;;  %11172 = vst [vmem:[#allocation141_spill] sm:$0xff] %v7923_v45  ;;  %3357 = vperm.xlu1 %4528, %v4733_v39   ;;  %v7936_v51 = vmul.f32 %v7299_v41, %v11176_v58  ;;  %v11178_v48 = vld [vmem:[#allocation9_spill] sm:$0xff]  ;;  %v11181_v54 = vld [vmem:[#allocation10_spill] sm:$0xff]  ;;  %v1641_v39 = vadd.f32 %v1577_v42, %v7317_v19  ;;  %v7958_v2 = vpop.permute.xlu1 %2989  ;;  %v7971_v42 = vpop.permute.xlu0 %364 }
 0x469   :  { %11174 = vst [vmem:[#allocation34_spill] sm:$0xff] %v7927_v35  ;;  %v7940_v24 = vmul.f32 %v11061_v52, %v11178_v48  ;;  %v11180_v35 = vld [vmem:[#allocation211_spill] sm:$0xff]  ;;  %v128_v5 = vld [vmem:[%s10258_s2 + $0x140] sm:$0xff]  ;;  %v7950_v33 = vmul.f32 %v7646_v12, %v11181_v54  ;;  %v7956_v52 = vrot.slane %v6961_v61, %v2734_v11  ;;  %11185 = vst [vmem:[#allocation265_spill] sm:$0xff] %v7958_v2 }
 0x46a   :  { %11177 = vst [vmem:[#allocation72_spill] sm:$0xff] %v7936_v51  ;;  %v1583_v45 = vmul.f32 %v6997_v53, %v11180_v35  ;;  %v11183_v58 = vld [vmem:[#allocation213_spill] sm:$0xff]  ;;  %v11186_v57 = vld [vmem:[#allocation199_spill] sm:$0xff]  ;;  %v1643_v54 = vadd.f32 %v1579_v25, %v7327_v6  ;;  %11191 = vst [vmem:[#allocation30_spill] sm:$0xff] %v7971_v42  ;;  %742 = vperm.xlu0 %4529, %v128_v5  }
 0x46b   :  { %11179 = vst [vmem:[#allocation25_spill] sm:$0xff] %v7940_v24  ;;  %11182 = vst [vmem:[#allocation132_spill] sm:$0xff] %v7950_v33  ;;  %v1585_v51 = vmul.f32 %v6997_v53, %v11183_v58  ;;  %v7962_v48 = vmul.f32 %v6997_v53, %v11186_v57  ;;  %v11188_v35 = vld [vmem:[#allocation11_spill] sm:$0xff]  ;;  %v11192_v58 = vld [vmem:[#allocation200_spill] sm:$0xff]  ;;  %v1645_v57 = vadd.f32 %v1581_v28, %v7343_v31 }
 0x46c   :  { %11184 = vst [vmem:[#allocation134_spill] sm:$0xff] %v7956_v52  ;;  %v7966_v24 = vmul.f32 %v7646_v12, %v11188_v35  ;;  %v11190_v33 = vld [vmem:[#allocation215_spill] sm:$0xff]  ;;  %v7975_v11 = vmul.f32 %v6997_v53, %v11192_v58  ;;  %v11194_v2 = vld [vmem:[#allocation201_spill] sm:$0xff]  ;;  %v11196_v6 = vld [vmem:[#allocation204_spill] sm:$0xff] }
 0x46d   :  { %11187 = vst [vmem:[#allocation29_spill] sm:$0xff] %v7962_v48  ;;  %v1587_v19 = vmul.f32 %v6997_v53, %v11190_v33  ;;  %v7979_v41 = vmul.f32 %v7646_v12, %v11194_v2  ;;  %v4734_v35 = vld [vmem:[%s10257_s1 + $0xe0] sm:$0xff]  ;;  %v7987_v25 = vmul.f32 %v7646_v12, %v11196_v6  ;;  %v1647_v33 = vadd.f32 %v1583_v45, %v7356_v55  ;;  %v130_v31 = vld [vmem:[%s10258_s2 + $0x150] sm:$0xff]  ;;  %v8008_v45 = vpop.permute.xlu1 %2997 }
 0x46e   :  { %11189 = vst [vmem:[#allocation136_spill] sm:$0xff] %v7966_v24  ;;  %11193 = vst [vmem:[#allocation138_spill] sm:$0xff] %v7975_v11  ;;  %3365 = vperm.xlu1 %4528, %v4734_v35   ;;  %v11198_v58 = vld [vmem:[#allocation217_spill] sm:$0xff]  ;;  %v7993_v2 = vadd.f32 %v7639_v34, %v1639_v49  ;;  %v11199_v28 = vld [vmem:[#allocation206_spill] sm:$0xff]  ;;  %v1649_v5 = vadd.f32 %v1585_v51, %v7359_v38  ;;  %v8006_v55 = vadd.f32 %v7652_v9, %v1641_v39  ;;  %v8020_v38 = vpop.permute.xlu0 %374 }
 0x46f   :  { %11195 = vst [vmem:[#allocation32_spill] sm:$0xff] %v7979_v41  ;;  %11197 = vst [vmem:[#allocation140_spill] sm:$0xff] %v7987_v25  ;;  %v1589_v24 = vmul.f32 %v6997_v53, %v11198_v58  ;;  %v8000_v35 = vmul.f32 %v7646_v12, %v11199_v28  ;;  %v11201_v6 = vld [vmem:[#allocation219_spill] sm:$0xff]  ;;  %v11203_v34 = vld [vmem:[#allocation208_spill] sm:$0xff]  ;;  %v1651_v58 = vadd.f32 %v1587_v19, %v7370_v8  ;;  %752 = vperm.xlu0 %4529, %v130_v31  }
 0x470   :  { %v1591_v25 = vmul.f32 %v6997_v53, %v11201_v6  ;;  %11202 = vst [vmem:[#allocation142_spill] sm:$0xff] %v8008_v45  ;;  %v8012_v49 = vmul.f32 %v7646_v12, %v11203_v34  ;;  %v11205_v41 = vld [vmem:[#allocation221_spill] sm:$0xff]  ;;  %11206 = vst [vmem:[#allocation75_spill] sm:$0xff] %v8020_v38  ;;  %v11207_v51 = vld [vmem:[#allocation210_spill] sm:$0xff]  ;;  %v8029_v34 = vadd.f32 %v7671_v20, %v1645_v57 }
 0x471   :  { %11200 = vst [vmem:[#allocation33_spill] sm:$0xff] %v8000_v35  ;;  %v1593_v28 = vmul.f32 %v6997_v53, %v11205_v41  ;;  %v8018_v35 = vadd.f32 %v7660_v10, %v1643_v54  ;;  %v8024_v9 = vmul.f32 %v7646_v12, %v11207_v51  ;;  %v11209_v39 = vld [vmem:[#allocation223_spill] sm:$0xff]  ;;  %v11210_v41 = vld [vmem:[#allocation212_spill] sm:$0xff]  ;;  %v1653_v54 = vadd.f32 %v1589_v24, %v7382_v3  ;;  %v11212_v19 = vld [vmem:[#allocation225_spill] sm:$0xff]  ;;  %v8057_v24 = vpop.permute.xlu1 %3005 }
 0x472   :  { %11204 = vst [vmem:[#allocation35_spill] sm:$0xff] %v8012_v49  ;;  %v1595_v6 = vmul.f32 %v6997_v53, %v11209_v39  ;;  %v4735_v8 = vld [vmem:[%s10257_s1 + $0xf0] sm:$0xff]  ;;  %v8036_v10 = vmul.f32 %v7646_v12, %v11210_v41  ;;  %v1597_v51 = vmul.f32 %v6997_v53, %v11212_v19  ;;  %v8042_v39 = vadd.f32 %v7679_v50, %v1647_v33  ;;  %v132_v20 = vld [vmem:[%s10258_s2 + $0x160] sm:$0xff] }
 0x473   :  { %11208 = vst [vmem:[#allocation12_spill] sm:$0xff] %v8024_v9  ;;  %3373 = vperm.xlu1 %4528, %v4735_v8   ;;  %v11213_v57 = vld [vmem:[#allocation214_spill] sm:$0xff]  ;;  %v1655_v31 = vadd.f32 %v1591_v25, %v7398_v59  ;;  %v11215_v41 = vld [vmem:[#allocation227_spill] sm:$0xff]  ;;  %v8055_v3 = vadd.f32 %v7690_v30, %v1649_v5  ;;  %11216 = vst [vmem:[#allocation143_spill] sm:$0xff] %v8057_v24  ;;  %v1657_v19 = vadd.f32 %v1593_v28, %v7401_v1  ;;  %v8069_v59 = vpop.permute.xlu0 %384 }
 0x474   :  { %11211 = vst [vmem:[#allocation463_spill] sm:$0xff] %v8036_v10  ;;  %v8049_v8 = vmul.f32 %v7646_v12, %v11213_v57  ;;  %v1599_v10 = vmul.f32 %v6997_v53, %v11215_v41  ;;  %v11217_v50 = vld [vmem:[#allocation216_spill] sm:$0xff]  ;;  %v11219_v9 = vld [vmem:[#allocation229_spill] sm:$0xff]  ;;  %11220 = vst [vmem:[#allocation145_spill] sm:$0xff] %v8069_v59  ;;  %v1659_v5 = vadd.f32 %v1595_v6, %v7412_v14  ;;  %762 = vperm.xlu0 %4529, %v132_v20  }
 0x475   :  { %v8061_v33 = vmul.f32 %v7646_v12, %v11217_v50  ;;  %v1601_v57 = vmul.f32 %v6997_v53, %v11219_v9  ;;  %v11221_v25 = vld [vmem:[#allocation218_spill] sm:$0xff]  ;;  %v11223_v41 = vld [vmem:[#allocation231_spill] sm:$0xff]  ;;  %v11224_v28 = vld [vmem:[#allocation220_spill] sm:$0xff]  ;;  %v8089_v14 = vadd.f32 %v7708_v63, %v1653_v54 }
 0x476   :  { %11214 = vst [vmem:[#allocation78_spill] sm:$0xff] %v8049_v8  ;;  %v8067_v8 = vadd.f32 %v7698_v17, %v1651_v58  ;;  %v8073_v30 = vmul.f32 %v7646_v12, %v11221_v25  ;;  %v1603_v50 = vmul.f32 %v6997_v53, %v11223_v41  ;;  %v4736_v1 = vld [vmem:[%s10257_s1 + $0x100] sm:$0xff]  ;;  %v8083_v17 = vmul.f32 %v7646_v12, %v11224_v28  ;;  %v134_v6 = vld [vmem:[%s10258_s2 + $0x170] sm:$0xff] }
 0x477   :  { %11218 = vst [vmem:[#allocation144_spill] sm:$0xff] %v8061_v33  ;;  %3381 = vperm.xlu1 %4528, %v4736_v1   ;;  %v1661_v58 = vadd.f32 %v1597_v51, %v7425_v0  ;;  %v11226_v9 = vld [vmem:[#allocation233_spill] sm:$0xff]  ;;  %v1663_v41 = vadd.f32 %v1599_v10, %v7437_v44  ;;  %v11227_v1 = vld [vmem:[#allocation235_spill] sm:$0xff]  ;;  %v8100_v0 = vadd.f32 %v7716_v13, %v1655_v31  ;;  %v8102_v51 = vpop.permute.xlu1 %3013  ;;  %v11232_v54 = vld [vmem:[#allocation224_spill] sm:$0xff] }
 0x478   :  { %11222 = vst [vmem:[#allocation146_spill] sm:$0xff] %v8073_v30  ;;  %11225 = vst [vmem:[#allocation147_spill] sm:$0xff] %v8083_v17  ;;  %v1605_v25 = vmul.f32 %v6997_v53, %v11226_v9  ;;  %v1607_v20 = vmul.f32 %v6997_v53, %v11227_v1  ;;  %v11228_v24 = vld [vmem:[#allocation237_spill] sm:$0xff]  ;;  %v11230_v9 = vld [vmem:[#allocation222_spill] sm:$0xff]  ;;  %v8110_v17 = vmul.f32 %v7646_v12, %v11232_v54  ;;  %v8116_v1 = vpop.permute.xlu0 %394  ;;  %772 = vperm.xlu0 %4529, %v134_v6  }
 0x479   :  { %v1609_v28 = vmul.f32 %v6997_v53, %v11228_v24  ;;  %11229 = vst [vmem:[#allocation148_spill] sm:$0xff] %v8102_v51  ;;  %v8106_v63 = vmul.f32 %v7646_v12, %v11230_v9  ;;  %v1665_v44 = vadd.f32 %v1601_v57, %v7453_v62  ;;  %v8114_v10 = vadd.f32 %v7726_v21, %v1657_v19  ;;  %v11235_v31 = vld [vmem:[#allocation239_spill] sm:$0xff]  ;;  %v11236_v62 = vld [vmem:[#allocation226_spill] sm:$0xff]  ;;  %v11238_v19 = vld [vmem:[#allocation228_spill] sm:$0xff] }
 0x47a   :  { %11233 = vst [vmem:[#allocation150_spill] sm:$0xff] %v8110_v17  ;;  %11234 = vst [vmem:[#allocation151_spill] sm:$0xff] %v8116_v1  ;;  %v1667_v13 = vadd.f32 %v1603_v50, %v7466_v18  ;;  %v1611_v24 = vmul.f32 %v6997_v53, %v11235_v31  ;;  %v8122_v51 = vadd.f32 %v7737_v56, %v1659_v5  ;;  %v4737_v9 = vld [vmem:[%s10257_s1 + $0x110] sm:$0xff]  ;;  %v136_v56 = vld [vmem:[%s10258_s2 + $0x180] sm:$0xff] }
 0x47b   :  { %11231 = vst [vmem:[#allocation149_spill] sm:$0xff] %v8106_v63  ;;  %3389 = vperm.xlu1 %4528, %v4737_v9   ;;  %v8129_v21 = vmul.f32 %v7646_v12, %v11236_v62  ;;  %v8133_v57 = vmul.f32 %v7646_v12, %v11238_v19  ;;  %v1669_v18 = vadd.f32 %v1605_v25, %v7469_v46  ;;  %v11240_v54 = vld [vmem:[#allocation241_spill] sm:$0xff]  ;;  %v8149_v62 = vpop.permute.xlu1 %3021  ;;  %v11242_v46 = vld [vmem:[#allocation230_spill] sm:$0xff]  ;;  %v11246_v19 = vld [vmem:[#allocation243_spill] sm:$0xff] }
 0x47c   :  { %v8137_v50 = vadd.f32 %v7745_v29, %v1661_v58  ;;  %v1671_v5 = vadd.f32 %v1607_v20, %v7480_v16  ;;  %v1673_v6 = vadd.f32 %v1609_v28, %v7492_v37  ;;  %v1613_v31 = vmul.f32 %v6997_v53, %v11240_v54  ;;  %11241 = vst [vmem:[#allocation154_spill] sm:$0xff] %v8149_v62  ;;  %v11244_v58 = vld [vmem:[#allocation232_spill] sm:$0xff]  ;;  %v8164_v20 = vpop.permute.xlu0 %404  ;;  %v11260_v17 = vld [vmem:[#allocation251_spill] sm:$0xff]  ;;  %v11273_v30 = vld [vmem:[#allocation85_spill] sm:$0xff] }
 0x47d   :  { %11237 = vst [vmem:[#allocation152_spill] sm:$0xff] %v8129_v21  ;;  %11239 = vst [vmem:[#allocation153_spill] sm:$0xff] %v8133_v57  ;;  %v8147_v9 = vadd.f32 %v7756_v4, %v1663_v41  ;;  %v8153_v29 = vmul.f32 %v7646_v12, %v11242_v46  ;;  %v8157_v25 = vmul.f32 %v7646_v12, %v11244_v58  ;;  %v11248_v41 = vld [vmem:[#allocation245_spill] sm:$0xff]  ;;  %782 = vperm.xlu0 %4529, %v136_v56   ;;  %v11249_v58 = vld [vmem:[#allocation234_spill] sm:$0xff] }
 0x47e   :  { %v1615_v16 = vmul.f32 %v6997_v53, %v11246_v19  ;;  %v8162_v37 = vadd.f32 %v7764_v7, %v1665_v44  ;;  %11247 = vst [vmem:[#allocation157_spill] sm:$0xff] %v8164_v20  ;;  %v1675_v4 = vadd.f32 %v1611_v24, %v7508_v15  ;;  %v1617_v28 = vmul.f32 %v6997_v53, %v11248_v41  ;;  %v4738_v46 = vld [vmem:[%s10257_s1 + $0x120] sm:$0xff]  ;;  %v11251_v44 = vld [vmem:[#allocation236_spill] sm:$0xff]  ;;  %v11253_v15 = vld [vmem:[#allocation247_spill] sm:$0xff] }
 0x47f   :  { %11243 = vst [vmem:[#allocation155_spill] sm:$0xff] %v8153_v29  ;;  %11245 = vst [vmem:[#allocation156_spill] sm:$0xff] %v8157_v25  ;;  %v8170_v54 = vadd.f32 %v7774_v27, %v1667_v13  ;;  %3397 = vperm.xlu1 %4528, %v4738_v46   ;;  %v8177_v7 = vmul.f32 %v7646_v12, %v11249_v58  ;;  %v8181_v19 = vmul.f32 %v7646_v12, %v11251_v44  ;;  %v138_v13 = vld [vmem:[%s10258_s2 + $0x190] sm:$0xff]  ;;  %v11254_v41 = vld [vmem:[#allocation238_spill] sm:$0xff] }
 0x480   :  { %v1619_v24 = vmul.f32 %v6997_v53, %v11253_v15  ;;  %v8186_v27 = vadd.f32 %v7782_v23, %v1669_v18  ;;  %v8193_v56 = vmul.f32 %v7646_v12, %v11254_v41  ;;  %v1677_v46 = vadd.f32 %v1613_v31, %v7511_v60  ;;  %v8202_v15 = vpop.permute.xlu1 %3029  ;;  %v11257_v23 = vld [vmem:[#allocation240_spill] sm:$0xff]  ;;  %v11259_v21 = vld [vmem:[#allocation249_spill] sm:$0xff]  ;;  %v8213_v31 = vpop.permute.xlu0 %414  ;;  %v11296_v45 = vld [vmem:[#allocation131_spill] sm:$0xff] }
 0x481   :  { %11250 = vst [vmem:[#allocation158_spill] sm:$0xff] %v8177_v7  ;;  %11252 = vst [vmem:[#allocation159_spill] sm:$0xff] %v8181_v19  ;;  %v8197_v58 = vadd.f32 %v7792_v26, %v1671_v5  ;;  %v8200_v44 = vadd.f32 %v7800_v47, %v1673_v6  ;;  %v8206_v18 = vmul.f32 %v7646_v12, %v11257_v23  ;;  %v11262_v47 = vld [vmem:[#allocation254_spill] sm:$0xff]  ;;  %792 = vperm.xlu0 %4529, %v138_v13   ;;  %v11265_v23 = vld [vmem:[#allocation257_spill] sm:$0xff] }
 0x482   :  { %11255 = vst [vmem:[#allocation160_spill] sm:$0xff] %v8193_v56  ;;  %11256 = vst [vmem:[#allocation161_spill] sm:$0xff] %v8202_v15  ;;  %v1679_v62 = vadd.f32 %v1615_v16, %v7522_v32  ;;  %v1621_v41 = vmul.f32 %v6997_v53, %v11259_v21  ;;  %v1623_v60 = vmul.f32 %v6997_v53, %v11260_v17  ;;  %v4739_v32 = vld [vmem:[%s10257_s1 + $0x130] sm:$0xff]  ;;  %v11263_v21 = vld [vmem:[#allocation242_spill] sm:$0xff] }
 0x483   :  { %11258 = vst [vmem:[#allocation162_spill] sm:$0xff] %v8206_v18  ;;  %11261 = vst [vmem:[#allocation163_spill] sm:$0xff] %v8213_v31  ;;  %v1681_v26 = vadd.f32 %v1617_v28, %v7537_v36  ;;  %v1625_v5 = vmul.f32 %v6997_v53, %v11262_v47  ;;  %v8219_v6 = vadd.f32 %v7811_v40, %v1675_v4  ;;  %3405 = vperm.xlu1 %4528, %v4739_v32   ;;  %v11266_v28 = vld [vmem:[#allocation260_spill] sm:$0xff]  ;;  %v140_v40 = vld [vmem:[%s10258_s2 + $0x1a0] sm:$0xff] }
 0x484   :  { %v8226_v16 = vmul.f32 %v7646_v12, %v11263_v21  ;;  %v1683_v17 = vadd.f32 %v1619_v24, %v7547_v43  ;;  %v1627_v36 = vmul.f32 %v6997_v53, %v11265_v23  ;;  %v1629_v47 = vmul.f32 %v6997_v53, %v11266_v28  ;;  %v11267_v4 = vld [vmem:[#allocation244_spill] sm:$0xff]  ;;  %v11269_v13 = vld [vmem:[#allocation263_spill] sm:$0xff]  ;;  %v11270_v15 = vld [vmem:[#allocation266_spill] sm:$0xff]  ;;  %v8247_v23 = vpop.permute.xlu1 %3037  ;;  %v8256_v18 = vpop.permute.xlu0 %424 }
 0x485   :  { %v8238_v32 = vmul.f32 %v7646_v12, %v11267_v4  ;;  %v1631_v21 = vmul.f32 %v6997_v53, %v11269_v13  ;;  %v1633_v43 = vmul.f32 %v6997_v53, %v11270_v15  ;;  %v8245_v24 = vadd.f32 %v7819_v22, %v1677_v46  ;;  %11271 = vst [vmem:[#allocation166_spill] sm:$0xff] %v8247_v23  ;;  %v11272_v28 = vld [vmem:[#allocation83_spill] sm:$0xff]  ;;  %v11274_v49 = vld [vmem:[#allocation268_spill] sm:$0xff]  ;;  %v11277_v13 = vld [vmem:[#allocation246_spill] sm:$0xff] }
 0x486   :  { %11264 = vst [vmem:[#allocation164_spill] sm:$0xff] %v8226_v16  ;;  %v1685_v63 = vadd.f32 %v1621_v41, %v11272_v28  ;;  %v1687_v33 = vadd.f32 %v1623_v60, %v11273_v30  ;;  %v1635_v16 = vmul.f32 %v6997_v53, %v11274_v49  ;;  %v11275_v4 = vld [vmem:[#allocation116_spill] sm:$0xff]  ;;  %11276 = vst [vmem:[#allocation167_spill] sm:$0xff] %v8256_v18  ;;  %v11279_v22 = vld [vmem:[#allocation87_spill] sm:$0xff]  ;;  %802 = vperm.xlu0 %4529, %v140_v40  }
 0x487   :  { %11268 = vst [vmem:[#allocation165_spill] sm:$0xff] %v8238_v32  ;;  %v8254_v32 = vadd.f32 %v11275_v4, %v1679_v62  ;;  %v8260_v15 = vmul.f32 %v7646_v12, %v11277_v13  ;;  %v1689_v46 = vadd.f32 %v1625_v5, %v11279_v22  ;;  %v11280_v31 = vld [vmem:[#allocation118_spill] sm:$0xff]  ;;  %v11281_v53 = vld [vmem:[#allocation248_spill] sm:$0xff]  ;;  %v11284_v60 = vld [vmem:[#allocation89_spill] sm:$0xff] }
 0x488   :  { %v8264_v23 = vadd.f32 %v11280_v31, %v1681_v26  ;;  %v4740_v30 = vld [vmem:[%s10257_s1 + $0x140] sm:$0xff]  ;;  %v8271_v49 = vmul.f32 %v7646_v12, %v11281_v53  ;;  %v11283_v62 = vld [vmem:[#allocation80_spill] sm:$0xff]  ;;  %v1693_v28 = vadd.f32 %v1629_v47, %v11284_v60  ;;  %v11288_v40 = vld [vmem:[#allocation91_spill] sm:$0xff] }
 0x489   :  { %11278 = vst [vmem:[#allocation168_spill] sm:$0xff] %v8260_v15  ;;  %3413 = vperm.xlu1 %4528, %v4740_v30   ;;  %v1691_v41 = vadd.f32 %v1627_v36, %v11283_v62  ;;  %v11285_v4 = vld [vmem:[#allocation122_spill] sm:$0xff]  ;;  %v142_v31 = vld [vmem:[%s10258_s2 + $0x1b0] sm:$0xff]  ;;  %v1695_v22 = vadd.f32 %v1631_v21, %v11288_v40  ;;  %v8288_v36 = vpop.permute.xlu1 %3045  ;;  %v11338_v56 = vld [vmem:[#allocation281_spill] sm:$0xff] }
 0x48a   :  { %11282 = vst [vmem:[#allocation169_spill] sm:$0xff] %v8271_v49  ;;  %v8276_v13 = vadd.f32 %v11285_v4, %v1683_v17  ;;  %v11286_v26 = vld [vmem:[#allocation250_spill] sm:$0xff]  ;;  %v11290_v49 = vld [vmem:[#allocation459_spill] sm:$0xff]  ;;  %11291 = vst [vmem:[#allocation171_spill] sm:$0xff] %v8288_v36  ;;  %812 = vperm.xlu0 %4529, %v142_v31  }
 0x48b   :  { %v8283_v5 = vmul.f32 %v7646_v12, %v11286_v26  ;;  %v11289_v30 = vld [vmem:[#allocation86_spill] sm:$0xff]  ;;  %v3122_v15 = vsub.s32 6, %v11290_v49  ;;  %v11292_v47 = vld [vmem:[#allocation252_spill] sm:$0xff]  ;;  %v8299_v26 = vadd.f32 %v11296_v45, %v1687_v33  ;;  %v11298_v21 = vld [vmem:[#allocation255_spill] sm:$0xff] }
 0x48c   :  { %v1697_v53 = vadd.f32 %v1633_v43, %v11289_v30  ;;  %v8292_v17 = vmul.f32 %v7646_v12, %v11292_v47  ;;  %v11294_v62 = vld [vmem:[#allocation272_spill] sm:$0xff]  ;;  %v8305_v43 = vmul.f32 %v7646_v12, %v11298_v21  ;;  %v11300_v40 = vld [vmem:[#allocation258_spill] sm:$0xff]  ;;  %v11304_v45 = vld [vmem:[#allocation261_spill] sm:$0xff] }
 0x48d   :  { %11287 = vst [vmem:[#allocation170_spill] sm:$0xff] %v8283_v5  ;;  %v1699_v60 = vadd.f32 %v1635_v16, %v11294_v62  ;;  %v11295_v4 = vld [vmem:[#allocation124_spill] sm:$0xff]  ;;  %v8301_v5 = vpop.permute.xlu0 %434  ;;  %v8309_v30 = vmul.f32 %v7646_v12, %v11300_v40  ;;  %v11302_v47 = vld [vmem:[#allocation26_spill] sm:$0xff]  ;;  %v8319_v33 = vmul.f32 %v7646_v12, %v11304_v45  ;;  %v8339_v45 = vrot.slane %v6961_v61, %v3122_v15  ;;  %v11341_v20 = vld [vmem:[#allocation283_spill] sm:$0xff] }
 0x48e   :  { %11293 = vst [vmem:[#allocation172_spill] sm:$0xff] %v8292_v17  ;;  %v8296_v18 = vadd.f32 %v11295_v4, %v1685_v63  ;;  %11297 = vst [vmem:[#allocation173_spill] sm:$0xff] %v8301_v5  ;;  %v8312_v36 = vadd.f32 %v11302_v47, %v1689_v46  ;;  %v4741_v63 = vld [vmem:[%s10257_s1 + $0x150] sm:$0xff]  ;;  %v11310_v40 = vld [vmem:[#allocation22_spill] sm:$0xff] }
 0x48f   :  { %11299 = vst [vmem:[#allocation174_spill] sm:$0xff] %v8305_v43  ;;  %11301 = vst [vmem:[#allocation175_spill] sm:$0xff] %v8309_v30  ;;  %3421 = vperm.xlu1 %4528, %v4741_v63   ;;  %v11306_v16 = vld [vmem:[#allocation264_spill] sm:$0xff]  ;;  %v11308_v4 = vld [vmem:[#allocation27_spill] sm:$0xff]  ;;  %v8329_v46 = vadd.f32 %v11310_v40, %v1693_v28 }
 0x490   :  { %11303 = vst [vmem:[#allocation176_spill] sm:$0xff] %v8312_v36  ;;  %11305 = vst [vmem:[#allocation177_spill] sm:$0xff] %v8319_v33  ;;  %v8323_v62 = vmul.f32 %v7956_v52, %v11306_v16  ;;  %v8326_v21 = vadd.f32 %v11308_v4, %v1691_v41  ;;  %v144_v47 = vld [vmem:[%s10258_s2 + $0x1c0] sm:$0xff]  ;;  %v11312_v63 = vld [vmem:[#allocation267_spill] sm:$0xff]  ;;  %v8347_v4 = vpop.permute.xlu1 %3053 }
 0x491   :  { %11311 = vst [vmem:[#allocation180_spill] sm:$0xff] %v8329_v46  ;;  %v8336_v31 = vmul.f32 %v7956_v52, %v11312_v63  ;;  %v11313_v33 = vld [vmem:[#allocation139_spill] sm:$0xff]  ;;  %v11315_v30 = vld [vmem:[#allocation141_spill] sm:$0xff]  ;;  %11317 = vst [vmem:[#allocation183_spill] sm:$0xff] %v8347_v4  ;;  %822 = vperm.xlu0 %4529, %v144_v47  }
 0x492   :  { %11307 = vst [vmem:[#allocation178_spill] sm:$0xff] %v8323_v62  ;;  %11309 = vst [vmem:[#allocation179_spill] sm:$0xff] %v8326_v21  ;;  %v8342_v16 = vadd.f32 %v11313_v33, %v1695_v22  ;;  %v8345_v41 = vadd.f32 %v11315_v30, %v1697_v53  ;;  %v11318_v28 = vld [vmem:[#allocation269_spill] sm:$0xff]  ;;  %v11319_v43 = vld [vmem:[#allocation270_spill] sm:$0xff]  ;;  %v8364_v33 = vpop.permute.xlu0 %444 }
 0x493   :  { %v8351_v40 = vmul.f32 %v7956_v52, %v11318_v28  ;;  %v11320_v17 = vld [vmem:[#allocation37_spill] sm:$0xff]  ;;  %v11322_v63 = vld [vmem:[#allocation271_spill] sm:$0xff]  ;;  %v11323_v15 = vld [vmem:[#allocation72_spill] sm:$0xff]  ;;  %11325 = vst [vmem:[#allocation186_spill] sm:$0xff] %v8364_v33 }
 0x494   :  { %11314 = vst [vmem:[#allocation181_spill] sm:$0xff] %v8342_v16  ;;  %11316 = vst [vmem:[#allocation182_spill] sm:$0xff] %v8345_v41  ;;  %v8355_v5 = vmul.f32 %v11320_v17, %v11319_v43  ;;  %v8359_v61 = vmul.f32 %v7956_v52, %v11322_v63  ;;  %v8362_v22 = vadd.f32 %v11323_v15, %v1699_v60  ;;  %v11326_v53 = vld [vmem:[#allocation273_spill] sm:$0xff]  ;;  %v11328_v4 = vld [vmem:[#allocation274_spill] sm:$0xff] }
 0x495   :  { %v8368_v30 = vmul.f32 %v11320_v17, %v11326_v53  ;;  %v8372_v28 = vmul.f32 %v7956_v52, %v11328_v4  ;;  %v11329_v62 = vld [vmem:[#allocation275_spill] sm:$0xff]  ;;  %v4742_v63 = vld [vmem:[%s10257_s1 + $0x160] sm:$0xff]  ;;  %v11331_v60 = vld [vmem:[#allocation276_spill] sm:$0xff] }
 0x496   :  { %11321 = vst [vmem:[#allocation184_spill] sm:$0xff] %v8355_v5  ;;  %11324 = vst [vmem:[#allocation185_spill] sm:$0xff] %v8362_v22  ;;  %v8376_v43 = vmul.f32 %v11320_v17, %v11329_v62  ;;  %3429 = vperm.xlu1 %4528, %v4742_v63   ;;  %v8383_v15 = vmul.f32 %v7956_v52, %v11331_v60  ;;  %v11332_v53 = vld [vmem:[#allocation277_spill] sm:$0xff]  ;;  %v11334_v4 = vld [vmem:[#allocation278_spill] sm:$0xff] }
 0x497   :  { %11327 = vst [vmem:[#allocation187_spill] sm:$0xff] %v8368_v30  ;;  %v8387_v33 = vmul.f32 %v11320_v17, %v11332_v53  ;;  %v8391_v30 = vmul.f32 %v7956_v52, %v11334_v4  ;;  %v11335_v62 = vld [vmem:[#allocation279_spill] sm:$0xff]  ;;  %v11337_v63 = vld [vmem:[#allocation280_spill] sm:$0xff]  ;;  %v8406_v53 = vmul.f32 %v11320_v17, %v11338_v56  ;;  %v11347_v56 = vld [vmem:[#allocation286_spill] sm:$0xff] }
 0x498   :  { %11330 = vst [vmem:[#allocation188_spill] sm:$0xff] %v8376_v43  ;;  %v8395_v43 = vmul.f32 %v11320_v17, %v11335_v62  ;;  %v146_v47 = vld [vmem:[%s10258_s2 + $0x1d0] sm:$0xff]  ;;  %v8402_v60 = vmul.f32 %v7956_v52, %v11337_v63  ;;  %v8414_v62 = vmul.f32 %v11320_v17, %v11341_v20  ;;  %v11345_v63 = vld [vmem:[#allocation285_spill] sm:$0xff]  ;;  %v8434_v20 = vpop.permute.xlu0 %454 }
 0x499   :  { %11333 = vst [vmem:[#allocation189_spill] sm:$0xff] %v8387_v33  ;;  %11339 = vst [vmem:[#allocation191_spill] sm:$0xff] %v8406_v53  ;;  %v11340_v33 = vld [vmem:[#allocation282_spill] sm:$0xff]  ;;  %v11344_v11 = vld [vmem:[#allocation284_spill] sm:$0xff]  ;;  %v8424_v1 = vmul.f32 %v11320_v17, %v11345_v63  ;;  %v8428_v53 = vmul.f32 %v7956_v52, %v11347_v56  ;;  %832 = vperm.xlu0 %4529, %v146_v47  }
 0x49a   :  { %11336 = vst [vmem:[#allocation190_spill] sm:$0xff] %v8395_v43  ;;  %v8410_v4 = vmul.f32 %v7956_v52, %v11340_v33  ;;  %11342 = vst [vmem:[#allocation192_spill] sm:$0xff] %v8414_v62  ;;  %v8416_v43 = vpop.permute.xlu1 %3061  ;;  %v8420_v19 = vmul.f32 %v7956_v52, %v11344_v11  ;;  %v11348_v33 = vld [vmem:[#allocation287_spill] sm:$0xff]  ;;  %v11351_v62 = vld [vmem:[#allocation288_spill] sm:$0xff] }
 0x49b   :  { %11343 = vst [vmem:[#allocation193_spill] sm:$0xff] %v8416_v43  ;;  %11346 = vst [vmem:[#allocation194_spill] sm:$0xff] %v8424_v1  ;;  %v8432_v7 = vmul.f32 %v11320_v17, %v11348_v33  ;;  %v8438_v43 = vmul.f32 %v7956_v52, %v11351_v62  ;;  %v11352_v11 = vld [vmem:[#allocation289_spill] sm:$0xff]  ;;  %v11354_v63 = vld [vmem:[#allocation290_spill] sm:$0xff] }
 0x49c   :  { %11350 = vst [vmem:[#allocation195_spill] sm:$0xff] %v8434_v20  ;;  %v8442_v48 = vmul.f32 %v11320_v17, %v11352_v11  ;;  %v8446_v1 = vmul.f32 %v7956_v52, %v11354_v63  ;;  %v4743_v56 = vld [vmem:[%s10257_s1 + $0x170] sm:$0xff]  ;;  %v11358_v11 = vld [vmem:[#allocation293_spill] sm:$0xff]  ;;  %v11360_v63 = vld [vmem:[#allocation294_spill] sm:$0xff] }
 0x49d   :  { %11349 = vst [vmem:[#allocation203_spill] sm:$0xff] %v8432_v7  ;;  %3437 = vperm.xlu1 %4528, %v4743_v56   ;;  %v11355_v33 = vld [vmem:[#allocation291_spill] sm:$0xff]  ;;  %v11357_v62 = vld [vmem:[#allocation292_spill] sm:$0xff]  ;;  %v8465_v59 = vmul.f32 %v7956_v52, %v11360_v63  ;;  %v148_v47 = vld [vmem:[%s10258_s2 + $0x1e0] sm:$0xff] }
 0x49e   :  { %11353 = vst [vmem:[#allocation196_spill] sm:$0xff] %v8442_v48  ;;  %v8453_v7 = vmul.f32 %v11320_v17, %v11355_v33  ;;  %v8457_v20 = vmul.f32 %v7956_v52, %v11357_v62  ;;  %v8461_v48 = vmul.f32 %v11320_v17, %v11358_v11  ;;  %v11361_v56 = vld [vmem:[#allocation295_spill] sm:$0xff]  ;;  %v11364_v25 = vld [vmem:[#allocation297_spill] sm:$0xff]  ;;  %v8486_v38 = vpop.permute.xlu1 %3069  ;;  %842 = vperm.xlu0 %4529, %v148_v47  }
 0x49f   :  { %v8472_v33 = vmul.f32 %v11320_v17, %v11361_v56  ;;  %v8480_v11 = vmul.f32 %v11320_v17, %v11364_v25  ;;  %11367 = vst [vmem:[#allocation207_spill] sm:$0xff] %v8486_v38  ;;  %v11368_v29 = vld [vmem:[#allocation299_spill] sm:$0xff]  ;;  %v11370_v56 = vld [vmem:[#allocation300_spill] sm:$0xff]  ;;  %v11373_v25 = vld [vmem:[#allocation302_spill] sm:$0xff] }
 0x4a0   :  { %11356 = vst [vmem:[#allocation205_spill] sm:$0xff] %v8453_v7  ;;  %11359 = vst [vmem:[#allocation6_spill] sm:$0xff] %v8461_v48  ;;  %v11363_v7 = vld [vmem:[#allocation296_spill] sm:$0xff]  ;;  %v11366_v48 = vld [vmem:[#allocation298_spill] sm:$0xff]  ;;  %v8490_v42 = vmul.f32 %v11320_v17, %v11368_v29 }
 0x4a1   :  { %11362 = vst [vmem:[#allocation69_spill] sm:$0xff] %v8472_v33  ;;  %v8476_v62 = vmul.f32 %v7956_v52, %v11363_v7  ;;  %11365 = vst [vmem:[#allocation7_spill] sm:$0xff] %v8480_v11  ;;  %v8484_v63 = vmul.f32 %v7956_v52, %v11366_v48  ;;  %v8494_v33 = vmul.f32 %v7956_v52, %v11370_v56  ;;  %v11371_v7 = vld [vmem:[#allocation301_spill] sm:$0xff]  ;;  %v8504_v48 = vpop.permute.xlu0 %464  ;;  %v11375_v5 = vld [vmem:[#allocation303_spill] sm:$0xff] }
 0x4a2   :  { %11369 = vst [vmem:[#allocation197_spill] sm:$0xff] %v8490_v42  ;;  %v8498_v57 = vmul.f32 %v11320_v17, %v11371_v7  ;;  %v8502_v11 = vmul.f32 %v7956_v52, %v11373_v25  ;;  %11374 = vst [vmem:[#allocation209_spill] sm:$0xff] %v8504_v48  ;;  %v8508_v38 = vmul.f32 %v11320_v17, %v11375_v5  ;;  %v11377_v29 = vld [vmem:[#allocation304_spill] sm:$0xff]  ;;  %v11378_v56 = vld [vmem:[#allocation305_spill] sm:$0xff] }
 0x4a3   :  { %v8512_v42 = vmul.f32 %v7956_v52, %v11377_v29  ;;  %v8516_v22 = vmul.f32 %v11320_v17, %v11378_v56  ;;  %v4744_v7 = vld [vmem:[%s10257_s1 + $0x180] sm:$0xff]  ;;  %v11382_v5 = vld [vmem:[#allocation307_spill] sm:$0xff]  ;;  %v11384_v29 = vld [vmem:[#allocation308_spill] sm:$0xff] }
 0x4a4   :  { %11372 = vst [vmem:[#allocation8_spill] sm:$0xff] %v8498_v57  ;;  %11376 = vst [vmem:[#allocation198_spill] sm:$0xff] %v8508_v38  ;;  %3445 = vperm.xlu1 %4528, %v4744_v7   ;;  %v11380_v25 = vld [vmem:[#allocation306_spill] sm:$0xff]  ;;  %v8527_v48 = vmul.f32 %v11320_v17, %v11382_v5  ;;  %v8531_v38 = vmul.f32 %v7956_v52, %v11384_v29  ;;  %v11386_v56 = vld [vmem:[#allocation309_spill] sm:$0xff] }
 0x4a5   :  { %11379 = vst [vmem:[#allocation9_spill] sm:$0xff] %v8516_v22  ;;  %v8523_v57 = vmul.f32 %v7956_v52, %v11380_v25  ;;  %v8535_v22 = vmul.f32 %v11320_v17, %v11386_v56  ;;  %v150_v47 = vld [vmem:[%s10258_s2 + $0x1f0] sm:$0xff]  ;;  %v11388_v7 = vld [vmem:[#allocation310_spill] sm:$0xff]  ;;  %v11394_v16 = vld [vmem:[#allocation313_spill] sm:$0xff] }
 0x4a6   :  { %11383 = vst [vmem:[#allocation10_spill] sm:$0xff] %v8527_v48  ;;  %11385 = vst [vmem:[#allocation213_spill] sm:$0xff] %v8531_v38  ;;  %v8542_v25 = vmul.f32 %v7956_v52, %v11388_v7  ;;  %v11390_v41 = vld [vmem:[#allocation311_spill] sm:$0xff]  ;;  %v11392_v48 = vld [vmem:[#allocation312_spill] sm:$0xff]  ;;  %v8554_v56 = vmul.f32 %v11320_v17, %v11394_v16  ;;  %v8574_v16 = vpop.permute.xlu0 %542  ;;  %852 = vperm.xlu0 %4529, %v150_v47  }
 0x4a7   :  { %11381 = vst [vmem:[#allocation211_spill] sm:$0xff] %v8523_v57  ;;  %11387 = vst [vmem:[#allocation199_spill] sm:$0xff] %v8535_v22  ;;  %v8546_v5 = vmul.f32 %v11320_v17, %v11390_v41  ;;  %v8550_v29 = vmul.f32 %v7956_v52, %v11392_v48  ;;  %v8556_v22 = vpop.permute.xlu1 %3077  ;;  %v11397_v38 = vld [vmem:[#allocation314_spill] sm:$0xff]  ;;  %v11399_v7 = vld [vmem:[#allocation315_spill] sm:$0xff] }
 0x4a8   :  { %11389 = vst [vmem:[#allocation11_spill] sm:$0xff] %v8542_v25  ;;  %11395 = vst [vmem:[#allocation201_spill] sm:$0xff] %v8554_v56  ;;  %v8560_v46 = vmul.f32 %v7956_v52, %v11397_v38  ;;  %v8564_v25 = vmul.f32 %v11320_v17, %v11399_v7  ;;  %v11401_v41 = vld [vmem:[#allocation316_spill] sm:$0xff]  ;;  %v11403_v48 = vld [vmem:[#allocation318_spill] sm:$0xff] }
 0x4a9   :  { %11391 = vst [vmem:[#allocation215_spill] sm:$0xff] %v8546_v5  ;;  %11393 = vst [vmem:[#allocation200_spill] sm:$0xff] %v8550_v29  ;;  %v8568_v5 = vmul.f32 %v7956_v52, %v11401_v41  ;;  %v8572_v29 = vmul.f32 %v11320_v17, %v11403_v48  ;;  %v11406_v56 = vld [vmem:[#allocation319_spill] sm:$0xff]  ;;  %v11408_v38 = vld [vmem:[#allocation321_spill] sm:$0xff]  ;;  %v3510_v41 = vsub.s32 7, %v11290_v49 }
 0x4aa   :  { %11396 = vst [vmem:[#allocation204_spill] sm:$0xff] %v8556_v22  ;;  %11398 = vst [vmem:[#allocation217_spill] sm:$0xff] %v8560_v46  ;;  %v8578_v22 = vmul.f32 %v7956_v52, %v11406_v56  ;;  %v8582_v46 = vmul.f32 %v11320_v17, %v11408_v38  ;;  %v11410_v7 = vld [vmem:[#allocation322_spill] sm:$0xff]  ;;  %v4745_v48 = vld [vmem:[%s10257_s1 + $0x190] sm:$0xff] }
 0x4ab   :  { %11400 = vst [vmem:[#allocation206_spill] sm:$0xff] %v8564_v25  ;;  %11402 = vst [vmem:[#allocation219_spill] sm:$0xff] %v8568_v5  ;;  %v8586_v25 = vmul.f32 %v7956_v52, %v11410_v7  ;;  %3453 = vperm.xlu1 %4528, %v4745_v48   ;;  %v3897_v48 = vld [vmem:[%s10259_s3 + $0x8] sm:$0xff]  ;;  %v11419_v47 = vld [vmem:[#allocation328_spill] sm:$0xff] }
 0x4ac   :  { %11404 = vst [vmem:[#allocation208_spill] sm:$0xff] %v8572_v29  ;;  %11405 = vst [vmem:[#allocation221_spill] sm:$0xff] %v8574_v16  ;;  %v11412_v29 = vld [vmem:[#allocation324_spill] sm:$0xff]  ;;  %v11414_v16 = vld [vmem:[#allocation325_spill] sm:$0xff]  ;;  %3967 = vperm.xlu0 %4529, %v3897_v48  }
 0x4ad   :  { %11407 = vst [vmem:[#allocation210_spill] sm:$0xff] %v8578_v22  ;;  %11409 = vst [vmem:[#allocation223_spill] sm:$0xff] %v8582_v46  ;;  %v8594_v56 = vmul.f32 %v11320_v17, %v11412_v29  ;;  %v8598_v38 = vmul.f32 %v7956_v52, %v11414_v16  ;;  %v11416_v46 = vld [vmem:[#allocation327_spill] sm:$0xff]  ;;  %v8611_v22 = vmul.f32 %v7956_v52, %v11419_v47  ;;  %v11421_v29 = vld [vmem:[#allocation330_spill] sm:$0xff] }
 0x4ae   :  { %11411 = vst [vmem:[#allocation212_spill] sm:$0xff] %v8586_v25  ;;  %v8602_v7 = vmul.f32 %v11320_v17, %v11416_v46  ;;  %v11418_v25 = vld [vmem:[#allocation345_spill] sm:$0xff]  ;;  %v11423_v16 = vld [vmem:[#allocation331_spill] sm:$0xff]  ;;  %v11429_v57 = vld [vmem:[#allocation334_spill] sm:$0xff] }
 0x4af   :  { %11413 = vst [vmem:[#allocation225_spill] sm:$0xff] %v8594_v56  ;;  %11415 = vst [vmem:[#allocation214_spill] sm:$0xff] %v8598_v38  ;;  %v2351_v49 = vmul.f32 %v7646_v12, %v11418_v25  ;;  %v8615_v56 = vmul.f32 %v11320_v17, %v11421_v29  ;;  %v8619_v38 = vmul.f32 %v7956_v52, %v11423_v16  ;;  %v11425_v46 = vld [vmem:[#allocation347_spill] sm:$0xff]  ;;  %v8623_v25 = vpop.permute.xlu1 %3085  ;;  %v11427_v5 = vld [vmem:[#allocation333_spill] sm:$0xff] }
 0x4b0   :  { %11417 = vst [vmem:[#allocation227_spill] sm:$0xff] %v8602_v7  ;;  %11420 = vst [vmem:[#allocation216_spill] sm:$0xff] %v8611_v22  ;;  %v2353_v7 = vmul.f32 %v7646_v12, %v11425_v46  ;;  %v8627_v21 = vmul.f32 %v11320_v17, %v11427_v5  ;;  %v8631_v47 = vmul.f32 %v7956_v52, %v11429_v57  ;;  %v11431_v22 = vld [vmem:[#allocation335_spill] sm:$0xff]  ;;  %v11435_v46 = vld [vmem:[#allocation336_spill] sm:$0xff] }
 0x4b1   :  { %11422 = vst [vmem:[#allocation229_spill] sm:$0xff] %v8615_v56  ;;  %11424 = vst [vmem:[#allocation218_spill] sm:$0xff] %v8619_v38  ;;  %v8635_v29 = vmul.f32 %v11320_v17, %v11431_v22  ;;  %v11433_v56 = vld [vmem:[#allocation349_spill] sm:$0xff]  ;;  %v8639_v38 = vpop.permute.xlu0 %552  ;;  %v11437_v36 = vld [vmem:[#allocation351_spill] sm:$0xff] }
 0x4b2   :  { %11426 = vst [vmem:[#allocation231_spill] sm:$0xff] %v8623_v25  ;;  %11428 = vst [vmem:[#allocation220_spill] sm:$0xff] %v8627_v21  ;;  %v2355_v16 = vmul.f32 %v7646_v12, %v11433_v56  ;;  %v8643_v25 = vmul.f32 %v8339_v45, %v11435_v46  ;;  %v2357_v5 = vmul.f32 %v7646_v12, %v11437_v36  ;;  %v4746_v57 = vld [vmem:[%s10256_s0] sm:$0xff] }
 0x4b3   :  { %11430 = vst [vmem:[#allocation233_spill] sm:$0xff] %v8631_v47  ;;  %11432 = vst [vmem:[#allocation235_spill] sm:$0xff] %v8635_v29  ;;  %v8650_v21 = vrot.slane %v4746_v57, %v3510_v41  ;;  %v4747_v22 = vld [vmem:[%s10257_s1 + $0x1a0] sm:$0xff]  ;;  %v2415_v36 = vadd.f32 %v2351_v49, %v7993_v2  ;;  %v11444_v47 = vld [vmem:[#allocation339_spill] sm:$0xff]  ;;  %v8680_v49 = vpop.permute.xlu1 %3093 }
 0x4b4   :  { %11434 = vst [vmem:[#allocation237_spill] sm:$0xff] %v8639_v38  ;;  %11436 = vst [vmem:[#allocation222_spill] sm:$0xff] %v8643_v25  ;;  %3461 = vperm.xlu1 %4528, %v4747_v22   ;;  %v11439_v56 = vld [vmem:[#allocation337_spill] sm:$0xff]  ;;  %v11441_v46 = vld [vmem:[#allocation338_spill] sm:$0xff]  ;;  %v8671_v48 = vmul.f32 %v11320_v17, %v11444_v47 }
 0x4b5   :  { %11438 = vst [vmem:[#allocation224_spill] sm:$0xff] %v8650_v21  ;;  %v8657_v29 = vmul.f32 %v11320_v17, %v11439_v56  ;;  %v8661_v38 = vmul.f32 %v8339_v45, %v11441_v46  ;;  %v11443_v25 = vld [vmem:[#allocation353_spill] sm:$0xff]  ;;  %v11446_v22 = vld [vmem:[#allocation340_spill] sm:$0xff]  ;;  %v2417_v46 = vadd.f32 %v2353_v7, %v8006_v55  ;;  %11449 = vst [vmem:[#allocation230_spill] sm:$0xff] %v8680_v49  ;;  %v8695_v55 = vpop.permute.xlu0 %562 }
 0x4b6   :  { %v2359_v41 = vmul.f32 %v7646_v12, %v11443_v25  ;;  %v3900_v57 = vld [vmem:[%s10259_s3 + $0x20] sm:$0xff]  ;;  %11445 = vst [vmem:[#allocation228_spill] sm:$0xff] %v8671_v48  ;;  %v8675_v56 = vmul.f32 %v8339_v45, %v11446_v22  ;;  %v11453_v17 = vld [vmem:[#allocation343_spill] sm:$0xff]  ;;  %v2419_v22 = vadd.f32 %v2355_v16, %v8018_v35  ;;  %v11454_v7 = vld [vmem:[#allocation344_spill] sm:$0xff]  ;;  %v2421_v49 = vadd.f32 %v2357_v5, %v8029_v34 }
 0x4b7   :  { %11440 = vst [vmem:[#allocation239_spill] sm:$0xff] %v8657_v29  ;;  %11442 = vst [vmem:[#allocation226_spill] sm:$0xff] %v8661_v38  ;;  %v11448_v29 = vld [vmem:[#allocation355_spill] sm:$0xff]  ;;  %v11450_v25 = vld [vmem:[#allocation341_spill] sm:$0xff]  ;;  %v8692_v47 = vmul.f32 %v7646_v12, %v11453_v17  ;;  %3982 = vperm.xlu0 %4529, %v3900_v57   ;;  %v8715_v34 = vadd.f32 %v8336_v31, %v2415_v36 }
 0x4b8   :  { %11447 = vst [vmem:[#allocation241_spill] sm:$0xff] %v8675_v56  ;;  %v2361_v2 = vmul.f32 %v7646_v12, %v11448_v29  ;;  %v8684_v38 = vmul.f32 %v7646_v12, %v11450_v25  ;;  %v11451_v52 = vld [vmem:[#allocation342_spill] sm:$0xff]  ;;  %v8699_v29 = vmul.f32 %v8339_v45, %v11454_v7  ;;  %v11456_v25 = vld [vmem:[#allocation357_spill] sm:$0xff]  ;;  %v2423_v16 = vadd.f32 %v2359_v41, %v8042_v39  ;;  %v3902_v5 = vld [vmem:[%s10259_s3 + $0x30] sm:$0xff] }
 0x4b9   :  { %v8688_v21 = vmul.f32 %v8339_v45, %v11451_v52  ;;  %v2363_v48 = vmul.f32 %v7646_v12, %v11456_v25  ;;  %v4748_v52 = vld [vmem:[%s10257_s1 + $0x1b0] sm:$0xff]  ;;  %v11457_v17 = vld [vmem:[#allocation346_spill] sm:$0xff]  ;;  %v8728_v39 = vadd.f32 %v8351_v40, %v2417_v46  ;;  %v11469_v46 = vld [vmem:[#allocation365_spill] sm:$0xff] }
 0x4ba   :  { %11455 = vst [vmem:[#allocation243_spill] sm:$0xff] %v8699_v29  ;;  %3469 = vperm.xlu1 %4528, %v4748_v52   ;;  %v8709_v35 = vmul.f32 %v8339_v45, %v11457_v17  ;;  %v11460_v25 = vld [vmem:[#allocation348_spill] sm:$0xff]  ;;  %v2425_v57 = vadd.f32 %v2361_v2, %v8055_v3  ;;  %v11462_v17 = vld [vmem:[#allocation361_spill] sm:$0xff]  ;;  %v11464_v31 = vld [vmem:[#allocation350_spill] sm:$0xff]  ;;  %v8743_v3 = vadd.f32 %v8359_v61, %v2419_v22  ;;  %v8745_v2 = vpop.permute.xlu0 %572 }
 0x4bb   :  { %11452 = vst [vmem:[#allocation232_spill] sm:$0xff] %v8688_v21  ;;  %v11459_v21 = vld [vmem:[#allocation359_spill] sm:$0xff]  ;;  %v8722_v52 = vmul.f32 %v8339_v45, %v11460_v25  ;;  %v8734_v36 = vmul.f32 %v8339_v45, %v11464_v31  ;;  %v11466_v41 = vld [vmem:[#allocation352_spill] sm:$0xff]  ;;  %v2427_v40 = vadd.f32 %v2363_v48, %v8067_v8  ;;  %v8751_v31 = vadd.f32 %v8372_v28, %v2421_v49  ;;  %v3904_v28 = vld [vmem:[%s10259_s3 + $0x40] sm:$0xff] }
 0x4bc   :  { %11458 = vst [vmem:[#allocation245_spill] sm:$0xff] %v8709_v35  ;;  %v2365_v7 = vmul.f32 %v7646_v12, %v11459_v21  ;;  %v2367_v35 = vmul.f32 %v7646_v12, %v11462_v17  ;;  %v8730_v21 = vpop.permute.xlu1 %3101  ;;  %v8738_v29 = vmul.f32 %v8339_v45, %v11466_v41  ;;  %v11468_v25 = vld [vmem:[#allocation363_spill] sm:$0xff]  ;;  %v2371_v17 = vmul.f32 %v7646_v12, %v11469_v46  ;;  %v4749_v41 = vld [vmem:[%s10257_s1 + $0x1c0] sm:$0xff]  ;;  %v11473_v49 = vld [vmem:[#allocation356_spill] sm:$0xff] }
 0x4bd   :  { %11461 = vst [vmem:[#allocation234_spill] sm:$0xff] %v8722_v52  ;;  %11463 = vst [vmem:[#allocation236_spill] sm:$0xff] %v8730_v21  ;;  %v2369_v52 = vmul.f32 %v7646_v12, %v11468_v25  ;;  %3992 = vperm.xlu0 %4529, %v3902_v5   ;;  %v11470_v25 = vld [vmem:[#allocation354_spill] sm:$0xff]  ;;  %v11472_v21 = vld [vmem:[#allocation367_spill] sm:$0xff]  ;;  %v8764_v48 = vadd.f32 %v8383_v15, %v2423_v16  ;;  %v8771_v46 = vmul.f32 %v8339_v45, %v11473_v49 }
 0x4be   :  { %11465 = vst [vmem:[#allocation247_spill] sm:$0xff] %v8734_v36  ;;  %11467 = vst [vmem:[#allocation238_spill] sm:$0xff] %v8738_v29  ;;  %3477 = vperm.xlu1 %4528, %v4749_v41   ;;  %v8758_v61 = vmul.f32 %v8339_v45, %v11470_v25  ;;  %v2429_v22 = vadd.f32 %v2365_v7, %v8089_v14  ;;  %v2373_v8 = vmul.f32 %v7646_v12, %v11472_v21  ;;  %v11475_v41 = vld [vmem:[#allocation369_spill] sm:$0xff]  ;;  %v11477_v15 = vld [vmem:[#allocation358_spill] sm:$0xff]  ;;  %v11521_v29 = vmov 0  }
 0x4bf   :  { %11474 = vst [vmem:[#allocation249_spill] sm:$0xff] %v8771_v46  ;;  %v2431_v5 = vadd.f32 %v2367_v35, %v8100_v0  ;;  %v2375_v25 = vmul.f32 %v7646_v12, %v11475_v41  ;;  %v8777_v14 = vadd.f32 %v8391_v30, %v2425_v57  ;;  %v8783_v16 = vmul.f32 %v8339_v45, %v11477_v15  ;;  %v11480_v46 = vld [vmem:[#allocation373_spill] sm:$0xff]  ;;  %v8790_v35 = vpop.permute.xlu0 %582  ;;  %v11481_v30 = vld [vmem:[#allocation375_spill] sm:$0xff] }
 0x4c0   :  { %11471 = vst [vmem:[#allocation240_spill] sm:$0xff] %v8758_v61  ;;  %v8779_v7 = vpop.permute.xlu1 %3109  ;;  %v2433_v21 = vadd.f32 %v2369_v52, %v8114_v10  ;;  %v11479_v61 = vld [vmem:[#allocation371_spill] sm:$0xff]  ;;  %v2379_v0 = vmul.f32 %v7646_v12, %v11480_v46  ;;  %v2435_v41 = vadd.f32 %v2371_v17, %v8122_v51  ;;  %v2381_v57 = vmul.f32 %v7646_v12, %v11481_v30  ;;  %v11482_v52 = vld [vmem:[#allocation360_spill] sm:$0xff]  ;;  %v11484_v15 = vld [vmem:[#allocation377_spill] sm:$0xff] }
 0x4c1   :  { %11476 = vst [vmem:[#allocation251_spill] sm:$0xff] %v8779_v7  ;;  %11478 = vst [vmem:[#allocation254_spill] sm:$0xff] %v8783_v16  ;;  %v2377_v49 = vmul.f32 %v7646_v12, %v11479_v61  ;;  %v8796_v7 = vadd.f32 %v8402_v60, %v2427_v40  ;;  %v4750_v10 = vld [vmem:[%s10257_s1 + $0x1d0] sm:$0xff]  ;;  %4002 = vperm.xlu0 %4529, %v3904_v28   ;;  %v8803_v61 = vmul.f32 %v8339_v45, %v11482_v52  ;;  %v11485_v40 = vld [vmem:[#allocation362_spill] sm:$0xff] }
 0x4c2   :  { %3485 = vperm.xlu1 %4528, %v4750_v10   ;;  %v2437_v46 = vadd.f32 %v2373_v8, %v8137_v50  ;;  %v2383_v51 = vmul.f32 %v7646_v12, %v11484_v15  ;;  %v8809_v17 = vadd.f32 %v8410_v4, %v2429_v22  ;;  %v3906_v60 = vld [vmem:[%s10259_s3 + $0x50] sm:$0xff]  ;;  %v8816_v30 = vmul.f32 %v8339_v45, %v11485_v40  ;;  %v11520_v16 = vld [vmem:[#allocation397_spill] sm:$0xff] }
 0x4c3   :  { %11483 = vst [vmem:[#allocation242_spill] sm:$0xff] %v8803_v61  ;;  %v2439_v28 = vadd.f32 %v2375_v25, %v8147_v9  ;;  %v11487_v10 = vld [vmem:[#allocation379_spill] sm:$0xff]  ;;  %v8822_v50 = vadd.f32 %v8420_v19, %v2431_v5  ;;  %v11489_v4 = vld [vmem:[#allocation364_spill] sm:$0xff]  ;;  %v2441_v15 = vadd.f32 %v2377_v49, %v8162_v37  ;;  %v2443_v61 = vadd.f32 %v2379_v0, %v8170_v54  ;;  %v8835_v9 = vpop.permute.xlu0 %592  ;;  %v11492_v25 = vld [vmem:[#allocation366_spill] sm:$0xff] }
 0x4c4   :  { %11486 = vst [vmem:[#allocation257_spill] sm:$0xff] %v8816_v30  ;;  %v2385_v52 = vmul.f32 %v7646_v12, %v11487_v10  ;;  %v8824_v8 = vpop.permute.xlu1 %3117  ;;  %v8828_v22 = vmul.f32 %v8339_v45, %v11489_v4  ;;  %v8833_v40 = vadd.f32 %v8428_v53, %v2433_v21  ;;  %11491 = vst [vmem:[#allocation263_spill] sm:$0xff] %v8835_v9  ;;  %v4751_v37 = vld [vmem:[%s10257_s1 + $0x1e0] sm:$0xff]  ;;  %v11493_v54 = vld [vmem:[#allocation368_spill] sm:$0xff] }
 0x4c5   :  { %11488 = vst [vmem:[#allocation260_spill] sm:$0xff] %v8824_v8  ;;  %v8839_v10 = vmul.f32 %v8339_v45, %v11492_v25  ;;  %v2445_v19 = vadd.f32 %v2381_v57, %v8186_v27  ;;  %v8843_v5 = vadd.f32 %v8438_v43, %v2435_v41  ;;  %4012 = vperm.xlu0 %4529, %v3906_v60   ;;  %v11494_v49 = vld [vmem:[#allocation381_spill] sm:$0xff]  ;;  %v11495_v41 = vld [vmem:[#allocation370_spill] sm:$0xff]  ;;  %v11496_v60 = vld [vmem:[#allocation372_spill] sm:$0xff] }
 0x4c6   :  { %11490 = vst [vmem:[#allocation244_spill] sm:$0xff] %v8828_v22  ;;  %3493 = vperm.xlu1 %4528, %v4751_v37   ;;  %v8850_v53 = vmul.f32 %v8339_v45, %v11493_v54  ;;  %v2447_v21 = vadd.f32 %v2383_v51, %v8197_v58  ;;  %v2387_v0 = vmul.f32 %v7646_v12, %v11494_v49  ;;  %v3908_v43 = vld [vmem:[%s10259_s3 + $0x60] sm:$0xff]  ;;  %v11511_v8 = vld [vmem:[#allocation391_spill] sm:$0xff]  ;;  %v11629_v9 = vld [vmem:[#allocation52_spill] sm:$0xff] }
 0x4c7   :  { %v8856_v27 = vadd.f32 %v8446_v1, %v2437_v46  ;;  %v8863_v57 = vmul.f32 %v8339_v45, %v11495_v41  ;;  %v8867_v4 = vmul.f32 %v8339_v45, %v11496_v60  ;;  %v2449_v58 = vadd.f32 %v2385_v52, %v8200_v44  ;;  %v11497_v25 = vld [vmem:[#allocation374_spill] sm:$0xff]  ;;  %v11498_v46 = vld [vmem:[#allocation383_spill] sm:$0xff]  ;;  %v8887_v60 = vpop.permute.xlu0 %602  ;;  %v11501_v44 = vld [vmem:[#allocation376_spill] sm:$0xff] }
 0x4c8   :  { %v8871_v51 = vadd.f32 %v8457_v20, %v2439_v28  ;;  %v8875_v1 = vmul.f32 %v8339_v45, %v11497_v25  ;;  %v2389_v37 = vmul.f32 %v7646_v12, %v11498_v46  ;;  %v8880_v54 = vadd.f32 %v8465_v59, %v2441_v15  ;;  %v8885_v41 = vpop.permute.xlu1 %3257  ;;  %11500 = vst [vmem:[#allocation83_spill] sm:$0xff] %v8887_v60  ;;  %v11502_v28 = vld [vmem:[#allocation385_spill] sm:$0xff]  ;;  %v4752_v59 = vld [vmem:[%s10257_s1 + $0x1f0] sm:$0xff] }
 0x4c9   :  { %v8883_v49 = vadd.f32 %v8476_v62, %v2443_v61  ;;  %11499 = vst [vmem:[#allocation266_spill] sm:$0xff] %v8885_v41  ;;  %v8891_v20 = vmul.f32 %v8339_v45, %v11501_v44  ;;  %v2391_v52 = vmul.f32 %v7646_v12, %v11502_v28  ;;  %v8896_v25 = vadd.f32 %v8484_v63, %v2445_v19  ;;  %v11504_v62 = vld [vmem:[#allocation378_spill] sm:$0xff]  ;;  %v11506_v46 = vld [vmem:[#allocation387_spill] sm:$0xff]  ;;  %v11508_v19 = vld [vmem:[#allocation380_spill] sm:$0xff] }
 0x4ca   :  { %3501 = vperm.xlu1 %4528, %v4752_v59   ;;  %4022 = vperm.xlu0 %4529, %v3908_v43   ;;  %v8903_v61 = vmul.f32 %v8339_v45, %v11504_v62  ;;  %v2451_v15 = vadd.f32 %v2387_v0, %v8219_v6  ;;  %v2393_v44 = vmul.f32 %v7646_v12, %v11506_v46  ;;  %v3910_v63 = vld [vmem:[%s10259_s3 + $0x70] sm:$0xff]  ;;  %v11510_v43 = vld [vmem:[#allocation389_spill] sm:$0xff] }
 0x4cb   :  { %11503 = vst [vmem:[#allocation85_spill] sm:$0xff] %v8896_v25  ;;  %v8909_v28 = vadd.f32 %v8494_v33, %v2447_v21  ;;  %v8916_v59 = vmul.f32 %v8339_v45, %v11508_v19  ;;  %v2395_v62 = vmul.f32 %v7646_v12, %v11510_v43  ;;  %v2397_v6 = vmul.f32 %v7646_v12, %v11511_v8  ;;  %v3896_v33 = vld [vmem:[%s10259_s3] sm:$0xff]  ;;  %v11516_v43 = vld [vmem:[#allocation395_spill] sm:$0xff] }
 0x4cc   :  { %11505 = vst [vmem:[#allocation268_spill] sm:$0xff] %v8903_v61  ;;  %v8923_v0 = vadd.f32 %v8502_v11, %v2449_v58  ;;  %v11513_v21 = vld [vmem:[#allocation382_spill] sm:$0xff]  ;;  %v2453_v19 = vadd.f32 %v2389_v37, %v8245_v24  ;;  %v2401_v30 = vmul.f32 %v7646_v12, %v11516_v43  ;;  %v8937_v8 = vpop.permute.xlu1 %3261  ;;  %v8939_v11 = vpop.permute.xlu0 %612  ;;  %v2455_v58 = vadd.f32 %v2391_v52, %v8254_v32  ;;  %v11523_v43 = vld [vmem:[#allocation399_spill] sm:$0xff] }
 0x4cd   :  { %11507 = vst [vmem:[#allocation116_spill] sm:$0xff] %v8909_v28  ;;  %11509 = vst [vmem:[#allocation246_spill] sm:$0xff] %v8916_v59  ;;  %v8930_v46 = vmul.f32 %v8339_v45, %v11513_v21  ;;  %v11515_v28 = vld [vmem:[#allocation393_spill] sm:$0xff]  ;;  %v2405_v21 = vmul.f32 %v7646_v12, %v11520_v16  ;;  %v2457_v24 = vadd.f32 %v2393_v44, %v8264_v23  ;;  %v11522_v37 = vld [vmem:[#allocation398_spill] sm:$0xff] }
 0x4ce   :  { %11512 = vst [vmem:[#allocation87_spill] sm:$0xff] %v8923_v0  ;;  %v2399_v22 = vmul.f32 %v7646_v12, %v11515_v28  ;;  %11517 = vst [vmem:[#allocation248_spill] sm:$0xff] %v8937_v8  ;;  %v11519_v0 = vld [vmem:[#allocation317_spill] sm:$0xff]  ;;  %4530 = vset.pattern.permute.xlu1 %v11521_v29  ;;  %4032 = vperm.xlu0 %4529, %v3910_v63   ;;  %v2407_v28 = vmul.f32 %v7646_v12, %v11522_v37  ;;  %v11525_v16 = vld [vmem:[#allocation384_spill] sm:$0xff] }
 0x4cf   :  { %11514 = vst [vmem:[#allocation118_spill] sm:$0xff] %v8930_v46  ;;  %11518 = vst [vmem:[#allocation80_spill] sm:$0xff] %v8939_v11  ;;  %v2403_v25 = vmul.f32 %v7646_v12, %v11519_v0  ;;  %v2409_v36 = vmul.f32 %v7646_v12, %v11523_v43  ;;  %v8953_v11 = vadd.f32 %v8512_v42, %v2451_v15  ;;  %3962 = vperm.xlu1 %4530, %v3896_v33   ;;  %v3912_v32 = vld [vmem:[%s10259_s3 + $0x80] sm:$0xff]  ;;  %v11527_v44 = vld [vmem:[#allocation400_spill] sm:$0xff] }
 0x4d0   :  { %v8960_v29 = vmul.f32 %v8339_v45, %v11525_v16  ;;  %v2459_v23 = vadd.f32 %v2395_v62, %v8276_v13  ;;  %v2461_v52 = vadd.f32 %v2397_v6, %v8296_v18  ;;  %v2411_v63 = vmul.f32 %v7646_v12, %v11527_v44  ;;  %v3898_v42 = vld [vmem:[%s10259_s3 + $0x10] sm:$0xff]  ;;  %v11528_v15 = vld [vmem:[#allocation386_spill] sm:$0xff]  ;;  %v8978_v13 = vpop.permute.xlu1 %3269  ;;  %v8980_v18 = vpop.permute.xlu0 %622  ;;  %v11618_v59 = vld [vmem:[#allocation417_spill] sm:$0xff] }
 0x4d1   :  { %11524 = vst [vmem:[#allocation89_spill] sm:$0xff] %v8953_v11  ;;  %v8971_v0 = vmul.f32 %v8339_v45, %v11528_v15  ;;  %v2463_v33 = vadd.f32 %v2399_v22, %v8299_v26  ;;  %v11530_v37 = vld [vmem:[#allocation176_spill] sm:$0xff]  ;;  %v11531_v16 = vld [vmem:[#allocation211_spill] sm:$0xff]  ;;  %11533 = vst [vmem:[#allocation86_spill] sm:$0xff] %v8978_v13 }
 0x4d2   :  { %11526 = vst [vmem:[#allocation122_spill] sm:$0xff] %v8960_v29  ;;  %v2465_v43 = vadd.f32 %v2401_v30, %v11530_v37  ;;  %v8976_v11 = vadd.f32 %v11531_v16, %v2453_v19  ;;  %11534 = vst [vmem:[#allocation252_spill] sm:$0xff] %v8980_v18  ;;  %v11535_v12 = vld [vmem:[#allocation388_spill] sm:$0xff]  ;;  %v11537_v6 = vld [vmem:[#allocation179_spill] sm:$0xff]  ;;  %4042 = vperm.xlu0 %4529, %v3912_v32  }
 0x4d3   :  { %11529 = vst [vmem:[#allocation250_spill] sm:$0xff] %v8971_v0  ;;  %v8984_v62 = vmul.f32 %v8339_v45, %v11535_v12  ;;  %v2467_v44 = vadd.f32 %v2403_v25, %v11537_v6  ;;  %v11538_v29 = vld [vmem:[#allocation180_spill] sm:$0xff]  ;;  %v11539_v0 = vld [vmem:[#allocation213_spill] sm:$0xff]  ;;  %v11541_v26 = vld [vmem:[#allocation390_spill] sm:$0xff]  ;;  %3972 = vperm.xlu1 %4530, %v3898_v42  }
 0x4d4   :  { %11532 = vst [vmem:[#allocation91_spill] sm:$0xff] %v8976_v11  ;;  %v2469_v15 = vadd.f32 %v2405_v21, %v11538_v29  ;;  %v8989_v56 = vadd.f32 %v11539_v0, %v2455_v58  ;;  %v8993_v30 = vmul.f32 %v8339_v45, %v11541_v26  ;;  %v11543_v22 = vld [vmem:[#allocation181_spill] sm:$0xff]  ;;  %v11544_v37 = vld [vmem:[#allocation182_spill] sm:$0xff]  ;;  %v11545_v11 = vld [vmem:[#allocation11_spill] sm:$0xff] }
 0x4d5   :  { %11536 = vst [vmem:[#allocation272_spill] sm:$0xff] %v8984_v62  ;;  %v2471_v19 = vadd.f32 %v2407_v28, %v11543_v22  ;;  %v2473_v16 = vadd.f32 %v2409_v36, %v11544_v37  ;;  %v8998_v18 = vadd.f32 %v11545_v11, %v2457_v24  ;;  %v3914_v25 = vld [vmem:[%s10259_s3 + $0x90] sm:$0xff]  ;;  %v11549_v32 = vld [vmem:[#allocation185_spill] sm:$0xff]  ;;  %v11554_v11 = vld [vmem:[#allocation394_spill] sm:$0xff] }
 0x4d6   :  { %11540 = vst [vmem:[#allocation124_spill] sm:$0xff] %v8989_v56  ;;  %11542 = vst [vmem:[#allocation131_spill] sm:$0xff] %v8993_v30  ;;  %v11547_v21 = vld [vmem:[#allocation392_spill] sm:$0xff]  ;;  %v2475_v29 = vadd.f32 %v2411_v63, %v11549_v32  ;;  %v11552_v28 = vld [vmem:[#allocation217_spill] sm:$0xff]  ;;  %v9019_v24 = vmul.f32 %v8339_v45, %v11554_v11  ;;  %4052 = vperm.xlu0 %4529, %v3914_v25  }
 0x4d7   :  { %11546 = vst [vmem:[#allocation255_spill] sm:$0xff] %v8998_v18  ;;  %v9005_v58 = vmul.f32 %v8339_v45, %v11547_v21  ;;  %v11550_v0 = vld [vmem:[#allocation200_spill] sm:$0xff]  ;;  %v9012_v6 = vadd.f32 %v11552_v28, %v2461_v52  ;;  %v11558_v22 = vld [vmem:[#allocation219_spill] sm:$0xff]  ;;  %v9031_v52 = vpop.permute.xlu1 %3277  ;;  %v9033_v21 = vpop.permute.xlu0 %632  ;;  %v11570_v18 = vld [vmem:[#allocation214_spill] sm:$0xff] }
 0x4d8   :  { %v9009_v12 = vadd.f32 %v11550_v0, %v2459_v23  ;;  %v3899_v36 = vld [vmem:[%s10259_s3 + $0x18] sm:$0xff]  ;;  %11555 = vst [vmem:[#allocation264_spill] sm:$0xff] %v9019_v24  ;;  %v9026_v63 = vadd.f32 %v11558_v22, %v2463_v33  ;;  %v11560_v23 = vld [vmem:[#allocation210_spill] sm:$0xff]  ;;  %11562 = vst [vmem:[#allocation139_spill] sm:$0xff] %v9031_v52  ;;  %v9045_v33 = vadd.f32 %v11570_v18, %v2469_v15 }
 0x4d9   :  { %11548 = vst [vmem:[#allocation258_spill] sm:$0xff] %v9005_v58  ;;  %11553 = vst [vmem:[#allocation261_spill] sm:$0xff] %v9012_v6  ;;  %v11556_v42 = vld [vmem:[#allocation396_spill] sm:$0xff]  ;;  %v9029_v37 = vadd.f32 %v11560_v23, %v2465_v43  ;;  %v11567_v11 = vld [vmem:[#allocation323_spill] sm:$0xff]  ;;  %3977 = vperm.xlu1 %4530, %v3899_v36  }
 0x4da   :  { %11551 = vst [vmem:[#allocation26_spill] sm:$0xff] %v9009_v12  ;;  %v9023_v26 = vmul.f32 %v8339_v45, %v11556_v42  ;;  %11559 = vst [vmem:[#allocation22_spill] sm:$0xff] %v9026_v63  ;;  %v11564_v32 = vld [vmem:[#allocation320_spill] sm:$0xff]  ;;  %v11572_v43 = vld [vmem:[#allocation326_spill] sm:$0xff] }
 0x4db   :  { %11561 = vst [vmem:[#allocation267_spill] sm:$0xff] %v9029_v37  ;;  %11563 = vst [vmem:[#allocation141_spill] sm:$0xff] %v9033_v21  ;;  %v11565_v0 = vld [vmem:[#allocation224_spill] sm:$0xff]  ;;  %v11573_v23 = vld [vmem:[#allocation329_spill] sm:$0xff] }
 0x4dc   :  { %11557 = vst [vmem:[#allocation27_spill] sm:$0xff] %v9023_v26  ;;  %v9037_v28 = vmul.f32 %v11565_v0, %v11564_v32  ;;  %v3515_v6 = vmul.f32 %v11565_v0, %v11567_v11  ;;  %v11568_v12 = vld [vmem:[#allocation212_spill] sm:$0xff]  ;;  %11571 = vst [vmem:[#allocation37_spill] sm:$0xff] %v9045_v33  ;;  %v3517_v22 = vmul.f32 %v11565_v0, %v11572_v43  ;;  %v11576_v56 = vld [vmem:[#allocation218_spill] sm:$0xff] }
 0x4dd   :  { %v9042_v42 = vadd.f32 %v11568_v12, %v2467_v44  ;;  %v9051_v37 = vmul.f32 %v11565_v0, %v11573_v23  ;;  %v11574_v63 = vld [vmem:[#allocation216_spill] sm:$0xff]  ;;  %v9057_v26 = vadd.f32 %v11576_v56, %v2473_v16  ;;  %v3916_v18 = vld [vmem:[%s10259_s3 + $0xa0] sm:$0xff]  ;;  %v3901_v56 = vld [vmem:[%s10259_s3 + $0x28] sm:$0xff] }
 0x4de   :  { %11566 = vst [vmem:[#allocation269_spill] sm:$0xff] %v9037_v28  ;;  %v9054_v32 = vadd.f32 %v11574_v63, %v2471_v19  ;;  %v11578_v44 = vld [vmem:[#allocation332_spill] sm:$0xff]  ;;  %v11579_v25 = vld [vmem:[#allocation401_spill] sm:$0xff]  ;;  %v11580_v12 = vld [vmem:[#allocation134_spill] sm:$0xff]  ;;  %4062 = vperm.xlu0 %4529, %v3916_v18   ;;  %3987 = vperm.xlu1 %4530, %v3901_v56  }
 0x4df   :  { %11569 = vst [vmem:[#allocation270_spill] sm:$0xff] %v9042_v42  ;;  %11577 = vst [vmem:[#allocation72_spill] sm:$0xff] %v9057_v26  ;;  %v9064_v15 = vmul.f32 %v11565_v0, %v11578_v44  ;;  %v9068_v11 = vmul.f32 %v11580_v12, %v11579_v25  ;;  %v11581_v43 = vld [vmem:[#allocation17_spill] sm:$0xff]  ;;  %v11584_v16 = vld [vmem:[#allocation402_spill] sm:$0xff] }
 0x4e0   :  { %11575 = vst [vmem:[#allocation271_spill] sm:$0xff] %v9054_v32  ;;  %v3127_v19 = vmul.f32 %v8339_v45, %v11581_v43  ;;  %v11582_v63 = vld [vmem:[#allocation233_spill] sm:$0xff]  ;;  %v9080_v36 = vmul.f32 %v11565_v0, %v11584_v16  ;;  %v11585_v44 = vld [vmem:[#allocation403_spill] sm:$0xff]  ;;  %v11588_v32 = vld [vmem:[#allocation462_spill] sm:$0xff] }
 0x4e1   :  { %v9073_v23 = vadd.f32 %v11582_v63, %v2475_v29  ;;  %v9084_v26 = vmul.f32 %v11580_v12, %v11585_v44  ;;  %v11587_v25 = vld [vmem:[#allocation457_spill] sm:$0xff]  ;;  %v11589_v42 = vld [vmem:[#allocation19_spill] sm:$0xff]  ;;  %v9090_v29 = vpop.permute.xlu1 %3285  ;;  %v9092_v63 = vpop.permute.xlu0 %642  ;;  %v11595_v44 = vld [vmem:[#allocation406_spill] sm:$0xff] }
 0x4e2   :  { %v477_v33 = vmul.f32 %v11588_v32, %v11587_v25  ;;  %v3129_v43 = vmul.f32 %v8339_v45, %v11589_v42  ;;  %11590 = vst [vmem:[#allocation275_spill] sm:$0xff] %v9090_v29  ;;  %11591 = vst [vmem:[#allocation276_spill] sm:$0xff] %v9092_v63  ;;  %v11593_v16 = vld [vmem:[#allocation405_spill] sm:$0xff]  ;;  %v9104_v30 = vmul.f32 %v11565_v0, %v11595_v44  ;;  %v11596_v25 = vld [vmem:[#allocation407_spill] sm:$0xff] }
 0x4e3   :  { %11583 = vst [vmem:[#allocation273_spill] sm:$0xff] %v9073_v23  ;;  %11586 = vst [vmem:[#allocation274_spill] sm:$0xff] %v9084_v26  ;;  %v11592_v23 = vld [vmem:[#allocation404_spill] sm:$0xff]  ;;  %v9100_v58 = vmul.f32 %v11580_v12, %v11593_v16  ;;  %v9108_v62 = vmul.f32 %v11580_v12, %v11596_v25  ;;  %v11599_v63 = vld [vmem:[#allocation409_spill] sm:$0xff] }
 0x4e4   :  { %v9096_v24 = vmul.f32 %v11565_v0, %v11592_v23  ;;  %v11598_v42 = vld [vmem:[#allocation408_spill] sm:$0xff]  ;;  %v9116_v23 = vmul.f32 %v11580_v12, %v11599_v63  ;;  %v11601_v21 = vld [vmem:[#allocation410_spill] sm:$0xff]  ;;  %v11605_v13 = vld [vmem:[#allocation411_spill] sm:$0xff] }
 0x4e5   :  { %11594 = vst [vmem:[#allocation277_spill] sm:$0xff] %v9100_v58  ;;  %11597 = vst [vmem:[#allocation278_spill] sm:$0xff] %v9108_v62  ;;  %v9112_v29 = vmul.f32 %v11565_v0, %v11598_v42  ;;  %v9120_v16 = vmul.f32 %v11565_v0, %v11601_v21  ;;  %v11602_v52 = vld [vmem:[#allocation28_spill] sm:$0xff]  ;;  %v11603_v25 = vld [vmem:[#allocation202_spill] sm:$0xff]  ;;  %v9133_v63 = vmul.f32 %v11565_v0, %v11605_v13 }
 0x4e6   :  { %11600 = vst [vmem:[#allocation279_spill] sm:$0xff] %v9116_v23  ;;  %v3131_v44 = vmul.f32 %v8339_v45, %v11602_v52  ;;  %v3918_v18 = vld [vmem:[%s10259_s3 + $0xb0] sm:$0xff]  ;;  %v9129_v42 = vmul.f32 %v11580_v12, %v11603_v25  ;;  %v3191_v23 = vadd.f32 %v3127_v19, %v8715_v34  ;;  %v11606_v21 = vld [vmem:[#allocation38_spill] sm:$0xff]  ;;  %v3903_v52 = vld [vmem:[%s10259_s3 + $0x38] sm:$0xff]  ;;  %v3193_v58 = vadd.f32 %v3129_v43, %v8728_v39  ;;  %v9151_v34 = vpop.permute.xlu1 %3293  ;;  %v9153_v19 = vpop.permute.xlu0 %652 }
 0x4e7   :  { %v3133_v8 = vmul.f32 %v8339_v45, %v11606_v21  ;;  %v11607_v56 = vld [vmem:[#allocation412_spill] sm:$0xff]  ;;  %v11609_v62 = vld [vmem:[#allocation413_spill] sm:$0xff]  ;;  %11611 = vst [vmem:[#allocation282_spill] sm:$0xff] %v9151_v34  ;;  %11612 = vst [vmem:[#allocation283_spill] sm:$0xff] %v9153_v19  ;;  %4072 = vperm.xlu0 %4529, %v3918_v18   ;;  %3997 = vperm.xlu1 %4530, %v3903_v52  }
 0x4e8   :  { %11604 = vst [vmem:[#allocation280_spill] sm:$0xff] %v9129_v42  ;;  %v9143_v46 = vmul.f32 %v11580_v12, %v11607_v56  ;;  %v9147_v25 = vmul.f32 %v11565_v0, %v11609_v62  ;;  %v11610_v42 = vld [vmem:[#allocation81_spill] sm:$0xff]  ;;  %v11613_v21 = vld [vmem:[#allocation414_spill] sm:$0xff]  ;;  %v11615_v41 = vld [vmem:[#allocation415_spill] sm:$0xff]  ;;  %v3581_v19 = vadd.f32 %v3517_v22, %v3193_v58 }
 0x4e9   :  { %v861_v13 = vadd.f32 %v11610_v42, %v477_v33  ;;  %v9157_v60 = vmul.f32 %v11580_v12, %v11613_v21  ;;  %v9161_v56 = vmul.f32 %v11565_v0, %v11615_v41  ;;  %v9169_v33 = vmul.f32 %v11565_v0, %v11618_v59  ;;  %v11619_v39 = vld [vmem:[#allocation418_spill] sm:$0xff]  ;;  %v11621_v42 = vld [vmem:[#allocation419_spill] sm:$0xff]  ;;  %v11624_v18 = vld [vmem:[#allocation421_spill] sm:$0xff] }
 0x4ea   :  { %11608 = vst [vmem:[#allocation281_spill] sm:$0xff] %v9143_v46  ;;  %v11616_v46 = vld [vmem:[#allocation416_spill] sm:$0xff]  ;;  %v9173_v43 = vmul.f32 %v11580_v12, %v11619_v39  ;;  %v9177_v21 = vmul.f32 %v11565_v0, %v11621_v42  ;;  %v3920_v59 = vld [vmem:[%s10259_s3 + $0xc0] sm:$0xff]  ;;  %v3579_v39 = vadd.f32 %v3515_v6, %v3191_v23  ;;  %v9204_v6 = vpop.permute.xlu1 %3301  ;;  %v11638_v58 = vld [vmem:[#allocation59_spill] sm:$0xff] }
 0x4eb   :  { %11614 = vst [vmem:[#allocation284_spill] sm:$0xff] %v9157_v60  ;;  %v9165_v62 = vmul.f32 %v11580_v12, %v11616_v46  ;;  %v11622_v60 = vld [vmem:[#allocation420_spill] sm:$0xff]  ;;  %v3195_v46 = vadd.f32 %v3131_v44, %v8743_v3  ;;  %v11625_v42 = vld [vmem:[#allocation45_spill] sm:$0xff]  ;;  %v11626_v3 = vld [vmem:[#allocation422_spill] sm:$0xff]  ;;  %v3139_v22 = vmul.f32 %v8339_v45, %v11638_v58  ;;  %4082 = vperm.xlu0 %4529, %v3920_v59  }
 0x4ec   :  { %11620 = vst [vmem:[#allocation286_spill] sm:$0xff] %v9173_v43  ;;  %v9181_v41 = vmul.f32 %v11580_v12, %v11622_v60  ;;  %v3197_v43 = vadd.f32 %v3133_v8, %v8751_v31  ;;  %v3135_v34 = vmul.f32 %v8339_v45, %v11625_v42  ;;  %v3905_v60 = vld [vmem:[%s10259_s3 + $0x48] sm:$0xff]  ;;  %v9199_v44 = vmul.f32 %v11580_v12, %v11626_v3  ;;  %v11628_v52 = vld [vmem:[#allocation97_spill] sm:$0xff]  ;;  %v9206_v31 = vpop.permute.xlu0 %662  ;;  %v11634_v42 = vld [vmem:[#allocation424_spill] sm:$0xff] }
 0x4ed   :  { %11617 = vst [vmem:[#allocation285_spill] sm:$0xff] %v9165_v62  ;;  %v9189_v62 = vmul.f32 %v11565_v0, %v11624_v18  ;;  %v3137_v18 = vmul.f32 %v8339_v45, %v11629_v9  ;;  %11630 = vst [vmem:[#allocation289_spill] sm:$0xff] %v9204_v6  ;;  %v11632_v8 = vld [vmem:[#allocation423_spill] sm:$0xff]  ;;  %v9214_v61 = vmul.f32 %v11580_v12, %v11634_v42  ;;  %v11636_v3 = vld [vmem:[#allocation425_spill] sm:$0xff]  ;;  %4007 = vperm.xlu1 %4530, %v3905_v60  }
 0x4ee   :  { %11623 = vst [vmem:[#allocation287_spill] sm:$0xff] %v9181_v41  ;;  %11627 = vst [vmem:[#allocation288_spill] sm:$0xff] %v9199_v44  ;;  %v1249_v41 = vadd.f32 %v11628_v52, %v861_v13  ;;  %v9210_v23 = vmul.f32 %v11565_v0, %v11632_v8  ;;  %v9218_v44 = vmul.f32 %v11565_v0, %v11636_v3  ;;  %v11639_v9 = vld [vmem:[#allocation426_spill] sm:$0xff]  ;;  %v11641_v52 = vld [vmem:[#allocation427_spill] sm:$0xff] }
 0x4ef   :  { %11631 = vst [vmem:[#allocation290_spill] sm:$0xff] %v9206_v31  ;;  %11635 = vst [vmem:[#allocation292_spill] sm:$0xff] %v9214_v61  ;;  %v9224_v13 = vmul.f32 %v11580_v12, %v11639_v9  ;;  %v9228_v8 = vmul.f32 %v11565_v0, %v11641_v52  ;;  %v11643_v42 = vld [vmem:[#allocation66_spill] sm:$0xff]  ;;  %v3922_v3 = vld [vmem:[%s10259_s3 + $0xd0] sm:$0xff]  ;;  %v3643_v9 = vmul.f32 0.5, %v3579_v39  ;;  %v3199_v52 = vadd.f32 %v3135_v34, %v8764_v48 }
 0x4f0   :  { %11633 = vst [vmem:[#allocation291_spill] sm:$0xff] %v9210_v23  ;;  %11637 = vst [vmem:[#allocation293_spill] sm:$0xff] %v9218_v44  ;;  %v3583_v23 = vadd.f32 %v9051_v37, %v3195_v46  ;;  %v3141_v61 = vmul.f32 %v8339_v45, %v11643_v42  ;;  %v11644_v58 = vld [vmem:[#allocation428_spill] sm:$0xff]  ;;  %v3585_v44 = vadd.f32 %v9064_v15, %v3197_v43  ;;  %v11646_v46 = vld [vmem:[#allocation429_spill] sm:$0xff]  ;;  %v9253_v39 = vpop.permute.xlu0 %672  ;;  %4092 = vperm.xlu0 %4529, %v3922_v3  }
 0x4f1   :  { %11640 = vst [vmem:[#allocation294_spill] sm:$0xff] %v9224_v13  ;;  %11642 = vst [vmem:[#allocation295_spill] sm:$0xff] %v9228_v8  ;;  %v9238_v59 = vmul.f32 %v11580_v12, %v11644_v58  ;;  %v3907_v37 = vld [vmem:[%s10259_s3 + $0x58] sm:$0xff]  ;;  %v9247_v60 = vmul.f32 %v11565_v0, %v11646_v46  ;;  %v3645_v13 = vmul.f32 0.5, %v3581_v19  ;;  %v3201_v31 = vadd.f32 %v3137_v18, %v8777_v14  ;;  %v9251_v58 = vpop.permute.xlu1 %3309  ;;  %v11651_v15 = vld [vmem:[#allocation430_spill] sm:$0xff] }
 0x4f2   :  { %v11648_v42 = vld [vmem:[#allocation36_spill] sm:$0xff]  ;;  %11649 = vst [vmem:[#allocation298_spill] sm:$0xff] %v9251_v58  ;;  %11650 = vst [vmem:[#allocation299_spill] sm:$0xff] %v9253_v39  ;;  %v9257_v48 = vmul.f32 %v11580_v12, %v11651_v15  ;;  %v11653_v34 = vld [vmem:[#allocation431_spill] sm:$0xff]  ;;  %v3203_v19 = vadd.f32 %v3139_v22, %v8796_v7  ;;  %v3647_v15 = vmul.f32 0.5, %v3583_v23  ;;  %4017 = vperm.xlu1 %4530, %v3907_v37   ;;  %v3649_v22 = vmul.f32 0.5, %v3585_v44 }
 0x4f3   :  { %11645 = vst [vmem:[#allocation296_spill] sm:$0xff] %v9238_v59  ;;  %11647 = vst [vmem:[#allocation297_spill] sm:$0xff] %v9247_v60  ;;  %v1637_v8 = vadd.f32 %v11648_v42, %v1249_v41  ;;  %v9261_v43 = vmul.f32 %v11565_v0, %v11653_v34  ;;  %v11655_v59 = vld [vmem:[#allocation432_spill] sm:$0xff]  ;;  %v11656_v14 = vld [vmem:[#allocation433_spill] sm:$0xff]  ;;  %v3205_v60 = vadd.f32 %v3141_v61, %v8809_v17  ;;  %4531 = vtanh.f32 %v3643_v9 }
 0x4f4   :  { %11652 = vst [vmem:[#allocation300_spill] sm:$0xff] %v9257_v48  ;;  %v9265_v46 = vmul.f32 %v11580_v12, %v11655_v59  ;;  %v9270_v41 = vmul.f32 %v11565_v0, %v11656_v14  ;;  %v11658_v18 = vld [vmem:[#allocation434_spill] sm:$0xff]  ;;  %v11659_v34 = vld [vmem:[#allocation435_spill] sm:$0xff]  ;;  %v3587_v3 = vadd.f32 %v9080_v36, %v3199_v52  ;;  %v11661_v23 = vld [vmem:[#allocation436_spill] sm:$0xff]  ;;  %4533 = vtanh.f32 %v3645_v13 }
 0x4f5   :  { %11654 = vst [vmem:[#allocation301_spill] sm:$0xff] %v9261_v43  ;;  %v9274_v42 = vmul.f32 %v11580_v12, %v11658_v18  ;;  %v3924_v59 = vld [vmem:[%s10259_s3 + $0xe0] sm:$0xff]  ;;  %v9282_v7 = vmul.f32 %v11565_v0, %v11659_v34  ;;  %v3909_v14 = vld [vmem:[%s10259_s3 + $0x68] sm:$0xff]  ;;  %v9290_v17 = vmul.f32 %v11580_v12, %v11661_v23  ;;  %v11662_v61 = vld [vmem:[#allocation184_spill] sm:$0xff]  ;;  %v3589_v18 = vadd.f32 %v9096_v24, %v3201_v31  ;;  %v9296_v34 = vpop.permute.xlu0 %682 }
 0x4f6   :  { %11657 = vst [vmem:[#allocation302_spill] sm:$0xff] %v9270_v41  ;;  %v2025_v37 = vadd.f32 %v11662_v61, %v1637_v8  ;;  %v9294_v41 = vpop.permute.xlu1 %3317  ;;  %11664 = vst [vmem:[#allocation305_spill] sm:$0xff] %v9296_v34  ;;  %v11665_v44 = vld [vmem:[#allocation437_spill] sm:$0xff]  ;;  %v11667_v52 = vld [vmem:[#allocation438_spill] sm:$0xff]  ;;  %v3591_v8 = vadd.f32 %v9104_v30, %v3203_v19  ;;  %4102 = vperm.xlu0 %4529, %v3924_v59   ;;  %v3593_v13 = vadd.f32 %v9112_v29, %v3205_v60 }
 0x4f7   :  { %11660 = vst [vmem:[#allocation303_spill] sm:$0xff] %v9282_v7  ;;  %11663 = vst [vmem:[#allocation304_spill] sm:$0xff] %v9294_v41  ;;  %v9300_v36 = vmul.f32 %v11565_v0, %v11665_v44  ;;  %v9304_v9 = vmul.f32 %v11580_v12, %v11667_v52  ;;  %v11668_v7 = vld [vmem:[#allocation439_spill] sm:$0xff]  ;;  %v11670_v24 = vld [vmem:[#allocation440_spill] sm:$0xff]  ;;  %4027 = vperm.xlu1 %4530, %v3909_v14   ;;  %4535 = vtanh.f32 %v3647_v15  ;;  %v3651_v59 = vmul.f32 0.5, %v3587_v3 }
 0x4f8   :  { %v9308_v23 = vmul.f32 %v11565_v0, %v11668_v7  ;;  %v9313_v31 = vmul.f32 %v11580_v12, %v11670_v24  ;;  %v11671_v61 = vld [vmem:[#allocation74_spill] sm:$0xff]  ;;  %v3926_v52 = vld [vmem:[%s10259_s3 + $0xf0] sm:$0xff]  ;;  %v11672_v7 = vld [vmem:[#allocation441_spill] sm:$0xff]  ;;  %4537 = vtanh.f32 %v3649_v22 }
 0x4f9   :  { %11666 = vst [vmem:[#allocation306_spill] sm:$0xff] %v9300_v36  ;;  %v3143_v44 = vmul.f32 %v8339_v45, %v11671_v61  ;;  %v11674_v30 = vld [vmem:[#allocation442_spill] sm:$0xff]  ;;  %v3911_v29 = vld [vmem:[%s10259_s3 + $0x78] sm:$0xff]  ;;  %v11675_v60 = vld [vmem:[#allocation443_spill] sm:$0xff]  ;;  %v3653_v61 = vmul.f32 0.5, %v3589_v18  ;;  %4539 = vtanh.f32 %v3651_v59 }
 0x4fa   :  { %11669 = vst [vmem:[#allocation307_spill] sm:$0xff] %v9308_v23  ;;  %v9323_v23 = vmul.f32 %v11565_v0, %v11672_v7  ;;  %v9327_v19 = vmul.f32 %v11580_v12, %v11674_v30  ;;  %v9334_v14 = vmul.f32 %v11565_v0, %v11675_v60  ;;  %v11677_v24 = vld [vmem:[#allocation444_spill] sm:$0xff]  ;;  %v9341_v36 = vpop.permute.xlu1 %3325  ;;  %v9343_v30 = vpop.permute.xlu0 %692  ;;  %v11682_v3 = vld [vmem:[#allocation445_spill] sm:$0xff]  ;;  %v11684_v22 = vld [vmem:[#allocation446_spill] sm:$0xff]  ;;  %4112 = vperm.xlu0 %4529, %v3926_v52  }
 0x4fb   :  { %v9338_v15 = vmul.f32 %v11580_v12, %v11677_v24  ;;  %v11679_v7 = vld [vmem:[#allocation132_spill] sm:$0xff]  ;;  %11680 = vst [vmem:[#allocation311_spill] sm:$0xff] %v9341_v36  ;;  %11681 = vst [vmem:[#allocation312_spill] sm:$0xff] %v9343_v30  ;;  %v9347_v43 = vmul.f32 %v11565_v0, %v11682_v3  ;;  %v9351_v48 = vmul.f32 %v11580_v12, %v11684_v22  ;;  %v11686_v60 = vld [vmem:[#allocation447_spill] sm:$0xff]  ;;  %v3655_v24 = vmul.f32 0.5, %v3591_v8 }
 0x4fc   :  { %11673 = vst [vmem:[#allocation308_spill] sm:$0xff] %v9323_v23  ;;  %11676 = vst [vmem:[#allocation309_spill] sm:$0xff] %v9334_v14  ;;  %v2413_v23 = vadd.f32 %v11679_v7, %v2025_v37  ;;  %v9355_v14 = vmul.f32 %v11565_v0, %v11686_v60  ;;  %v11688_v18 = vld [vmem:[#allocation448_spill] sm:$0xff]  ;;  %v11690_v7 = vld [vmem:[#allocation449_spill] sm:$0xff]  ;;  %v3657_v3 = vmul.f32 0.5, %v3593_v13  ;;  %4037 = vperm.xlu1 %4530, %v3911_v29   ;;  %4541 = vtanh.f32 %v3653_v61 }
 0x4fd   :  { %11678 = vst [vmem:[#allocation310_spill] sm:$0xff] %v9338_v15  ;;  %11683 = vst [vmem:[#allocation313_spill] sm:$0xff] %v9347_v43  ;;  %v9359_v37 = vmul.f32 %v11580_v12, %v11688_v18  ;;  %v9363_v30 = vmul.f32 %v11565_v0, %v11690_v7  ;;  %v3207_v43 = vadd.f32 %v3143_v44, %v8822_v50  ;;  %v3928_v22 = vld [vmem:[%s10259_s3 + $0x100] sm:$0xff]  ;;  %v11694_v52 = vld [vmem:[#allocation451_spill] sm:$0xff]  ;;  %4543 = vtanh.f32 %v3655_v24 }
 0x4fe   :  { %11685 = vst [vmem:[#allocation314_spill] sm:$0xff] %v9351_v48  ;;  %11687 = vst [vmem:[#allocation315_spill] sm:$0xff] %v9355_v14  ;;  %v11692_v60 = vld [vmem:[#allocation450_spill] sm:$0xff]  ;;  %v9375_v18 = vmul.f32 %v11565_v0, %v11694_v52  ;;  %v11696_v14 = vld [vmem:[#allocation99_spill] sm:$0xff]  ;;  %v9391_v52 = vpop.permute.xlu1 %3333  ;;  %4122 = vperm.xlu0 %4529, %v3928_v22   ;;  %4545 = vtanh.f32 %v3657_v3 }
 0x4ff   :  { %11689 = vst [vmem:[#allocation316_spill] sm:$0xff] %v9359_v37  ;;  %11691 = vst [vmem:[#allocation318_spill] sm:$0xff] %v9363_v30  ;;  %v9371_v8 = vmul.f32 %v11580_v12, %v11692_v60  ;;  %v508_v7 = vmul.f32 %v11588_v32, %v11696_v14  ;;  %v3913_v50 = vld [vmem:[%s10259_s3 + $0x88] sm:$0xff]  ;;  %v11697_v13 = vld [vmem:[#allocation452_spill] sm:$0xff]  ;;  %v2801_v30 = vadd.f32 %v9068_v11, %v2413_v23 }
 0x500   :  { %11695 = vst [vmem:[#allocation321_spill] sm:$0xff] %v9375_v18  ;;  %v9384_v44 = vmul.f32 %v11580_v12, %v11697_v13  ;;  %v11699_v29 = vld [vmem:[#allocation454_spill] sm:$0xff]  ;;  %11701 = vst [vmem:[#allocation325_spill] sm:$0xff] %v9391_v52  ;;  %v703_v18 = vpop.permute.xlu0 %702  ;;  %v11702_v14 = vld [vmem:[#allocation455_spill] sm:$0xff]  ;;  %v3595_v23 = vadd.f32 %v9120_v16, %v3207_v43  ;;  %4047 = vperm.xlu1 %4530, %v3913_v50   ;;  %v4532_v3 = vpop.eup %4531 }
 0x501   :  { %11693 = vst [vmem:[#allocation319_spill] sm:$0xff] %v9371_v8  ;;  %v9388_v60 = vmul.f32 %v11580_v12, %v11699_v29  ;;  %v9395_v36 = vmul.f32 %v11588_v32, %v11702_v14  ;;  %v11703_v34 = vld [vmem:[#allocation90_spill] sm:$0xff]  ;;  %v892_v41 = vadd.f32 %v703_v18, %v508_v7  ;;  %v11704_v13 = vld [vmem:[#allocation456_spill] sm:$0xff]  ;;  %v11712_v14 = vld [vmem:[#allocation461_spill] sm:$0xff] }
 0x502   :  { %11698 = vst [vmem:[#allocation322_spill] sm:$0xff] %v9384_v44  ;;  %v3145_v59 = vmul.f32 %v8339_v45, %v11703_v34  ;;  %v9401_v29 = vmul.f32 %v11580_v12, %v11704_v13  ;;  %v11706_v39 = vld [vmem:[#allocation458_spill] sm:$0xff]  ;;  %v3930_v61 = vld [vmem:[%s10259_s3 + $0x110] sm:$0xff]  ;;  %v11708_v34 = vld [vmem:[#allocation253_spill] sm:$0xff]  ;;  %v9425_v16 = vmul.f32 %v11580_v12, %v11712_v14  ;;  %v4534_v14 = vpop.eup %4533 }
 0x503   :  { %11700 = vst [vmem:[#allocation324_spill] sm:$0xff] %v9388_v60  ;;  %v9405_v11 = vmul.f32 %v11580_v12, %v11706_v39  ;;  %v9413_v22 = vmul.f32 %v11588_v32, %v11708_v34  ;;  %v11709_v24 = vld [vmem:[#allocation460_spill] sm:$0xff]  ;;  %v11714_v50 = vld [vmem:[#allocation259_spill] sm:$0xff]  ;;  %v11715_v34 = vld [vmem:[#allocation102_spill] sm:$0xff]  ;;  %4132 = vperm.xlu0 %4529, %v3930_v61  }
 0x504   :  { %11705 = vst [vmem:[#allocation327_spill] sm:$0xff] %v9401_v29  ;;  %v9417_v18 = vmul.f32 %v11580_v12, %v11709_v24  ;;  %v11711_v7 = vld [vmem:[#allocation256_spill] sm:$0xff]  ;;  %11713 = vst [vmem:[#allocation330_spill] sm:$0xff] %v9425_v16  ;;  %v9432_v13 = vmul.f32 %v11588_v32, %v11714_v50  ;;  %v510_v24 = vmul.f32 %v11588_v32, %v11715_v34  ;;  %v11716_v52 = vld [vmem:[#allocation222_spill] sm:$0xff]  ;;  %v713_v12 = vpop.permute.xlu0 %712 }
 0x505   :  { %11707 = vst [vmem:[#allocation345_spill] sm:$0xff] %v9405_v11  ;;  %v9421_v39 = vmul.f32 %v11588_v32, %v11711_v7  ;;  %v3915_v43 = vld [vmem:[%s10259_s3 + $0x98] sm:$0xff]  ;;  %v9437_v58 = vadd.f32 %v11716_v52, %v2801_v30  ;;  %v11721_v29 = vld [vmem:[#allocation262_spill] sm:$0xff]  ;;  %v11723_v60 = vld [vmem:[#allocation15_spill] sm:$0xff]  ;;  %v3209_v30 = vadd.f32 %v3145_v59, %v8833_v40 }
 0x506   :  { %11710 = vst [vmem:[#allocation328_spill] sm:$0xff] %v9417_v18  ;;  %v11718_v7 = vld [vmem:[#allocation117_spill] sm:$0xff]  ;;  %v9440_v18 = vpop.permute.xlu1 %3341  ;;  %v11720_v16 = vld [vmem:[#allocation464_spill] sm:$0xff]  ;;  %v9448_v50 = vmul.f32 %v11588_v32, %v11721_v29  ;;  %v9452_v34 = vmul.f32 %v8339_v45, %v11723_v60  ;;  %v894_v44 = vadd.f32 %v713_v12, %v510_v24  ;;  %4057 = vperm.xlu1 %4530, %v3915_v43   ;;  %v11728_v60 = vld [vmem:[#allocation18_spill] sm:$0xff] }
 0x507   :  { %11717 = vst [vmem:[#allocation331_spill] sm:$0xff] %v9437_v58  ;;  %v1280_v6 = vadd.f32 %v11718_v7, %v892_v41  ;;  %11719 = vst [vmem:[#allocation347_spill] sm:$0xff] %v9440_v18  ;;  %v9444_v11 = vmul.f32 %v8339_v45, %v11720_v16  ;;  %v11725_v41 = vld [vmem:[#allocation16_spill] sm:$0xff]  ;;  %v3659_v7 = vmul.f32 0.5, %v3595_v23  ;;  %v11727_v18 = vld [vmem:[#allocation98_spill] sm:$0xff]  ;;  %v4536_v58 = vpop.eup %4535  ;;  %v9466_v8 = vmul.f32 %v11588_v32, %v11728_v60 }
 0x508   :  { %11722 = vst [vmem:[#allocation333_spill] sm:$0xff] %v9448_v50  ;;  %11724 = vst [vmem:[#allocation334_spill] sm:$0xff] %v9452_v34  ;;  %v9457_v52 = vmul.f32 %v11588_v32, %v11725_v41  ;;  %v3147_v16 = vmul.f32 %v8339_v45, %v11727_v18  ;;  %v3932_v29 = vld [vmem:[%s10259_s3 + $0x120] sm:$0xff]  ;;  %v11730_v40 = vld [vmem:[#allocation20_spill] sm:$0xff]  ;;  %v4538_v24 = vpop.eup %4537  ;;  %v3773_v34 = vmul.f32 0.5, %v4534_v14  ;;  %v3775_v14 = vmul.f32 0.5, %v4536_v58 }
 0x509   :  { %11729 = vst [vmem:[#allocation349_spill] sm:$0xff] %v9466_v8  ;;  %v9470_v59 = vmul.f32 %v11588_v32, %v11730_v40  ;;  %v11732_v61 = vld [vmem:[#allocation108_spill] sm:$0xff]  ;;  %v3917_v43 = vld [vmem:[%s10259_s3 + $0xa8] sm:$0xff]  ;;  %v723_v40 = vpop.permute.xlu0 %722  ;;  %4142 = vperm.xlu0 %4529, %v3932_v29   ;;  %4547 = vtanh.f32 %v3659_v7  ;;  %v11745_v29 = vld [vmem:[#allocation61_spill] sm:$0xff] }
 0x50a   :  { %11726 = vst [vmem:[#allocation335_spill] sm:$0xff] %v9457_v52  ;;  %v3149_v23 = vmul.f32 %v8339_v45, %v11732_v61  ;;  %v11733_v41 = vld [vmem:[#allocation112_spill] sm:$0xff]  ;;  %v11734_v12 = vld [vmem:[#allocation31_spill] sm:$0xff]  ;;  %v11735_v60 = vld [vmem:[#allocation58_spill] sm:$0xff]  ;;  %v9484_v37 = vpop.permute.xlu1 %3349  ;;  %4067 = vperm.xlu1 %4530, %v3917_v43  }
 0x50b   :  { %11731 = vst [vmem:[#allocation336_spill] sm:$0xff] %v9470_v59  ;;  %v512_v18 = vmul.f32 %v11588_v32, %v11733_v41  ;;  %v9481_v52 = vmul.f32 %v11588_v32, %v11734_v12  ;;  %v1668_v8 = vadd.f32 %v11735_v60, %v1280_v6  ;;  %11736 = vst [vmem:[#allocation351_spill] sm:$0xff] %v9484_v37  ;;  %v3771_v59 = vmul.f32 0.5, %v4532_v3  ;;  %v11737_v61 = vld [vmem:[#allocation40_spill] sm:$0xff]  ;;  %v11739_v48 = vld [vmem:[#allocation119_spill] sm:$0xff] }
 0x50c   :  { %v9488_v50 = vmul.f32 %v11588_v32, %v11737_v61  ;;  %v3597_v41 = vadd.f32 %v9133_v63, %v3209_v30  ;;  %v1282_v28 = vadd.f32 %v11739_v48, %v894_v44  ;;  %v11740_v15 = vld [vmem:[#allocation47_spill] sm:$0xff]  ;;  %v3211_v6 = vadd.f32 %v3147_v16, %v8843_v5  ;;  %v11742_v60 = vld [vmem:[#allocation54_spill] sm:$0xff]  ;;  %v3919_v5 = vld [vmem:[%s10259_s3 + $0xb8] sm:$0xff]  ;;  %v4540_v16 = vpop.eup %4539 }
 0x50d   :  { %v896_v26 = vadd.f32 %v723_v40, %v512_v18  ;;  %v9494_v12 = vmul.f32 %v11588_v32, %v11740_v15  ;;  %v3934_v3 = vld [vmem:[%s10259_s3 + $0x130] sm:$0xff]  ;;  %v9502_v63 = vmul.f32 %v11588_v32, %v11742_v60  ;;  %v3213_v48 = vadd.f32 %v3149_v23, %v8856_v27  ;;  %v11744_v44 = vld [vmem:[#allocation126_spill] sm:$0xff]  ;;  %v733_v40 = vpop.permute.xlu0 %732  ;;  %v4542_v23 = vpop.eup %4541 }
 0x50e   :  { %11738 = vst [vmem:[#allocation337_spill] sm:$0xff] %v9488_v50  ;;  %v514_v30 = vmul.f32 %v11588_v32, %v11744_v44  ;;  %v3777_v15 = vmul.f32 0.5, %v4538_v24  ;;  %v9512_v18 = vmul.f32 %v11588_v32, %v11745_v29  ;;  %v11747_v58 = vld [vmem:[#allocation198_spill] sm:$0xff]  ;;  %v9515_v43 = vpop.permute.xlu1 %3357  ;;  %v9517_v61 = vadd.f32 0.5, %v3771_v59  ;;  %v11751_v44 = vld [vmem:[#allocation60_spill] sm:$0xff]  ;;  %4152 = vperm.xlu0 %4529, %v3934_v3   ;;  %v4544_v50 = vpop.eup %4543  ;;  %4077 = vperm.xlu1 %4530, %v3919_v5  }
 0x50f   :  { %11741 = vst [vmem:[#allocation338_spill] sm:$0xff] %v9494_v12  ;;  %11743 = vst [vmem:[#allocation353_spill] sm:$0xff] %v9502_v63  ;;  %v2056_v7 = vadd.f32 %v11747_v58, %v1668_v8  ;;  %v9519_v27 = vadd.f32 0.5, %v3773_v34  ;;  %v3661_v60 = vmul.f32 0.5, %v3597_v41  ;;  %v1670_v37 = vadd.f32 %v11751_v44, %v1282_v28  ;;  %v11752_v63 = vld [vmem:[#allocation121_spill] sm:$0xff]  ;;  %v11753_v29 = vld [vmem:[#allocation70_spill] sm:$0xff] }
 0x510   :  { %11746 = vst [vmem:[#allocation339_spill] sm:$0xff] %v9512_v18  ;;  %11748 = vst [vmem:[#allocation340_spill] sm:$0xff] %v9515_v43  ;;  %v1284_v24 = vadd.f32 %v11752_v63, %v896_v26  ;;  %v898_v12 = vadd.f32 %v733_v40, %v514_v30  ;;  %v9525_v18 = vmul.f32 %v11588_v32, %v11753_v29  ;;  %v11754_v58 = vld [vmem:[#allocation120_spill] sm:$0xff]  ;;  %v3936_v34 = vld [vmem:[%s10259_s3 + $0x140] sm:$0xff]  ;;  %v9533_v28 = vadd.f32 0.5, %v3775_v14  ;;  %v4546_v26 = vpop.eup %4545 }
 0x511   :  { %11749 = vst [vmem:[#allocation355_spill] sm:$0xff] %v9517_v61  ;;  %11750 = vst [vmem:[#allocation341_spill] sm:$0xff] %v9519_v27  ;;  %v3599_v8 = vadd.f32 %v9147_v25, %v3211_v6  ;;  %v3151_v59 = vmul.f32 %v8339_v45, %v11754_v58  ;;  %v11756_v41 = vld [vmem:[#allocation79_spill] sm:$0xff]  ;;  %v3601_v63 = vadd.f32 %v9161_v56, %v3213_v48  ;;  %v11758_v30 = vld [vmem:[#allocation130_spill] sm:$0xff]  ;;  %v9545_v5 = vadd.f32 0.5, %v3777_v15  ;;  %v743_v29 = vpop.permute.xlu0 %742 }
 0x512   :  { %11755 = vst [vmem:[#allocation342_spill] sm:$0xff] %v9533_v28  ;;  %v9537_v3 = vmul.f32 %v11588_v32, %v11756_v41  ;;  %v516_v25 = vmul.f32 %v11588_v32, %v11758_v30  ;;  %v3921_v6 = vld [vmem:[%s10259_s3 + $0xc8] sm:$0xff]  ;;  %v9548_v14 = vpop.permute.xlu1 %3365  ;;  %v11761_v58 = vld [vmem:[#allocation153_spill] sm:$0xff]  ;;  %v3779_v41 = vmul.f32 0.5, %v4540_v16  ;;  %v3781_v28 = vmul.f32 0.5, %v4542_v23  ;;  %4162 = vperm.xlu0 %4529, %v3936_v34   ;;  %v11764_v16 = vld [vmem:[#allocation128_spill] sm:$0xff] }
 0x513   :  { %v11759_v40 = vld [vmem:[#allocation114_spill] sm:$0xff]  ;;  %11760 = vst [vmem:[#allocation344_spill] sm:$0xff] %v9548_v14  ;;  %v2444_v43 = vadd.f32 %v11761_v58, %v2056_v7  ;;  %v11762_v27 = vld [vmem:[#allocation9_spill] sm:$0xff]  ;;  %4549 = vtanh.f32 %v3661_v60  ;;  %v3215_v15 = vadd.f32 %v3151_v59, %v8871_v51  ;;  %4087 = vperm.xlu1 %4530, %v3921_v6   ;;  %v3785_v14 = vmul.f32 0.5, %v4546_v26  ;;  %v11768_v34 = vld [vmem:[#allocation123_spill] sm:$0xff] }
 0x514   :  { %11757 = vst [vmem:[#allocation343_spill] sm:$0xff] %v9537_v3  ;;  %v1286_v44 = vadd.f32 %v11759_v40, %v898_v12  ;;  %v2058_v56 = vadd.f32 %v11762_v27, %v1670_v37  ;;  %v11763_v48 = vld [vmem:[#allocation62_spill] sm:$0xff]  ;;  %v900_v30 = vadd.f32 %v743_v29, %v516_v25  ;;  %v3663_v3 = vmul.f32 0.5, %v3599_v8  ;;  %v3938_v12 = vld [vmem:[%s10259_s3 + $0x150] sm:$0xff]  ;;  %v3923_v51 = vld [vmem:[%s10259_s3 + $0xd8] sm:$0xff] }
 0x515   :  { %v1672_v61 = vadd.f32 %v11763_v48, %v1284_v24  ;;  %v3783_v40 = vmul.f32 0.5, %v4544_v50  ;;  %v3665_v7 = vmul.f32 0.5, %v3601_v63  ;;  %v3153_v23 = vmul.f32 %v8339_v45, %v11764_v16  ;;  %v11765_v37 = vld [vmem:[#allocation30_spill] sm:$0xff]  ;;  %v11766_v24 = vld [vmem:[#allocation221_spill] sm:$0xff]  ;;  %v11767_v8 = vld [vmem:[#allocation63_spill] sm:$0xff]  ;;  %v753_v26 = vpop.permute.xlu0 %752 }
 0x516   :  { %v518_v27 = vmul.f32 %v11588_v32, %v11765_v37  ;;  %v860_v60 = vadd.f32 %v11766_v24, %v9395_v36  ;;  %v1674_v59 = vadd.f32 %v11767_v8, %v1286_v44  ;;  %v1288_v25 = vadd.f32 %v11768_v34, %v900_v30  ;;  %v9568_v50 = vpop.permute.xlu1 %3373  ;;  %v11769_v29 = vld [vmem:[#allocation10_spill] sm:$0xff]  ;;  %4172 = vperm.xlu0 %4529, %v3938_v12   ;;  %v11770_v36 = vld [vmem:[#allocation155_spill] sm:$0xff] }
 0x517   :  { %v2832_v63 = vadd.f32 %v9265_v46, %v2444_v43  ;;  %v9571_v6 = vadd.f32 0.5, %v3779_v41  ;;  %v2060_v58 = vadd.f32 %v11769_v29, %v1672_v61  ;;  %v2446_v16 = vadd.f32 %v11770_v36, %v2058_v56  ;;  %4097 = vperm.xlu1 %4530, %v3923_v51   ;;  %v3940_v44 = vld [vmem:[%s10259_s3 + $0x160] sm:$0xff]  ;;  %v4548_v43 = vpop.eup %4547  ;;  %v11771_v41 = vld [vmem:[#allocation75_spill] sm:$0xff]  ;;  %v11776_v29 = vld [vmem:[#allocation156_spill] sm:$0xff] }
 0x518   :  { %v902_v48 = vadd.f32 %v753_v26, %v518_v27  ;;  %v9575_v37 = vadd.f32 0.5, %v3781_v28  ;;  %v3603_v24 = vadd.f32 %v9169_v33, %v3215_v15  ;;  %v9581_v30 = vadd.f32 0.5, %v3783_v40  ;;  %v11772_v28 = vld [vmem:[#allocation14_spill] sm:$0xff]  ;;  %v11773_v15 = vld [vmem:[#allocation199_spill] sm:$0xff]  ;;  %v11774_v40 = vld [vmem:[#allocation64_spill] sm:$0xff] }
 0x519   :  { %v9583_v46 = vadd.f32 0.5, %v3785_v14  ;;  %4551 = vtanh.f32 %v3663_v3  ;;  %v3217_v61 = vadd.f32 %v3153_v23, %v8880_v54  ;;  %v520_v56 = vmul.f32 %v11588_v32, %v11771_v41  ;;  %v3925_v33 = vld [vmem:[%s10259_s3 + $0xe8] sm:$0xff]  ;;  %v11775_v14 = vld [vmem:[#allocation125_spill] sm:$0xff]  ;;  %v763_v54 = vpop.permute.xlu0 %762 }
 0x51a   :  { %v1248_v12 = vadd.f32 %v11772_v28, %v860_v60  ;;  %4553 = vtanh.f32 %v3665_v7  ;;  %v2062_v27 = vadd.f32 %v11773_v15, %v1674_v59  ;;  %v1676_v51 = vadd.f32 %v11774_v40, %v1288_v25  ;;  %v3382_v3 = vpop.permute.xlu1 %3381  ;;  %4182 = vperm.xlu0 %4529, %v3940_v44   ;;  %v11777_v7 = vld [vmem:[#allocation265_spill] sm:$0xff]  ;;  %v11782_v40 = vld [vmem:[#allocation215_spill] sm:$0xff] }
 0x51b   :  { %v1290_v8 = vadd.f32 %v11775_v14, %v902_v48  ;;  %v3220_v34 = vadd.f32 %v8839_v10, %v2832_v63  ;;  %v3544_v23 = vmul.f32 %v11565_v0, %v3382_v3  ;;  %v904_v26 = vadd.f32 %v763_v54, %v520_v56  ;;  %v11778_v28 = vld [vmem:[#allocation13_spill] sm:$0xff]  ;;  %4107 = vperm.xlu1 %4530, %v3925_v33   ;;  %v3942_v10 = vld [vmem:[%s10259_s3 + $0x170] sm:$0xff] }
 0x51c   :  { %v2834_v60 = vadd.f32 %v9274_v42, %v2446_v16  ;;  %v2448_v36 = vadd.f32 %v11776_v29, %v2060_v58  ;;  %v3667_v41 = vmul.f32 0.5, %v3603_v24  ;;  %v3155_v59 = vmul.f32 %v8339_v45, %v11777_v7  ;;  %v11779_v25 = vld [vmem:[#allocation237_spill] sm:$0xff]  ;;  %v11784_v54 = vld [vmem:[#allocation127_spill] sm:$0xff] }
 0x51d   :  { %v862_v15 = vadd.f32 %v11779_v25, %v11778_v28  ;;  %v3787_v63 = vmul.f32 0.5, %v4548_v43  ;;  %v3605_v48 = vadd.f32 %v9177_v21, %v3217_v61  ;;  %v11780_v44 = vld [vmem:[#allocation145_spill] sm:$0xff]  ;;  %v9610_v24 = vadd.f32 %v3544_v23, %v3220_v34  ;;  %v773_v7 = vpop.permute.xlu0 %772  ;;  %v11785_v21 = vld [vmem:[#allocation158_spill] sm:$0xff] }
 0x51e   :  { %v522_v42 = vmul.f32 %v11588_v32, %v11780_v44  ;;  %v11781_v16 = vld [vmem:[#allocation29_spill] sm:$0xff]  ;;  %v2064_v33 = vadd.f32 %v11782_v40, %v1676_v51  ;;  %v1292_v29 = vadd.f32 %v11784_v54, %v904_v26  ;;  %v3390_v43 = vpop.permute.xlu1 %3389  ;;  %v2450_v61 = vadd.f32 %v11785_v21, %v2062_v27  ;;  %4192 = vperm.xlu0 %4529, %v3942_v10   ;;  %v11786_v51 = vld [vmem:[#allocation92_spill] sm:$0xff]  ;;  %v11787_v27 = vld [vmem:[#allocation151_spill] sm:$0xff] }
 0x51f   :  { %v1636_v58 = vadd.f32 %v11781_v16, %v1248_v12  ;;  %v3927_v56 = vld [vmem:[%s10259_s3 + $0xf8] sm:$0xff]  ;;  %v3222_v28 = vadd.f32 %v8850_v53, %v2834_v60  ;;  %v3546_v12 = vmul.f32 %v11565_v0, %v3390_v43  ;;  %v2836_v23 = vadd.f32 %v9290_v17, %v2448_v36 }
 0x520   :  { %v11783_v14 = vld [vmem:[#allocation65_spill] sm:$0xff]  ;;  %v906_v34 = vadd.f32 %v773_v7, %v522_v42  ;;  %v4550_v25 = vpop.eup %4549  ;;  %v3219_v44 = vadd.f32 %v3155_v59, %v8883_v49  ;;  %v1250_v16 = vadd.f32 %v11786_v51, %v862_v15  ;;  %4117 = vperm.xlu1 %4530, %v3927_v56   ;;  %v9627_v26 = vadd.f32 0.5, %v3787_v63  ;;  %v11788_v10 = vld [vmem:[#allocation88_spill] sm:$0xff]  ;;  %v3929_v49 = vld [vmem:[%s10259_s3 + $0x108] sm:$0xff] }
 0x521   :  { %v1678_v3 = vadd.f32 %v11783_v14, %v1290_v8  ;;  %v3944_v8 = vld [vmem:[%s10259_s3 + $0x180] sm:$0xff]  ;;  %4555 = vtanh.f32 %v3667_v41  ;;  %v9629_v53 = vmul.f32 0.5, %v3605_v48  ;;  %v524_v60 = vmul.f32 %v11588_v32, %v11787_v27  ;;  %v11790_v42 = vld [vmem:[#allocation67_spill] sm:$0xff]  ;;  %v783_v40 = vpop.permute.xlu0 %782 }
 0x522   :  { %v2024_v17 = vadd.f32 %v11788_v10, %v1636_v58  ;;  %v9634_v36 = vadd.f32 %v3546_v12, %v3222_v28  ;;  %v11789_v59 = vld [vmem:[#allocation201_spill] sm:$0xff]  ;;  %v1680_v56 = vadd.f32 %v11790_v42, %v1292_v29  ;;  %v3398_v63 = vpop.permute.xlu1 %3397  ;;  %v2838_v41 = vadd.f32 %v9304_v9, %v2450_v61  ;;  %v11791_v48 = vld [vmem:[#allocation159_spill] sm:$0xff]  ;;  %4202 = vperm.xlu0 %4529, %v3944_v8  }
 0x523   :  { %v2066_v15 = vadd.f32 %v11789_v59, %v1678_v3  ;;  %v2452_v14 = vadd.f32 %v11791_v48, %v2064_v33  ;;  %v11792_v54 = vld [vmem:[#allocation129_spill] sm:$0xff]  ;;  %v3224_v58 = vadd.f32 %v8863_v57, %v2836_v23  ;;  %v3548_v7 = vmul.f32 %v11565_v0, %v3398_v63  ;;  %v11793_v3 = vld [vmem:[#allocation138_spill] sm:$0xff]  ;;  %v3946_v9 = vld [vmem:[%s10259_s3 + $0x190] sm:$0xff] }
 0x524   :  { %v1294_v43 = vadd.f32 %v11792_v54, %v906_v34  ;;  %v908_v21 = vadd.f32 %v783_v40, %v524_v60  ;;  %v9647_v28 = vadd.f32 %v9189_v62, %v3219_v44  ;;  %v1638_v12 = vadd.f32 %v11793_v3, %v1250_v16  ;;  %4127 = vperm.xlu1 %4530, %v3929_v49   ;;  %v11794_v61 = vld [vmem:[#allocation157_spill] sm:$0xff]  ;;  %v11799_v63 = vld [vmem:[#allocation142_spill] sm:$0xff] }
 0x525   :  { %v864_v29 = vadd.f32 %v8695_v55, %v9413_v22  ;;  %v9655_v33 = vmul.f32 0.5, %v4550_v25  ;;  %v526_v34 = vmul.f32 %v11588_v32, %v11794_v61  ;;  %v2412_v62 = vadd.f32 %v8684_v38, %v2024_v17  ;;  %v3931_v55 = vld [vmem:[%s10259_s3 + $0x118] sm:$0xff]  ;;  %v11795_v25 = vld [vmem:[#allocation206_spill] sm:$0xff]  ;;  %v793_v27 = vpop.permute.xlu0 %792 }
 0x526   :  { %v9657_v57 = vpop.eup %4551  ;;  %v866_v23 = vadd.f32 %v8745_v2, %v9421_v39  ;;  %v9664_v44 = vadd.f32 %v3548_v7, %v3224_v58  ;;  %v2068_v51 = vadd.f32 %v11795_v25, %v1680_v56  ;;  %v3406_v16 = vpop.permute.xlu1 %3405  ;;  %v3226_v8 = vadd.f32 %v8867_v4, %v2838_v41  ;;  %v11796_v38 = vld [vmem:[#allocation160_spill] sm:$0xff]  ;;  %4212 = vperm.xlu0 %4529, %v3946_v9   ;;  %v11800_v56 = vld [vmem:[#allocation163_spill] sm:$0xff]  ;;  %v11803_v54 = vld [vmem:[#allocation94_spill] sm:$0xff] }
 0x527   :  { %v9669_v22 = vpop.eup %4553  ;;  %v2840_v60 = vadd.f32 %v9313_v31, %v2452_v14  ;;  %v2454_v10 = vadd.f32 %v11796_v38, %v2066_v15  ;;  %v11797_v17 = vld [vmem:[#allocation68_spill] sm:$0xff]  ;;  %v3550_v59 = vmul.f32 %v11565_v0, %v3406_v16  ;;  %v910_v42 = vadd.f32 %v793_v27, %v526_v34  ;;  %v11801_v41 = vld [vmem:[#allocation187_spill] sm:$0xff]  ;;  %v11802_v31 = vld [vmem:[#allocation101_spill] sm:$0xff] }
 0x528   :  { %v1682_v2 = vadd.f32 %v11797_v17, %v1294_v43  ;;  %v11798_v39 = vld [vmem:[#allocation24_spill] sm:$0xff]  ;;  %v9680_v40 = vmul.f32 %v8339_v45, %v11799_v63  ;;  %v528_v4 = vmul.f32 %v11588_v32, %v11800_v56  ;;  %v2026_v48 = vadd.f32 %v11801_v41, %v1638_v12  ;;  %4137 = vperm.xlu1 %4530, %v3931_v55   ;;  %v3948_v15 = vld [vmem:[%s10259_s3 + $0x1a0] sm:$0xff]  ;;  %v11813_v63 = vld [vmem:[#allocation103_spill] sm:$0xff] }
 0x529   :  { %v1296_v49 = vadd.f32 %v11798_v39, %v908_v21  ;;  %v1252_v14 = vadd.f32 %v11802_v31, %v864_v29  ;;  %v1254_v43 = vadd.f32 %v11803_v54, %v866_v23  ;;  %v868_v58 = vadd.f32 %v8790_v35, %v9432_v13  ;;  %v3933_v21 = vld [vmem:[%s10259_s3 + $0x128] sm:$0xff]  ;;  %v11805_v9 = vld [vmem:[#allocation21_spill] sm:$0xff]  ;;  %v803_v55 = vpop.permute.xlu0 %802  ;;  %v11807_v27 = vld [vmem:[#allocation208_spill] sm:$0xff] }
 0x52a   :  { %v9692_v7 = vadd.f32 %v3550_v59, %v3226_v8  ;;  %v11804_v3 = vld [vmem:[#allocation178_spill] sm:$0xff]  ;;  %v1298_v29 = vadd.f32 %v11805_v9, %v910_v42  ;;  %v3414_v61 = vpop.permute.xlu1 %3413  ;;  %v3228_v34 = vadd.f32 %v8875_v1, %v2840_v60  ;;  %v2842_v25 = vadd.f32 %v9327_v19, %v2454_v10  ;;  %v11808_v13 = vld [vmem:[#allocation71_spill] sm:$0xff]  ;;  %4222 = vperm.xlu0 %4529, %v3948_v15   ;;  %v11810_v59 = vld [vmem:[#allocation173_spill] sm:$0xff] }
 0x52b   :  { %v2800_v12 = vadd.f32 %v11804_v3, %v2412_v62  ;;  %v11806_v23 = vld [vmem:[#allocation162_spill] sm:$0xff]  ;;  %v2070_v35 = vadd.f32 %v11807_v27, %v1682_v2  ;;  %v1684_v8 = vadd.f32 %v11808_v13, %v1296_v49  ;;  %v3552_v38 = vmul.f32 %v11565_v0, %v3414_v61  ;;  %v11809_v39 = vld [vmem:[#allocation167_spill] sm:$0xff]  ;;  %v11812_v2 = vld [vmem:[#allocation41_spill] sm:$0xff] }
 0x52c   :  { %v2456_v16 = vadd.f32 %v11806_v23, %v2068_v51  ;;  %v912_v17 = vadd.f32 %v803_v55, %v528_v4  ;;  %v530_v62 = vmul.f32 %v11588_v32, %v11809_v39  ;;  %v532_v42 = vmul.f32 %v11588_v32, %v11810_v59  ;;  %v11811_v1 = vld [vmem:[#allocation39_spill] sm:$0xff]  ;;  %4147 = vperm.xlu1 %4530, %v3933_v21   ;;  %v3935_v41 = vld [vmem:[%s10259_s3 + $0x138] sm:$0xff]  ;;  %v11816_v9 = vld [vmem:[#allocation310_spill] sm:$0xff] }
 0x52d   :  { %v1640_v60 = vadd.f32 %v11811_v1, %v1252_v14  ;;  %v2414_v19 = vadd.f32 %v8692_v47, %v2026_v48  ;;  %v3950_v51 = vld [vmem:[%s10259_s3 + $0x1b0] sm:$0xff]  ;;  %v1642_v49 = vadd.f32 %v11812_v2, %v1254_v43  ;;  %v1256_v56 = vadd.f32 %v11813_v63, %v868_v58  ;;  %v11814_v47 = vld [vmem:[#allocation73_spill] sm:$0xff]  ;;  %v813_v3 = vpop.permute.xlu0 %812  ;;  %v11819_v13 = vld [vmem:[#allocation186_spill] sm:$0xff] }
 0x52e   :  { %v9714_v10 = vpop.eup %4555  ;;  %v9718_v4 = vadd.f32 %v3552_v38, %v3228_v34  ;;  %v3188_v31 = vadd.f32 %v9444_v11, %v2800_v12  ;;  %v1686_v48 = vadd.f32 %v11814_v47, %v1298_v29  ;;  %v11815_v14 = vld [vmem:[#allocation133_spill] sm:$0xff]  ;;  %v3422_v54 = vpop.permute.xlu1 %3421  ;;  %v3230_v21 = vadd.f32 %v8891_v20, %v2842_v25  ;;  %v11817_v61 = vld [vmem:[#allocation223_spill] sm:$0xff]  ;;  %4232 = vperm.xlu0 %4529, %v3950_v51   ;;  %v11818_v23 = vld [vmem:[#allocation164_spill] sm:$0xff] }
 0x52f   :  { %v1300_v15 = vadd.f32 %v11815_v14, %v912_v17  ;;  %v2844_v43 = vadd.f32 %v11816_v9, %v2456_v16  ;;  %v2072_v58 = vadd.f32 %v11817_v61, %v1684_v8  ;;  %v3554_v34 = vmul.f32 %v11565_v0, %v3422_v54  ;;  %v11820_v12 = vld [vmem:[#allocation195_spill] sm:$0xff]  ;;  %v11821_v38 = vld [vmem:[#allocation188_spill] sm:$0xff]  ;;  %v11822_v25 = vld [vmem:[#allocation274_spill] sm:$0xff] }
 0x530   :  { %v914_v55 = vadd.f32 %v813_v3, %v530_v62  ;;  %v2458_v27 = vadd.f32 %v11818_v23, %v2070_v35  ;;  %v534_v11 = vmul.f32 %v11588_v32, %v11819_v13  ;;  %v9735_v29 = vmul.f32 %v11588_v32, %v11820_v12  ;;  %4157 = vperm.xlu1 %4530, %v3935_v41   ;;  %v3952_v16 = vld [vmem:[%s10259_s3 + $0x1c0] sm:$0xff]  ;;  %v3937_v1 = vld [vmem:[%s10259_s3 + $0x148] sm:$0xff]  ;;  %v11829_v3 = vld [vmem:[#allocation268_spill] sm:$0xff] }
 0x531   :  { %v2028_v20 = vadd.f32 %v11821_v38, %v1640_v60  ;;  %v2802_v17 = vadd.f32 %v11822_v25, %v2414_v19  ;;  %v11823_v8 = vld [vmem:[#allocation189_spill] sm:$0xff]  ;;  %v11824_v62 = vld [vmem:[#allocation42_spill] sm:$0xff]  ;;  %v9744_v59 = vadd.f32 %v3554_v34, %v3230_v21  ;;  %v11827_v19 = vld [vmem:[#allocation76_spill] sm:$0xff]  ;;  %v3232_v9 = vadd.f32 %v11829_v3, %v2844_v43 }
 0x532   :  { %v2030_v39 = vadd.f32 %v11823_v8, %v1642_v49  ;;  %v1644_v35 = vadd.f32 %v11824_v62, %v1256_v56  ;;  %v11825_v51 = vld [vmem:[#allocation269_spill] sm:$0xff]  ;;  %v1688_v41 = vadd.f32 %v11827_v19, %v1300_v15  ;;  %v11828_v47 = vld [vmem:[#allocation135_spill] sm:$0xff]  ;;  %v3430_v54 = vpop.permute.xlu1 %3429  ;;  %v823_v49 = vpop.permute.xlu0 %822  ;;  %4242 = vperm.xlu0 %4529, %v3952_v16   ;;  %v11830_v61 = vld [vmem:[#allocation314_spill] sm:$0xff] }
 0x533   :  { %v3576_v2 = vadd.f32 %v11825_v51, %v3188_v31  ;;  %v11826_v60 = vld [vmem:[#allocation225_spill] sm:$0xff]  ;;  %v1302_v14 = vadd.f32 %v11828_v47, %v914_v55  ;;  %v3556_v56 = vmul.f32 %v11565_v0, %v3430_v54  ;;  %v916_v21 = vadd.f32 %v823_v49, %v532_v42  ;;  %v11834_v15 = vld [vmem:[#allocation263_spill] sm:$0xff]  ;;  %v11835_v55 = vld [vmem:[#allocation334_spill] sm:$0xff] }
 0x534   :  { %v2074_v63 = vadd.f32 %v11826_v60, %v1686_v48  ;;  %v2846_v34 = vadd.f32 %v11830_v61, %v2458_v27  ;;  %v11831_v23 = vld [vmem:[#allocation165_spill] sm:$0xff]  ;;  %v9764_v25 = vadd.f32 %v11835_v55, %v2802_v17  ;;  %v11836_v43 = vld [vmem:[#allocation136_spill] sm:$0xff]  ;;  %4167 = vperm.xlu1 %4530, %v3937_v1   ;;  %v11837_v27 = vld [vmem:[#allocation190_spill] sm:$0xff] }
 0x535   :  { %v2460_v13 = vadd.f32 %v11831_v23, %v2072_v58  ;;  %v11832_v12 = vld [vmem:[#allocation209_spill] sm:$0xff]  ;;  %v2416_v8 = vadd.f32 %v11836_v43, %v2028_v20  ;;  %v3954_v42 = vld [vmem:[%s10259_s3 + $0x1d0] sm:$0xff]  ;;  %v2032_v16 = vadd.f32 %v11837_v27, %v1644_v35  ;;  %v9772_v51 = vadd.f32 %v3556_v56, %v3232_v9  ;;  %v11844_v35 = vld [vmem:[#allocation246_spill] sm:$0xff] }
 0x536   :  { %v9759_v31 = vmul.f32 %v11588_v32, %v11832_v12  ;;  %v11833_v48 = vld [vmem:[#allocation333_spill] sm:$0xff]  ;;  %v11838_v58 = vld [vmem:[#allocation32_spill] sm:$0xff]  ;;  %v3640_v60 = vmul.f32 0.5, %v3576_v2  ;;  %v11840_v17 = vld [vmem:[#allocation227_spill] sm:$0xff]  ;;  %v3438_v3 = vpop.permute.xlu1 %3437  ;;  %v833_v49 = vpop.permute.xlu0 %832  ;;  %v3234_v12 = vadd.f32 %v11844_v35, %v2846_v34  ;;  %4252 = vperm.xlu0 %4529, %v3954_v42  }
 0x537   :  { %v870_v38 = vadd.f32 %v11834_v15, %v11833_v48  ;;  %v2418_v62 = vadd.f32 %v11838_v58, %v2030_v39  ;;  %11839 = vst [vmem:[#allocation357_spill] sm:$0xff] %v9772_v51  ;;  %v3939_v32 = vld [vmem:[%s10259_s3 + $0x158] sm:$0xff]  ;;  %v2076_v19 = vadd.f32 %v11840_v17, %v1688_v41  ;;  %v3558_v39 = vmul.f32 %v11565_v0, %v3438_v3  ;;  %v11847_v55 = vld [vmem:[#allocation266_spill] sm:$0xff]  ;;  %v11849_v43 = vld [vmem:[#allocation83_spill] sm:$0xff] }
 0x538   :  { %v11841_v47 = vld [vmem:[#allocation77_spill] sm:$0xff]  ;;  %v11843_v61 = vld [vmem:[#allocation168_spill] sm:$0xff]  ;;  %v918_v9 = vadd.f32 %v833_v49, %v534_v11  ;;  %v3513_v41 = vmul.f32 %v11565_v0, %v11847_v55  ;;  %4177 = vperm.xlu1 %4530, %v3939_v32   ;;  %v11851_v34 = vld [vmem:[#allocation278_spill] sm:$0xff]  ;;  %4557 = vtanh.f32 %v3640_v60 }
 0x539   :  { %v1690_v20 = vadd.f32 %v11841_v47, %v1302_v14  ;;  %v11842_v1 = vld [vmem:[#allocation137_spill] sm:$0xff]  ;;  %v2462_v23 = vadd.f32 %v11843_v61, %v2074_v63  ;;  %v11845_v56 = vld [vmem:[#allocation316_spill] sm:$0xff]  ;;  %v11848_v14 = vld [vmem:[#allocation335_spill] sm:$0xff]  ;;  %v2806_v11 = vadd.f32 %v11851_v34, %v2418_v62 }
 0x53a   :  { %v1304_v54 = vadd.f32 %v11842_v1, %v916_v21  ;;  %v2848_v48 = vadd.f32 %v11845_v56, %v2460_v13  ;;  %v11846_v15 = vld [vmem:[#allocation96_spill] sm:$0xff]  ;;  %v872_v21 = vadd.f32 %v11849_v43, %v11848_v14  ;;  %v11850_v27 = vld [vmem:[#allocation277_spill] sm:$0xff]  ;;  %v9795_v13 = vadd.f32 %v3558_v39, %v3234_v12  ;;  %v11855_v3 = vld [vmem:[#allocation82_spill] sm:$0xff]  ;;  %v3446_v32 = vpop.permute.xlu1 %3445  ;;  %v843_v49 = vpop.permute.xlu0 %842 }
 0x53b   :  { %v1258_v2 = vadd.f32 %v11846_v15, %v870_v38  ;;  %v2804_v58 = vadd.f32 %v11850_v27, %v2416_v8  ;;  %v3956_v63 = vld [vmem:[%s10259_s3 + $0x1e0] sm:$0xff]  ;;  %v11852_v42 = vld [vmem:[#allocation140_spill] sm:$0xff]  ;;  %v3941_v38 = vld [vmem:[%s10259_s3 + $0x168] sm:$0xff]  ;;  %v3560_v39 = vmul.f32 %v11565_v0, %v3446_v32  ;;  %v920_v14 = vadd.f32 %v843_v49, %v9735_v29 }
 0x53c   :  { %v2420_v17 = vadd.f32 %v11852_v42, %v2032_v16  ;;  %11853 = vst [vmem:[#allocation346_spill] sm:$0xff] %v9795_v13  ;;  %v11854_v47 = vld [vmem:[#allocation229_spill] sm:$0xff]  ;;  %v1692_v8 = vadd.f32 %v11855_v3, %v1304_v54  ;;  %v11856_v61 = vld [vmem:[#allocation319_spill] sm:$0xff]  ;;  %v11859_v16 = vld [vmem:[#allocation118_spill] sm:$0xff]  ;;  %4262 = vperm.xlu0 %4529, %v3956_v63   ;;  %4187 = vperm.xlu1 %4530, %v3941_v38  }
 0x53d   :  { %v2078_v1 = vadd.f32 %v11854_v47, %v1690_v20  ;;  %v2850_v35 = vadd.f32 %v11856_v61, %v2462_v23  ;;  %v11857_v56 = vld [vmem:[#allocation169_spill] sm:$0xff]  ;;  %v11858_v62 = vld [vmem:[#allocation23_spill] sm:$0xff]  ;;  %v3236_v12 = vadd.f32 %v11859_v16, %v2848_v48  ;;  %v11863_v42 = vld [vmem:[#allocation226_spill] sm:$0xff] }
 0x53e   :  { %v2464_v15 = vadd.f32 %v11857_v56, %v2076_v19  ;;  %v1306_v55 = vadd.f32 %v11858_v62, %v918_v9  ;;  %v11860_v60 = vld [vmem:[#allocation43_spill] sm:$0xff]  ;;  %v11862_v54 = vld [vmem:[#allocation105_spill] sm:$0xff]  ;;  %v3192_v47 = vadd.f32 %v11863_v42, %v2804_v58  ;;  %v11864_v23 = vld [vmem:[#allocation248_spill] sm:$0xff]  ;;  %v3454_v58 = vpop.permute.xlu1 %3453  ;;  %v853_v61 = vpop.permute.xlu0 %852 }
 0x53f   :  { %v1646_v43 = vadd.f32 %v11860_v60, %v1258_v2  ;;  %v11861_v20 = vld [vmem:[#allocation331_spill] sm:$0xff]  ;;  %v1260_v34 = vadd.f32 %v11862_v54, %v872_v21  ;;  %v3514_v9 = vmul.f32 %v11565_v0, %v11864_v23  ;;  %v11865_v48 = vld [vmem:[#allocation241_spill] sm:$0xff]  ;;  %v9819_v32 = vadd.f32 %v3560_v39, %v3236_v12  ;;  %v11869_v38 = vld [vmem:[#allocation122_spill] sm:$0xff] }
 0x540   :  { %v3577_v27 = vadd.f32 %v3513_v41, %v11861_v20  ;;  %v3958_v19 = vld [vmem:[%s10259_s3 + $0x1f0] sm:$0xff]  ;;  %v3194_v3 = vadd.f32 %v11865_v48, %v2806_v11  ;;  %v3943_v2 = vld [vmem:[%s10259_s3 + $0x178] sm:$0xff]  ;;  %v3238_v49 = vadd.f32 %v11869_v38, %v2850_v35  ;;  %v11870_v56 = vld [vmem:[#allocation322_spill] sm:$0xff]  ;;  %v3562_v12 = vmul.f32 %v11565_v0, %v3454_v58 }
 0x541   :  { %v11866_v29 = vld [vmem:[#allocation279_spill] sm:$0xff]  ;;  %11867 = vst [vmem:[#allocation359_spill] sm:$0xff] %v9819_v32  ;;  %v11868_v41 = vld [vmem:[#allocation220_spill] sm:$0xff]  ;;  %v2852_v62 = vadd.f32 %v11870_v56, %v2464_v15  ;;  %v11871_v16 = vld [vmem:[#allocation170_spill] sm:$0xff]  ;;  %v922_v39 = vadd.f32 %v853_v61, %v9759_v31  ;;  %4272 = vperm.xlu0 %4529, %v3958_v19   ;;  %4197 = vperm.xlu1 %4530, %v3943_v2  }
 0x542   :  { %v2808_v63 = vadd.f32 %v11866_v29, %v2420_v17  ;;  %v2080_v21 = vadd.f32 %v11868_v41, %v1692_v8  ;;  %v2466_v60 = vadd.f32 %v11871_v16, %v2078_v1  ;;  %v11872_v20 = vld [vmem:[#allocation84_spill] sm:$0xff]  ;;  %v11873_v54 = vld [vmem:[#allocation34_spill] sm:$0xff]  ;;  %v11874_v42 = vld [vmem:[#allocation191_spill] sm:$0xff]  ;;  %v3641_v8 = vmul.f32 0.5, %v3577_v27  ;;  %v3462_v19 = vpop.permute.xlu1 %3461 }
 0x543   :  { %v1694_v11 = vadd.f32 %v11872_v20, %v1306_v55  ;;  %v1308_v17 = vadd.f32 %v11873_v54, %v920_v14  ;;  %v2034_v23 = vadd.f32 %v11874_v42, %v1646_v43  ;;  %v11875_v48 = vld [vmem:[#allocation44_spill] sm:$0xff]  ;;  %v11876_v35 = vld [vmem:[#allocation349_spill] sm:$0xff]  ;;  %v3578_v1 = vadd.f32 %v3514_v9, %v9764_v25  ;;  %v11878_v55 = vld [vmem:[#allocation86_spill] sm:$0xff]  ;;  %v9848_v20 = vpop.permute.xlu0 %3967 }
 0x544   :  { %v1648_v29 = vadd.f32 %v11875_v48, %v1260_v34  ;;  %v11877_v41 = vld [vmem:[#allocation80_spill] sm:$0xff]  ;;  %v4478_v15 = vld [vmem:[#allocation2] sm:$0x1]  ;;  %v3516_v14 = vmul.f32 %v11565_v0, %v11878_v55  ;;  %v9840_v16 = vadd.f32 %v3562_v12, %v3238_v49  ;;  %v3945_v31 = vld [vmem:[%s10259_s3 + $0x188] sm:$0xff]  ;;  %v3564_v55 = vmul.f32 %v11565_v0, %v3462_v19 }
 0x545   :  { %v874_v38 = vadd.f32 %v11877_v41, %v11876_v35  ;;  %v11879_v56 = vld [vmem:[#allocation232_spill] sm:$0xff]  ;;  %v11883_v61 = vld [vmem:[#allocation250_spill] sm:$0xff]  ;;  %v11886_v48 = vld [vmem:[#allocation235_spill] sm:$0xff]  ;;  %4481 = vperm.xlu0 %4529, %v4478_v15   ;;  %4207 = vperm.xlu1 %4530, %v3945_v31   ;;  %4559 = vtanh.f32 %v3641_v8 }
 0x546   :  { %v3196_v58 = vadd.f32 %v11879_v56, %v2808_v63  ;;  %11880 = vst [vmem:[#allocation348_spill] sm:$0xff] %v9840_v16  ;;  %v11881_v43 = vld [vmem:[#allocation336_spill] sm:$0xff]  ;;  %v3240_v2 = vadd.f32 %v11883_v61, %v2852_v62  ;;  %v2082_v63 = vadd.f32 %v11886_v48, %v1694_v11  ;;  %v11887_v49 = vld [vmem:[#allocation93_spill] sm:$0xff]  ;;  %v11891_v62 = vld [vmem:[#allocation139_spill] sm:$0xff] }
 0x547   :  { %v11882_v27 = vld [vmem:[#allocation252_spill] sm:$0xff]  ;;  %v1696_v12 = vadd.f32 %v11887_v49, %v1308_v17  ;;  %v11888_v35 = vld [vmem:[#allocation25_spill] sm:$0xff]  ;;  %v3518_v61 = vmul.f32 %v11565_v0, %v11891_v62  ;;  %v11900_v31 = vld [vmem:[#allocation239_spill] sm:$0xff] }
 0x548   :  { %v876_v34 = vadd.f32 %v11882_v27, %v11881_v43  ;;  %v11884_v25 = vld [vmem:[#allocation324_spill] sm:$0xff]  ;;  %v1310_v41 = vadd.f32 %v11888_v35, %v922_v39  ;;  %v11892_v32 = vld [vmem:[#allocation33_spill] sm:$0xff]  ;;  %v11901_v35 = vld [vmem:[#allocation95_spill] sm:$0xff] }
 0x549   :  { %v2854_v9 = vadd.f32 %v11884_v25, %v2466_v60  ;;  %v11885_v54 = vld [vmem:[#allocation172_spill] sm:$0xff]  ;;  %v2422_v60 = vadd.f32 %v11892_v32, %v2034_v23  ;;  %v3580_v25 = vadd.f32 %v3516_v14, %v3192_v47  ;;  %v11893_v11 = vld [vmem:[#allocation141_spill] sm:$0xff]  ;;  %v3470_v32 = vpop.permute.xlu1 %3469  ;;  %v9874_v47 = vpop.permute.xlu0 %3982  ;;  %v11899_v14 = vld [vmem:[#allocation327_spill] sm:$0xff] }
 0x54a   :  { %v2468_v42 = vadd.f32 %v11885_v54, %v2080_v21  ;;  %v11889_v56 = vld [vmem:[#allocation192_spill] sm:$0xff]  ;;  %v3642_v21 = vmul.f32 0.5, %v3578_v1  ;;  %v878_v17 = vadd.f32 %v11893_v11, %v9481_v52  ;;  %v9863_v54 = vadd.f32 %v3564_v55, %v3240_v2  ;;  %v11896_v19 = vld [vmem:[#allocation337_spill] sm:$0xff]  ;;  %v11906_v13 = vld [vmem:[#allocation275_spill] sm:$0xff] }
 0x54b   :  { %v2036_v43 = vadd.f32 %v11889_v56, %v1648_v29  ;;  %v11890_v27 = vld [vmem:[#allocation100_spill] sm:$0xff]  ;;  %v9868_v29 = vpop.eup %4557  ;;  %v2084_v2 = vadd.f32 %v11900_v31, %v1696_v12  ;;  %v1698_v55 = vadd.f32 %v11901_v35, %v1310_v41  ;;  %v3566_v56 = vmul.f32 %v11565_v0, %v3470_v32  ;;  %v3949_v41 = vld [vmem:[%s10259_s3 + $0x1a8] sm:$0xff] }
 0x54c   :  { %v1262_v16 = vadd.f32 %v11890_v27, %v874_v38  ;;  %11894 = vst [vmem:[#allocation361_spill] sm:$0xff] %v9863_v54  ;;  %v3947_v39 = vld [vmem:[%s10259_s3 + $0x198] sm:$0xff]  ;;  %v11895_v38 = vld [vmem:[#allocation107_spill] sm:$0xff]  ;;  %v2856_v52 = vadd.f32 %v11899_v14, %v2468_v42  ;;  %v11902_v27 = vld [vmem:[#allocation174_spill] sm:$0xff]  ;;  %v3520_v42 = vmul.f32 %v11565_v0, %v11906_v13  ;;  %4561 = vtanh.f32 %v3642_v21 }
 0x54d   :  { %v1264_v15 = vadd.f32 %v11895_v38, %v876_v34  ;;  %v11897_v48 = vld [vmem:[#allocation276_spill] sm:$0xff]  ;;  %v2470_v62 = vadd.f32 %v11902_v27, %v2082_v63  ;;  %v11903_v34 = vld [vmem:[#allocation46_spill] sm:$0xff]  ;;  %v3582_v38 = vadd.f32 %v3518_v61, %v3194_v3  ;;  %4217 = vperm.xlu1 %4530, %v3947_v39   ;;  %v3478_v61 = vpop.permute.xlu1 %3477  ;;  %v11913_v31 = vld [vmem:[#allocation175_spill] sm:$0xff] }
 0x54e   :  { %v880_v49 = vadd.f32 %v11897_v48, %v11896_v19  ;;  %v11898_v23 = vld [vmem:[#allocation272_spill] sm:$0xff]  ;;  %v1650_v11 = vadd.f32 %v11903_v34, %v1262_v16  ;;  %v11904_v19 = vld [vmem:[#allocation35_spill] sm:$0xff]  ;;  %v3568_v13 = vmul.f32 %v11565_v0, %v3478_v61  ;;  %v2472_v35 = vadd.f32 %v11913_v31, %v2084_v2  ;;  %v11926_v31 = vld [vmem:[#allocation177_spill] sm:$0xff] }
 0x54f   :  { %v3242_v1 = vadd.f32 %v11898_v23, %v2854_v9  ;;  %v2424_v48 = vadd.f32 %v11904_v19, %v2036_v43  ;;  %v3644_v9 = vmul.f32 0.5, %v3580_v25  ;;  %v11905_v23 = vld [vmem:[#allocation109_spill] sm:$0xff]  ;;  %v11908_v8 = vld [vmem:[#allocation48_spill] sm:$0xff]  ;;  %v11910_v43 = vld [vmem:[#allocation131_spill] sm:$0xff]  ;;  %v9894_v25 = vpop.permute.xlu0 %3992  ;;  %v3646_v21 = vmul.f32 0.5, %v3582_v38 }
 0x550   :  { %v1266_v54 = vadd.f32 %v11905_v23, %v878_v17  ;;  %v1652_v63 = vadd.f32 %v11908_v8, %v1264_v15  ;;  %v11909_v16 = vld [vmem:[#allocation104_spill] sm:$0xff]  ;;  %v3244_v39 = vadd.f32 %v11910_v43, %v2856_v52  ;;  %v11916_v19 = vld [vmem:[#allocation338_spill] sm:$0xff]  ;;  %v11918_v52 = vld [vmem:[#allocation49_spill] sm:$0xff] }
 0x551   :  { %v9886_v12 = vadd.f32 %v3566_v56, %v3242_v1  ;;  %v1268_v3 = vadd.f32 %v11909_v16, %v880_v49  ;;  %v11911_v17 = vld [vmem:[#allocation228_spill] sm:$0xff]  ;;  %v11912_v1 = vld [vmem:[#allocation345_spill] sm:$0xff]  ;;  %v11914_v56 = vld [vmem:[#allocation194_spill] sm:$0xff]  ;;  %4227 = vperm.xlu1 %4530, %v3949_v41   ;;  %4563 = vtanh.f32 %v3644_v9  ;;  %v3584_v16 = vadd.f32 %v3520_v42, %v3196_v58  ;;  %v3486_v41 = vpop.permute.xlu1 %3485 }
 0x552   :  { %v2086_v32 = vadd.f32 %v11911_v17, %v1698_v55  ;;  %v2858_v14 = vadd.f32 %v11912_v1, %v2470_v62  ;;  %v2038_v27 = vadd.f32 %v11914_v56, %v1650_v11  ;;  %v11915_v34 = vld [vmem:[#allocation280_spill] sm:$0xff]  ;;  %v11917_v49 = vld [vmem:[#allocation283_spill] sm:$0xff]  ;;  %v1654_v8 = vadd.f32 %v11918_v52, %v1266_v54  ;;  %v11921_v11 = vld [vmem:[#allocation50_spill] sm:$0xff] }
 0x553   :  { %11907 = vst [vmem:[#allocation350_spill] sm:$0xff] %v9886_v12  ;;  %v2810_v15 = vadd.f32 %v11915_v34, %v2422_v60  ;;  %v882_v23 = vadd.f32 %v11917_v49, %v11916_v19  ;;  %v9905_v55 = vadd.f32 %v3568_v13, %v3244_v39  ;;  %v3951_v62 = vld [vmem:[%s10259_s3 + $0x1b8] sm:$0xff]  ;;  %v11920_v2 = vld [vmem:[#allocation203_spill] sm:$0xff]  ;;  %v1656_v38 = vadd.f32 %v11921_v11, %v1268_v3  ;;  %v11922_v43 = vld [vmem:[#allocation282_spill] sm:$0xff]  ;;  %v9915_v9 = vpop.permute.xlu0 %4002 }
 0x554   :  { %v2040_v61 = vadd.f32 %v11920_v2, %v1652_v63  ;;  %v3522_v60 = vmul.f32 %v11565_v0, %v11922_v43  ;;  %v11923_v17 = vld [vmem:[#allocation281_spill] sm:$0xff]  ;;  %v11924_v54 = vld [vmem:[#allocation258_spill] sm:$0xff]  ;;  %v3570_v42 = vmul.f32 %v11565_v0, %v3486_v41  ;;  %v11925_v39 = vld [vmem:[#allocation328_spill] sm:$0xff]  ;;  %v2474_v56 = vadd.f32 %v11926_v31, %v2086_v32 }
 0x555   :  { %11919 = vst [vmem:[#allocation352_spill] sm:$0xff] %v9905_v55  ;;  %v2812_v1 = vadd.f32 %v11923_v17, %v2424_v48  ;;  %v3246_v58 = vadd.f32 %v11924_v54, %v2858_v14  ;;  %v2860_v13 = vadd.f32 %v11925_v39, %v2472_v35  ;;  %4565 = vtanh.f32 %v3646_v21  ;;  %v11927_v63 = vld [vmem:[#allocation243_spill] sm:$0xff]  ;;  %v11929_v49 = vld [vmem:[#allocation12_spill] sm:$0xff]  ;;  %4237 = vperm.xlu1 %4530, %v3951_v62   ;;  %v11931_v43 = vld [vmem:[#allocation289_spill] sm:$0xff]  ;;  %v3494_v62 = vpop.permute.xlu1 %3493 }
 0x556   :  { %v3198_v34 = vadd.f32 %v11927_v63, %v2810_v15  ;;  %v11928_v3 = vld [vmem:[#allocation111_spill] sm:$0xff]  ;;  %v2426_v52 = vadd.f32 %v11929_v49, %v2038_v27  ;;  %v11930_v48 = vld [vmem:[#allocation196_spill] sm:$0xff]  ;;  %v3648_v11 = vmul.f32 0.5, %v3584_v16  ;;  %v3524_v14 = vmul.f32 %v11565_v0, %v11931_v43  ;;  %v11933_v35 = vld [vmem:[#allocation205_spill] sm:$0xff] }
 0x557   :  { %v1270_v19 = vadd.f32 %v11928_v3, %v882_v23  ;;  %v2042_v2 = vadd.f32 %v11930_v48, %v1654_v8  ;;  %v9927_v17 = vadd.f32 %v3570_v42, %v3246_v58  ;;  %v3953_v32 = vld [vmem:[%s10259_s3 + $0x1c8] sm:$0xff]  ;;  %v2044_v21 = vadd.f32 %v11933_v35, %v1656_v38  ;;  %v11934_v41 = vld [vmem:[#allocation245_spill] sm:$0xff]  ;;  %v9935_v39 = vpop.permute.xlu0 %4012  ;;  %v11938_v63 = vld [vmem:[#allocation264_spill] sm:$0xff] }
 0x558   :  { %v3586_v15 = vadd.f32 %v3522_v60, %v3198_v34  ;;  %v3200_v23 = vadd.f32 %v11934_v41, %v2812_v1  ;;  %v11935_v54 = vld [vmem:[#allocation463_spill] sm:$0xff]  ;;  %v11936_v8 = vld [vmem:[#allocation353_spill] sm:$0xff]  ;;  %v11937_v16 = vld [vmem:[#allocation290_spill] sm:$0xff]  ;;  %v3248_v58 = vadd.f32 %v11938_v63, %v2860_v13  ;;  %v3572_v42 = vmul.f32 %v11565_v0, %v3494_v62 }
 0x559   :  { %11932 = vst [vmem:[#allocation363_spill] sm:$0xff] %v9927_v17  ;;  %v2428_v27 = vadd.f32 %v11935_v54, %v2040_v61  ;;  %v884_v31 = vadd.f32 %v11937_v16, %v11936_v8  ;;  %v11939_v3 = vld [vmem:[#allocation330_spill] sm:$0xff]  ;;  %v11940_v48 = vld [vmem:[#allocation51_spill] sm:$0xff]  ;;  %v11941_v38 = vld [vmem:[#allocation284_spill] sm:$0xff]  ;;  %4247 = vperm.xlu1 %4530, %v3953_v32   ;;  %v3768_v1 = vmul.f32 0.5, %v9868_v29  ;;  %4567 = vtanh.f32 %v9629_v53  ;;  %v4560_v61 = vpop.eup %4559  ;;  %v3502_v53 = vpop.permute.xlu1 %3501 }
 0x55a   :  { %v2862_v49 = vadd.f32 %v11939_v3, %v2474_v56  ;;  %v1658_v43 = vadd.f32 %v11940_v48, %v1270_v19  ;;  %v2814_v60 = vadd.f32 %v11941_v38, %v2426_v52  ;;  %4569 = vtanh.f32 %v3648_v11  ;;  %v11942_v35 = vld [vmem:[#allocation78_spill] sm:$0xff]  ;;  %v3955_v13 = vld [vmem:[%s10259_s3 + $0x1d8] sm:$0xff]  ;;  %v4562_v11 = vpop.eup %4561  ;;  %v11949_v63 = vld [vmem:[#allocation299_spill] sm:$0xff] }
 0x55b   :  { %v3588_v34 = vadd.f32 %v3524_v14, %v3200_v23  ;;  %v2430_v41 = vadd.f32 %v11942_v35, %v2042_v2  ;;  %v9947_v54 = vadd.f32 %v3572_v42, %v3248_v58  ;;  %v3650_v56 = vmul.f32 0.5, %v3586_v15  ;;  %v11944_v19 = vld [vmem:[#allocation298_spill] sm:$0xff]  ;;  %v11945_v32 = vld [vmem:[#allocation285_spill] sm:$0xff]  ;;  %v11946_v29 = vld [vmem:[#allocation144_spill] sm:$0xff]  ;;  %v9956_v16 = vpop.permute.xlu0 %4022 }
 0x55c   :  { %v3526_v52 = vmul.f32 %v11565_v0, %v11944_v19  ;;  %v2816_v62 = vadd.f32 %v11945_v32, %v2428_v27  ;;  %v2432_v8 = vadd.f32 %v11946_v29, %v2044_v21  ;;  %v11947_v14 = vld [vmem:[#allocation113_spill] sm:$0xff]  ;;  %v11948_v23 = vld [vmem:[#allocation339_spill] sm:$0xff]  ;;  %v3574_v15 = vmul.f32 %v11565_v0, %v3502_v53  ;;  %v11951_v48 = vld [vmem:[#allocation6_spill] sm:$0xff] }
 0x55d   :  { %11943 = vst [vmem:[#allocation365_spill] sm:$0xff] %v9947_v54  ;;  %v1272_v2 = vadd.f32 %v11947_v14, %v884_v31  ;;  %v886_v58 = vadd.f32 %v11949_v63, %v11948_v23  ;;  %v11950_v42 = vld [vmem:[#allocation27_spill] sm:$0xff]  ;;  %v2046_v38 = vadd.f32 %v11951_v48, %v1658_v43  ;;  %v11952_v35 = vld [vmem:[#allocation234_spill] sm:$0xff]  ;;  %v3769_v27 = vmul.f32 0.5, %v4560_v61  ;;  %4257 = vperm.xlu1 %4530, %v3955_v13   ;;  %v11953_v29 = vld [vmem:[#allocation304_spill] sm:$0xff]  ;;  %v3963_v48 = vpop.permute.xlu1 %3962 }
 0x55e   :  { %v3250_v3 = vadd.f32 %v11950_v42, %v2862_v49  ;;  %v3202_v19 = vadd.f32 %v11952_v35, %v2814_v60  ;;  %v3832_v21 = vadd.f32 0.5, %v3768_v1  ;;  %v3652_v32 = vmul.f32 0.5, %v3588_v34  ;;  %v11954_v17 = vld [vmem:[#allocation286_spill] sm:$0xff]  ;;  %v4564_v53 = vpop.eup %4563  ;;  %v11956_v23 = vld [vmem:[#allocation247_spill] sm:$0xff]  ;;  %v11957_v34 = vld [vmem:[#allocation53_spill] sm:$0xff] }
 0x55f   :  { %v3528_v54 = vmul.f32 %v11565_v0, %v11953_v29  ;;  %v2818_v31 = vadd.f32 %v11954_v17, %v2430_v41  ;;  %v3957_v49 = vld [vmem:[%s10259_s3 + $0x1e8] sm:$0xff]  ;;  %4571 = vtanh.f32 %v3650_v56  ;;  %v3204_v60 = vadd.f32 %v11956_v23, %v2816_v62  ;;  %v9974_v61 = vpop.permute.xlu0 %4032  ;;  %v11959_v17 = vld [vmem:[#allocation305_spill] sm:$0xff] }
 0x560   :  { %v9968_v14 = vadd.f32 %v3574_v15, %v3250_v3  ;;  %v3590_v43 = vadd.f32 %v3526_v52, %v3202_v19  ;;  %v3770_v1 = vmul.f32 0.5, %v4562_v11  ;;  %v1660_v13 = vadd.f32 %v11957_v34, %v1272_v2  ;;  %v11958_v63 = vld [vmem:[#allocation106_spill] sm:$0xff]  ;;  %v11960_v3 = vld [vmem:[#allocation287_spill] sm:$0xff] }
 0x561   :  { %v1274_v42 = vadd.f32 %v11958_v63, %v886_v58  ;;  %v888_v41 = vadd.f32 %v11959_v17, %v9525_v18  ;;  %v2820_v15 = vadd.f32 %v11960_v3, %v2432_v8  ;;  %v11961_v35 = vld [vmem:[#allocation146_spill] sm:$0xff]  ;;  %v3833_v56 = vadd.f32 0.5, %v3769_v27  ;;  %4267 = vperm.xlu1 %4530, %v3957_v49   ;;  %v3959_v58 = vld [vmem:[%s10259_s3 + $0x1f8] sm:$0xff]  ;;  %v11963_v34 = vld [vmem:[#allocation311_spill] sm:$0xff]  ;;  %v3973_v3 = vpop.permute.xlu1 %3972  ;;  %s4783_s3 = smov [#allocation3]  }
 0x562   :  { %11955 = vst [vmem:[#allocation354_spill] sm:$0xff] %v9968_v14  ;;  %v2434_v29 = vadd.f32 %v11961_v35, %v2046_v38  ;;  %v4280_v52 = vmul.f32 %v3963_v48, %v3832_v21  ;;  %v4566_v62 = vpop.eup %4565  ;;  %4573 = vtanh.f32 %v3652_v32  ;;  %v3592_v19 = vadd.f32 %v3528_v54, %v3204_v60  ;;  %v11962_v11 = vld [vmem:[#allocation238_spill] sm:$0xff]  ;;  %v11964_v21 = vld [vmem:[#allocation69_spill] sm:$0xff]  ;;  %v11965_v32 = vld [vmem:[#allocation55_spill] sm:$0xff]  ;;  %s4497_s2 = sshll.u32 %s4783_s3, 4  ;;  %s4498_s2 = int_to_ptr.vmem [resolvable:$true] %s4497_s2 }
 0x563   :  { %v3206_v23 = vadd.f32 %v11962_v11, %v2818_v31  ;;  %v3772_v2 = vmul.f32 0.5, %v4564_v53  ;;  %v3654_v18 = vmul.f32 0.5, %v3590_v43  ;;  %v3530_v8 = vmul.f32 %v11565_v0, %v11963_v34  ;;  %v9989_v63 = vpop.permute.xlu0 %4042  ;;  %v11966_v60 = vld [vmem:[#allocation115_spill] sm:$0xff]  ;;  %v11967_v53 = vld [vmem:[#allocation240_spill] sm:$0xff]  ;;  %s4753_s8 = scalar_lea.vmem %s4498_s2, 16  ;;  %s4757_s1 = scalar_lea.vmem %s4498_s2, 32 }
 0x564   :  { %v4281_v38 = vmul.f32 %v9848_v20, %v3833_v56  ;;  %v3834_v27 = vadd.f32 0.5, %v3770_v1  ;;  %v2048_v49 = vadd.f32 %v11964_v21, %v1660_v13  ;;  %v1662_v54 = vadd.f32 %v11965_v32, %v1274_v42  ;;  %v11968_v48 = vld [vmem:[#allocation343_spill] sm:$0xff]  ;;  %v11969_v35 = vld [vmem:[#allocation312_spill] sm:$0xff]  ;;  %v11971_v13 = vld [vmem:[#allocation325_spill] sm:$0xff]  ;;  %p4754_p0 = scmp.ne.s32.totalorder %s4498_s2, %s4753_s8  ;;  %p4758_p1 = scmp.lt.s32.totalorder %s4498_s2, %s4498_s2 }
 0x565   :  { %v1276_v31 = vadd.f32 %v11966_v60, %v888_v41  ;;  %v3208_v17 = vadd.f32 %v11967_v53, %v2820_v15  ;;  %v890_v43 = vadd.f32 %v11969_v35, %v11968_v48  ;;  %v11970_v11 = vld [vmem:[#allocation288_spill] sm:$0xff]  ;;  %v4345_v34 = vsel %vm4344_vm0, %v4280_v52, 0.0  ;;  %4277 = vperm.xlu1 %4530, %v3959_v58   ;;  %v11972_v52 = vld [vmem:[#allocation7_spill] sm:$0xff]  ;;  %p4759_p2 = scmp.lt.s32.totalorder %s4757_s1, %s4753_s8 }
 0x566   :  { %v2822_v14 = vadd.f32 %v11970_v11, %v2434_v29  ;;  %v4282_v20 = vmul.f32 %v3973_v3, %v3834_v27  ;;  %v9999_v56 = vpop.eup %4567  ;;  %v3656_v1 = vmul.f32 0.5, %v3592_v19  ;;  %v3532_v42 = vmul.f32 %v11565_v0, %v11971_v13  ;;  %v11973_v58 = vld [vmem:[#allocation56_spill] sm:$0xff]  ;;  %v11974_v48 = vld [vmem:[#allocation147_spill] sm:$0xff]  ;;  %v3978_v11 = vpop.permute.xlu1 %3977  ;;  %v11975_v13 = vld [vmem:[#allocation110_spill] sm:$0xff] }
 0x567   :  { %v3836_v21 = vadd.f32 0.5, %v3772_v2  ;;  %v3774_v41 = vmul.f32 0.5, %v4566_v62  ;;  %v4570_v32 = vpop.eup %4569  ;;  %4575 = vtanh.f32 %v3654_v18  ;;  %v3594_v15 = vadd.f32 %v3530_v8, %v3206_v23  ;;  %v10005_v29 = vpop.permute.xlu0 %4052  ;;  %v11976_v62 = vld [vmem:[#allocation249_spill] sm:$0xff]  ;;  %v11977_v18 = vld [vmem:[#allocation355_spill] sm:$0xff]  ;;  %p4760_p3 = por %p4759_p2, %p4758_p1 }
 0x568   :  { %v4346_v60 = vsel %vm4344_vm0, %v4281_v38, 0.0  ;;  %v4348_v53 = vsel %vm4344_vm0, %v4282_v20, 0.0  ;;  %v2050_v27 = vadd.f32 %v11972_v52, %v1662_v54  ;;  %v1664_v3 = vadd.f32 %v11973_v58, %v1276_v31  ;;  %v11978_v54 = vld [vmem:[#allocation347_spill] sm:$0xff]  ;;  %v11980_v58 = vld [vmem:[#allocation292_spill] sm:$0xff] }
 0x569   :  { %v2436_v19 = vadd.f32 %v11974_v48, %v2048_v49  ;;  %v4347_v35 = vadd.f32 %v4346_v60, %v4345_v34  ;;  %v1278_v2 = vadd.f32 %v11975_v13, %v890_v43  ;;  %v3210_v55 = vadd.f32 %v11976_v62, %v2822_v14  ;;  %v11979_v60 = vld [vmem:[#allocation197_spill] sm:$0xff]  ;;  %v11984_v13 = vld [vmem:[#allocation351_spill] sm:$0xff]  ;;  %p4761_p4 = pnand %p4760_p3, %p4754_p0 }
 0x56a   :  { %v4284_v23 = vmul.f32 %v9874_v47, %v3836_v21  ;;  %v4283_v8 = vmul.f32 %v3978_v11, %v11977_v18  ;;  %4577 = vtanh.f32 %v3656_v1  ;;  %v3596_v38 = vadd.f32 %v3532_v42, %v3208_v17  ;;  %v11981_v21 = vld [vmem:[#allocation149_spill] sm:$0xff]  ;;  %v3988_v17 = vpop.permute.xlu1 %3987 }
 0x56b   :  { %v3776_v20 = vmul.f32 0.5, %v4570_v32  ;;  %v4349_v12 = vadd.f32 %v4348_v53, %v4347_v35  ;;  %v3658_v51 = vmul.f32 0.5, %v3594_v15  ;;  %v3534_v31 = vmul.f32 %v11565_v0, %v11978_v54  ;;  %v10017_v34 = vpop.permute.xlu0 %4062  ;;  %v11982_v42 = vld [vmem:[#allocation57_spill] sm:$0xff] }
 0x56c   :  { %v3838_v52 = vadd.f32 0.5, %v3774_v41  ;;  %v4350_v49 = vsel %vm4344_vm0, %v4283_v8, 0.0  ;;  %v4572_v43 = vpop.eup %4571  ;;  %v2052_v14 = vadd.f32 %v11979_v60, %v1664_v3  ;;  %v2824_v47 = vadd.f32 %v11980_v58, %v2436_v19  ;;  %v11983_v41 = vld [vmem:[#allocation341_spill] sm:$0xff] }
 0x56d   :  { %v2438_v48 = vadd.f32 %v11981_v21, %v2050_v27  ;;  %v4351_v1 = vadd.f32 %v4350_v49, %v4349_v12  ;;  %v1666_v32 = vadd.f32 %v11982_v42, %v1278_v2  ;;  %v4352_v15 = vsel %vm4344_vm0, %v4284_v23, 0.0  ;;  %v11985_v2 = vld [vmem:[#allocation254_spill] sm:$0xff]  ;;  %v11988_v21 = vld [vmem:[#allocation8_spill] sm:$0xff] }
 0x56e   :  { %v4286_v53 = vmul.f32 %v9894_v25, %v3838_v52  ;;  %v4285_v35 = vmul.f32 %v3988_v17, %v11983_v41  ;;  %v3660_v11 = vmul.f32 0.5, %v3596_v38  ;;  %v3536_v62 = vmul.f32 %v11565_v0, %v11984_v13  ;;  %v11986_v49 = vld [vmem:[#allocation294_spill] sm:$0xff]  ;;  %v3998_v58 = vpop.permute.xlu1 %3997 }
 0x56f   :  { %v3840_v18 = vadd.f32 0.5, %v3776_v20  ;;  %v4353_v3 = vadd.f32 %v4352_v15, %v4351_v1  ;;  %v4574_v8 = vpop.eup %4573  ;;  %4579 = vtanh.f32 %v3658_v51  ;;  %v3598_v19 = vadd.f32 %v3534_v31, %v3210_v55  ;;  %v10029_v54 = vpop.permute.xlu0 %4072  ;;  %v11987_v52 = vld [vmem:[#allocation150_spill] sm:$0xff] }
 0x570   :  { %v3778_v27 = vmul.f32 0.5, %v4572_v43  ;;  %v4354_v12 = vsel %vm4344_vm0, %v4285_v35, 0.0  ;;  %v3212_v23 = vadd.f32 %v11985_v2, %v2824_v47  ;;  %v2826_v25 = vadd.f32 %v11986_v49, %v2438_v48  ;;  %v11989_v55 = vld [vmem:[#allocation342_spill] sm:$0xff]  ;;  %v11990_v47 = vld [vmem:[#allocation340_spill] sm:$0xff] }
 0x571   :  { %v2440_v60 = vadd.f32 %v11987_v52, %v2052_v14  ;;  %v4355_v38 = vadd.f32 %v4354_v12, %v4353_v3  ;;  %v2054_v17 = vadd.f32 %v11988_v21, %v1666_v32  ;;  %v4356_v20 = vsel %vm4344_vm0, %v4286_v53, 0.0  ;;  %v11994_v49 = vld [vmem:[#allocation344_spill] sm:$0xff] }
 0x572   :  { %v4288_v51 = vmul.f32 %v9915_v9, %v3840_v18  ;;  %v4287_v31 = vmul.f32 %v3998_v58, %v11989_v55  ;;  %4581 = vtanh.f32 %v3660_v11  ;;  %v3600_v43 = vadd.f32 %v3536_v62, %v3212_v23  ;;  %v11991_v9 = vld [vmem:[#allocation242_spill] sm:$0xff]  ;;  %v11992_v18 = vld [vmem:[#allocation296_spill] sm:$0xff]  ;;  %v4008_v3 = vpop.permute.xlu1 %4007  ;;  %v11997_v55 = vld [vmem:[#allocation257_spill] sm:$0xff] }
 0x573   :  { %v3780_v1 = vmul.f32 0.5, %v4574_v8  ;;  %v4357_v42 = vadd.f32 %v4356_v20, %v4355_v38  ;;  %v3662_v15 = vmul.f32 0.5, %v3598_v19  ;;  %v3538_v48 = vmul.f32 %v11565_v0, %v11990_v47  ;;  %v10041_v35 = vpop.permute.xlu0 %4082  ;;  %v11993_v8 = vld [vmem:[#allocation152_spill] sm:$0xff] }
 0x574   :  { %v3842_v41 = vadd.f32 0.5, %v3778_v27  ;;  %v4358_v14 = vsel %vm4344_vm0, %v4287_v31, 0.0  ;;  %v4576_v32 = vpop.eup %4575  ;;  %v10044_v53 = vmul.f32 0.5, %v9647_v28  ;;  %v3214_v13 = vadd.f32 %v11991_v9, %v2826_v25 }
 0x575   :  { %v2828_v11 = vadd.f32 %v11992_v18, %v2440_v60  ;;  %v4359_v62 = vadd.f32 %v4358_v14, %v4357_v42  ;;  %v2442_v19 = vadd.f32 %v11993_v8, %v2054_v17  ;;  %v4360_v12 = vsel %vm4344_vm0, %v4288_v51, 0.0  ;;  %v11995_v17 = vld [vmem:[#allocation85_spill] sm:$0xff]  ;;  %v11999_v8 = vld [vmem:[#allocation291_spill] sm:$0xff] }
 0x576   :  { %v4290_v27 = vmul.f32 %v9935_v39, %v3842_v41  ;;  %v4289_v2 = vmul.f32 %v4008_v3, %v9545_v5  ;;  %v3664_v23 = vmul.f32 0.5, %v3600_v43  ;;  %v3540_v52 = vmul.f32 %v11565_v0, %v11994_v49  ;;  %v11996_v39 = vld [vmem:[#allocation143_spill] sm:$0xff]  ;;  %v4018_v42 = vpop.permute.xlu1 %4017 }
 0x577   :  { %v3844_v28 = vadd.f32 0.5, %v3780_v1  ;;  %v4361_v38 = vadd.f32 %v4360_v12, %v4359_v62  ;;  %v4578_v58 = vpop.eup %4577  ;;  %4583 = vtanh.f32 %v3662_v15  ;;  %v3602_v25 = vadd.f32 %v3538_v48, %v3214_v13  ;;  %v10055_v20 = vpop.permute.xlu0 %4092  ;;  %v11998_v1 = vld [vmem:[#allocation300_spill] sm:$0xff] }
 0x578   :  { %v3782_v60 = vmul.f32 0.5, %v4576_v32  ;;  %v4362_v21 = vsel %vm4344_vm0, %v4289_v2, 0.0  ;;  %v3221_v51 = vadd.f32 %v9680_v40, %v11995_v17  ;;  %v3159_v5 = vmul.f32 %v8339_v45, %v11996_v39  ;;  %v12000_v12 = vld [vmem:[#allocation148_spill] sm:$0xff] }
 0x579   :  { %v3216_v31 = vadd.f32 %v11997_v55, %v2828_v11  ;;  %v4363_v43 = vadd.f32 %v4362_v21, %v4361_v38  ;;  %v2830_v47 = vadd.f32 %v11998_v1, %v2442_v19  ;;  %v4364_v15 = vsel %vm4344_vm0, %v4290_v27, 0.0  ;;  %v12002_v38 = vld [vmem:[#allocation116_spill] sm:$0xff]  ;;  %v12004_v1 = vld [vmem:[#allocation154_spill] sm:$0xff] }
 0x57a   :  { %v4292_v48 = vmul.f32 %v9956_v16, %v3844_v28  ;;  %v4291_v41 = vmul.f32 %v4018_v42, %v9571_v6  ;;  %4585 = vtanh.f32 %v3664_v23  ;;  %v3784_v32 = vmul.f32 0.5, %v4578_v58  ;;  %v4028_v27 = vpop.permute.xlu1 %4027  ;;  %v12001_v23 = vld [vmem:[#allocation244_spill] sm:$0xff] }
 0x57b   :  { %v3604_v14 = vadd.f32 %v3540_v52, %v3216_v31  ;;  %v4365_v9 = vadd.f32 %v4364_v15, %v4363_v43  ;;  %v3666_v40 = vmul.f32 0.5, %v3602_v25  ;;  %v3542_v13 = vmul.f32 %v11565_v0, %v9568_v50  ;;  %v10069_v62 = vpop.permute.xlu0 %4102  ;;  %v12003_v43 = vld [vmem:[#allocation87_spill] sm:$0xff] }
 0x57c   :  { %v3846_v18 = vadd.f32 0.5, %v3782_v60  ;;  %v4366_v11 = vsel %vm4344_vm0, %v4291_v41, 0.0  ;;  %v4580_v3 = vpop.eup %4579  ;;  %v3609_v19 = vadd.f32 %v11999_v8, %v3221_v51  ;;  %v3161_v16 = vmul.f32 %v8339_v45, %v12000_v12  ;;  %v12005_v41 = vld [vmem:[#allocation293_spill] sm:$0xff] }
 0x57d   :  { %v4367_v6 = vadd.f32 %v4366_v11, %v4365_v9  ;;  %v3791_v2 = vmul.f32 0.5, %v9657_v57  ;;  %v3218_v49 = vadd.f32 %v12001_v23, %v2830_v47  ;;  %v4368_v52 = vsel %vm4344_vm0, %v4292_v48, 0.0  ;;  %v12007_v12 = vld [vmem:[#allocation89_spill] sm:$0xff] }
 0x57e   :  { %v4294_v50 = vmul.f32 %v9974_v61, %v3846_v18  ;;  %v4293_v28 = vmul.f32 %v4028_v27, %v9575_v37  ;;  %v3223_v58 = vadd.f32 %v3159_v5, %v12002_v38  ;;  %v3668_v25 = vmul.f32 0.5, %v3604_v14  ;;  %v4038_v47 = vpop.permute.xlu1 %4037 }
 0x57f   :  { %v3848_v60 = vadd.f32 0.5, %v3784_v32  ;;  %v4369_v21 = vadd.f32 %v4368_v52, %v4367_v6  ;;  %v4582_v17 = vpop.eup %4581  ;;  %4587 = vtanh.f32 %v3666_v40  ;;  %v3606_v51 = vadd.f32 %v3542_v13, %v3218_v49  ;;  %v10081_v57 = vpop.permute.xlu0 %4112  ;;  %v12008_v6 = vld [vmem:[#allocation161_spill] sm:$0xff] }
 0x580   :  { %v3786_v39 = vmul.f32 0.5, %v4580_v3  ;;  %v4370_v55 = vsel %vm4344_vm0, %v4293_v28, 0.0  ;;  %v3673_v31 = vmul.f32 0.5, %v3609_v19  ;;  %v3225_v42 = vadd.f32 %v3161_v16, %v12003_v43  ;;  %v12006_v19 = vld [vmem:[#allocation295_spill] sm:$0xff] }
 0x581   :  { %v3163_v61 = vmul.f32 %v8339_v45, %v12004_v1  ;;  %v4371_v37 = vadd.f32 %v4370_v55, %v4369_v21  ;;  %v4372_v5 = vsel %vm4344_vm0, %v4294_v50, 0.0  ;;  %v4296_v15 = vmul.f32 %v9989_v63, %v3848_v60  ;;  %v12010_v43 = vld [vmem:[#allocation91_spill] sm:$0xff] }
 0x582   :  { %v4295_v48 = vmul.f32 %v4038_v47, %v9581_v30  ;;  %4589 = vtanh.f32 %v10044_v53  ;;  %v3611_v14 = vadd.f32 %v12005_v41, %v3223_v58  ;;  %v3788_v32 = vmul.f32 0.5, %v4582_v17  ;;  %v4048_v53 = vpop.permute.xlu1 %4047 }
 0x583   :  { %4591 = vtanh.f32 %v3668_v25  ;;  %v4373_v9 = vadd.f32 %v4372_v5, %v4371_v37  ;;  %v3670_v40 = vmul.f32 0.5, %v3606_v51  ;;  %v3850_v13 = vadd.f32 0.5, %v3786_v39  ;;  %v10092_v11 = vpop.permute.xlu0 %4122  ;;  %v12009_v39 = vld [vmem:[#allocation297_spill] sm:$0xff] }
 0x584   :  { %v4374_v18 = vsel %vm4344_vm0, %v4295_v48, 0.0  ;;  %v3853_v3 = vadd.f32 0.5, %v9655_v33  ;;  %v4584_v8 = vpop.eup %4583  ;;  %v3613_v63 = vadd.f32 %v12006_v19, %v3225_v42  ;;  %v3227_v30 = vadd.f32 %v3163_v61, %v12007_v12 }
 0x585   :  { %v4375_v16 = vadd.f32 %v4374_v18, %v4373_v9  ;;  %4593 = vtanh.f32 %v3673_v31  ;;  %v3165_v27 = vmul.f32 %v8339_v45, %v12008_v6  ;;  %v4376_v23 = vsel %vm4344_vm0, %v4296_v15, 0.0 }
 0x586   :  { %v4298_v49 = vmul.f32 %v10005_v29, %v3850_v13  ;;  %v4297_v52 = vmul.f32 %v4048_v53, %v9583_v46  ;;  %v3675_v50 = vmul.f32 0.5, %v3611_v14  ;;  %v3852_v28 = vadd.f32 0.5, %v3788_v32  ;;  %v4058_v29 = vpop.permute.xlu1 %4057  ;;  %v12011_v14 = vld [vmem:[#allocation166_spill] sm:$0xff] }
 0x587   :  { %v4377_v33 = vadd.f32 %v4376_v23, %v4375_v16  ;;  %v3855_v38 = vadd.f32 0.5, %v3791_v2  ;;  %v4586_v58 = vpop.eup %4585  ;;  %4595 = vtanh.f32 %v3670_v40  ;;  %v3672_v25 = vmul.f32 0.5, %v9610_v24  ;;  %v10104_v17 = vpop.permute.xlu0 %4132  ;;  %v12012_v40 = vld [vmem:[#allocation301_spill] sm:$0xff]  ;;  %v12013_v23 = vld [vmem:[#allocation124_spill] sm:$0xff] }
 0x588   :  { %v3790_v60 = vmul.f32 0.5, %v4584_v8  ;;  %v4378_v21 = vsel %vm4344_vm0, %v4297_v52, 0.0  ;;  %v3677_v51 = vmul.f32 0.5, %v3613_v63  ;;  %v3615_v55 = vadd.f32 %v12009_v39, %v3227_v30  ;;  %v12014_v52 = vld [vmem:[#allocation171_spill] sm:$0xff] }
 0x589   :  { %v4379_v31 = vadd.f32 %v4378_v21, %v4377_v33  ;;  %v3793_v46 = vmul.f32 0.5, %v9669_v22  ;;  %v3229_v42 = vadd.f32 %v3165_v27, %v12010_v43  ;;  %v4380_v2 = vsel %vm4344_vm0, %v4298_v49, 0.0 }
 0x58a   :  { %v4300_v1 = vmul.f32 %v10017_v34, %v3852_v28  ;;  %v4299_v24 = vmul.f32 %v4058_v29, %v9627_v26  ;;  %v3792_v61 = vmul.f32 0.5, %v4586_v58  ;;  %v3795_v47 = vmul.f32 0.5, %v9714_v10  ;;  %v4068_v26 = vpop.permute.xlu1 %4067 }
 0x58b   :  { %v4381_v37 = vadd.f32 %v4380_v2, %v4379_v31  ;;  %4597 = vtanh.f32 %v3675_v50  ;;  %v3674_v5 = vmul.f32 0.5, %v9634_v36  ;;  %v3854_v15 = vadd.f32 0.5, %v3790_v60  ;;  %v10117_v34 = vpop.permute.xlu0 %4142 }
 0x58c   :  { %4599 = vtanh.f32 %v3672_v25  ;;  %v4382_v48 = vsel %vm4344_vm0, %v4299_v24, 0.0  ;;  %v4588_v22 = vpop.eup %4587  ;;  %v3679_v41 = vmul.f32 0.5, %v3615_v55  ;;  %v3167_v32 = vmul.f32 %v8339_v45, %v12011_v14 }
 0x58d   :  { %v4383_v9 = vadd.f32 %v4382_v48, %v4381_v37  ;;  %4601 = vtanh.f32 %v3677_v51  ;;  %v3617_v13 = vadd.f32 %v12012_v40, %v3229_v42  ;;  %v4384_v10 = vsel %vm4344_vm0, %v4300_v1, 0.0  ;;  %v12015_v42 = vld [vmem:[#allocation302_spill] sm:$0xff]  ;;  %v12016_v1 = vld [vmem:[#allocation255_spill] sm:$0xff] }
 0x58e   :  { %v4302_v18 = vmul.f32 %v10029_v54, %v3854_v15  ;;  %v4301_v36 = vmul.f32 %v4068_v26, %v3853_v3  ;;  %v3856_v19 = vadd.f32 0.5, %v3792_v61  ;;  %v3857_v12 = vadd.f32 0.5, %v3793_v46  ;;  %v4078_v54 = vpop.permute.xlu1 %4077 }
 0x58f   :  { %v4590_v8 = vpop.eup %4589  ;;  %v4385_v63 = vadd.f32 %v4384_v10, %v4383_v9  ;;  %v3859_v30 = vadd.f32 0.5, %v3795_v47  ;;  %4603 = vtanh.f32 %v3674_v5  ;;  %v3676_v53 = vmul.f32 0.5, %v9664_v44  ;;  %v10129_v44 = vpop.permute.xlu0 %4152  ;;  %v12017_v5 = vld [vmem:[#allocation183_spill] sm:$0xff] }
 0x590   :  { %v4592_v16 = vpop.eup %4591  ;;  %v3794_v6 = vmul.f32 0.5, %v4588_v22  ;;  %v4386_v27 = vsel %vm4344_vm0, %v4301_v36, 0.0  ;;  %v3231_v49 = vadd.f32 %v3167_v32, %v12013_v23  ;;  %v3169_v50 = vmul.f32 %v8339_v45, %v12014_v52 }
 0x591   :  { %v4387_v28 = vadd.f32 %v4386_v27, %v4385_v63  ;;  %4605 = vtanh.f32 %v3679_v41  ;;  %v3681_v33 = vmul.f32 0.5, %v3617_v13  ;;  %v4388_v58 = vsel %vm4344_vm0, %v4302_v18, 0.0  ;;  %v12018_v13 = vld [vmem:[#allocation303_spill] sm:$0xff] }
 0x592   :  { %v4594_v3 = vpop.eup %4593  ;;  %v4304_v25 = vmul.f32 %v10041_v35, %v3856_v19  ;;  %v4303_v60 = vmul.f32 %v4078_v54, %v3855_v38  ;;  %v3796_v21 = vmul.f32 0.5, %v4592_v16  ;;  %v3797_v39 = vmul.f32 0.5, %v9999_v56  ;;  %v4088_v38 = vpop.permute.xlu1 %4087 }
 0x593   :  { %v4389_v51 = vadd.f32 %v4388_v58, %v4387_v28  ;;  %v3799_v55 = vmul.f32 0.5, %v4590_v8  ;;  %4607 = vtanh.f32 %v3676_v53  ;;  %v3678_v31 = vmul.f32 0.5, %v9692_v7 }
 0x594   :  { %v3858_v29 = vadd.f32 0.5, %v3794_v6  ;;  %v4390_v46 = vsel %vm4344_vm0, %v4303_v60, 0.0  ;;  %v4596_v43 = vpop.eup %4595  ;;  %v3619_v2 = vadd.f32 %v12015_v42, %v3231_v49  ;;  %v3233_v24 = vadd.f32 %v3169_v50, %v12016_v1  ;;  %v12023_v42 = vld [vmem:[#allocation357_spill] sm:$0xff] }
 0x595   :  { %v4391_v35 = vadd.f32 %v4390_v46, %v4389_v51  ;;  %v3801_v61 = vmul.f32 0.5, %v4594_v3  ;;  %v4392_v37 = vsel %vm4344_vm0, %v4304_v25, 0.0  ;;  %v4305_v56 = vmul.f32 %v4088_v38, %v3857_v12 }
 0x596   :  { %v4306_v47 = vmul.f32 %v10055_v20, %v3858_v29  ;;  %4609 = vtanh.f32 %v3681_v33  ;;  %v3171_v7 = vmul.f32 %v8339_v45, %v12017_v5  ;;  %v3860_v15 = vadd.f32 0.5, %v3796_v21  ;;  %v10143_v20 = vpop.permute.xlu0 %4162  ;;  %v4098_v36 = vpop.permute.xlu1 %4097  ;;  %v12020_v33 = vld [vmem:[#allocation193_spill] sm:$0xff] }
 0x597   :  { %v4393_v48 = vadd.f32 %v4392_v37, %v4391_v35  ;;  %v3861_v22 = vadd.f32 0.5, %v3797_v39  ;;  %4611 = vtanh.f32 %v3678_v31  ;;  %v3680_v14 = vmul.f32 0.5, %v9718_v4  ;;  %v12019_v4 = vld [vmem:[#allocation26_spill] sm:$0xff]  ;;  %v12022_v31 = vld [vmem:[#allocation207_spill] sm:$0xff] }
 0x598   :  { %v4598_v41 = vpop.eup %4597  ;;  %v3798_v32 = vmul.f32 0.5, %v4596_v43  ;;  %v4394_v9 = vsel %vm4344_vm0, %v4305_v56, 0.0  ;;  %v3683_v40 = vmul.f32 0.5, %v3619_v2  ;;  %v3621_v10 = vadd.f32 %v12018_v13, %v3233_v24  ;;  %v12021_v39 = vld [vmem:[#allocation306_spill] sm:$0xff] }
 0x599   :  { %v4600_v26 = vpop.eup %4599  ;;  %v4395_v18 = vadd.f32 %v4394_v9, %v4393_v48  ;;  %v3863_v8 = vadd.f32 0.5, %v3799_v55  ;;  %v4396_v63 = vsel %vm4344_vm0, %v4306_v47, 0.0  ;;  %v4308_v12 = vmul.f32 %v10069_v62, %v3860_v15 }
 0x59a   :  { %v4602_v19 = vpop.eup %4601  ;;  %v4307_v16 = vmul.f32 %v4098_v36, %v3859_v30  ;;  %v3865_v53 = vadd.f32 0.5, %v3801_v61  ;;  %v3235_v6 = vadd.f32 %v3171_v7, %v12019_v4  ;;  %v3682_v27 = vmul.f32 0.5, %v9744_v59  ;;  %v4108_v62 = vpop.permute.xlu1 %4107  ;;  %v12024_v61 = vld [vmem:[#allocation261_spill] sm:$0xff] }
 0x59b   :  { %v4397_v23 = vadd.f32 %v4396_v63, %v4395_v18  ;;  %v3803_v49 = vmul.f32 0.5, %v4598_v41  ;;  %4613 = vtanh.f32 %v3680_v14  ;;  %v3862_v52 = vadd.f32 0.5, %v3798_v32  ;;  %v10157_v46 = vpop.permute.xlu0 %4172  ;;  %v12025_v41 = vld [vmem:[#allocation22_spill] sm:$0xff]  ;;  %v12027_v63 = vld [vmem:[#allocation307_spill] sm:$0xff] }
 0x59c   :  { %v3800_v50 = vmul.f32 0.5, %v4600_v26  ;;  %v4398_v28 = vsel %vm4344_vm0, %v4307_v16, 0.0  ;;  %v4604_v54 = vpop.eup %4603  ;;  %v3685_v3 = vmul.f32 0.5, %v3621_v10  ;;  %v3173_v58 = vmul.f32 %v8339_v45, %v12020_v33  ;;  %v12026_v32 = vld [vmem:[#allocation346_spill] sm:$0xff]  ;;  %v12030_v33 = vld [vmem:[#allocation359_spill] sm:$0xff] }
 0x59d   :  { %v4399_v25 = vadd.f32 %v4398_v28, %v4397_v23  ;;  %4615 = vtanh.f32 %v3683_v40  ;;  %v4400_v60 = vsel %vm4344_vm0, %v4308_v12, 0.0  ;;  %v4310_v59 = vmul.f32 %v10081_v57, %v3862_v52  ;;  %v12028_v52 = vld [vmem:[#allocation308_spill] sm:$0xff] }
 0x59e   :  { %v4606_v30 = vpop.eup %4605  ;;  %v4309_v21 = vmul.f32 %v4108_v62, %v3861_v22  ;;  %v3805_v51 = vmul.f32 0.5, %v4602_v19  ;;  %v3623_v55 = vadd.f32 %v12021_v39, %v3235_v6  ;;  %v3175_v29 = vmul.f32 %v8339_v45, %v12022_v31  ;;  %v4118_v47 = vpop.permute.xlu1 %4117  ;;  %v12029_v28 = vld [vmem:[#allocation204_spill] sm:$0xff] }
 0x59f   :  { %4617 = vtanh.f32 %v3682_v27  ;;  %v4401_v43 = vadd.f32 %v4400_v60, %v4399_v25  ;;  %v3684_v2 = vmul.f32 0.5, %v12023_v42  ;;  %v3864_v1 = vadd.f32 0.5, %v3800_v50  ;;  %v10168_v16 = vpop.permute.xlu0 %4182 }
 0x5a0   :  { %v3802_v24 = vmul.f32 0.5, %v4604_v54  ;;  %v4402_v35 = vsel %vm4344_vm0, %v4309_v21, 0.0  ;;  %v4608_v38 = vpop.eup %4607  ;;  %v3237_v57 = vadd.f32 %v3173_v58, %v12024_v61  ;;  %v3807_v56 = vmul.f32 0.5, %v4606_v30  ;;  %v12031_v21 = vld [vmem:[#allocation231_spill] sm:$0xff] }
 0x5a1   :  { %v4403_v37 = vadd.f32 %v4402_v35, %v4401_v43  ;;  %4619 = vtanh.f32 %v3685_v3  ;;  %v4404_v5 = vsel %vm4344_vm0, %v4310_v59, 0.0  ;;  %v4312_v7 = vmul.f32 %v10092_v11, %v3864_v1 }
 0x5a2   :  { %v4311_v15 = vmul.f32 %v4118_v47, %v3863_v8  ;;  %v3867_v48 = vadd.f32 0.5, %v3803_v49  ;;  %v3239_v14 = vadd.f32 %v3175_v29, %v12025_v41  ;;  %v3686_v9 = vmul.f32 0.5, %v12026_v32  ;;  %v4128_v8 = vpop.permute.xlu1 %4127 }
 0x5a3   :  { %v4610_v22 = vpop.eup %4609  ;;  %v4405_v26 = vadd.f32 %v4404_v5, %v4403_v37  ;;  %v3869_v40 = vadd.f32 0.5, %v3805_v51  ;;  %4621 = vtanh.f32 %v3684_v2  ;;  %v3866_v13 = vadd.f32 0.5, %v3802_v24  ;;  %v12032_v2 = vld [vmem:[#allocation267_spill] sm:$0xff]  ;;  %v12033_v24 = vld [vmem:[#allocation348_spill] sm:$0xff]  ;;  %v12034_v5 = vld [vmem:[#allocation270_spill] sm:$0xff] }
 0x5a4   :  { %v3804_v10 = vmul.f32 0.5, %v4608_v38  ;;  %v4406_v18 = vsel %vm4344_vm0, %v4311_v15, 0.0  ;;  %v4612_v36 = vpop.eup %4611  ;;  %v3687_v19 = vmul.f32 0.5, %v3623_v55  ;;  %v3625_v12 = vadd.f32 %v12027_v63, %v3237_v57  ;;  %v10183_v38 = vpop.permute.xlu0 %4192  ;;  %v12035_v15 = vld [vmem:[#allocation230_spill] sm:$0xff] }
 0x5a5   :  { %v4407_v11 = vadd.f32 %v4406_v18, %v4405_v26  ;;  %v3871_v4 = vadd.f32 0.5, %v3807_v56  ;;  %v4408_v6 = vsel %vm4344_vm0, %v4312_v7, 0.0  ;;  %v4314_v27 = vmul.f32 %v10104_v17, %v3866_v13  ;;  %v12036_v13 = vld [vmem:[#allocation309_spill] sm:$0xff] }
 0x5a6   :  { %v4313_v23 = vmul.f32 %v4128_v8, %v3865_v53  ;;  %v3809_v49 = vmul.f32 0.5, %v4610_v22  ;;  %v3627_v50 = vadd.f32 %v12028_v52, %v3239_v14  ;;  %v3177_v54 = vmul.f32 %v8339_v45, %v12029_v28  ;;  %v4138_v51 = vpop.permute.xlu1 %4137 }
 0x5a7   :  { %4623 = vtanh.f32 %v3686_v9  ;;  %v4409_v3 = vadd.f32 %v4408_v6, %v4407_v11  ;;  %v3688_v58 = vmul.f32 0.5, %v12030_v33  ;;  %v3868_v25 = vadd.f32 0.5, %v3804_v10  ;;  %v12038_v6 = vld [vmem:[#allocation313_spill] sm:$0xff] }
 0x5a8   :  { %v3806_v62 = vmul.f32 0.5, %v4612_v36  ;;  %v4410_v30 = vsel %vm4344_vm0, %v4313_v23, 0.0  ;;  %v4614_v60 = vpop.eup %4613  ;;  %v3689_v59 = vmul.f32 0.5, %v3625_v12  ;;  %v3179_v17 = vmul.f32 %v8339_v45, %v12031_v21  ;;  %v12039_v23 = vld [vmem:[#allocation37_spill] sm:$0xff]  ;;  %v10196_v52 = vpop.permute.xlu0 %4202  ;;  %v12041_v21 = vld [vmem:[#allocation350_spill] sm:$0xff] }
 0x5a9   :  { %v4411_v53 = vadd.f32 %v4410_v30, %v4409_v3  ;;  %4625 = vtanh.f32 %v3687_v19  ;;  %v4412_v55 = vsel %vm4344_vm0, %v4314_v27, 0.0  ;;  %v4316_v31 = vmul.f32 %v10117_v34, %v3868_v25  ;;  %v12037_v19 = vld [vmem:[#allocation361_spill] sm:$0xff]  ;;  %v12040_v25 = vld [vmem:[#allocation236_spill] sm:$0xff] }
 0x5aa   :  { %v4616_v39 = vpop.eup %4615  ;;  %v4315_v29 = vmul.f32 %v4138_v51, %v3867_v48  ;;  %v3873_v43 = vadd.f32 0.5, %v3809_v49  ;;  %v3691_v42 = vmul.f32 0.5, %v3627_v50  ;;  %v3241_v1 = vadd.f32 %v3177_v54, %v12032_v2  ;;  %v4148_v22 = vpop.permute.xlu1 %4147  ;;  %v12043_v2 = vld [vmem:[#allocation251_spill] sm:$0xff] }
 0x5ab   :  { %v3690_v35 = vmul.f32 0.5, %v12033_v24  ;;  %v4413_v61 = vadd.f32 %v4412_v55, %v4411_v53  ;;  %4627 = vtanh.f32 %v3688_v58  ;;  %v3870_v37 = vadd.f32 0.5, %v3806_v62  ;;  %v12042_v55 = vld [vmem:[#allocation315_spill] sm:$0xff] }
 0x5ac   :  { %v4618_v57 = vpop.eup %4617  ;;  %v3808_v47 = vmul.f32 0.5, %v4614_v60  ;;  %v4414_v56 = vsel %vm4344_vm0, %v4315_v29, 0.0  ;;  %v3243_v7 = vadd.f32 %v3179_v17, %v12034_v5  ;;  %v3181_v34 = vmul.f32 %v8339_v45, %v12035_v15 }
 0x5ad   :  { %v4415_v48 = vadd.f32 %v4414_v56, %v4413_v61  ;;  %4629 = vtanh.f32 %v3689_v59  ;;  %v4416_v14 = vsel %vm4344_vm0, %v4316_v31, 0.0  ;;  %v4318_v32 = vmul.f32 %v10129_v44, %v3870_v37  ;;  %v10210_v56 = vpop.permute.xlu0 %4212 }
 0x5ae   :  { %v4620_v41 = vpop.eup %4619  ;;  %v4317_v9 = vmul.f32 %v4148_v22, %v3869_v40  ;;  %v3811_v26 = vmul.f32 0.5, %v4616_v39  ;;  %v3629_v10 = vadd.f32 %v12036_v13, %v3241_v1  ;;  %4631 = vtanh.f32 %v3690_v35  ;;  %v4158_v40 = vpop.permute.xlu1 %4157 }
 0x5af   :  { %v3810_v18 = vmul.f32 0.5, %v4618_v57  ;;  %v4417_v36 = vadd.f32 %v4416_v14, %v4415_v48  ;;  %v3692_v63 = vmul.f32 0.5, %v12037_v19  ;;  %v3872_v12 = vadd.f32 0.5, %v3808_v47  ;;  %v12044_v57 = vld [vmem:[#allocation271_spill] sm:$0xff] }
 0x5b0   :  { %v4418_v11 = vsel %vm4344_vm0, %v4317_v9, 0.0  ;;  %4633 = vtanh.f32 %v3691_v42  ;;  %v4622_v8 = vpop.eup %4621  ;;  %v3631_v27 = vadd.f32 %v12038_v6, %v3243_v7  ;;  %v3245_v49 = vadd.f32 %v3181_v34, %v12039_v23  ;;  %v12045_v7 = vld [vmem:[#allocation352_spill] sm:$0xff] }
 0x5b1   :  { %v4419_v44 = vadd.f32 %v4418_v11, %v4417_v36  ;;  %v3813_v50 = vmul.f32 0.5, %v4620_v41  ;;  %v4420_v28 = vsel %vm4344_vm0, %v4318_v32, 0.0  ;;  %v4320_v54 = vmul.f32 %v10143_v20, %v3872_v12  ;;  %v12047_v36 = vld [vmem:[#allocation318_spill] sm:$0xff] }
 0x5b2   :  { %v4319_v3 = vmul.f32 %v4158_v40, %v3871_v4  ;;  %v3875_v33 = vadd.f32 0.5, %v3811_v26  ;;  %v3693_v58 = vmul.f32 0.5, %v3629_v10  ;;  %v3183_v62 = vmul.f32 %v8339_v45, %v12040_v25  ;;  %v4168_v20 = vpop.permute.xlu1 %4167 }
 0x5b3   :  { %v3874_v30 = vadd.f32 0.5, %v3810_v18  ;;  %v4421_v60 = vadd.f32 %v4420_v28, %v4419_v44  ;;  %4635 = vtanh.f32 %v3692_v63  ;;  %v3694_v17 = vmul.f32 0.5, %v12041_v21  ;;  %v12048_v63 = vld [vmem:[#allocation260_spill] sm:$0xff] }
 0x5b4   :  { %v4624_v59 = vpop.eup %4623  ;;  %v3812_v53 = vmul.f32 0.5, %v4622_v8  ;;  %v4422_v51 = vsel %vm4344_vm0, %v4319_v3, 0.0  ;;  %v3695_v39 = vmul.f32 0.5, %v3631_v27  ;;  %v3633_v31 = vadd.f32 %v12042_v55, %v3245_v49  ;;  %v12049_v27 = vld [vmem:[#allocation363_spill] sm:$0xff] }
 0x5b5   :  { %v4423_v29 = vadd.f32 %v4422_v51, %v4421_v60  ;;  %v3877_v4 = vadd.f32 0.5, %v3813_v50  ;;  %v3185_v1 = vmul.f32 %v8339_v45, %v12043_v2  ;;  %v4424_v24 = vsel %vm4344_vm0, %v4320_v54, 0.0  ;;  %v4223_v50 = vpop.permute.xlu0 %4222  ;;  %v12051_v60 = vld [vmem:[#allocation273_spill] sm:$0xff] }
 0x5b6   :  { %v4626_v42 = vpop.eup %4625  ;;  %v4322_v35 = vmul.f32 %v10157_v46, %v3874_v30  ;;  %v4321_v61 = vmul.f32 %v4168_v20, %v3873_v43  ;;  %v3247_v37 = vadd.f32 %v3183_v62, %v12044_v57  ;;  %v3814_v47 = vmul.f32 0.5, %v4624_v59  ;;  %v4178_v32 = vpop.permute.xlu1 %4177  ;;  %v12046_v43 = vld [vmem:[#allocation72_spill] sm:$0xff] }
 0x5b7   :  { %v4425_v5 = vadd.f32 %v4424_v24, %v4423_v29  ;;  %4637 = vtanh.f32 %v3693_v58  ;;  %v3696_v15 = vmul.f32 0.5, %v12045_v7  ;;  %v3876_v34 = vadd.f32 0.5, %v3812_v53  ;;  %v12052_v53 = vld [vmem:[#allocation365_spill] sm:$0xff] }
 0x5b8   :  { %4639 = vtanh.f32 %v3694_v17  ;;  %v4426_v48 = vsel %vm4344_vm0, %v4321_v61, 0.0  ;;  %v4628_v22 = vpop.eup %4627  ;;  %v3697_v41 = vmul.f32 0.5, %v3633_v31  ;;  %v3815_v9 = vmul.f32 0.5, %v4626_v42  ;;  %v12053_v29 = vld [vmem:[#allocation453_spill] sm:$0xff] }
 0x5b9   :  { %v4427_v14 = vadd.f32 %v4426_v48, %v4425_v5  ;;  %4641 = vtanh.f32 %v3695_v39  ;;  %v3249_v26 = vadd.f32 %v3185_v1, %v12046_v43  ;;  %v4428_v13 = vsel %vm4344_vm0, %v4322_v35, 0.0 }
 0x5ba   :  { %v4630_v46 = vpop.eup %4629  ;;  %v4324_v10 = vmul.f32 %v10168_v16, %v3876_v34  ;;  %v4323_v18 = vmul.f32 %v4178_v32, %v3875_v33  ;;  %v3635_v19 = vadd.f32 %v12047_v36, %v3247_v37  ;;  %v3187_v12 = vmul.f32 %v8339_v45, %v12048_v63  ;;  %v4188_v54 = vpop.permute.xlu1 %4187  ;;  %v12050_v33 = vld [vmem:[#allocation321_spill] sm:$0xff] }
 0x5bb   :  { %v3878_v11 = vadd.f32 0.5, %v3814_v47  ;;  %v4429_v8 = vadd.f32 %v4428_v13, %v4427_v14  ;;  %v4632_v6 = vpop.eup %4631  ;;  %4643 = vtanh.f32 %v3696_v15  ;;  %v3698_v23 = vmul.f32 0.5, %v12049_v27  ;;  %v4233_v47 = vpop.permute.xlu0 %4232  ;;  %v12054_v15 = vld [vmem:[#allocation354_spill] sm:$0xff] }
 0x5bc   :  { %v3816_v49 = vmul.f32 0.5, %v4628_v22  ;;  %v4430_v44 = vsel %vm4344_vm0, %v4323_v18, 0.0  ;;  %v3879_v16 = vadd.f32 0.5, %v3815_v9  ;;  %v3817_v3 = vmul.f32 0.5, %v4630_v46 }
 0x5bd   :  { %v4634_v40 = vpop.eup %4633  ;;  %v4431_v28 = vadd.f32 %v4430_v44, %v4429_v8  ;;  %4645 = vtanh.f32 %v3697_v41  ;;  %v3637_v58 = vadd.f32 %v12050_v33, %v3249_v26  ;;  %v4432_v45 = vsel %vm4344_vm0, %v4324_v10, 0.0 }
 0x5be   :  { %v4326_v25 = vmul.f32 %v10183_v38, %v3878_v11  ;;  %v4325_v62 = vmul.f32 %v4188_v54, %v3877_v4  ;;  %v3699_v30 = vmul.f32 0.5, %v3635_v19  ;;  %v3251_v59 = vadd.f32 %v3187_v12, %v12051_v60  ;;  %v4198_v2 = vpop.permute.xlu1 %4197 }
 0x5bf   :  { %v3818_v21 = vmul.f32 0.5, %v4632_v6  ;;  %v4433_v17 = vadd.f32 %v4432_v45, %v4431_v28  ;;  %4647 = vtanh.f32 %v3698_v23  ;;  %v3700_v51 = vmul.f32 0.5, %v12052_v53  ;;  %v4243_v12 = vpop.permute.xlu0 %4242 }
 0x5c0   :  { %v3880_v39 = vadd.f32 0.5, %v3816_v49  ;;  %v4434_v55 = vsel %vm4344_vm0, %v4325_v62, 0.0  ;;  %v4636_v31 = vpop.eup %4635  ;;  %v3575_v20 = vmul.f32 %v11565_v0, %v12053_v29  ;;  %v3881_v1 = vadd.f32 0.5, %v3817_v3 }
 0x5c1   :  { %v4435_v42 = vadd.f32 %v4434_v55, %v4433_v17  ;;  %v3819_v38 = vmul.f32 0.5, %v4634_v40  ;;  %v3701_v4 = vmul.f32 0.5, %v3637_v58  ;;  %v4436_v24 = vsel %vm4344_vm0, %v4326_v25, 0.0 }
 0x5c2   :  { %v4328_v35 = vmul.f32 %v10196_v52, %v3880_v39  ;;  %v4327_v61 = vmul.f32 %v4198_v2, %v3879_v16  ;;  %v3639_v57 = vadd.f32 %v3575_v20, %v3251_v59  ;;  %v3882_v37 = vadd.f32 0.5, %v3818_v21  ;;  %v4208_v14 = vpop.permute.xlu1 %4207 }
 0x5c3   :  { %v4437_v5 = vadd.f32 %v4436_v24, %v4435_v42  ;;  %4649 = vtanh.f32 %v3699_v30  ;;  %v3702_v34 = vmul.f32 0.5, %v12054_v15  ;;  %v3820_v0 = vmul.f32 0.5, %v4636_v31  ;;  %v4253_v30 = vpop.permute.xlu0 %4252 }
 0x5c4   :  { %v4638_v7 = vpop.eup %4637  ;;  %4651 = vtanh.f32 %v3700_v51  ;;  %v4438_v48 = vsel %vm4344_vm0, %v4327_v61, 0.0  ;;  %v4440_v9 = vsel %vm4344_vm0, %v4328_v35, 0.0  ;;  %v4330_v52 = vmul.f32 %v10210_v56, %v3882_v37 }
 0x5c5   :  { %v4640_v22 = vpop.eup %4639  ;;  %v4439_v41 = vadd.f32 %v4438_v48, %v4437_v5  ;;  %v4329_v46 = vmul.f32 %v4208_v14, %v3881_v1  ;;  %v3883_v43 = vadd.f32 0.5, %v3819_v38  ;;  %v3703_v26 = vmul.f32 0.5, %v3639_v57 }
 0x5c6   :  { %v4642_v32 = vpop.eup %4641  ;;  %v3821_v10 = vmul.f32 0.5, %v4638_v7  ;;  %4653 = vtanh.f32 %v3701_v4  ;;  %v3884_v18 = vadd.f32 0.5, %v3820_v0  ;;  %v3822_v36 = vmul.f32 0.5, %v4640_v22 }
 0x5c7   :  { %v4441_v13 = vadd.f32 %v4440_v9, %v4439_v41  ;;  %4655 = vtanh.f32 %v3702_v34  ;;  %v4442_v19 = vsel %vm4344_vm0, %v4329_v46, 0.0  ;;  %v4444_v27 = vsel %vm4344_vm0, %v4330_v52, 0.0  ;;  %v4263_v37 = vpop.permute.xlu0 %4262 }
 0x5c8   :  { %v4644_v63 = vpop.eup %4643  ;;  %v4218_v8 = vpop.permute.xlu1 %4217  ;;  %v4332_v23 = vmul.f32 %v4223_v50, %v3884_v18  ;;  %v3885_v44 = vadd.f32 0.5, %v3821_v10  ;;  %v3823_v40 = vmul.f32 0.5, %v4642_v32  ;;  %v3886_v28 = vadd.f32 0.5, %v3822_v36 }
 0x5c9   :  { %v4443_v11 = vadd.f32 %v4442_v19, %v4441_v13  ;;  %v4331_v56 = vmul.f32 %v4218_v8, %v3883_v43  ;;  %v3824_v54 = vmul.f32 0.5, %v4644_v63  ;;  %4657 = vtanh.f32 %v3703_v26 }
 0x5ca   :  { %v4646_v6 = vpop.eup %4645  ;;  %v4448_v45 = vsel %vm4344_vm0, %v4332_v23, 0.0  ;;  %v4334_v25 = vmul.f32 %v4233_v47, %v3886_v28  ;;  %v3887_v51 = vadd.f32 0.5, %v3823_v40 }
 0x5cb   :  { %v4445_v49 = vadd.f32 %v4444_v27, %v4443_v11  ;;  %v4446_v16 = vsel %vm4344_vm0, %v4331_v56, 0.0  ;;  %v3825_v59 = vmul.f32 0.5, %v4646_v6  ;;  %v3888_v21 = vadd.f32 0.5, %v3824_v54  ;;  %v4273_v10 = vpop.permute.xlu0 %4272 }
 0x5cc   :  { %v4648_v3 = vpop.eup %4647  ;;  %v4228_v58 = vpop.permute.xlu1 %4227  ;;  %v4452_v29 = vsel %vm4344_vm0, %v4334_v25, 0.0 }
 0x5cd   :  { %v4447_v33 = vadd.f32 %v4446_v16, %v4445_v49  ;;  %v4333_v62 = vmul.f32 %v4228_v58, %v3885_v44  ;;  %v3826_v17 = vmul.f32 0.5, %v4648_v3  ;;  %v4336_v20 = vmul.f32 %v4243_v12, %v3888_v21 }
 0x5ce   :  { %v3889_v1 = vadd.f32 0.5, %v3825_v59 }
 0x5cf   :  { %v4449_v60 = vadd.f32 %v4448_v45, %v4447_v33  ;;  %v4450_v53 = vsel %vm4344_vm0, %v4333_v62, 0.0  ;;  %v3890_v4 = vadd.f32 0.5, %v3826_v17  ;;  %v4456_v7 = vsel %vm4344_vm0, %v4336_v20, 0.0 }
 0x5d0   :  { %v4650_v50 = vpop.eup %4649  ;;  %v4238_v31 = vpop.permute.xlu1 %4237 }
 0x5d1   :  { %v4652_v39 = vpop.eup %4651  ;;  %v4451_v55 = vadd.f32 %v4450_v53, %v4449_v60  ;;  %v4335_v42 = vmul.f32 %v4238_v31, %v3887_v51  ;;  %v3827_v61 = vmul.f32 0.5, %v4650_v50  ;;  %v4338_v15 = vmul.f32 %v4253_v30, %v3890_v4  ;;  %v4482_v60 = vpop.permute.xlu0 %4481  ;;  %v12055_v50 = vld [vmem:[#allocation459_spill] sm:$0xff] }
 0x5d2   :  { %v3828_v24 = vmul.f32 0.5, %v4652_v39  ;;  %v12056_v21 = vsub.s32 0, %v12055_v50 }
 0x5d3   :  { %v4453_v2 = vadd.f32 %v4452_v29, %v4451_v55  ;;  %v4654_v38 = vpop.eup %4653  ;;  %v4454_v35 = vsel %vm4344_vm0, %v4335_v42, 0.0  ;;  %v3891_v32 = vadd.f32 0.5, %v3827_v61  ;;  %v4460_v43 = vsel %vm4344_vm0, %v4338_v15, 0.0 }
 0x5d4   :  { %v4656_v57 = vpop.eup %4655  ;;  %v4248_v5 = vpop.permute.xlu1 %4247  ;;  %v3829_v48 = vmul.f32 0.5, %v4654_v38  ;;  %v3892_v22 = vadd.f32 0.5, %v3828_v24  ;;  %v4487_v17 = vrot.slane %v4482_v60, %v12056_v21 }
 0x5d5   :  { %v4455_v47 = vadd.f32 %v4454_v35, %v4453_v2  ;;  %v4337_v34 = vmul.f32 %v4248_v5, %v3889_v1  ;;  %v3830_v41 = vmul.f32 0.5, %v4656_v57 }
 0x5d6   :  { %v4658_v9 = vpop.eup %4657  ;;  %v4340_v26 = vmul.f32 %v4263_v37, %v3892_v22  ;;  %v3893_v63 = vadd.f32 0.5, %v3829_v48 }
 0x5d7   :  { %v4457_v0 = vadd.f32 %v4456_v7, %v4455_v47  ;;  %v4458_v14 = vsel %vm4344_vm0, %v4337_v34, 0.0  ;;  %v3894_v36 = vadd.f32 0.5, %v3830_v41  ;;  %v3831_v12 = vmul.f32 0.5, %v4658_v9 }
 0x5d8   :  { %v4258_v46 = vpop.permute.xlu1 %4257  ;;  %v4464_v6 = vsel %vm4344_vm0, %v4340_v26, 0.0 }
 0x5d9   :  { %v4459_v52 = vadd.f32 %v4458_v14, %v4457_v0  ;;  %v4339_v13 = vmul.f32 %v4258_v46, %v3891_v32  ;;  %v4342_v27 = vmul.f32 %v4273_v10, %v3894_v36  ;;  %v3895_v44 = vadd.f32 0.5, %v3831_v12 }
 0x5db   :  { %v4461_v18 = vadd.f32 %v4460_v43, %v4459_v52  ;;  %v4462_v19 = vsel %vm4344_vm0, %v4339_v13, 0.0  ;;  %v4468_v54 = vsel %vm4344_vm0, %v4342_v27, 0.0 }
 0x5dc   :  { %v4268_v8 = vpop.permute.xlu1 %4267 }
 0x5dd   :  { %v4463_v11 = vadd.f32 %v4462_v19, %v4461_v18  ;;  %v4341_v23 = vmul.f32 %v4268_v8, %v3893_v63 }
 0x5df   :  { %v4465_v56 = vadd.f32 %v4464_v6, %v4463_v11  ;;  %v4466_v49 = vsel %vm4344_vm0, %v4341_v23, 0.0 }
 0x5e0   :  { %v4278_v28 = vpop.permute.xlu1 %4277 }
 0x5e1   :  { %v4467_v40 = vadd.f32 %v4466_v49, %v4465_v56  ;;  %v4343_v16 = vmul.f32 %v4278_v28, %v3895_v44 }
 0x5e3   :  { %v4469_v3 = vadd.f32 %v4468_v54, %v4467_v40  ;;  %v4470_v33 = vsel %vm4344_vm0, %v4343_v16, 0.0 }
 0x5e5   :  { %v4471_v58 = vadd.f32 %v4470_v33, %v4469_v3 }
 0x5e7   :  { %v4472_v45 = vrot.slane %v4471_v58, 4 }
 0x5e9   :  { %v4473_v25 = vadd.f32 %v4472_v45, %v4471_v58 }
 0x5eb   :  { %v4474_v62 = vrot.slane %v4473_v25, 2 }
 0x5ed   :  { %v4475_v30 = vadd.f32 %v4474_v62, %v4473_v25 }
 0x5ef   :  { %v4476_v59 = vrot.slane %v4475_v30, 1 }
 0x5f1   :  { %v4477_v53 = vadd.f32 %v4476_v59, %v4475_v30 }
 0x5f3   :  { %v4488_v51 = vadd.f32 %v4487_v17, %v4477_v53 }
 0x5f5   :  { %4490 = vst.msk [vmem:[#allocation3] sm:$0x1] %vm4489_vm1, %v4488_v51 }
 0x5f6   :  { %4764 = shalt.err (!%p4761_p4)
}
 0x5f7   :  { %4500 = dma.vmem_to_hbm [thread:$0]  %s4498_s2, 16, %s10261_s5, [#allocation4]  }
 0x5f8   :  { %4773 = dma.done.wait [#allocation4], 16  }
 0x5f9   :  { %4774 = vsyncadd [#allocation4], 4294967280 }
 0x5fa   :  { %4504 = vsyncpa [#allocation4], 1 }

</bundles_post_ra>
